<compile_context>
chip_gen: v7x
topology: tpu7x:2x2x1
jax: 0.10.0
libtpu: 0.0.40
codegen_flags: <defaults>
</compile_context>

<pallas_src>
import jax
import jax.numpy as jnp
from jax.experimental import pallas as pl
from jax.experimental.pallas import tpu as pltpu

LRELU_SLOPE = 0.1   # nn.LeakyReLU(0.1)
IN_EPS = 1e-5       # nn.InstanceNorm2d default (affine=False, biased variance)


# ----------------------------------------------------------------------------
# Kernel 1: fused 3x3 conv (in-kernel im2col) + bias + LeakyReLU [+ InstanceNorm]
# ----------------------------------------------------------------------------
def _make_conv_kernel(H, W, Cin, Cout, with_norm):
    def kernel(xp_ref, w_ref, b_ref, o_ref):
        # im2col inside the kernel: 9 shifted slices of the padded VMEM tile,
        # each contracted against its (Cin, Cout) weight tap on the MXU.
        acc = jnp.zeros((H * W, Cout), jnp.float32)
        for kh in range(3):
            for kw in range(3):
                patch = xp_ref[0, kh:kh + H, kw:kw + W, :].reshape(H * W, Cin)
                acc = acc + jnp.dot(patch, w_ref[kh * 3 + kw],
                                    preferred_element_type=jnp.float32)
        acc = acc + b_ref[...]
        acc = jnp.where(acc >= 0, acc, LRELU_SLOPE * acc)          # LeakyReLU(0.1)
        if with_norm:                                              # InstanceNorm2d
            mean = jnp.mean(acc, axis=0, keepdims=True)            # per-channel
            var = jnp.mean(jnp.square(acc - mean), axis=0, keepdims=True)
            acc = (acc - mean) * jax.lax.rsqrt(var + IN_EPS)
        o_ref[...] = acc[None]                                     # (1, H*W, Cout)
    return kernel


def conv3x3_fused(x_nhwc, w9, b_row, *, with_norm):
    """Conv2d(3x3, stride 1, pad 1) + bias + LeakyReLU(0.1) [+ InstanceNorm2d],
    fused in one pallas_call.  Grid over batch ('parallel' -> both v7x cores)."""
    N, H, W, Cin = x_nhwc.shape
    Cout = w9.shape[-1]
    xp = jnp.pad(x_nhwc, ((0, 0), (1, 1), (1, 1), (0, 0)))         # tiny halo pad
    y = pl.pallas_call(
        _make_conv_kernel(H, W, Cin, Cout, with_norm),
        out_shape=jax.ShapeDtypeStruct((N, H * W, Cout), jnp.float32),
        grid=(N,),
        in_specs=[
            pl.BlockSpec((1, H + 2, W + 2, Cin), lambda n: (n, 0, 0, 0)),
            pl.BlockSpec((9, Cin, Cout), lambda n: (0, 0, 0)),
            pl.BlockSpec((1, Cout), lambda n: (0, 0)),
        ],
        out_specs=pl.BlockSpec((1, H * W, Cout), lambda n: (n, 0, 0)),
        compiler_params=pltpu.CompilerParams(
            dimension_semantics=("parallel",)),
    )(xp, w9, b_row)
    return y.reshape(N, H, W, Cout)


# ----------------------------------------------------------------------------
# Kernel 2: FC head with K-tiled reduction: relu(x@W1+b1)@W2+b2 -> softmax(dim=1)
# ----------------------------------------------------------------------------
def _head_kernel(x_ref, w1_ref, b1_ref, w2_ref, b2_ref, o_ref, acc_ref):
    k = pl.program_id(0)

    @pl.when(k == 0)
    def _init():
        acc_ref[...] = jnp.zeros_like(acc_ref)

    acc_ref[...] += jnp.dot(x_ref[...], w1_ref[...],
                            preferred_element_type=jnp.float32)

    @pl.when(k == pl.num_programs(0) - 1)
    def _finish():
        h = jnp.maximum(acc_ref[...] + b1_ref[...], 0.0)           # fch + ReLU
        logits = jnp.dot(h, w2_ref[...],
                         preferred_element_type=jnp.float32) + b2_ref[...]
        m = jnp.max(logits, axis=-1, keepdims=True)                # softmax dim=1
        e = jnp.exp(logits - m)
        o_ref[...] = e / jnp.sum(e, axis=-1, keepdims=True)


def mlp_head(x_flat, w1, b1_row, w2, b2_row):
    """w1 is pre-transposed/permuted (Din, Hh); the Din reduction is tiled over
    the grid so the weight streams through VMEM (no giant resident buffer)."""
    N, Din = x_flat.shape
    Hh = w1.shape[1]
    Dout = w2.shape[1]
    tk = min(4096, Din)
    while Din % tk:
        tk //= 2
    return pl.pallas_call(
        _head_kernel,
        out_shape=jax.ShapeDtypeStruct((N, Dout), jnp.float32),
        grid=(Din // tk,),
        in_specs=[
            pl.BlockSpec((N, tk), lambda k: (0, k)),
            pl.BlockSpec((tk, Hh), lambda k: (k, 0)),
            pl.BlockSpec((1, Hh), lambda k: (0, 0)),
            pl.BlockSpec((Hh, Dout), lambda k: (0, 0)),
            pl.BlockSpec((1, Dout), lambda k: (0, 0)),
        ],
        out_specs=pl.BlockSpec((N, Dout), lambda k: (0, 0)),
        scratch_shapes=[pltpu.VMEM((N, Hh), jnp.float32)],
        compiler_params=pltpu.CompilerParams(
            dimension_semantics=("arbitrary",)),
    )(x_flat, w1, b1_row, w2, b2_row)


# ----------------------------------------------------------------------------
# Parameter repacking (done ONCE, outside jit) and the forward pass
# ----------------------------------------------------------------------------
def prepare_params(p, in_shape):
    """Repack PyTorch-layout params into kernel layout (one-time, outside jit)."""
    H, W = in_shape

    def conv_w(w):                       # (Cout, Cin, 3, 3) -> (9, Cin, Cout)
        co, ci = w.shape[0], w.shape[1]
        return jnp.transpose(w, (2, 3, 1, 0)).reshape(9, ci, co)

    c_last = p['c4_w'].shape[0]          # 128
    hh = p['fch_w'].shape[0]
    # fch.weight columns are ordered c*(H*W)+hw (NCHW flatten); permute once to
    # hw*C+c (NHWC flatten) and pre-transpose to (Din, Hh).
    w1 = (p['fch_w'].reshape(hh, c_last, H * W)
          .transpose(0, 2, 1)
          .reshape(hh, H * W * c_last).T)
    return {
        'c1_w': conv_w(p['c1_w']), 'c1_b': p['c1_b'].reshape(1, -1),
        'c2_w': conv_w(p['c2_w']), 'c2_b': p['c2_b'].reshape(1, -1),
        'c3_w': conv_w(p['c3_w']), 'c3_b': p['c3_b'].reshape(1, -1),
        'c4_w': conv_w(p['c4_w']), 'c4_b': p['c4_b'].reshape(1, -1),
        'fch_w': w1,               'fch_b': p['fch_b'].reshape(1, -1),
        'fco_w': p['fco_w'].T,     'fco_b': p['fco_b'].reshape(1, -1),
    }


def task_classifier_forward(x_nchw, kp):
    x = jnp.transpose(x_nchw, (0, 2, 3, 1))        # NCHW -> NHWC, once (tiny)
    # convBlock1
    x = conv3x3_fused(x, kp['c1_w'], kp['c1_b'], with_norm=True)
    x = conv3x3_fused(x, kp['c2_w'], kp['c2_b'], with_norm=True)
    # convBlock2
    x = conv3x3_fused(x, kp['c3_w'], kp['c3_b'], with_norm=True)
    x = conv3x3_fused(x, kp['c4_w'], kp['c4_b'], with_norm=False)
    flat = x.reshape(x.shape[0], -1)               # NHWC flatten (bitcast); fc
    return mlp_head(flat, kp['fch_w'], kp['fch_b'],  # weights pre-permuted to
                    kp['fco_w'], kp['fco_b'])        # match this order


# ----------------------------------------------------------------------------
# Params, pure-JAX reference (PyTorch layout) and test harness
# ----------------------------------------------------------------------------
def init_params(key, in_shape=(16, 16), out_shape=8, h=32):
    ks = jax.random.split(key, 12)

    def w(k, shape, scale=0.05):
        return (scale * jax.random.normal(k, shape)).astype(jnp.float32)

    return {
        'c1_w': w(ks[0], (16, 3, 3, 3)),    'c1_b': w(ks[1], (16,)),
        'c2_w': w(ks[2], (32, 16, 3, 3)),   'c2_b': w(ks[3], (32,)),
        'c3_w': w(ks[4], (64, 32, 3, 3)),   'c3_b': w(ks[5], (64,)),
        'c4_w': w(ks[6], (128, 64, 3, 3)),  'c4_b': w(ks[7], (128,)),
        'fch_w': w(ks[8], (h, in_shape[0] * in_shape[1] * 128), 0.01),
        'fch_b': w(ks[9], (h,)),
        'fco_w': w(ks[10], (out_shape, h)), 'fco_b': w(ks[11], (out_shape,)),
    }


def reference_forward(x, p):
    """Plain-JAX re-implementation of the PyTorch forward (NCHW), f32."""
    hi = jax.lax.Precision.HIGHEST

    def conv(x, w, b):
        y = jax.lax.conv_general_dilated(
            x, w, window_strides=(1, 1), padding=((1, 1), (1, 1)),
            dimension_numbers=('NCHW', 'OIHW', 'NCHW'), precision=hi)
        return y + b[None, :, None, None]

    def lrelu(x):
        return jnp.where(x >= 0, x, LRELU_SLOPE * x)

    def inorm(x):
        m = jnp.mean(x, axis=(2, 3), keepdims=True)
        v = jnp.mean(jnp.square(x - m), axis=(2, 3), keepdims=True)
        return (x - m) * jax.lax.rsqrt(v + IN_EPS)

    x = inorm(lrelu(conv(x, p['c1_w'], p['c1_b'])))
    x = inorm(lrelu(conv(x, p['c2_w'], p['c2_b'])))
    x = inorm(lrelu(conv(x, p['c3_w'], p['c3_b'])))
    x = lrelu(conv(x, p['c4_w'], p['c4_b']))
    flat = x.reshape(x.shape[0], -1)
    h = jnp.maximum(jnp.dot(flat, p['fch_w'].T, precision=hi) + p['fch_b'], 0.0)
    logits = jnp.dot(h, p['fco_w'].T, precision=hi) + p['fco_b']
    return jax.nn.softmax(logits, axis=1)


if __name__ == "__main__":
    key = jax.random.PRNGKey(0)
    k_x, k_p = jax.random.split(key)

    in_shape = (16, 16)   # inShape
    out_shape = 8         # outShape (maxTasks)
    hidden = 32           # h (small for the test; module default is 300)

    x = jax.random.normal(k_x, (2, 3, in_shape[0], in_shape[1]), jnp.float32)
    torch_params = init_params(k_p, in_shape=in_shape, out_shape=out_shape,
                               h=hidden)
    kparams = prepare_params(torch_params, in_shape)   # one-time, outside jit

    fwd = jax.jit(task_classifier_forward)
    z = jax.block_until_ready(fwd(x, kparams))

    assert z.shape == (2, out_shape)
    assert bool(jnp.all(jnp.isfinite(z)))
    assert bool(jnp.allclose(jnp.sum(z, axis=1), 1.0, atol=1e-5))

    z_ref = reference_forward(x, torch_params)
    assert bool(jnp.allclose(z, z_ref, atol=2e-2)), \
        f"mismatch vs reference, max|diff|={float(jnp.max(jnp.abs(z - z_ref)))}"
    print("KERNEL_OK")
</pallas_src>

<mosaic_0001>
module attributes {stable_mosaic.version = 11 : i64} {
  func.func @kernel(%arg0: i32, %arg1: memref<1x18x18x3xf32, #tpu.memory_space<vmem>>, %arg2: memref<9x3x16xf32, #tpu.memory_space<vmem>>, %arg3: memref<1x16xf32, #tpu.memory_space<vmem>>, %arg4: memref<1x256x16xf32, #tpu.memory_space<vmem>>) attributes {dimension_semantics = [#tpu.dimension_semantics<parallel>], iteration_bounds = array<i64: 2>, scalar_prefetch = 0 : i64, scratch_operands = 0 : i64, tpu.core_type = #tpu.core_type<tc>, window_params = [{transform_indices = @transform_0, window_bounds = array<i64: 1, 18, 18, 3>}, {pipeline_mode = #tpu.pipeline_mode<synchronous>, transform_indices = @transform_1, window_bounds = array<i64: 9, 3, 16>}, {pipeline_mode = #tpu.pipeline_mode<synchronous>, transform_indices = @transform_2, window_bounds = array<i64: 1, 16>}, {transform_indices = @transform_3, window_bounds = array<i64: 1, 256, 16>}]} {
    %cst = arith.constant 0.000000e+00 : f32
    %0 = vector.broadcast %cst : f32 to vector<256x16xf32>
    %c0 = arith.constant 0 : index
    %c0_0 = arith.constant 0 : index
    %c0_1 = arith.constant 0 : index
    %c0_2 = arith.constant 0 : index
    %1 = vector.load %arg1[%c0, %c0_0, %c0_1, %c0_2] : memref<1x18x18x3xf32, #tpu.memory_space<vmem>>, vector<1x16x16x3xf32>
    %2 = vector.shape_cast %1 : vector<1x16x16x3xf32> to vector<16x16x3xf32>
    %3 = vector.shape_cast %2 : vector<16x16x3xf32> to vector<256x3xf32>
    %c0_3 = arith.constant 0 : index
    %c0_4 = arith.constant 0 : index
    %c0_5 = arith.constant 0 : index
    %4 = vector.load %arg2[%c0_3, %c0_4, %c0_5] : memref<9x3x16xf32, #tpu.memory_space<vmem>>, vector<1x3x16xf32>
    %5 = vector.shape_cast %4 : vector<1x3x16xf32> to vector<3x16xf32>
    %cst_6 = arith.constant dense<0.000000e+00> : vector<256x16xf32>
    %6 = tpu.matmul %3, %5, %cst_6 {dimension_numbers = #tpu.dot_dimension_numbers<[1], [0], [0], [1], [0, 0, 1, 1], [], []>} : vector<256x3xf32>, vector<3x16xf32>, vector<256x16xf32> -> vector<256x16xf32>
    %7 = arith.addf %0, %6 : vector<256x16xf32>
    %c0_7 = arith.constant 0 : index
    %c0_8 = arith.constant 0 : index
    %c1 = arith.constant 1 : index
    %c0_9 = arith.constant 0 : index
    %8 = vector.load %arg1[%c0_7, %c0_8, %c1, %c0_9] : memref<1x18x18x3xf32, #tpu.memory_space<vmem>>, vector<1x16x16x3xf32>
    %9 = vector.shape_cast %8 : vector<1x16x16x3xf32> to vector<16x16x3xf32>
    %10 = vector.shape_cast %9 : vector<16x16x3xf32> to vector<256x3xf32>
    %c1_10 = arith.constant 1 : index
    %c0_11 = arith.constant 0 : index
    %c0_12 = arith.constant 0 : index
    %11 = vector.load %arg2[%c1_10, %c0_11, %c0_12] : memref<9x3x16xf32, #tpu.memory_space<vmem>>, vector<1x3x16xf32>
    %12 = vector.shape_cast %11 : vector<1x3x16xf32> to vector<3x16xf32>
    %cst_13 = arith.constant dense<0.000000e+00> : vector<256x16xf32>
    %13 = tpu.matmul %10, %12, %cst_13 {dimension_numbers = #tpu.dot_dimension_numbers<[1], [0], [0], [1], [0, 0, 1, 1], [], []>} : vector<256x3xf32>, vector<3x16xf32>, vector<256x16xf32> -> vector<256x16xf32>
    %14 = arith.addf %7, %13 : vector<256x16xf32>
    %c0_14 = arith.constant 0 : index
    %c0_15 = arith.constant 0 : index
    %c2 = arith.constant 2 : index
    %c0_16 = arith.constant 0 : index
    %15 = vector.load %arg1[%c0_14, %c0_15, %c2, %c0_16] : memref<1x18x18x3xf32, #tpu.memory_space<vmem>>, vector<1x16x16x3xf32>
    %16 = vector.shape_cast %15 : vector<1x16x16x3xf32> to vector<16x16x3xf32>
    %17 = vector.shape_cast %16 : vector<16x16x3xf32> to vector<256x3xf32>
    %c2_17 = arith.constant 2 : index
    %c0_18 = arith.constant 0 : index
    %c0_19 = arith.constant 0 : index
    %18 = vector.load %arg2[%c2_17, %c0_18, %c0_19] : memref<9x3x16xf32, #tpu.memory_space<vmem>>, vector<1x3x16xf32>
    %19 = vector.shape_cast %18 : vector<1x3x16xf32> to vector<3x16xf32>
    %cst_20 = arith.constant dense<0.000000e+00> : vector<256x16xf32>
    %20 = tpu.matmul %17, %19, %cst_20 {dimension_numbers = #tpu.dot_dimension_numbers<[1], [0], [0], [1], [0, 0, 1, 1], [], []>} : vector<256x3xf32>, vector<3x16xf32>, vector<256x16xf32> -> vector<256x16xf32>
    %21 = arith.addf %14, %20 : vector<256x16xf32>
    %c0_21 = arith.constant 0 : index
    %c1_22 = arith.constant 1 : index
    %c0_23 = arith.constant 0 : index
    %c0_24 = arith.constant 0 : index
    %22 = vector.load %arg1[%c0_21, %c1_22, %c0_23, %c0_24] : memref<1x18x18x3xf32, #tpu.memory_space<vmem>>, vector<1x16x16x3xf32>
    %23 = vector.shape_cast %22 : vector<1x16x16x3xf32> to vector<16x16x3xf32>
    %24 = vector.shape_cast %23 : vector<16x16x3xf32> to vector<256x3xf32>
    %c3 = arith.constant 3 : index
    %c0_25 = arith.constant 0 : index
    %c0_26 = arith.constant 0 : index
    %25 = vector.load %arg2[%c3, %c0_25, %c0_26] : memref<9x3x16xf32, #tpu.memory_space<vmem>>, vector<1x3x16xf32>
    %26 = vector.shape_cast %25 : vector<1x3x16xf32> to vector<3x16xf32>
    %cst_27 = arith.constant dense<0.000000e+00> : vector<256x16xf32>
    %27 = tpu.matmul %24, %26, %cst_27 {dimension_numbers = #tpu.dot_dimension_numbers<[1], [0], [0], [1], [0, 0, 1, 1], [], []>} : vector<256x3xf32>, vector<3x16xf32>, vector<256x16xf32> -> vector<256x16xf32>
    %28 = arith.addf %21, %27 : vector<256x16xf32>
    %c0_28 = arith.constant 0 : index
    %c1_29 = arith.constant 1 : index
    %c1_30 = arith.constant 1 : index
    %c0_31 = arith.constant 0 : index
    %29 = vector.load %arg1[%c0_28, %c1_29, %c1_30, %c0_31] : memref<1x18x18x3xf32, #tpu.memory_space<vmem>>, vector<1x16x16x3xf32>
    %30 = vector.shape_cast %29 : vector<1x16x16x3xf32> to vector<16x16x3xf32>
    %31 = vector.shape_cast %30 : vector<16x16x3xf32> to vector<256x3xf32>
    %c4 = arith.constant 4 : index
    %c0_32 = arith.constant 0 : index
    %c0_33 = arith.constant 0 : index
    %32 = vector.load %arg2[%c4, %c0_32, %c0_33] : memref<9x3x16xf32, #tpu.memory_space<vmem>>, vector<1x3x16xf32>
    %33 = vector.shape_cast %32 : vector<1x3x16xf32> to vector<3x16xf32>
    %cst_34 = arith.constant dense<0.000000e+00> : vector<256x16xf32>
    %34 = tpu.matmul %31, %33, %cst_34 {dimension_numbers = #tpu.dot_dimension_numbers<[1], [0], [0], [1], [0, 0, 1, 1], [], []>} : vector<256x3xf32>, vector<3x16xf32>, vector<256x16xf32> -> vector<256x16xf32>
    %35 = arith.addf %28, %34 : vector<256x16xf32>
    %c0_35 = arith.constant 0 : index
    %c1_36 = arith.constant 1 : index
    %c2_37 = arith.constant 2 : index
    %c0_38 = arith.constant 0 : index
    %36 = vector.load %arg1[%c0_35, %c1_36, %c2_37, %c0_38] : memref<1x18x18x3xf32, #tpu.memory_space<vmem>>, vector<1x16x16x3xf32>
    %37 = vector.shape_cast %36 : vector<1x16x16x3xf32> to vector<16x16x3xf32>
    %38 = vector.shape_cast %37 : vector<16x16x3xf32> to vector<256x3xf32>
    %c5 = arith.constant 5 : index
    %c0_39 = arith.constant 0 : index
    %c0_40 = arith.constant 0 : index
    %39 = vector.load %arg2[%c5, %c0_39, %c0_40] : memref<9x3x16xf32, #tpu.memory_space<vmem>>, vector<1x3x16xf32>
    %40 = vector.shape_cast %39 : vector<1x3x16xf32> to vector<3x16xf32>
    %cst_41 = arith.constant dense<0.000000e+00> : vector<256x16xf32>
    %41 = tpu.matmul %38, %40, %cst_41 {dimension_numbers = #tpu.dot_dimension_numbers<[1], [0], [0], [1], [0, 0, 1, 1], [], []>} : vector<256x3xf32>, vector<3x16xf32>, vector<256x16xf32> -> vector<256x16xf32>
    %42 = arith.addf %35, %41 : vector<256x16xf32>
    %c0_42 = arith.constant 0 : index
    %c2_43 = arith.constant 2 : index
    %c0_44 = arith.constant 0 : index
    %c0_45 = arith.constant 0 : index
    %43 = vector.load %arg1[%c0_42, %c2_43, %c0_44, %c0_45] : memref<1x18x18x3xf32, #tpu.memory_space<vmem>>, vector<1x16x16x3xf32>
    %44 = vector.shape_cast %43 : vector<1x16x16x3xf32> to vector<16x16x3xf32>
    %45 = vector.shape_cast %44 : vector<16x16x3xf32> to vector<256x3xf32>
    %c6 = arith.constant 6 : index
    %c0_46 = arith.constant 0 : index
    %c0_47 = arith.constant 0 : index
    %46 = vector.load %arg2[%c6, %c0_46, %c0_47] : memref<9x3x16xf32, #tpu.memory_space<vmem>>, vector<1x3x16xf32>
    %47 = vector.shape_cast %46 : vector<1x3x16xf32> to vector<3x16xf32>
    %cst_48 = arith.constant dense<0.000000e+00> : vector<256x16xf32>
    %48 = tpu.matmul %45, %47, %cst_48 {dimension_numbers = #tpu.dot_dimension_numbers<[1], [0], [0], [1], [0, 0, 1, 1], [], []>} : vector<256x3xf32>, vector<3x16xf32>, vector<256x16xf32> -> vector<256x16xf32>
    %49 = arith.addf %42, %48 : vector<256x16xf32>
    %c0_49 = arith.constant 0 : index
    %c2_50 = arith.constant 2 : index
    %c1_51 = arith.constant 1 : index
    %c0_52 = arith.constant 0 : index
    %50 = vector.load %arg1[%c0_49, %c2_50, %c1_51, %c0_52] : memref<1x18x18x3xf32, #tpu.memory_space<vmem>>, vector<1x16x16x3xf32>
    %51 = vector.shape_cast %50 : vector<1x16x16x3xf32> to vector<16x16x3xf32>
    %52 = vector.shape_cast %51 : vector<16x16x3xf32> to vector<256x3xf32>
    %c7 = arith.constant 7 : index
    %c0_53 = arith.constant 0 : index
    %c0_54 = arith.constant 0 : index
    %53 = vector.load %arg2[%c7, %c0_53, %c0_54] : memref<9x3x16xf32, #tpu.memory_space<vmem>>, vector<1x3x16xf32>
    %54 = vector.shape_cast %53 : vector<1x3x16xf32> to vector<3x16xf32>
    %cst_55 = arith.constant dense<0.000000e+00> : vector<256x16xf32>
    %55 = tpu.matmul %52, %54, %cst_55 {dimension_numbers = #tpu.dot_dimension_numbers<[1], [0], [0], [1], [0, 0, 1, 1], [], []>} : vector<256x3xf32>, vector<3x16xf32>, vector<256x16xf32> -> vector<256x16xf32>
    %56 = arith.addf %49, %55 : vector<256x16xf32>
    %c0_56 = arith.constant 0 : index
    %c2_57 = arith.constant 2 : index
    %c2_58 = arith.constant 2 : index
    %c0_59 = arith.constant 0 : index
    %57 = vector.load %arg1[%c0_56, %c2_57, %c2_58, %c0_59] : memref<1x18x18x3xf32, #tpu.memory_space<vmem>>, vector<1x16x16x3xf32>
    %58 = vector.shape_cast %57 : vector<1x16x16x3xf32> to vector<16x16x3xf32>
    %59 = vector.shape_cast %58 : vector<16x16x3xf32> to vector<256x3xf32>
    %c8 = arith.constant 8 : index
    %c0_60 = arith.constant 0 : index
    %c0_61 = arith.constant 0 : index
    %60 = vector.load %arg2[%c8, %c0_60, %c0_61] : memref<9x3x16xf32, #tpu.memory_space<vmem>>, vector<1x3x16xf32>
    %61 = vector.shape_cast %60 : vector<1x3x16xf32> to vector<3x16xf32>
    %cst_62 = arith.constant dense<0.000000e+00> : vector<256x16xf32>
    %62 = tpu.matmul %59, %61, %cst_62 {dimension_numbers = #tpu.dot_dimension_numbers<[1], [0], [0], [1], [0, 0, 1, 1], [], []>} : vector<256x3xf32>, vector<3x16xf32>, vector<256x16xf32> -> vector<256x16xf32>
    %63 = arith.addf %56, %62 : vector<256x16xf32>
    %c0_63 = arith.constant 0 : index
    %c0_64 = arith.constant 0 : index
    %64 = vector.load %arg3[%c0_63, %c0_64] : memref<1x16xf32, #tpu.memory_space<vmem>>, vector<1x16xf32>
    %65 = vector.broadcast %64 : vector<1x16xf32> to vector<256x16xf32>
    %66 = arith.addf %63, %65 : vector<256x16xf32>
    %cst_65 = arith.constant 0.000000e+00 : f32
    %67 = vector.broadcast %cst_65 : f32 to vector<256x16xf32>
    %68 = arith.cmpf oge, %66, %67 : vector<256x16xf32>
    %cst_66 = arith.constant 1.000000e-01 : f32
    %69 = vector.broadcast %cst_66 : f32 to vector<256x16xf32>
    %70 = arith.mulf %69, %66 : vector<256x16xf32>
    %71 = arith.select %68, %66, %70 : vector<256x16xi1>, vector<256x16xf32>
    %cst_67 = arith.constant dense<0.000000e+00> : vector<16xf32>
    %72 = vector.multi_reduction <add>, %71, %cst_67 [0] : vector<256x16xf32> to vector<16xf32>
    %73 = vector.shape_cast %72 : vector<16xf32> to vector<1x16xf32>
    %cst_68 = arith.constant 2.560000e+02 : f32
    %74 = vector.broadcast %cst_68 : f32 to vector<1x16xf32>
    %75 = arith.divf %73, %74 : vector<1x16xf32>
    %76 = vector.broadcast %75 : vector<1x16xf32> to vector<256x16xf32>
    %77 = arith.subf %71, %76 : vector<256x16xf32>
    %78 = arith.mulf %77, %77 : vector<256x16xf32>
    %cst_69 = arith.constant dense<0.000000e+00> : vector<16xf32>
    %79 = vector.multi_reduction <add>, %78, %cst_69 [0] : vector<256x16xf32> to vector<16xf32>
    %80 = vector.shape_cast %79 : vector<16xf32> to vector<1x16xf32>
    %cst_70 = arith.constant 2.560000e+02 : f32
    %81 = vector.broadcast %cst_70 : f32 to vector<1x16xf32>
    %82 = arith.divf %80, %81 : vector<1x16xf32>
    %83 = vector.broadcast %75 : vector<1x16xf32> to vector<256x16xf32>
    %84 = arith.subf %71, %83 : vector<256x16xf32>
    %cst_71 = arith.constant 9.99999974E-6 : f32
    %85 = vector.broadcast %cst_71 : f32 to vector<1x16xf32>
    %86 = arith.addf %82, %85 : vector<1x16xf32>
    %87 = math.rsqrt %86 : vector<1x16xf32>
    %88 = vector.broadcast %87 : vector<1x16xf32> to vector<256x16xf32>
    %89 = arith.mulf %84, %88 : vector<256x16xf32>
    %90 = vector.shape_cast %89 : vector<256x16xf32> to vector<1x256x16xf32>
    %c0_72 = arith.constant 0 : index
    %c0_73 = arith.constant 0 : index
    %c0_74 = arith.constant 0 : index
    %91 = vector.load %arg4[%c0_72, %c0_73, %c0_74] : memref<1x256x16xf32, #tpu.memory_space<vmem>>, vector<1x256x16xf32>
    tpu.vector_store %arg4[%c0_72, %c0_73, %c0_74], %90 {strides = array<i32>} : memref<1x256x16xf32, #tpu.memory_space<vmem>>, vector<1x256x16xf32>,
    return
  }
  func.func @transform_0(%arg0: i32) -> (i32, i32, i32, i32) {
    %c0_i32 = arith.constant 0 : i32
    %c0_i32_0 = arith.constant 0 : i32
    %c0_i32_1 = arith.constant 0 : i32
    %c0_i32_2 = arith.constant 0 : i32
    return %arg0, %c0_i32, %c0_i32_0, %c0_i32_1 : i32, i32, i32, i32
  }
  func.func @transform_1(%arg0: i32) -> (i32, i32, i32) {
    %c0_i32 = arith.constant 0 : i32
    %c0_i32_0 = arith.constant 0 : i32
    %c0_i32_1 = arith.constant 0 : i32
    %c0_i32_2 = arith.constant 0 : i32
    return %c0_i32, %c0_i32_0, %c0_i32_1 : i32, i32, i32
  }
  func.func @transform_2(%arg0: i32) -> (i32, i32) {
    %c0_i32 = arith.constant 0 : i32
    %c0_i32_0 = arith.constant 0 : i32
    %c0_i32_1 = arith.constant 0 : i32
    return %c0_i32, %c0_i32_0 : i32, i32
  }
  func.func @transform_3(%arg0: i32) -> (i32, i32, i32) {
    %c0_i32 = arith.constant 0 : i32
    %c0_i32_0 = arith.constant 0 : i32
    %c0_i32_1 = arith.constant 0 : i32
    return %arg0, %c0_i32, %c0_i32_0 : i32, i32, i32
  }
}

module attributes {stable_mosaic.version = 11 : i64} {
  func.func @kernel(%arg0: i32, %arg1: memref<1x18x18x16xf32, #tpu.memory_space<vmem>>, %arg2: memref<9x16x32xf32, #tpu.memory_space<vmem>>, %arg3: memref<1x32xf32, #tpu.memory_space<vmem>>, %arg4: memref<1x256x32xf32, #tpu.memory_space<vmem>>) attributes {dimension_semantics = [#tpu.dimension_semantics<parallel>], iteration_bounds = array<i64: 2>, scalar_prefetch = 0 : i64, scratch_operands = 0 : i64, tpu.core_type = #tpu.core_type<tc>, window_params = [{transform_indices = @transform_0, window_bounds = array<i64: 1, 18, 18, 16>}, {pipeline_mode = #tpu.pipeline_mode<synchronous>, transform_indices = @transform_1, window_bounds = array<i64: 9, 16, 32>}, {pipeline_mode = #tpu.pipeline_mode<synchronous>, transform_indices = @transform_2, window_bounds = array<i64: 1, 32>}, {transform_indices = @transform_3, window_bounds = array<i64: 1, 256, 32>}]} {
    %cst = arith.constant 0.000000e+00 : f32
    %0 = vector.broadcast %cst : f32 to vector<256x32xf32>
    %c0 = arith.constant 0 : index
    %c0_0 = arith.constant 0 : index
    %c0_1 = arith.constant 0 : index
    %c0_2 = arith.constant 0 : index
    %1 = vector.load %arg1[%c0, %c0_0, %c0_1, %c0_2] : memref<1x18x18x16xf32, #tpu.memory_space<vmem>>, vector<1x16x16x16xf32>
    %2 = vector.shape_cast %1 : vector<1x16x16x16xf32> to vector<16x16x16xf32>
    %3 = vector.shape_cast %2 : vector<16x16x16xf32> to vector<256x16xf32>
    %c0_3 = arith.constant 0 : index
    %c0_4 = arith.constant 0 : index
    %c0_5 = arith.constant 0 : index
    %4 = vector.load %arg2[%c0_3, %c0_4, %c0_5] : memref<9x16x32xf32, #tpu.memory_space<vmem>>, vector<1x16x32xf32>
    %5 = vector.shape_cast %4 : vector<1x16x32xf32> to vector<16x32xf32>
    %cst_6 = arith.constant dense<0.000000e+00> : vector<256x32xf32>
    %6 = tpu.matmul %3, %5, %cst_6 {dimension_numbers = #tpu.dot_dimension_numbers<[1], [0], [0], [1], [0, 0, 1, 1], [], []>} : vector<256x16xf32>, vector<16x32xf32>, vector<256x32xf32> -> vector<256x32xf32>
    %7 = arith.addf %0, %6 : vector<256x32xf32>
    %c0_7 = arith.constant 0 : index
    %c0_8 = arith.constant 0 : index
    %c1 = arith.constant 1 : index
    %c0_9 = arith.constant 0 : index
    %8 = vector.load %arg1[%c0_7, %c0_8, %c1, %c0_9] : memref<1x18x18x16xf32, #tpu.memory_space<vmem>>, vector<1x16x16x16xf32>
    %9 = vector.shape_cast %8 : vector<1x16x16x16xf32> to vector<16x16x16xf32>
    %10 = vector.shape_cast %9 : vector<16x16x16xf32> to vector<256x16xf32>
    %c1_10 = arith.constant 1 : index
    %c0_11 = arith.constant 0 : index
    %c0_12 = arith.constant 0 : index
    %11 = vector.load %arg2[%c1_10, %c0_11, %c0_12] : memref<9x16x32xf32, #tpu.memory_space<vmem>>, vector<1x16x32xf32>
    %12 = vector.shape_cast %11 : vector<1x16x32xf32> to vector<16x32xf32>
    %cst_13 = arith.constant dense<0.000000e+00> : vector<256x32xf32>
    %13 = tpu.matmul %10, %12, %cst_13 {dimension_numbers = #tpu.dot_dimension_numbers<[1], [0], [0], [1], [0, 0, 1, 1], [], []>} : vector<256x16xf32>, vector<16x32xf32>, vector<256x32xf32> -> vector<256x32xf32>
    %14 = arith.addf %7, %13 : vector<256x32xf32>
    %c0_14 = arith.constant 0 : index
    %c0_15 = arith.constant 0 : index
    %c2 = arith.constant 2 : index
    %c0_16 = arith.constant 0 : index
    %15 = vector.load %arg1[%c0_14, %c0_15, %c2, %c0_16] : memref<1x18x18x16xf32, #tpu.memory_space<vmem>>, vector<1x16x16x16xf32>
    %16 = vector.shape_cast %15 : vector<1x16x16x16xf32> to vector<16x16x16xf32>
    %17 = vector.shape_cast %16 : vector<16x16x16xf32> to vector<256x16xf32>
    %c2_17 = arith.constant 2 : index
    %c0_18 = arith.constant 0 : index
    %c0_19 = arith.constant 0 : index
    %18 = vector.load %arg2[%c2_17, %c0_18, %c0_19] : memref<9x16x32xf32, #tpu.memory_space<vmem>>, vector<1x16x32xf32>
    %19 = vector.shape_cast %18 : vector<1x16x32xf32> to vector<16x32xf32>
    %cst_20 = arith.constant dense<0.000000e+00> : vector<256x32xf32>
    %20 = tpu.matmul %17, %19, %cst_20 {dimension_numbers = #tpu.dot_dimension_numbers<[1], [0], [0], [1], [0, 0, 1, 1], [], []>} : vector<256x16xf32>, vector<16x32xf32>, vector<256x32xf32> -> vector<256x32xf32>
    %21 = arith.addf %14, %20 : vector<256x32xf32>
    %c0_21 = arith.constant 0 : index
    %c1_22 = arith.constant 1 : index
    %c0_23 = arith.constant 0 : index
    %c0_24 = arith.constant 0 : index
    %22 = vector.load %arg1[%c0_21, %c1_22, %c0_23, %c0_24] : memref<1x18x18x16xf32, #tpu.memory_space<vmem>>, vector<1x16x16x16xf32>
    %23 = vector.shape_cast %22 : vector<1x16x16x16xf32> to vector<16x16x16xf32>
    %24 = vector.shape_cast %23 : vector<16x16x16xf32> to vector<256x16xf32>
    %c3 = arith.constant 3 : index
    %c0_25 = arith.constant 0 : index
    %c0_26 = arith.constant 0 : index
    %25 = vector.load %arg2[%c3, %c0_25, %c0_26] : memref<9x16x32xf32, #tpu.memory_space<vmem>>, vector<1x16x32xf32>
    %26 = vector.shape_cast %25 : vector<1x16x32xf32> to vector<16x32xf32>
    %cst_27 = arith.constant dense<0.000000e+00> : vector<256x32xf32>
    %27 = tpu.matmul %24, %26, %cst_27 {dimension_numbers = #tpu.dot_dimension_numbers<[1], [0], [0], [1], [0, 0, 1, 1], [], []>} : vector<256x16xf32>, vector<16x32xf32>, vector<256x32xf32> -> vector<256x32xf32>
    %28 = arith.addf %21, %27 : vector<256x32xf32>
    %c0_28 = arith.constant 0 : index
    %c1_29 = arith.constant 1 : index
    %c1_30 = arith.constant 1 : index
    %c0_31 = arith.constant 0 : index
    %29 = vector.load %arg1[%c0_28, %c1_29, %c1_30, %c0_31] : memref<1x18x18x16xf32, #tpu.memory_space<vmem>>, vector<1x16x16x16xf32>
    %30 = vector.shape_cast %29 : vector<1x16x16x16xf32> to vector<16x16x16xf32>
    %31 = vector.shape_cast %30 : vector<16x16x16xf32> to vector<256x16xf32>
    %c4 = arith.constant 4 : index
    %c0_32 = arith.constant 0 : index
    %c0_33 = arith.constant 0 : index
    %32 = vector.load %arg2[%c4, %c0_32, %c0_33] : memref<9x16x32xf32, #tpu.memory_space<vmem>>, vector<1x16x32xf32>
    %33 = vector.shape_cast %32 : vector<1x16x32xf32> to vector<16x32xf32>
    %cst_34 = arith.constant dense<0.000000e+00> : vector<256x32xf32>
    %34 = tpu.matmul %31, %33, %cst_34 {dimension_numbers = #tpu.dot_dimension_numbers<[1], [0], [0], [1], [0, 0, 1, 1], [], []>} : vector<256x16xf32>, vector<16x32xf32>, vector<256x32xf32> -> vector<256x32xf32>
    %35 = arith.addf %28, %34 : vector<256x32xf32>
    %c0_35 = arith.constant 0 : index
    %c1_36 = arith.constant 1 : index
    %c2_37 = arith.constant 2 : index
    %c0_38 = arith.constant 0 : index
    %36 = vector.load %arg1[%c0_35, %c1_36, %c2_37, %c0_38] : memref<1x18x18x16xf32, #tpu.memory_space<vmem>>, vector<1x16x16x16xf32>
    %37 = vector.shape_cast %36 : vector<1x16x16x16xf32> to vector<16x16x16xf32>
    %38 = vector.shape_cast %37 : vector<16x16x16xf32> to vector<256x16xf32>
    %c5 = arith.constant 5 : index
    %c0_39 = arith.constant 0 : index
    %c0_40 = arith.constant 0 : index
    %39 = vector.load %arg2[%c5, %c0_39, %c0_40] : memref<9x16x32xf32, #tpu.memory_space<vmem>>, vector<1x16x32xf32>
    %40 = vector.shape_cast %39 : vector<1x16x32xf32> to vector<16x32xf32>
    %cst_41 = arith.constant dense<0.000000e+00> : vector<256x32xf32>
    %41 = tpu.matmul %38, %40, %cst_41 {dimension_numbers = #tpu.dot_dimension_numbers<[1], [0], [0], [1], [0, 0, 1, 1], [], []>} : vector<256x16xf32>, vector<16x32xf32>, vector<256x32xf32> -> vector<256x32xf32>
    %42 = arith.addf %35, %41 : vector<256x32xf32>
    %c0_42 = arith.constant 0 : index
    %c2_43 = arith.constant 2 : index
    %c0_44 = arith.constant 0 : index
    %c0_45 = arith.constant 0 : index
    %43 = vector.load %arg1[%c0_42, %c2_43, %c0_44, %c0_45] : memref<1x18x18x16xf32, #tpu.memory_space<vmem>>, vector<1x16x16x16xf32>
    %44 = vector.shape_cast %43 : vector<1x16x16x16xf32> to vector<16x16x16xf32>
    %45 = vector.shape_cast %44 : vector<16x16x16xf32> to vector<256x16xf32>
    %c6 = arith.constant 6 : index
    %c0_46 = arith.constant 0 : index
    %c0_47 = arith.constant 0 : index
    %46 = vector.load %arg2[%c6, %c0_46, %c0_47] : memref<9x16x32xf32, #tpu.memory_space<vmem>>, vector<1x16x32xf32>
    %47 = vector.shape_cast %46 : vector<1x16x32xf32> to vector<16x32xf32>
    %cst_48 = arith.constant dense<0.000000e+00> : vector<256x32xf32>
    %48 = tpu.matmul %45, %47, %cst_48 {dimension_numbers = #tpu.dot_dimension_numbers<[1], [0], [0], [1], [0, 0, 1, 1], [], []>} : vector<256x16xf32>, vector<16x32xf32>, vector<256x32xf32> -> vector<256x32xf32>
    %49 = arith.addf %42, %48 : vector<256x32xf32>
    %c0_49 = arith.constant 0 : index
    %c2_50 = arith.constant 2 : index
    %c1_51 = arith.constant 1 : index
    %c0_52 = arith.constant 0 : index
    %50 = vector.load %arg1[%c0_49, %c2_50, %c1_51, %c0_52] : memref<1x18x18x16xf32, #tpu.memory_space<vmem>>, vector<1x16x16x16xf32>
    %51 = vector.shape_cast %50 : vector<1x16x16x16xf32> to vector<16x16x16xf32>
    %52 = vector.shape_cast %51 : vector<16x16x16xf32> to vector<256x16xf32>
    %c7 = arith.constant 7 : index
    %c0_53 = arith.constant 0 : index
    %c0_54 = arith.constant 0 : index
    %53 = vector.load %arg2[%c7, %c0_53, %c0_54] : memref<9x16x32xf32, #tpu.memory_space<vmem>>, vector<1x16x32xf32>
    %54 = vector.shape_cast %53 : vector<1x16x32xf32> to vector<16x32xf32>
    %cst_55 = arith.constant dense<0.000000e+00> : vector<256x32xf32>
    %55 = tpu.matmul %52, %54, %cst_55 {dimension_numbers = #tpu.dot_dimension_numbers<[1], [0], [0], [1], [0, 0, 1, 1], [], []>} : vector<256x16xf32>, vector<16x32xf32>, vector<256x32xf32> -> vector<256x32xf32>
    %56 = arith.addf %49, %55 : vector<256x32xf32>
    %c0_56 = arith.constant 0 : index
    %c2_57 = arith.constant 2 : index
    %c2_58 = arith.constant 2 : index
    %c0_59 = arith.constant 0 : index
    %57 = vector.load %arg1[%c0_56, %c2_57, %c2_58, %c0_59] : memref<1x18x18x16xf32, #tpu.memory_space<vmem>>, vector<1x16x16x16xf32>
    %58 = vector.shape_cast %57 : vector<1x16x16x16xf32> to vector<16x16x16xf32>
    %59 = vector.shape_cast %58 : vector<16x16x16xf32> to vector<256x16xf32>
    %c8 = arith.constant 8 : index
    %c0_60 = arith.constant 0 : index
    %c0_61 = arith.constant 0 : index
    %60 = vector.load %arg2[%c8, %c0_60, %c0_61] : memref<9x16x32xf32, #tpu.memory_space<vmem>>, vector<1x16x32xf32>
    %61 = vector.shape_cast %60 : vector<1x16x32xf32> to vector<16x32xf32>
    %cst_62 = arith.constant dense<0.000000e+00> : vector<256x32xf32>
    %62 = tpu.matmul %59, %61, %cst_62 {dimension_numbers = #tpu.dot_dimension_numbers<[1], [0], [0], [1], [0, 0, 1, 1], [], []>} : vector<256x16xf32>, vector<16x32xf32>, vector<256x32xf32> -> vector<256x32xf32>
    %63 = arith.addf %56, %62 : vector<256x32xf32>
    %c0_63 = arith.constant 0 : index
    %c0_64 = arith.constant 0 : index
    %64 = vector.load %arg3[%c0_63, %c0_64] : memref<1x32xf32, #tpu.memory_space<vmem>>, vector<1x32xf32>
    %65 = vector.broadcast %64 : vector<1x32xf32> to vector<256x32xf32>
    %66 = arith.addf %63, %65 : vector<256x32xf32>
    %cst_65 = arith.constant 0.000000e+00 : f32
    %67 = vector.broadcast %cst_65 : f32 to vector<256x32xf32>
    %68 = arith.cmpf oge, %66, %67 : vector<256x32xf32>
    %cst_66 = arith.constant 1.000000e-01 : f32
    %69 = vector.broadcast %cst_66 : f32 to vector<256x32xf32>
    %70 = arith.mulf %69, %66 : vector<256x32xf32>
    %71 = arith.select %68, %66, %70 : vector<256x32xi1>, vector<256x32xf32>
    %cst_67 = arith.constant dense<0.000000e+00> : vector<32xf32>
    %72 = vector.multi_reduction <add>, %71, %cst_67 [0] : vector<256x32xf32> to vector<32xf32>
    %73 = vector.shape_cast %72 : vector<32xf32> to vector<1x32xf32>
    %cst_68 = arith.constant 2.560000e+02 : f32
    %74 = vector.broadcast %cst_68 : f32 to vector<1x32xf32>
    %75 = arith.divf %73, %74 : vector<1x32xf32>
    %76 = vector.broadcast %75 : vector<1x32xf32> to vector<256x32xf32>
    %77 = arith.subf %71, %76 : vector<256x32xf32>
    %78 = arith.mulf %77, %77 : vector<256x32xf32>
    %cst_69 = arith.constant dense<0.000000e+00> : vector<32xf32>
    %79 = vector.multi_reduction <add>, %78, %cst_69 [0] : vector<256x32xf32> to vector<32xf32>
    %80 = vector.shape_cast %79 : vector<32xf32> to vector<1x32xf32>
    %cst_70 = arith.constant 2.560000e+02 : f32
    %81 = vector.broadcast %cst_70 : f32 to vector<1x32xf32>
    %82 = arith.divf %80, %81 : vector<1x32xf32>
    %83 = vector.broadcast %75 : vector<1x32xf32> to vector<256x32xf32>
    %84 = arith.subf %71, %83 : vector<256x32xf32>
    %cst_71 = arith.constant 9.99999974E-6 : f32
    %85 = vector.broadcast %cst_71 : f32 to vector<1x32xf32>
    %86 = arith.addf %82, %85 : vector<1x32xf32>
    %87 = math.rsqrt %86 : vector<1x32xf32>
    %88 = vector.broadcast %87 : vector<1x32xf32> to vector<256x32xf32>
    %89 = arith.mulf %84, %88 : vector<256x32xf32>
    %90 = vector.shape_cast %89 : vector<256x32xf32> to vector<1x256x32xf32>
    %c0_72 = arith.constant 0 : index
    %c0_73 = arith.constant 0 : index
    %c0_74 = arith.constant 0 : index
    %91 = vector.load %arg4[%c0_72, %c0_73, %c0_74] : memref<1x256x32xf32, #tpu.memory_space<vmem>>, vector<1x256x32xf32>
    tpu.vector_store %arg4[%c0_72, %c0_73, %c0_74], %90 {strides = array<i32>} : memref<1x256x32xf32, #tpu.memory_space<vmem>>, vector<1x256x32xf32>,
    return
  }
  func.func @transform_0(%arg0: i32) -> (i32, i32, i32, i32) {
    %c0_i32 = arith.constant 0 : i32
    %c0_i32_0 = arith.constant 0 : i32
    %c0_i32_1 = arith.constant 0 : i32
    %c0_i32_2 = arith.constant 0 : i32
    return %arg0, %c0_i32, %c0_i32_0, %c0_i32_1 : i32, i32, i32, i32
  }
  func.func @transform_1(%arg0: i32) -> (i32, i32, i32) {
    %c0_i32 = arith.constant 0 : i32
    %c0_i32_0 = arith.constant 0 : i32
    %c0_i32_1 = arith.constant 0 : i32
    %c0_i32_2 = arith.constant 0 : i32
    return %c0_i32, %c0_i32_0, %c0_i32_1 : i32, i32, i32
  }
  func.func @transform_2(%arg0: i32) -> (i32, i32) {
    %c0_i32 = arith.constant 0 : i32
    %c0_i32_0 = arith.constant 0 : i32
    %c0_i32_1 = arith.constant 0 : i32
    return %c0_i32, %c0_i32_0 : i32, i32
  }
  func.func @transform_3(%arg0: i32) -> (i32, i32, i32) {
    %c0_i32 = arith.constant 0 : i32
    %c0_i32_0 = arith.constant 0 : i32
    %c0_i32_1 = arith.constant 0 : i32
    return %arg0, %c0_i32, %c0_i32_0 : i32, i32, i32
  }
}

module attributes {stable_mosaic.version = 11 : i64} {
  func.func @kernel(%arg0: i32, %arg1: memref<1x18x18x32xf32, #tpu.memory_space<vmem>>, %arg2: memref<9x32x64xf32, #tpu.memory_space<vmem>>, %arg3: memref<1x64xf32, #tpu.memory_space<vmem>>, %arg4: memref<1x256x64xf32, #tpu.memory_space<vmem>>) attributes {dimension_semantics = [#tpu.dimension_semantics<parallel>], iteration_bounds = array<i64: 2>, scalar_prefetch = 0 : i64, scratch_operands = 0 : i64, tpu.core_type = #tpu.core_type<tc>, window_params = [{transform_indices = @transform_0, window_bounds = array<i64: 1, 18, 18, 32>}, {pipeline_mode = #tpu.pipeline_mode<synchronous>, transform_indices = @transform_1, window_bounds = array<i64: 9, 32, 64>}, {pipeline_mode = #tpu.pipeline_mode<synchronous>, transform_indices = @transform_2, window_bounds = array<i64: 1, 64>}, {transform_indices = @transform_3, window_bounds = array<i64: 1, 256, 64>}]} {
    %cst = arith.constant 0.000000e+00 : f32
    %0 = vector.broadcast %cst : f32 to vector<256x64xf32>
    %c0 = arith.constant 0 : index
    %c0_0 = arith.constant 0 : index
    %c0_1 = arith.constant 0 : index
    %c0_2 = arith.constant 0 : index
    %1 = vector.load %arg1[%c0, %c0_0, %c0_1, %c0_2] : memref<1x18x18x32xf32, #tpu.memory_space<vmem>>, vector<1x16x16x32xf32>
    %2 = vector.shape_cast %1 : vector<1x16x16x32xf32> to vector<16x16x32xf32>
    %3 = vector.shape_cast %2 : vector<16x16x32xf32> to vector<256x32xf32>
    %c0_3 = arith.constant 0 : index
    %c0_4 = arith.constant 0 : index
    %c0_5 = arith.constant 0 : index
    %4 = vector.load %arg2[%c0_3, %c0_4, %c0_5] : memref<9x32x64xf32, #tpu.memory_space<vmem>>, vector<1x32x64xf32>
    %5 = vector.shape_cast %4 : vector<1x32x64xf32> to vector<32x64xf32>
    %cst_6 = arith.constant dense<0.000000e+00> : vector<256x64xf32>
    %6 = tpu.matmul %3, %5, %cst_6 {dimension_numbers = #tpu.dot_dimension_numbers<[1], [0], [0], [1], [0, 0, 1, 1], [], []>} : vector<256x32xf32>, vector<32x64xf32>, vector<256x64xf32> -> vector<256x64xf32>
    %7 = arith.addf %0, %6 : vector<256x64xf32>
    %c0_7 = arith.constant 0 : index
    %c0_8 = arith.constant 0 : index
    %c1 = arith.constant 1 : index
    %c0_9 = arith.constant 0 : index
    %8 = vector.load %arg1[%c0_7, %c0_8, %c1, %c0_9] : memref<1x18x18x32xf32, #tpu.memory_space<vmem>>, vector<1x16x16x32xf32>
    %9 = vector.shape_cast %8 : vector<1x16x16x32xf32> to vector<16x16x32xf32>
    %10 = vector.shape_cast %9 : vector<16x16x32xf32> to vector<256x32xf32>
    %c1_10 = arith.constant 1 : index
    %c0_11 = arith.constant 0 : index
    %c0_12 = arith.constant 0 : index
    %11 = vector.load %arg2[%c1_10, %c0_11, %c0_12] : memref<9x32x64xf32, #tpu.memory_space<vmem>>, vector<1x32x64xf32>
    %12 = vector.shape_cast %11 : vector<1x32x64xf32> to vector<32x64xf32>
    %cst_13 = arith.constant dense<0.000000e+00> : vector<256x64xf32>
    %13 = tpu.matmul %10, %12, %cst_13 {dimension_numbers = #tpu.dot_dimension_numbers<[1], [0], [0], [1], [0, 0, 1, 1], [], []>} : vector<256x32xf32>, vector<32x64xf32>, vector<256x64xf32> -> vector<256x64xf32>
    %14 = arith.addf %7, %13 : vector<256x64xf32>
    %c0_14 = arith.constant 0 : index
    %c0_15 = arith.constant 0 : index
    %c2 = arith.constant 2 : index
    %c0_16 = arith.constant 0 : index
    %15 = vector.load %arg1[%c0_14, %c0_15, %c2, %c0_16] : memref<1x18x18x32xf32, #tpu.memory_space<vmem>>, vector<1x16x16x32xf32>
    %16 = vector.shape_cast %15 : vector<1x16x16x32xf32> to vector<16x16x32xf32>
    %17 = vector.shape_cast %16 : vector<16x16x32xf32> to vector<256x32xf32>
    %c2_17 = arith.constant 2 : index
    %c0_18 = arith.constant 0 : index
    %c0_19 = arith.constant 0 : index
    %18 = vector.load %arg2[%c2_17, %c0_18, %c0_19] : memref<9x32x64xf32, #tpu.memory_space<vmem>>, vector<1x32x64xf32>
    %19 = vector.shape_cast %18 : vector<1x32x64xf32> to vector<32x64xf32>
    %cst_20 = arith.constant dense<0.000000e+00> : vector<256x64xf32>
    %20 = tpu.matmul %17, %19, %cst_20 {dimension_numbers = #tpu.dot_dimension_numbers<[1], [0], [0], [1], [0, 0, 1, 1], [], []>} : vector<256x32xf32>, vector<32x64xf32>, vector<256x64xf32> -> vector<256x64xf32>
    %21 = arith.addf %14, %20 : vector<256x64xf32>
    %c0_21 = arith.constant 0 : index
    %c1_22 = arith.constant 1 : index
    %c0_23 = arith.constant 0 : index
    %c0_24 = arith.constant 0 : index
    %22 = vector.load %arg1[%c0_21, %c1_22, %c0_23, %c0_24] : memref<1x18x18x32xf32, #tpu.memory_space<vmem>>, vector<1x16x16x32xf32>
    %23 = vector.shape_cast %22 : vector<1x16x16x32xf32> to vector<16x16x32xf32>
    %24 = vector.shape_cast %23 : vector<16x16x32xf32> to vector<256x32xf32>
    %c3 = arith.constant 3 : index
    %c0_25 = arith.constant 0 : index
    %c0_26 = arith.constant 0 : index
    %25 = vector.load %arg2[%c3, %c0_25, %c0_26] : memref<9x32x64xf32, #tpu.memory_space<vmem>>, vector<1x32x64xf32>
    %26 = vector.shape_cast %25 : vector<1x32x64xf32> to vector<32x64xf32>
    %cst_27 = arith.constant dense<0.000000e+00> : vector<256x64xf32>
    %27 = tpu.matmul %24, %26, %cst_27 {dimension_numbers = #tpu.dot_dimension_numbers<[1], [0], [0], [1], [0, 0, 1, 1], [], []>} : vector<256x32xf32>, vector<32x64xf32>, vector<256x64xf32> -> vector<256x64xf32>
    %28 = arith.addf %21, %27 : vector<256x64xf32>
    %c0_28 = arith.constant 0 : index
    %c1_29 = arith.constant 1 : index
    %c1_30 = arith.constant 1 : index
    %c0_31 = arith.constant 0 : index
    %29 = vector.load %arg1[%c0_28, %c1_29, %c1_30, %c0_31] : memref<1x18x18x32xf32, #tpu.memory_space<vmem>>, vector<1x16x16x32xf32>
    %30 = vector.shape_cast %29 : vector<1x16x16x32xf32> to vector<16x16x32xf32>
    %31 = vector.shape_cast %30 : vector<16x16x32xf32> to vector<256x32xf32>
    %c4 = arith.constant 4 : index
    %c0_32 = arith.constant 0 : index
    %c0_33 = arith.constant 0 : index
    %32 = vector.load %arg2[%c4, %c0_32, %c0_33] : memref<9x32x64xf32, #tpu.memory_space<vmem>>, vector<1x32x64xf32>
    %33 = vector.shape_cast %32 : vector<1x32x64xf32> to vector<32x64xf32>
    %cst_34 = arith.constant dense<0.000000e+00> : vector<256x64xf32>
    %34 = tpu.matmul %31, %33, %cst_34 {dimension_numbers = #tpu.dot_dimension_numbers<[1], [0], [0], [1], [0, 0, 1, 1], [], []>} : vector<256x32xf32>, vector<32x64xf32>, vector<256x64xf32> -> vector<256x64xf32>
    %35 = arith.addf %28, %34 : vector<256x64xf32>
    %c0_35 = arith.constant 0 : index
    %c1_36 = arith.constant 1 : index
    %c2_37 = arith.constant 2 : index
    %c0_38 = arith.constant 0 : index
    %36 = vector.load %arg1[%c0_35, %c1_36, %c2_37, %c0_38] : memref<1x18x18x32xf32, #tpu.memory_space<vmem>>, vector<1x16x16x32xf32>
    %37 = vector.shape_cast %36 : vector<1x16x16x32xf32> to vector<16x16x32xf32>
    %38 = vector.shape_cast %37 : vector<16x16x32xf32> to vector<256x32xf32>
    %c5 = arith.constant 5 : index
    %c0_39 = arith.constant 0 : index
    %c0_40 = arith.constant 0 : index
    %39 = vector.load %arg2[%c5, %c0_39, %c0_40] : memref<9x32x64xf32, #tpu.memory_space<vmem>>, vector<1x32x64xf32>
    %40 = vector.shape_cast %39 : vector<1x32x64xf32> to vector<32x64xf32>
    %cst_41 = arith.constant dense<0.000000e+00> : vector<256x64xf32>
    %41 = tpu.matmul %38, %40, %cst_41 {dimension_numbers = #tpu.dot_dimension_numbers<[1], [0], [0], [1], [0, 0, 1, 1], [], []>} : vector<256x32xf32>, vector<32x64xf32>, vector<256x64xf32> -> vector<256x64xf32>
    %42 = arith.addf %35, %41 : vector<256x64xf32>
    %c0_42 = arith.constant 0 : index
    %c2_43 = arith.constant 2 : index
    %c0_44 = arith.constant 0 : index
    %c0_45 = arith.constant 0 : index
    %43 = vector.load %arg1[%c0_42, %c2_43, %c0_44, %c0_45] : memref<1x18x18x32xf32, #tpu.memory_space<vmem>>, vector<1x16x16x32xf32>
    %44 = vector.shape_cast %43 : vector<1x16x16x32xf32> to vector<16x16x32xf32>
    %45 = vector.shape_cast %44 : vector<16x16x32xf32> to vector<256x32xf32>
    %c6 = arith.constant 6 : index
    %c0_46 = arith.constant 0 : index
    %c0_47 = arith.constant 0 : index
    %46 = vector.load %arg2[%c6, %c0_46, %c0_47] : memref<9x32x64xf32, #tpu.memory_space<vmem>>, vector<1x32x64xf32>
    %47 = vector.shape_cast %46 : vector<1x32x64xf32> to vector<32x64xf32>
    %cst_48 = arith.constant dense<0.000000e+00> : vector<256x64xf32>
    %48 = tpu.matmul %45, %47, %cst_48 {dimension_numbers = #tpu.dot_dimension_numbers<[1], [0], [0], [1], [0, 0, 1, 1], [], []>} : vector<256x32xf32>, vector<32x64xf32>, vector<256x64xf32> -> vector<256x64xf32>
    %49 = arith.addf %42, %48 : vector<256x64xf32>
    %c0_49 = arith.constant 0 : index
    %c2_50 = arith.constant 2 : index
    %c1_51 = arith.constant 1 : index
    %c0_52 = arith.constant 0 : index
    %50 = vector.load %arg1[%c0_49, %c2_50, %c1_51, %c0_52] : memref<1x18x18x32xf32, #tpu.memory_space<vmem>>, vector<1x16x16x32xf32>
    %51 = vector.shape_cast %50 : vector<1x16x16x32xf32> to vector<16x16x32xf32>
    %52 = vector.shape_cast %51 : vector<16x16x32xf32> to vector<256x32xf32>
    %c7 = arith.constant 7 : index
    %c0_53 = arith.constant 0 : index
    %c0_54 = arith.constant 0 : index
    %53 = vector.load %arg2[%c7, %c0_53, %c0_54] : memref<9x32x64xf32, #tpu.memory_space<vmem>>, vector<1x32x64xf32>
    %54 = vector.shape_cast %53 : vector<1x32x64xf32> to vector<32x64xf32>
    %cst_55 = arith.constant dense<0.000000e+00> : vector<256x64xf32>
    %55 = tpu.matmul %52, %54, %cst_55 {dimension_numbers = #tpu.dot_dimension_numbers<[1], [0], [0], [1], [0, 0, 1, 1], [], []>} : vector<256x32xf32>, vector<32x64xf32>, vector<256x64xf32> -> vector<256x64xf32>
    %56 = arith.addf %49, %55 : vector<256x64xf32>
    %c0_56 = arith.constant 0 : index
    %c2_57 = arith.constant 2 : index
    %c2_58 = arith.constant 2 : index
    %c0_59 = arith.constant 0 : index
    %57 = vector.load %arg1[%c0_56, %c2_57, %c2_58, %c0_59] : memref<1x18x18x32xf32, #tpu.memory_space<vmem>>, vector<1x16x16x32xf32>
    %58 = vector.shape_cast %57 : vector<1x16x16x32xf32> to vector<16x16x32xf32>
    %59 = vector.shape_cast %58 : vector<16x16x32xf32> to vector<256x32xf32>
    %c8 = arith.constant 8 : index
    %c0_60 = arith.constant 0 : index
    %c0_61 = arith.constant 0 : index
    %60 = vector.load %arg2[%c8, %c0_60, %c0_61] : memref<9x32x64xf32, #tpu.memory_space<vmem>>, vector<1x32x64xf32>
    %61 = vector.shape_cast %60 : vector<1x32x64xf32> to vector<32x64xf32>
    %cst_62 = arith.constant dense<0.000000e+00> : vector<256x64xf32>
    %62 = tpu.matmul %59, %61, %cst_62 {dimension_numbers = #tpu.dot_dimension_numbers<[1], [0], [0], [1], [0, 0, 1, 1], [], []>} : vector<256x32xf32>, vector<32x64xf32>, vector<256x64xf32> -> vector<256x64xf32>
    %63 = arith.addf %56, %62 : vector<256x64xf32>
    %c0_63 = arith.constant 0 : index
    %c0_64 = arith.constant 0 : index
    %64 = vector.load %arg3[%c0_63, %c0_64] : memref<1x64xf32, #tpu.memory_space<vmem>>, vector<1x64xf32>
    %65 = vector.broadcast %64 : vector<1x64xf32> to vector<256x64xf32>
    %66 = arith.addf %63, %65 : vector<256x64xf32>
    %cst_65 = arith.constant 0.000000e+00 : f32
    %67 = vector.broadcast %cst_65 : f32 to vector<256x64xf32>
    %68 = arith.cmpf oge, %66, %67 : vector<256x64xf32>
    %cst_66 = arith.constant 1.000000e-01 : f32
    %69 = vector.broadcast %cst_66 : f32 to vector<256x64xf32>
    %70 = arith.mulf %69, %66 : vector<256x64xf32>
    %71 = arith.select %68, %66, %70 : vector<256x64xi1>, vector<256x64xf32>
    %cst_67 = arith.constant dense<0.000000e+00> : vector<64xf32>
    %72 = vector.multi_reduction <add>, %71, %cst_67 [0] : vector<256x64xf32> to vector<64xf32>
    %73 = vector.shape_cast %72 : vector<64xf32> to vector<1x64xf32>
    %cst_68 = arith.constant 2.560000e+02 : f32
    %74 = vector.broadcast %cst_68 : f32 to vector<1x64xf32>
    %75 = arith.divf %73, %74 : vector<1x64xf32>
    %76 = vector.broadcast %75 : vector<1x64xf32> to vector<256x64xf32>
    %77 = arith.subf %71, %76 : vector<256x64xf32>
    %78 = arith.mulf %77, %77 : vector<256x64xf32>
    %cst_69 = arith.constant dense<0.000000e+00> : vector<64xf32>
    %79 = vector.multi_reduction <add>, %78, %cst_69 [0] : vector<256x64xf32> to vector<64xf32>
    %80 = vector.shape_cast %79 : vector<64xf32> to vector<1x64xf32>
    %cst_70 = arith.constant 2.560000e+02 : f32
    %81 = vector.broadcast %cst_70 : f32 to vector<1x64xf32>
    %82 = arith.divf %80, %81 : vector<1x64xf32>
    %83 = vector.broadcast %75 : vector<1x64xf32> to vector<256x64xf32>
    %84 = arith.subf %71, %83 : vector<256x64xf32>
    %cst_71 = arith.constant 9.99999974E-6 : f32
    %85 = vector.broadcast %cst_71 : f32 to vector<1x64xf32>
    %86 = arith.addf %82, %85 : vector<1x64xf32>
    %87 = math.rsqrt %86 : vector<1x64xf32>
    %88 = vector.broadcast %87 : vector<1x64xf32> to vector<256x64xf32>
    %89 = arith.mulf %84, %88 : vector<256x64xf32>
    %90 = vector.shape_cast %89 : vector<256x64xf32> to vector<1x256x64xf32>
    %c0_72 = arith.constant 0 : index
    %c0_73 = arith.constant 0 : index
    %c0_74 = arith.constant 0 : index
    %91 = vector.load %arg4[%c0_72, %c0_73, %c0_74] : memref<1x256x64xf32, #tpu.memory_space<vmem>>, vector<1x256x64xf32>
    tpu.vector_store %arg4[%c0_72, %c0_73, %c0_74], %90 {strides = array<i32>} : memref<1x256x64xf32, #tpu.memory_space<vmem>>, vector<1x256x64xf32>,
    return
  }
  func.func @transform_0(%arg0: i32) -> (i32, i32, i32, i32) {
    %c0_i32 = arith.constant 0 : i32
    %c0_i32_0 = arith.constant 0 : i32
    %c0_i32_1 = arith.constant 0 : i32
    %c0_i32_2 = arith.constant 0 : i32
    return %arg0, %c0_i32, %c0_i32_0, %c0_i32_1 : i32, i32, i32, i32
  }
  func.func @transform_1(%arg0: i32) -> (i32, i32, i32) {
    %c0_i32 = arith.constant 0 : i32
    %c0_i32_0 = arith.constant 0 : i32
    %c0_i32_1 = arith.constant 0 : i32
    %c0_i32_2 = arith.constant 0 : i32
    return %c0_i32, %c0_i32_0, %c0_i32_1 : i32, i32, i32
  }
  func.func @transform_2(%arg0: i32) -> (i32, i32) {
    %c0_i32 = arith.constant 0 : i32
    %c0_i32_0 = arith.constant 0 : i32
    %c0_i32_1 = arith.constant 0 : i32
    return %c0_i32, %c0_i32_0 : i32, i32
  }
  func.func @transform_3(%arg0: i32) -> (i32, i32, i32) {
    %c0_i32 = arith.constant 0 : i32
    %c0_i32_0 = arith.constant 0 : i32
    %c0_i32_1 = arith.constant 0 : i32
    return %arg0, %c0_i32, %c0_i32_0 : i32, i32, i32
  }
}

module attributes {stable_mosaic.version = 11 : i64} {
  func.func @kernel(%arg0: i32, %arg1: memref<1x18x18x64xf32, #tpu.memory_space<vmem>>, %arg2: memref<9x64x128xf32, #tpu.memory_space<vmem>>, %arg3: memref<1x128xf32, #tpu.memory_space<vmem>>, %arg4: memref<1x256x128xf32, #tpu.memory_space<vmem>>) attributes {dimension_semantics = [#tpu.dimension_semantics<parallel>], iteration_bounds = array<i64: 2>, scalar_prefetch = 0 : i64, scratch_operands = 0 : i64, tpu.core_type = #tpu.core_type<tc>, window_params = [{transform_indices = @transform_0, window_bounds = array<i64: 1, 18, 18, 64>}, {pipeline_mode = #tpu.pipeline_mode<synchronous>, transform_indices = @transform_1, window_bounds = array<i64: 9, 64, 128>}, {pipeline_mode = #tpu.pipeline_mode<synchronous>, transform_indices = @transform_2, window_bounds = array<i64: 1, 128>}, {transform_indices = @transform_3, window_bounds = array<i64: 1, 256, 128>}]} {
    %cst = arith.constant 0.000000e+00 : f32
    %0 = vector.broadcast %cst : f32 to vector<256x128xf32>
    %c0 = arith.constant 0 : index
    %c0_0 = arith.constant 0 : index
    %c0_1 = arith.constant 0 : index
    %c0_2 = arith.constant 0 : index
    %1 = vector.load %arg1[%c0, %c0_0, %c0_1, %c0_2] : memref<1x18x18x64xf32, #tpu.memory_space<vmem>>, vector<1x16x16x64xf32>
    %2 = vector.shape_cast %1 : vector<1x16x16x64xf32> to vector<16x16x64xf32>
    %3 = vector.shape_cast %2 : vector<16x16x64xf32> to vector<256x64xf32>
    %c0_3 = arith.constant 0 : index
    %c0_4 = arith.constant 0 : index
    %c0_5 = arith.constant 0 : index
    %4 = vector.load %arg2[%c0_3, %c0_4, %c0_5] : memref<9x64x128xf32, #tpu.memory_space<vmem>>, vector<1x64x128xf32>
    %5 = vector.shape_cast %4 : vector<1x64x128xf32> to vector<64x128xf32>
    %cst_6 = arith.constant dense<0.000000e+00> : vector<256x128xf32>
    %6 = tpu.matmul %3, %5, %cst_6 {dimension_numbers = #tpu.dot_dimension_numbers<[1], [0], [0], [1], [0, 0, 1, 1], [], []>} : vector<256x64xf32>, vector<64x128xf32>, vector<256x128xf32> -> vector<256x128xf32>
    %7 = arith.addf %0, %6 : vector<256x128xf32>
    %c0_7 = arith.constant 0 : index
    %c0_8 = arith.constant 0 : index
    %c1 = arith.constant 1 : index
    %c0_9 = arith.constant 0 : index
    %8 = vector.load %arg1[%c0_7, %c0_8, %c1, %c0_9] : memref<1x18x18x64xf32, #tpu.memory_space<vmem>>, vector<1x16x16x64xf32>
    %9 = vector.shape_cast %8 : vector<1x16x16x64xf32> to vector<16x16x64xf32>
    %10 = vector.shape_cast %9 : vector<16x16x64xf32> to vector<256x64xf32>
    %c1_10 = arith.constant 1 : index
    %c0_11 = arith.constant 0 : index
    %c0_12 = arith.constant 0 : index
    %11 = vector.load %arg2[%c1_10, %c0_11, %c0_12] : memref<9x64x128xf32, #tpu.memory_space<vmem>>, vector<1x64x128xf32>
    %12 = vector.shape_cast %11 : vector<1x64x128xf32> to vector<64x128xf32>
    %cst_13 = arith.constant dense<0.000000e+00> : vector<256x128xf32>
    %13 = tpu.matmul %10, %12, %cst_13 {dimension_numbers = #tpu.dot_dimension_numbers<[1], [0], [0], [1], [0, 0, 1, 1], [], []>} : vector<256x64xf32>, vector<64x128xf32>, vector<256x128xf32> -> vector<256x128xf32>
    %14 = arith.addf %7, %13 : vector<256x128xf32>
    %c0_14 = arith.constant 0 : index
    %c0_15 = arith.constant 0 : index
    %c2 = arith.constant 2 : index
    %c0_16 = arith.constant 0 : index
    %15 = vector.load %arg1[%c0_14, %c0_15, %c2, %c0_16] : memref<1x18x18x64xf32, #tpu.memory_space<vmem>>, vector<1x16x16x64xf32>
    %16 = vector.shape_cast %15 : vector<1x16x16x64xf32> to vector<16x16x64xf32>
    %17 = vector.shape_cast %16 : vector<16x16x64xf32> to vector<256x64xf32>
    %c2_17 = arith.constant 2 : index
    %c0_18 = arith.constant 0 : index
    %c0_19 = arith.constant 0 : index
    %18 = vector.load %arg2[%c2_17, %c0_18, %c0_19] : memref<9x64x128xf32, #tpu.memory_space<vmem>>, vector<1x64x128xf32>
    %19 = vector.shape_cast %18 : vector<1x64x128xf32> to vector<64x128xf32>
    %cst_20 = arith.constant dense<0.000000e+00> : vector<256x128xf32>
    %20 = tpu.matmul %17, %19, %cst_20 {dimension_numbers = #tpu.dot_dimension_numbers<[1], [0], [0], [1], [0, 0, 1, 1], [], []>} : vector<256x64xf32>, vector<64x128xf32>, vector<256x128xf32> -> vector<256x128xf32>
    %21 = arith.addf %14, %20 : vector<256x128xf32>
    %c0_21 = arith.constant 0 : index
    %c1_22 = arith.constant 1 : index
    %c0_23 = arith.constant 0 : index
    %c0_24 = arith.constant 0 : index
    %22 = vector.load %arg1[%c0_21, %c1_22, %c0_23, %c0_24] : memref<1x18x18x64xf32, #tpu.memory_space<vmem>>, vector<1x16x16x64xf32>
    %23 = vector.shape_cast %22 : vector<1x16x16x64xf32> to vector<16x16x64xf32>
    %24 = vector.shape_cast %23 : vector<16x16x64xf32> to vector<256x64xf32>
    %c3 = arith.constant 3 : index
    %c0_25 = arith.constant 0 : index
    %c0_26 = arith.constant 0 : index
    %25 = vector.load %arg2[%c3, %c0_25, %c0_26] : memref<9x64x128xf32, #tpu.memory_space<vmem>>, vector<1x64x128xf32>
    %26 = vector.shape_cast %25 : vector<1x64x128xf32> to vector<64x128xf32>
    %cst_27 = arith.constant dense<0.000000e+00> : vector<256x128xf32>
    %27 = tpu.matmul %24, %26, %cst_27 {dimension_numbers = #tpu.dot_dimension_numbers<[1], [0], [0], [1], [0, 0, 1, 1], [], []>} : vector<256x64xf32>, vector<64x128xf32>, vector<256x128xf32> -> vector<256x128xf32>
    %28 = arith.addf %21, %27 : vector<256x128xf32>
    %c0_28 = arith.constant 0 : index
    %c1_29 = arith.constant 1 : index
    %c1_30 = arith.constant 1 : index
    %c0_31 = arith.constant 0 : index
    %29 = vector.load %arg1[%c0_28, %c1_29, %c1_30, %c0_31] : memref<1x18x18x64xf32, #tpu.memory_space<vmem>>, vector<1x16x16x64xf32>
    %30 = vector.shape_cast %29 : vector<1x16x16x64xf32> to vector<16x16x64xf32>
    %31 = vector.shape_cast %30 : vector<16x16x64xf32> to vector<256x64xf32>
    %c4 = arith.constant 4 : index
    %c0_32 = arith.constant 0 : index
    %c0_33 = arith.constant 0 : index
    %32 = vector.load %arg2[%c4, %c0_32, %c0_33] : memref<9x64x128xf32, #tpu.memory_space<vmem>>, vector<1x64x128xf32>
    %33 = vector.shape_cast %32 : vector<1x64x128xf32> to vector<64x128xf32>
    %cst_34 = arith.constant dense<0.000000e+00> : vector<256x128xf32>
    %34 = tpu.matmul %31, %33, %cst_34 {dimension_numbers = #tpu.dot_dimension_numbers<[1], [0], [0], [1], [0, 0, 1, 1], [], []>} : vector<256x64xf32>, vector<64x128xf32>, vector<256x128xf32> -> vector<256x128xf32>
    %35 = arith.addf %28, %34 : vector<256x128xf32>
    %c0_35 = arith.constant 0 : index
    %c1_36 = arith.constant 1 : index
    %c2_37 = arith.constant 2 : index
    %c0_38 = arith.constant 0 : index
    %36 = vector.load %arg1[%c0_35, %c1_36, %c2_37, %c0_38] : memref<1x18x18x64xf32, #tpu.memory_space<vmem>>, vector<1x16x16x64xf32>
    %37 = vector.shape_cast %36 : vector<1x16x16x64xf32> to vector<16x16x64xf32>
    %38 = vector.shape_cast %37 : vector<16x16x64xf32> to vector<256x64xf32>
    %c5 = arith.constant 5 : index
    %c0_39 = arith.constant 0 : index
    %c0_40 = arith.constant 0 : index
    %39 = vector.load %arg2[%c5, %c0_39, %c0_40] : memref<9x64x128xf32, #tpu.memory_space<vmem>>, vector<1x64x128xf32>
    %40 = vector.shape_cast %39 : vector<1x64x128xf32> to vector<64x128xf32>
    %cst_41 = arith.constant dense<0.000000e+00> : vector<256x128xf32>
    %41 = tpu.matmul %38, %40, %cst_41 {dimension_numbers = #tpu.dot_dimension_numbers<[1], [0], [0], [1], [0, 0, 1, 1], [], []>} : vector<256x64xf32>, vector<64x128xf32>, vector<256x128xf32> -> vector<256x128xf32>
    %42 = arith.addf %35, %41 : vector<256x128xf32>
    %c0_42 = arith.constant 0 : index
    %c2_43 = arith.constant 2 : index
    %c0_44 = arith.constant 0 : index
    %c0_45 = arith.constant 0 : index
    %43 = vector.load %arg1[%c0_42, %c2_43, %c0_44, %c0_45] : memref<1x18x18x64xf32, #tpu.memory_space<vmem>>, vector<1x16x16x64xf32>
    %44 = vector.shape_cast %43 : vector<1x16x16x64xf32> to vector<16x16x64xf32>
    %45 = vector.shape_cast %44 : vector<16x16x64xf32> to vector<256x64xf32>
    %c6 = arith.constant 6 : index
    %c0_46 = arith.constant 0 : index
    %c0_47 = arith.constant 0 : index
    %46 = vector.load %arg2[%c6, %c0_46, %c0_47] : memref<9x64x128xf32, #tpu.memory_space<vmem>>, vector<1x64x128xf32>
    %47 = vector.shape_cast %46 : vector<1x64x128xf32> to vector<64x128xf32>
    %cst_48 = arith.constant dense<0.000000e+00> : vector<256x128xf32>
    %48 = tpu.matmul %45, %47, %cst_48 {dimension_numbers = #tpu.dot_dimension_numbers<[1], [0], [0], [1], [0, 0, 1, 1], [], []>} : vector<256x64xf32>, vector<64x128xf32>, vector<256x128xf32> -> vector<256x128xf32>
    %49 = arith.addf %42, %48 : vector<256x128xf32>
    %c0_49 = arith.constant 0 : index
    %c2_50 = arith.constant 2 : index
    %c1_51 = arith.constant 1 : index
    %c0_52 = arith.constant 0 : index
    %50 = vector.load %arg1[%c0_49, %c2_50, %c1_51, %c0_52] : memref<1x18x18x64xf32, #tpu.memory_space<vmem>>, vector<1x16x16x64xf32>
    %51 = vector.shape_cast %50 : vector<1x16x16x64xf32> to vector<16x16x64xf32>
    %52 = vector.shape_cast %51 : vector<16x16x64xf32> to vector<256x64xf32>
    %c7 = arith.constant 7 : index
    %c0_53 = arith.constant 0 : index
    %c0_54 = arith.constant 0 : index
    %53 = vector.load %arg2[%c7, %c0_53, %c0_54] : memref<9x64x128xf32, #tpu.memory_space<vmem>>, vector<1x64x128xf32>
    %54 = vector.shape_cast %53 : vector<1x64x128xf32> to vector<64x128xf32>
    %cst_55 = arith.constant dense<0.000000e+00> : vector<256x128xf32>
    %55 = tpu.matmul %52, %54, %cst_55 {dimension_numbers = #tpu.dot_dimension_numbers<[1], [0], [0], [1], [0, 0, 1, 1], [], []>} : vector<256x64xf32>, vector<64x128xf32>, vector<256x128xf32> -> vector<256x128xf32>
    %56 = arith.addf %49, %55 : vector<256x128xf32>
    %c0_56 = arith.constant 0 : index
    %c2_57 = arith.constant 2 : index
    %c2_58 = arith.constant 2 : index
    %c0_59 = arith.constant 0 : index
    %57 = vector.load %arg1[%c0_56, %c2_57, %c2_58, %c0_59] : memref<1x18x18x64xf32, #tpu.memory_space<vmem>>, vector<1x16x16x64xf32>
    %58 = vector.shape_cast %57 : vector<1x16x16x64xf32> to vector<16x16x64xf32>
    %59 = vector.shape_cast %58 : vector<16x16x64xf32> to vector<256x64xf32>
    %c8 = arith.constant 8 : index
    %c0_60 = arith.constant 0 : index
    %c0_61 = arith.constant 0 : index
    %60 = vector.load %arg2[%c8, %c0_60, %c0_61] : memref<9x64x128xf32, #tpu.memory_space<vmem>>, vector<1x64x128xf32>
    %61 = vector.shape_cast %60 : vector<1x64x128xf32> to vector<64x128xf32>
    %cst_62 = arith.constant dense<0.000000e+00> : vector<256x128xf32>
    %62 = tpu.matmul %59, %61, %cst_62 {dimension_numbers = #tpu.dot_dimension_numbers<[1], [0], [0], [1], [0, 0, 1, 1], [], []>} : vector<256x64xf32>, vector<64x128xf32>, vector<256x128xf32> -> vector<256x128xf32>
    %63 = arith.addf %56, %62 : vector<256x128xf32>
    %c0_63 = arith.constant 0 : index
    %c0_64 = arith.constant 0 : index
    %64 = vector.load %arg3[%c0_63, %c0_64] : memref<1x128xf32, #tpu.memory_space<vmem>>, vector<1x128xf32>
    %65 = vector.broadcast %64 : vector<1x128xf32> to vector<256x128xf32>
    %66 = arith.addf %63, %65 : vector<256x128xf32>
    %cst_65 = arith.constant 0.000000e+00 : f32
    %67 = vector.broadcast %cst_65 : f32 to vector<256x128xf32>
    %68 = arith.cmpf oge, %66, %67 : vector<256x128xf32>
    %cst_66 = arith.constant 1.000000e-01 : f32
    %69 = vector.broadcast %cst_66 : f32 to vector<256x128xf32>
    %70 = arith.mulf %69, %66 : vector<256x128xf32>
    %71 = arith.select %68, %66, %70 : vector<256x128xi1>, vector<256x128xf32>
    %72 = vector.shape_cast %71 : vector<256x128xf32> to vector<1x256x128xf32>
    %c0_67 = arith.constant 0 : index
    %c0_68 = arith.constant 0 : index
    %c0_69 = arith.constant 0 : index
    %73 = vector.load %arg4[%c0_67, %c0_68, %c0_69] : memref<1x256x128xf32, #tpu.memory_space<vmem>>, vector<1x256x128xf32>
    tpu.vector_store %arg4[%c0_67, %c0_68, %c0_69], %72 {strides = array<i32>} : memref<1x256x128xf32, #tpu.memory_space<vmem>>, vector<1x256x128xf32>,
    return
  }
  func.func @transform_0(%arg0: i32) -> (i32, i32, i32, i32) {
    %c0_i32 = arith.constant 0 : i32
    %c0_i32_0 = arith.constant 0 : i32
    %c0_i32_1 = arith.constant 0 : i32
    %c0_i32_2 = arith.constant 0 : i32
    return %arg0, %c0_i32, %c0_i32_0, %c0_i32_1 : i32, i32, i32, i32
  }
  func.func @transform_1(%arg0: i32) -> (i32, i32, i32) {
    %c0_i32 = arith.constant 0 : i32
    %c0_i32_0 = arith.constant 0 : i32
    %c0_i32_1 = arith.constant 0 : i32
    %c0_i32_2 = arith.constant 0 : i32
    return %c0_i32, %c0_i32_0, %c0_i32_1 : i32, i32, i32
  }
  func.func @transform_2(%arg0: i32) -> (i32, i32) {
    %c0_i32 = arith.constant 0 : i32
    %c0_i32_0 = arith.constant 0 : i32
    %c0_i32_1 = arith.constant 0 : i32
    return %c0_i32, %c0_i32_0 : i32, i32
  }
  func.func @transform_3(%arg0: i32) -> (i32, i32, i32) {
    %c0_i32 = arith.constant 0 : i32
    %c0_i32_0 = arith.constant 0 : i32
    %c0_i32_1 = arith.constant 0 : i32
    return %arg0, %c0_i32, %c0_i32_0 : i32, i32, i32
  }
}

module attributes {stable_mosaic.version = 11 : i64} {
  func.func @_head_kernel(%arg0: i32, %arg1: memref<2x4096xf32, #tpu.memory_space<vmem>>, %arg2: memref<4096x32xf32, #tpu.memory_space<vmem>>, %arg3: memref<1x32xf32, #tpu.memory_space<vmem>>, %arg4: memref<32x8xf32, #tpu.memory_space<vmem>>, %arg5: memref<1x8xf32, #tpu.memory_space<vmem>>, %arg6: memref<2x8xf32, #tpu.memory_space<vmem>>, %arg7: memref<2x32xf32, #tpu.memory_space<vmem>>) attributes {dimension_semantics = [#tpu.dimension_semantics<arbitrary>], iteration_bounds = array<i64: 8>, scalar_prefetch = 0 : i64, scratch_operands = 1 : i64, tpu.core_type = #tpu.core_type<tc>, window_params = [{transform_indices = @transform_0, window_bounds = array<i64: 2, 4096>}, {transform_indices = @transform_1, window_bounds = array<i64: 4096, 32>}, {pipeline_mode = #tpu.pipeline_mode<synchronous>, transform_indices = @transform_2, window_bounds = array<i64: 1, 32>}, {pipeline_mode = #tpu.pipeline_mode<synchronous>, transform_indices = @transform_3, window_bounds = array<i64: 32, 8>}, {pipeline_mode = #tpu.pipeline_mode<synchronous>, transform_indices = @transform_4, window_bounds = array<i64: 1, 8>}, {pipeline_mode = #tpu.pipeline_mode<synchronous>, transform_indices = @transform_5, window_bounds = array<i64: 2, 8>}]} {
    %c0_i32 = arith.constant 0 : i32
    %0 = arith.cmpi eq, %arg0, %c0_i32 : i32
    %1 = arith.extui %0 : i1 to i32
    %c0_i32_0 = arith.constant 0 : i32
    %2 = arith.cmpi ne, %1, %c0_i32_0 : i32
    scf.if %2 {
      %cst_9 = arith.constant 0.000000e+00 : f32
      %12 = vector.broadcast %cst_9 : f32 to vector<2x32xf32>
      %c0_10 = arith.constant 0 : index
      %c0_11 = arith.constant 0 : index
      %13 = vector.load %arg7[%c0_10, %c0_11] : memref<2x32xf32, #tpu.memory_space<vmem>>, vector<2x32xf32>
      tpu.vector_store %arg7[%c0_10, %c0_11], %12 {strides = array<i32>} : memref<2x32xf32, #tpu.memory_space<vmem>>, vector<2x32xf32>,
    } else {
    }
    %c0 = arith.constant 0 : index
    %c0_1 = arith.constant 0 : index
    %3 = vector.load %arg7[%c0, %c0_1] : memref<2x32xf32, #tpu.memory_space<vmem>>, vector<2x32xf32>
    %c0_2 = arith.constant 0 : index
    %c0_3 = arith.constant 0 : index
    %4 = vector.load %arg1[%c0_2, %c0_3] : memref<2x4096xf32, #tpu.memory_space<vmem>>, vector<2x4096xf32>
    %c0_4 = arith.constant 0 : index
    %c0_5 = arith.constant 0 : index
    %5 = vector.load %arg2[%c0_4, %c0_5] : memref<4096x32xf32, #tpu.memory_space<vmem>>, vector<4096x32xf32>
    %cst = arith.constant dense<0.000000e+00> : vector<2x32xf32>
    %6 = tpu.matmul %4, %5, %cst {dimension_numbers = #tpu.dot_dimension_numbers<[1], [0], [0], [1], [0, 0, 1, 1], [], []>} : vector<2x4096xf32>, vector<4096x32xf32>, vector<2x32xf32> -> vector<2x32xf32>
    %7 = arith.addf %3, %6 : vector<2x32xf32>
    %c0_6 = arith.constant 0 : index
    %c0_7 = arith.constant 0 : index
    %8 = vector.load %arg7[%c0_6, %c0_7] : memref<2x32xf32, #tpu.memory_space<vmem>>, vector<2x32xf32>
    tpu.vector_store %arg7[%c0_6, %c0_7], %7 {strides = array<i32>} : memref<2x32xf32, #tpu.memory_space<vmem>>, vector<2x32xf32>,
    %c7_i32 = arith.constant 7 : i32
    %9 = arith.cmpi eq, %arg0, %c7_i32 : i32
    %10 = arith.extui %9 : i1 to i32
    %c0_i32_8 = arith.constant 0 : i32
    %11 = arith.cmpi ne, %10, %c0_i32_8 : i32
    scf.if %11 {
      %c0_9 = arith.constant 0 : index
      %c0_10 = arith.constant 0 : index
      %12 = vector.load %arg7[%c0_9, %c0_10] : memref<2x32xf32, #tpu.memory_space<vmem>>, vector<2x32xf32>
      %c0_11 = arith.constant 0 : index
      %c0_12 = arith.constant 0 : index
      %13 = vector.load %arg3[%c0_11, %c0_12] : memref<1x32xf32, #tpu.memory_space<vmem>>, vector<1x32xf32>
      %14 = vector.broadcast %13 : vector<1x32xf32> to vector<2x32xf32>
      %15 = arith.addf %12, %14 : vector<2x32xf32>
      %cst_13 = arith.constant 0.000000e+00 : f32
      %16 = vector.broadcast %cst_13 : f32 to vector<2x32xf32>
      %17 = arith.maximumf %15, %16 : vector<2x32xf32>
      %c0_14 = arith.constant 0 : index
      %c0_15 = arith.constant 0 : index
      %18 = vector.load %arg4[%c0_14, %c0_15] : memref<32x8xf32, #tpu.memory_space<vmem>>, vector<32x8xf32>
      %cst_16 = arith.constant dense<0.000000e+00> : vector<2x8xf32>
      %19 = tpu.matmul %17, %18, %cst_16 {dimension_numbers = #tpu.dot_dimension_numbers<[1], [0], [0], [1], [0, 0, 1, 1], [], []>} : vector<2x32xf32>, vector<32x8xf32>, vector<2x8xf32> -> vector<2x8xf32>
      %c0_17 = arith.constant 0 : index
      %c0_18 = arith.constant 0 : index
      %20 = vector.load %arg5[%c0_17, %c0_18] : memref<1x8xf32, #tpu.memory_space<vmem>>, vector<1x8xf32>
      %21 = vector.broadcast %20 : vector<1x8xf32> to vector<2x8xf32>
      %22 = arith.addf %19, %21 : vector<2x8xf32>
      %cst_19 = arith.constant dense<0xFF800000> : vector<2xf32>
      %23 = vector.multi_reduction <maximumf>, %22, %cst_19 [1] : vector<2x8xf32> to vector<2xf32>
      %24 = vector.shape_cast %23 : vector<2xf32> to vector<2x1xf32>
      %25 = vector.broadcast %24 : vector<2x1xf32> to vector<2x8xf32>
      %26 = arith.subf %22, %25 : vector<2x8xf32>
      %27 = math.exp %26 : vector<2x8xf32>
      %cst_20 = arith.constant dense<0.000000e+00> : vector<2xf32>
      %28 = vector.multi_reduction <add>, %27, %cst_20 [1] : vector<2x8xf32> to vector<2xf32>
      %29 = vector.shape_cast %28 : vector<2xf32> to vector<2x1xf32>
      %30 = vector.broadcast %29 : vector<2x1xf32> to vector<2x8xf32>
      %31 = arith.divf %27, %30 : vector<2x8xf32>
      %c0_21 = arith.constant 0 : index
      %c0_22 = arith.constant 0 : index
      %32 = vector.load %arg6[%c0_21, %c0_22] : memref<2x8xf32, #tpu.memory_space<vmem>>, vector<2x8xf32>
      tpu.vector_store %arg6[%c0_21, %c0_22], %31 {strides = array<i32>} : memref<2x8xf32, #tpu.memory_space<vmem>>, vector<2x8xf32>,
    } else {
    }
    return
  }
  func.func @transform_0(%arg0: i32) -> (i32, i32) {
    %c0_i32 = arith.constant 0 : i32
    %c0_i32_0 = arith.constant 0 : i32
    return %c0_i32, %arg0 : i32, i32
  }
  func.func @transform_1(%arg0: i32) -> (i32, i32) {
    %c0_i32 = arith.constant 0 : i32
    %c0_i32_0 = arith.constant 0 : i32
    return %arg0, %c0_i32 : i32, i32
  }
  func.func @transform_2(%arg0: i32) -> (i32, i32) {
    %c0_i32 = arith.constant 0 : i32
    %c0_i32_0 = arith.constant 0 : i32
    %c0_i32_1 = arith.constant 0 : i32
    return %c0_i32, %c0_i32_0 : i32, i32
  }
  func.func @transform_3(%arg0: i32) -> (i32, i32) {
    %c0_i32 = arith.constant 0 : i32
    %c0_i32_0 = arith.constant 0 : i32
    %c0_i32_1 = arith.constant 0 : i32
    return %c0_i32, %c0_i32_0 : i32, i32
  }
  func.func @transform_4(%arg0: i32) -> (i32, i32) {
    %c0_i32 = arith.constant 0 : i32
    %c0_i32_0 = arith.constant 0 : i32
    %c0_i32_1 = arith.constant 0 : i32
    return %c0_i32, %c0_i32_0 : i32, i32
  }
  func.func @transform_5(%arg0: i32) -> (i32, i32) {
    %c0_i32 = arith.constant 0 : i32
    %c0_i32_0 = arith.constant 0 : i32
    %c0_i32_1 = arith.constant 0 : i32
    return %c0_i32, %c0_i32_0 : i32, i32
  }
}

</mosaic_0001>

<bundles_post_ra>
// kernel: task_classifier_forward.6
= control target key start
LH: loop header
LB: loop body
LE: loop exit
PB: predicated region body
PF: predicated region fallthrough
CT: control target
= control target key end

     0   :  { %8 = vsyncpa [#allocation3], 0  ;;  %s7237_s0 = inlined_call_operand.vmem [shape: f32[2,18,18,16], index: 0, kind: input, shape index: {}]   ;;  %s7238_s1 = inlined_call_operand.hbm [shape: f32[9,16,32], index: 1, kind: input, shape index: {}]   ;;  %s7239_s2 = inlined_call_operand.hbm [shape: f32[1,32], index: 2, kind: input, shape index: {}]   ;;  %s7240_s3 = inlined_call_operand.vmem [shape: f32[2,256,32], index: 3, kind: output, shape index: {}]  }
   0x1   :  { %9 = vsyncpa [#allocation5], 0  ;;  %s5807_s12 = smov 0  }
   0x2 LB: > { %s5813_s13 = sadd.s32 4294967295, %s5781_s12   ;;  %p4115_p0 = scmp.ge.s32.totalorder %s5781_s12, 1  ;;  %s5781_s12 = sphi %s5807_s12, %s15_s12  }
   0x3   : > { %p114_p1 = scmp.lt.s32.totalorder %s5781_s12, 3  ;;  %s5783_s14 = smov [#allocation2]  }
   0x4   : > { %s126_s15 = sshll.u32 %s5783_s14, 4  ;;  %p7241_p3 = scmp.eq.s32.totalorder %s5813_s13, 0  ;;  %s127_s15 = int_to_ptr.vmem [resolvable:$true] %s126_s15 }
   0x5   : > { %p5817_p2 = pnand %p4115_p0, %p114_p1  ;;  %s5784_s17 = smov [#allocation4]  }
   0x6   : > { %s140_s18 = sshll.u32 %s5784_s17, 4  ;;  %s5711_s22 = scalar_lea.hbm %s7238_s1, 2304  ;;  %s5830_s18 = int_to_ptr.vmem [resolvable:$true] %s140_s18 }
   0x7   : > { %s7290_s16 = scalar_select %p5817_p2, 1, 0 }
   0x8   : > { %p5686_p4 = pneg %p5817_p2  ;;  %p5712_p6 = scmp.ne.s32.totalorder %s7238_s1, %s5711_s22 }
   0x9   : > { %p5718_p10 = scmp.lt.u32.totalorder %s5711_s22, %s7238_s1 }
   0xa   : > { %p5826_p5 = pnand %p7241_p3, %p5686_p4 }
   0xc   : > { %p5713_p7 = pneg %p5826_p5 }
   0xe   : > { %p5714_p8 = pnand %p5713_p7, %p5712_p6 }
  0x10   : > { %p5715_p9 = pneg %p5714_p8 }
  0x12   : > { %p5720_p11 = pnand %p5718_p10, %p5715_p9 }
  0x14   : > { %5723 = shalt.err (!%p5720_p11)
}
  0x15   : > { %s5724_s27 = scalar_lea.vmem %s127_s15, 2304  ;;  %p5732_p1 = scmp.lt.s32.totalorder %s127_s15, %s127_s15 }
  0x16   : > { %p5725_p12 = scmp.ne.s32.totalorder %s127_s15, %s5724_s27  ;;  %p5733_p4 = scmp.lt.s32.totalorder %s5724_s27, %s5724_s27 }
  0x18   : > { %p5727_p13 = pnand %p5725_p12, %p5713_p7  ;;  %p5734_p3 = por %p5733_p4, %p5732_p1 }
  0x1a   : > { %p5728_p0 = pneg %p5727_p13 }
  0x1c   : > { %p5735_p2 = pnand %p5734_p3, %p5728_p0 }
  0x1e   : > { %5738 = shalt.err (!%p5735_p2)
}
  0x1f   : > { %s5785_s28 = smov 128   ;;  %s5786_s29 = smov 8  }
  0x20   : > { %5689 = dma.hbm_to_vmem [thread:$0]  (!%p5826_p5), %s7238_s1, 2304, %s127_s15, [#allocation3], %s5785_s28, %s5785_s28, %s5786_s29  }
  0x21   : > { %s5739_s7 = scalar_lea.hbm %s7239_s2, 16 }
  0x22   : > { %p5740_p6 = scmp.ne.s32.totalorder %s7239_s2, %s5739_s7  ;;  %p5746_p8 = scmp.lt.u32.totalorder %s5739_s7, %s7239_s2 }
  0x24   : > { %p5742_p2 = pnand %p5740_p6, %p5713_p7 }
  0x26   : > { %p5743_p3 = pneg %p5742_p2 }
  0x28   : > { %p5748_p9 = pnand %p5746_p8, %p5743_p3 }
  0x2a   : > { %5751 = shalt.err (!%p5748_p9)
}
  0x2b   : > { %s5752_s14 = scalar_lea.vmem %s5830_s18, 16  ;;  %s5759_s15 = scalar_lea.vmem %s5830_s18, 32 }
  0x2c   : > { %p5753_p10 = scmp.ne.s32.totalorder %s5830_s18, %s5752_s14  ;;  %p5760_p13 = scmp.lt.s32.totalorder %s5830_s18, %s5830_s18 }
  0x2d   : > { %p5761_p0 = scmp.lt.s32.totalorder %s5759_s15, %s5752_s14 }
  0x2e   : > { %p5755_p11 = pnand %p5753_p10, %p5713_p7 }
  0x2f   : > { %p5762_p1 = por %p5761_p0, %p5760_p13 }
  0x30   : > { %p5756_p12 = pneg %p5755_p11 }
  0x32   : > { %p5763_p4 = pnand %p5762_p1, %p5756_p12 }
  0x34   : > { %5766 = shalt.err (!%p5763_p4)
}
  0x35   : > { %5692 = dma.hbm_to_vmem [thread:$0]  (!%p5826_p5), %s7239_s2, 16, %s5830_s18, [#allocation5]  }
  0x36   : > { %p7292_p6 = scmp.ne.s32.totalorder %s7290_s16, 0 }
  0x38   : > { %161 = sbr.rel (%p7292_p6) target bundleno = 719 (0x2cf), region = 32 }
  0x3f   : > { %p7293_p7 = scmp.eq.s32.totalorder %s5813_s13, 0 }
  0x41   : > { %5772 = dma.done.wait (%p7293_p7), [#allocation3], 2304   ;;  %p7294_p2 = pmov %p7293_p7 }
  0x43   : > { %5774 = vsyncadd (%p7294_p2), [#allocation3], 4294964992  ;;  %p7295_p3 = pmov %p7294_p2 }
  0x44   : > { %p7296_p8 = pmov %p7294_p2 }
  0x45   : > { %5776 = dma.done.wait (%p7295_p3), [#allocation5], 16  }
  0x46   : > { %5778 = vsyncadd (%p7296_p8), [#allocation5], 4294967280  ;;  %p189_p9 = scmp.lt.s32.totalorder %s5813_s13, 1  ;;  %vm268_vm0 = vcmask 130048   ;;  %v266_v0 = vld [vmem:[#allocation2 + $0x10] sm:$0xff]  ;;  %v267_v1 = vld [vmem:[#allocation2 + $0x18] sm:$0xff] }
  0x47   : > { %v1721_v2 = vld [vmem:[#allocation2 + $0x40] sm:$0xff]  ;;  %v5383_v3 = vpack.c.bf16 %v267_v1, %v266_v0  ;;  %v1722_v4 = vld [vmem:[#allocation2 + $0x48] sm:$0xff]  ;;  %v2109_v11 = vld [vmem:[#allocation2 + $0x50] sm:$0xff]  ;;  %vm3764_vm2 = vcmask 261120  }
  0x48   : > { %s7362_s13 = smov (!%p189_p9, %s5813_s13), 1  ;;  %v5902_v7 = vpack.c.bf16 %v1722_v4, %v1721_v2  ;;  %v231_v8 = vld [vmem:[#allocation2] sm:$0xff]  ;;  %v232_v9 = vld [vmem:[#allocation2 + $0x8] sm:$0xff]  ;;  %v2110_v12 = vld [vmem:[#allocation2 + $0x58] sm:$0xff] }
  0x49   : > { %s5677_s16 = smul.u32 432, %s7362_s13  ;;  %5384 = vmatprep.subr.bf16.mxu1 %v5383_v3  ;;  %v5387_v10 = vpack.c.bf16 %v232_v9, %v231_v8  ;;  %v5403_v14 = vpack.c.bf16 %v2110_v12, %v2109_v11  ;;  %v2498_v18 = vld [vmem:[#allocation2 + $0x60] sm:$0xff]  ;;  %v2499_v19 = vld [vmem:[#allocation2 + $0x68] sm:$0xff]  ;;  %v2886_v37 = vld [vmem:[#allocation2 + $0x70] sm:$0xff]  ;;  %s4608_s22 = sshll.u32 %s7362_s13, 8 }
  0x4a   : > { %5400 = vmatprep.subr.bf16.mxu0 %v5902_v7  ;;  %5386 = vmatpush3.bf16.msra.mxu1 %v5383_v3  ;;  %v5407_v21 = vpack.c.bf16 %v2499_v19, %v2498_v18  ;;  %v944_v26 = vld [vmem:[#allocation2 + $0x20] sm:$0xff]  ;;  %v945_v27 = vld [vmem:[#allocation2 + $0x28] sm:$0xff]  ;;  %v2887_v38 = vld [vmem:[#allocation2 + $0x78] sm:$0xff]  ;;  %s7136_s25 = scalar_lea.vmem %s7240_s3, %s4608_s22 }
  0x4b   : > { %s5898_s21 = scalar_lea.vmem %s7237_s0, %s5677_s16  ;;  %5402 = vmatpush3.bf16.msra.mxu0 %v5902_v7  ;;  %5388 = vmatprep.subr.bf16.mxu1 %v5387_v10  ;;  %v5962_v29 = vpack.c.bf16 %v945_v27, %v944_v26  ;;  %v6027_v42 = vpack.c.bf16 %v2887_v38, %v2886_v37  ;;  %v1333_v8 = vld [vmem:[#allocation2 + $0x30] sm:$0xff]  ;;  %v1334_v9 = vld [vmem:[#allocation2 + $0x38] sm:$0xff] }
  0x4c   : > { %v233_v5 = vld [vmem:[%s5898_s21 + $0x1] sm:$0xff]  ;;  %v4285_v6 = vld [vmem:[%s5898_s21 + $0x19] sm:$0xff]  ;;  %v234_v13 = vld [vmem:[%s5898_s21 + $0x9] sm:$0xff]  ;;  %5404 = vmatprep.subr.bf16.mxu0 %v5403_v14 }
  0x4d   : > { %4919 = vmatprep.mubr.msk.f32.mxu1 %vm268_vm0, %v233_v5  ;;  %5127 = vmatprep.mubr.msk.f32.mxu0 %vm268_vm0, %v4285_v6  ;;  %v4286_v15 = vld [vmem:[%s5898_s21 + $0x21] sm:$0xff]  ;;  %v5912_v16 = vld [vmem:[%s5898_s21 + $0x31] sm:$0xff]  ;;  %v5917_v17 = vld [vmem:[%s5898_s21 + $0x39] sm:$0xff] }
  0x4e   : > { %4920 = vmatmul.mubr.msk.f32.vlgmr.msra.gmra.mrb[0].mxu1 %vm268_vm0, %v234_v13  ;;  %5128 = vmatmul.mubr.msk.f32.vlgmr.msra.gmra.mrb[0].mxu0 %vm268_vm0, %v4286_v15  ;;  %v5922_v20 = vld [vmem:[%s5898_s21 + $0x49] sm:$0xff]  ;;  %v5932_v22 = vld [vmem:[%s5898_s21 + $0x51] sm:$0xff]  ;;  %v5935_v23 = vld [vmem:[%s5898_s21 + $0x61] sm:$0xff] }
  0x4f   : > { %5390 = vmatpush3.bf16.msra.mxu1 %v5387_v10  ;;  %5406 = vmatpush3.bf16.msra.mxu0 %v5403_v14  ;;  %v5946_v24 = vld [vmem:[%s5898_s21 + $0x69] sm:$0xff]  ;;  %v5949_v25 = vld [vmem:[%s5898_s21 + $0x79] sm:$0xff]  ;;  %v5960_v28 = vld [vmem:[%s5898_s21 + $0x81] sm:$0xff]  ;;  %v6185_v14 = vpack.c.bf16 %v1334_v9, %v1333_v8 }
  0x50   : > { %4922 = vmatprep.mubr.msk.f32.mxu1 %vm268_vm0, %v4285_v6  ;;  %5130 = vmatprep.mubr.msk.f32.mxu0 %vm268_vm0, %v5912_v16  ;;  %v5965_v30 = vld [vmem:[%s5898_s21 + $0x91] sm:$0xff]  ;;  %v5977_v31 = vld [vmem:[%s5898_s21 + $0x99] sm:$0xff]  ;;  %v5980_v32 = vld [vmem:[%s5898_s21 + $0xa9] sm:$0xff] }
  0x51   : > { %5408 = vmatprep.subr.bf16.mxu0 %v5407_v21  ;;  %5392 = vmatprep.subr.bf16.mxu1 %v5962_v29  ;;  %v5991_v33 = vld [vmem:[%s5898_s21 + $0xb1] sm:$0xff]  ;;  %v5994_v34 = vld [vmem:[%s5898_s21 + $0xc1] sm:$0xff]  ;;  %v6005_v35 = vld [vmem:[%s5898_s21 + $0xc9] sm:$0xff] }
  0x52   : > { %4923 = vmatmul.mubr.msk.f32.gmra.mrb[2].mxu1 %vm268_vm0, %v4286_v15  ;;  %5131 = vmatmul.mubr.msk.f32.gmra.mrb[2].mxu0 %vm268_vm0, %v5917_v17  ;;  %v6008_v36 = vld [vmem:[%s5898_s21 + $0x1a] sm:$0xff]  ;;  %v6019_v39 = vld [vmem:[%s5898_s21 + $0x22] sm:$0xff]  ;;  %v6025_v41 = vld [vmem:[%s5898_s21 + $0x32] sm:$0xff] }
  0x53   : > { %4925 = vmatprep.mubr.msk.f32.mxu1 %vm268_vm0, %v5912_v16  ;;  %5133 = vmatprep.mubr.msk.f32.mxu0 %vm268_vm0, %v5922_v20  ;;  %v6022_v40 = vld [vmem:[%s5898_s21 + $0xd9] sm:$0xff]  ;;  %v6036_v43 = vld [vmem:[%s5898_s21 + $0xe1] sm:$0xff]  ;;  %v6044_v45 = vld [vmem:[%s5898_s21 + $0xf1] sm:$0xff] }
  0x54   : > { %7297 = vst [vmem:[#allocation8_spill] sm:$0xff] %v6022_v40  ;;  %7298 = vst [vmem:[#allocation9_spill] sm:$0xff] %v6036_v43  ;;  %v6041_v44 = vld [vmem:[%s5898_s21 + $0x3a] sm:$0xff]  ;;  %v6047_v46 = vld [vmem:[%s5898_s21 + $0x4a] sm:$0xff] }
  0x55   : > { %7299 = vst [vmem:[#allocation10_spill] sm:$0xff] %v6044_v45  ;;  %v6057_v47 = vld [vmem:[%s5898_s21 + $0xf9] sm:$0xff]  ;;  %v6065_v49 = vld [vmem:[%s5898_s21 + $0x109] sm:$0xff]  ;;  %v6077_v51 = vld [vmem:[%s5898_s21 + $0x111] sm:$0xff] }
  0x56   : > { %4926 = vmatmul.mubr.msk.f32.gmra.mrb[4].mxu1 %vm268_vm0, %v5917_v17  ;;  %5134 = vmatmul.mubr.msk.f32.gmra.mrb[4].mxu0 %vm268_vm0, %v5932_v22  ;;  %7300 = vst [vmem:[#allocation11_spill] sm:$0xff] %v6057_v47  ;;  %v6062_v48 = vld [vmem:[%s5898_s21 + $0x52] sm:$0xff]  ;;  %7301 = vst [vmem:[#allocation12_spill] sm:$0xff] %v6065_v49  ;;  %v6068_v50 = vld [vmem:[%s5898_s21 + $0x62] sm:$0xff] }
  0x57   : > { %4928 = vmatprep.mubr.msk.f32.mxu1 %vm268_vm0, %v5922_v20  ;;  %5136 = vmatprep.mubr.msk.f32.mxu0 %vm268_vm0, %v5935_v23  ;;  %7302 = vst [vmem:[#allocation13_spill] sm:$0xff] %v6077_v51  ;;  %v6082_v52 = vld [vmem:[%s5898_s21 + $0x6a] sm:$0xff]  ;;  %v6085_v53 = vld [vmem:[%s5898_s21 + $0x121] sm:$0xff]  ;;  %v6105_v57 = vld [vmem:[%s5898_s21 + $0x139] sm:$0xff] }
  0x58   : > { %7303 = vst [vmem:[#allocation14_spill] sm:$0xff] %v6085_v53  ;;  %v6088_v54 = vld [vmem:[%s5898_s21 + $0x7a] sm:$0xff]  ;;  %v6097_v55 = vld [vmem:[%s5898_s21 + $0x129] sm:$0xff]  ;;  %7305 = vst [vmem:[#allocation16_spill] sm:$0xff] %v6105_v57 }
  0x59   : > { %7304 = vst [vmem:[#allocation15_spill] sm:$0xff] %v6097_v55  ;;  %v6102_v56 = vld [vmem:[%s5898_s21 + $0x82] sm:$0xff]  ;;  %v6108_v58 = vld [vmem:[%s5898_s21 + $0x92] sm:$0xff]  ;;  %v6122_v60 = vld [vmem:[%s5898_s21 + $0x9a] sm:$0xff] }
  0x5a   : > { %4929 = vmatmul.mubr.msk.f32.gmra.mrb[6].mxu1 %vm268_vm0, %v5932_v22  ;;  %5137 = vmatmul.mubr.msk.f32.gmra.mrb[6].mxu0 %vm268_vm0, %v5946_v24  ;;  %v6117_v59 = vld [vmem:[%s5898_s21 + $0x141] sm:$0xff]  ;;  %v6125_v61 = vld [vmem:[%s5898_s21 + $0x151] sm:$0xff]  ;;  %v6137_v63 = vld [vmem:[%s5898_s21 + $0x159] sm:$0xff] }
  0x5b   : > { %4931 = vmatprep.mubr.msk.f32.mxu1 %vm268_vm0, %v5935_v23  ;;  %5139 = vmatprep.mubr.msk.f32.mxu0 %vm268_vm0, %v5949_v25  ;;  %7306 = vst [vmem:[#allocation17_spill] sm:$0xff] %v6117_v59  ;;  %7307 = vst [vmem:[#allocation18_spill] sm:$0xff] %v6125_v61  ;;  %v6128_v62 = vld [vmem:[%s5898_s21 + $0xaa] sm:$0xff]  ;;  %v6142_v0 = vld [vmem:[%s5898_s21 + $0xb2] sm:$0xff] }
  0x5c   : > { %7308 = vst [vmem:[#allocation19_spill] sm:$0xff] %v6137_v63  ;;  %v6145_v1 = vld [vmem:[%s5898_s21 + $0x169] sm:$0xff]  ;;  %v6157_v3 = vld [vmem:[%s5898_s21 + $0x171] sm:$0xff]  ;;  %v199_v5 = vld [vmem:[%s5898_s21] sm:$0xff] }
  0x5d   : > { %7309 = vst [vmem:[#allocation20_spill] sm:$0xff] %v6145_v1  ;;  %v6148_v2 = vld [vmem:[%s5898_s21 + $0xc2] sm:$0xff]  ;;  %7310 = vst [vmem:[#allocation21_spill] sm:$0xff] %v6157_v3  ;;  %v6162_v4 = vld [vmem:[%s5898_s21 + $0xca] sm:$0xff] }
  0x5e   : > { %4932 = vmatmul.mubr.msk.f32.gmra.mrb[8].mxu1 %vm268_vm0, %v5946_v24  ;;  %5140 = vmatmul.mubr.msk.f32.gmra.mrb[8].mxu0 %vm268_vm0, %v5960_v28  ;;  %v6166_v6 = vld [vmem:[%s5898_s21 + $0xda] sm:$0xff]  ;;  %v200_v10 = vld [vmem:[%s5898_s21 + $0x8] sm:$0xff]  ;;  %v6183_v13 = vld [vmem:[%s5898_s21 + $0xf2] sm:$0xff] }
  0x5f   : > { %4934 = vmatprep.mubr.msk.f32.mxu1 %vm268_vm0, %v5949_v25  ;;  %5142 = vmatprep.mubr.msk.f32.mxu0 %vm268_vm0, %v5965_v30  ;;  %v6177_v11 = vld [vmem:[%s5898_s21 + $0xe2] sm:$0xff]  ;;  %v6180_v12 = vld [vmem:[%s5898_s21 + $0x18] sm:$0xff]  ;;  %v6202_v19 = vld [vmem:[%s5898_s21 + $0x30] sm:$0xff] }
  0x60   : > { %7311 = vst [vmem:[#allocation22_spill] sm:$0xff] %v6180_v12  ;;  %v6192_v15 = vld [vmem:[%s5898_s21 + $0x20] sm:$0xff]  ;;  %v6215_v26 = vld [vmem:[%s5898_s21 + $0x38] sm:$0xff]  ;;  %v6235_v38 = vld [vmem:[%s5898_s21 + $0x50] sm:$0xff] }
  0x61   : > { %7312 = vst [vmem:[#allocation23_spill] sm:$0xff] %v6192_v15  ;;  %v6199_v18 = vld [vmem:[%s5898_s21 + $0xfa] sm:$0xff]  ;;  %v6220_v27 = vld [vmem:[%s5898_s21 + $0x112] sm:$0xff]  ;;  %v6226_v37 = vld [vmem:[%s5898_s21 + $0x122] sm:$0xff] }
  0x62   : > { %4935 = vmatmul.mubr.msk.f32.gmra.mrb[10].mxu1 %vm268_vm0, %v5960_v28  ;;  %5143 = vmatmul.mubr.msk.f32.gmra.mrb[10].mxu0 %vm268_vm0, %v5977_v31  ;;  %7314 = vst [vmem:[#allocation25_spill] sm:$0xff] %v6235_v38  ;;  %v6243_v8 = vld [vmem:[%s5898_s21 + $0x60] sm:$0xff] }
  0x63   : > { %4937 = vmatprep.mubr.msk.f32.mxu1 %vm268_vm0, %v5965_v30  ;;  %5145 = vmatprep.mubr.msk.f32.mxu0 %vm268_vm0, %v5980_v32  ;;  %7315 = vst [vmem:[#allocation26_spill] sm:$0xff] %v6243_v8  ;;  %v6246_v9 = vld [vmem:[%s5898_s21 + $0x13a] sm:$0xff] }
  0x66   : > { %4938 = vmatmul.mubr.msk.f32.gmra.mrb[12].mxu1 %vm268_vm0, %v5977_v31  ;;  %5146 = vmatmul.mubr.msk.f32.gmra.mrb[12].mxu0 %vm268_vm0, %v5991_v33 }
  0x67   : > { %4940 = vmatprep.mubr.msk.f32.mxu1 %vm268_vm0, %v5980_v32  ;;  %5148 = vmatprep.mubr.msk.f32.mxu0 %vm268_vm0, %v5994_v34 }
  0x6a   : > { %4941 = vmatmul.mubr.msk.f32.gmra.mrb[14].mxu1 %vm268_vm0, %v5991_v33  ;;  %5149 = vmatmul.mubr.msk.f32.gmra.mrb[14].mxu0 %vm268_vm0, %v6005_v35 }
  0x6b   : > { %4943 = vmatprep.mubr.msk.f32.mxu1 %vm268_vm0, %v5994_v34  ;;  %5179 = vmatprep.mubr.msk.f32.mxu0 %vm268_vm0, %v6008_v36 }
  0x6e   : > { %4944 = vmatmul.mubr.msk.f32.gmra.mrb[16].mxu1 %vm268_vm0, %v6005_v35  ;;  %5180 = vmatmul.mubr.msk.f32.vlgmr.msra.gmra.mrb[0].mxu0 %vm268_vm0, %v6019_v39 }
  0x6f   : > { %4946 = vmatprep.mubr.msk.f32.mxu1 %vm268_vm0, %v6022_v40  ;;  %5410 = vmatpush3.bf16.msra.mxu0 %v5407_v21  ;;  %v6205_v21 = vld [vmem:[%s5898_s21 + $0x10a] sm:$0xff] }
  0x70   : > { %5182 = vmatprep.mubr.msk.f32.mxu0 %vm268_vm0, %v6025_v41  ;;  %5412 = vmatprep.subr.bf16.mxu0 %v6027_v42  ;;  %v3275_v40 = vld [vmem:[#allocation2 + $0x88] sm:$0xff] }
  0x72   : > { %4947 = vmatmul.mubr.msk.f32.gmra.mrb[18].mxu1 %vm268_vm0, %v6036_v43  ;;  %5183 = vmatmul.mubr.msk.f32.gmra.mrb[2].mxu0 %vm268_vm0, %v6041_v44  ;;  %v3274_v43 = vld [vmem:[#allocation2 + $0x80] sm:$0xff] }
  0x73   : > { %4949 = vmatprep.mubr.msk.f32.mxu1 %vm268_vm0, %v6044_v45  ;;  %5185 = vmatprep.mubr.msk.f32.mxu0 %vm268_vm0, %v6047_v46  ;;  %v6320_v45 = vld [vmem:[%s5898_s21 + $0x18a] sm:$0xff] }
  0x74   : > { %7326 = vst [vmem:[#allocation37_spill] sm:$0xff] %v6320_v45 }
  0x76   : > { %4950 = vmatmul.mubr.msk.f32.gmra.mrb[20].mxu1 %vm268_vm0, %v6057_v47  ;;  %5186 = vmatmul.mubr.msk.f32.gmra.mrb[4].mxu0 %vm268_vm0, %v6062_v48  ;;  %v6306_v47 = vld [vmem:[%s5898_s21 + $0x182] sm:$0xff] }
  0x77   : > { %4952 = vmatprep.mubr.msk.f32.mxu1 %vm268_vm0, %v6065_v49  ;;  %5188 = vmatprep.mubr.msk.f32.mxu0 %vm268_vm0, %v6068_v50  ;;  %v6303_v49 = vld [vmem:[%s5898_s21 + $0xa8] sm:$0xff]  ;;  %7324 = vst [vmem:[#allocation35_spill] sm:$0xff] %v6306_v47 }
  0x78   : > { %7323 = vst [vmem:[#allocation34_spill] sm:$0xff] %v6303_v49 }
  0x7a   : > { %4953 = vmatmul.mubr.msk.f32.gmra.mrb[22].mxu1 %vm268_vm0, %v6077_v51  ;;  %5189 = vmatmul.mubr.msk.f32.gmra.mrb[6].mxu0 %vm268_vm0, %v6082_v52  ;;  %v6300_v51 = vld [vmem:[%s5898_s21 + $0x172] sm:$0xff] }
  0x7b   : > { %4955 = vmatprep.mubr.msk.f32.mxu1 %vm268_vm0, %v6085_v53  ;;  %5191 = vmatprep.mubr.msk.f32.mxu0 %vm268_vm0, %v6088_v54  ;;  %v6295_v53 = vld [vmem:[%s5898_s21 + $0x98] sm:$0xff]  ;;  %7322 = vst [vmem:[#allocation33_spill] sm:$0xff] %v6300_v51 }
  0x7c   : > { %7321 = vst [vmem:[#allocation32_spill] sm:$0xff] %v6295_v53 }
  0x7e   : > { %4956 = vmatmul.mubr.msk.f32.gmra.mrb[24].mxu1 %vm268_vm0, %v6097_v55  ;;  %5192 = vmatmul.mubr.msk.f32.gmra.mrb[8].mxu0 %vm268_vm0, %v6102_v56  ;;  %v6286_v55 = vld [vmem:[%s5898_s21 + $0x16a] sm:$0xff] }
  0x7f   : > { %4958 = vmatprep.mubr.msk.f32.mxu1 %vm268_vm0, %v6105_v57  ;;  %5194 = vmatprep.mubr.msk.f32.mxu0 %vm268_vm0, %v6108_v58  ;;  %v6283_v57 = vld [vmem:[%s5898_s21 + $0x90] sm:$0xff]  ;;  %7320 = vst [vmem:[#allocation31_spill] sm:$0xff] %v6286_v55 }
  0x80   : > { %7319 = vst [vmem:[#allocation30_spill] sm:$0xff] %v6283_v57 }
  0x82   : > { %4959 = vmatmul.mubr.msk.f32.gmra.mrb[26].mxu1 %vm268_vm0, %v6117_v59  ;;  %5195 = vmatmul.mubr.msk.f32.gmra.mrb[10].mxu0 %vm268_vm0, %v6122_v60  ;;  %v6280_v59 = vld [vmem:[%s5898_s21 + $0x15a] sm:$0xff] }
  0x83   : > { %4961 = vmatprep.mubr.msk.f32.mxu1 %vm268_vm0, %v6125_v61  ;;  %5197 = vmatprep.mubr.msk.f32.mxu0 %vm268_vm0, %v6128_v62  ;;  %v6275_v61 = vld [vmem:[%s5898_s21 + $0x80] sm:$0xff] }
  0x84   : > { %7318 = vst [vmem:[#allocation29_spill] sm:$0xff] %v6275_v61 }
  0x86   : > { %4962 = vmatmul.mubr.msk.f32.gmra.mrb[28].mxu1 %vm268_vm0, %v6137_v63  ;;  %5198 = vmatmul.mubr.msk.f32.gmra.mrb[12].mxu0 %vm268_vm0, %v6142_v0  ;;  %v6266_v63 = vld [vmem:[%s5898_s21 + $0x152] sm:$0xff] }
  0x87   : > { %4964 = vmatprep.mubr.msk.f32.mxu1 %vm268_vm0, %v6145_v1  ;;  %5200 = vmatprep.mubr.msk.f32.mxu0 %vm268_vm0, %v6148_v2  ;;  %v6263_v1 = vld [vmem:[%s5898_s21 + $0x78] sm:$0xff] }
  0x88   : > { %7317 = vst [vmem:[#allocation28_spill] sm:$0xff] %v6263_v1 }
  0x8a   : > { %4965 = vmatmul.mubr.msk.f32.gmra.mrb[30].mxu1 %vm268_vm0, %v6157_v3  ;;  %5201 = vmatmul.mubr.msk.f32.gmra.mrb[14].mxu0 %vm268_vm0, %v6162_v4  ;;  %v6260_v3 = vld [vmem:[%s5898_s21 + $0x142] sm:$0xff] }
  0x8b   : > { %4971 = vmatprep.mubr.msk.f32.mxu1 %vm268_vm0, %v199_v5  ;;  %5203 = vmatprep.mubr.msk.f32.mxu0 %vm268_vm0, %v6166_v6  ;;  %v6240_v5 = vld [vmem:[%s5898_s21 + $0x12a] sm:$0xff] }
  0x8e   : > { %4972 = vmatmul.mubr.msk.f32.vlgmr.msra.gmra.mrb[0].mxu1 %vm268_vm0, %v200_v10  ;;  %5204 = vmatmul.mubr.msk.f32.gmra.mrb[16].mxu0 %vm268_vm0, %v6177_v11  ;;  %v6255_v10 = vld [vmem:[%s5898_s21 + $0x68] sm:$0xff] }
  0x8f   : > { %5394 = vmatpush3.bf16.msra.mxu1 %v5962_v29  ;;  %4974 = vmatprep.mubr.msk.f32.mxu1 %vm268_vm0, %v6180_v12  ;;  %v6223_v29 = vld [vmem:[%s5898_s21 + $0x48] sm:$0xff]  ;;  %7316 = vst [vmem:[#allocation27_spill] sm:$0xff] %v6255_v10  ;;  %v6323_v12 = vld [vmem:[%s5898_s21 + $0xc0] sm:$0xff] }
  0x90   : > { %5206 = vmatprep.mubr.msk.f32.mxu0 %vm268_vm0, %v6183_v13  ;;  %5396 = vmatprep.subr.bf16.mxu1 %v6185_v14  ;;  %7313 = vst [vmem:[#allocation24_spill] sm:$0xff] %v6223_v29  ;;  %7327 = vst [vmem:[#allocation38_spill] sm:$0xff] %v6323_v12 }
  0x92   : > { %4975 = vmatmul.mubr.msk.f32.gmra.mrb[2].mxu1 %vm268_vm0, %v6192_v15  ;;  %5207 = vmatmul.mubr.msk.f32.gmra.mrb[18].mxu0 %vm268_vm0, %v6199_v18  ;;  %v6315_v15 = vld [vmem:[%s5898_s21 + $0xb0] sm:$0xff] }
  0x93   : > { %4977 = vmatprep.mubr.msk.f32.mxu1 %vm268_vm0, %v6202_v19  ;;  %5209 = vmatprep.mubr.msk.f32.mxu0 %vm268_vm0, %v6205_v21  ;;  %7325 = vst [vmem:[#allocation36_spill] sm:$0xff] %v6315_v15 }
  0x96   : > { %4978 = vmatmul.mubr.msk.f32.gmra.mrb[4].mxu1 %vm268_vm0, %v6215_v26  ;;  %5210 = vmatmul.mubr.msk.f32.gmra.mrb[20].mxu0 %vm268_vm0, %v6220_v27 }
  0x97   : > { %4980 = vmatprep.mubr.msk.f32.mxu1 %vm268_vm0, %v6223_v29  ;;  %5212 = vmatprep.mubr.msk.f32.mxu0 %vm268_vm0, %v6226_v37 }
  0x9a   : > { %4981 = vmatmul.mubr.msk.f32.gmra.mrb[6].mxu1 %vm268_vm0, %v6235_v38  ;;  %5213 = vmatmul.mubr.msk.f32.gmra.mrb[22].mxu0 %vm268_vm0, %v6240_v5 }
  0x9b   : > { %4983 = vmatprep.mubr.msk.f32.mxu1 %vm268_vm0, %v6243_v8  ;;  %5215 = vmatprep.mubr.msk.f32.mxu0 %vm268_vm0, %v6246_v9 }
  0x9e   : > { %4984 = vmatmul.mubr.msk.f32.gmra.mrb[8].mxu1 %vm268_vm0, %v6255_v10  ;;  %5216 = vmatmul.mubr.msk.f32.gmra.mrb[24].mxu0 %vm268_vm0, %v6260_v3 }
  0x9f   : > { %4986 = vmatprep.mubr.msk.f32.mxu1 %vm268_vm0, %v6263_v1  ;;  %5218 = vmatprep.mubr.msk.f32.mxu0 %vm268_vm0, %v6266_v63 }
  0xa2   : > { %4987 = vmatmul.mubr.msk.f32.gmra.mrb[10].mxu1 %vm268_vm0, %v6275_v61  ;;  %5219 = vmatmul.mubr.msk.f32.gmra.mrb[26].mxu0 %vm268_vm0, %v6280_v59 }
  0xa3   : > { %4989 = vmatprep.mubr.msk.f32.mxu1 %vm268_vm0, %v6283_v57  ;;  %5221 = vmatprep.mubr.msk.f32.mxu0 %vm268_vm0, %v6286_v55  ;;  %v6339_v55 = vpack.c.bf16 %v3275_v40, %v3274_v43  ;;  %v6354_v40 = vld [vmem:[%s5898_s21 + $0xf0] sm:$0xff]  ;;  %v6364_v43 = vld [vmem:[%s5898_s21 + $0xf8] sm:$0xff] }
  0xa6   : > { %4990 = vmatmul.mubr.msk.f32.gmra.mrb[12].mxu1 %vm268_vm0, %v6295_v53  ;;  %5222 = vmatmul.mubr.msk.f32.gmra.mrb[28].mxu0 %vm268_vm0, %v6300_v51  ;;  %v6332_v51 = vld [vmem:[%s5898_s21 + $0xc8] sm:$0xff] }
  0xa7   : > { %4992 = vmatprep.mubr.msk.f32.mxu1 %vm268_vm0, %v6303_v49  ;;  %5224 = vmatprep.mubr.msk.f32.mxu0 %vm268_vm0, %v6306_v47  ;;  %v6337_v47 = vld [vmem:[%s5898_s21 + $0xd8] sm:$0xff] }
  0xaa   : > { %4993 = vmatmul.mubr.msk.f32.gmra.mrb[14].mxu1 %vm268_vm0, %v6315_v15  ;;  %5225 = vmatmul.mubr.msk.f32.gmra.mrb[30].mxu0 %vm268_vm0, %v6320_v45  ;;  %v6348_v45 = vld [vmem:[%s5898_s21 + $0xe0] sm:$0xff] }
  0xab   : > { %4995 = vmatprep.mubr.msk.f32.mxu1 %vm268_vm0, %v6323_v12  ;;  %5231 = vmatprep.mubr.msk.f32.mxu0 %vm268_vm0, %v6202_v19 }
  0xae   : > { %4996 = vmatmul.mubr.msk.f32.gmra.mrb[16].mxu1 %vm268_vm0, %v6332_v51  ;;  %5232 = vmatmul.mubr.msk.f32.vlgmr.msra.gmra.mrb[0].mxu0 %vm268_vm0, %v6215_v26 }
  0xaf   : > { %4998 = vmatprep.mubr.msk.f32.mxu1 %vm268_vm0, %v6337_v47  ;;  %5414 = vmatpush3.bf16.msra.mxu0 %v6027_v42  ;;  %v6369_v42 = vld [vmem:[%s5898_s21 + $0x108] sm:$0xff] }
  0xb0   : > { %5234 = vmatprep.mubr.msk.f32.mxu0 %vm268_vm0, %v6223_v29  ;;  %5416 = vmatprep.subr.bf16.mxu0 %v6339_v55  ;;  %v6383_v29 = vld [vmem:[%s5898_s21 + $0x120] sm:$0xff] }
  0xb2   : > { %4999 = vmatmul.mubr.msk.f32.gmra.mrb[18].mxu1 %vm268_vm0, %v6348_v45  ;;  %5235 = vmatmul.mubr.msk.f32.gmra.mrb[2].mxu0 %vm268_vm0, %v6235_v38  ;;  %v6378_v38 = vld [vmem:[%s5898_s21 + $0x110] sm:$0xff] }
  0xb3   : > { %5001 = vmatprep.mubr.msk.f32.mxu1 %vm268_vm0, %v6354_v40  ;;  %5237 = vmatprep.mubr.msk.f32.mxu0 %vm268_vm0, %v6243_v8  ;;  %v6397_v8 = vld [vmem:[%s5898_s21 + $0x138] sm:$0xff] }
  0xb6   : > { %5002 = vmatmul.mubr.msk.f32.gmra.mrb[20].mxu1 %vm268_vm0, %v6364_v43  ;;  %5238 = vmatmul.mubr.msk.f32.gmra.mrb[4].mxu0 %vm268_vm0, %v6255_v10  ;;  %v6392_v10 = vld [vmem:[%s5898_s21 + $0x128] sm:$0xff] }
  0xb7   : > { %5004 = vmatprep.mubr.msk.f32.mxu1 %vm268_vm0, %v6369_v42  ;;  %5240 = vmatprep.mubr.msk.f32.mxu0 %vm268_vm0, %v6263_v1  ;;  %v6411_v1 = vld [vmem:[%s5898_s21 + $0x150] sm:$0xff] }
  0xba   : > { %5005 = vmatmul.mubr.msk.f32.gmra.mrb[22].mxu1 %vm268_vm0, %v6378_v38  ;;  %5241 = vmatmul.mubr.msk.f32.gmra.mrb[6].mxu0 %vm268_vm0, %v6275_v61  ;;  %v6406_v61 = vld [vmem:[%s5898_s21 + $0x140] sm:$0xff] }
  0xbb   : > { %5007 = vmatprep.mubr.msk.f32.mxu1 %vm268_vm0, %v6383_v29  ;;  %5243 = vmatprep.mubr.msk.f32.mxu0 %vm268_vm0, %v6283_v57  ;;  %v6425_v57 = vld [vmem:[%s5898_s21 + $0x168] sm:$0xff] }
  0xbe   : > { %5008 = vmatmul.mubr.msk.f32.gmra.mrb[24].mxu1 %vm268_vm0, %v6392_v10  ;;  %5244 = vmatmul.mubr.msk.f32.gmra.mrb[8].mxu0 %vm268_vm0, %v6295_v53  ;;  %v6420_v53 = vld [vmem:[%s5898_s21 + $0x158] sm:$0xff] }
  0xbf   : > { %5010 = vmatprep.mubr.msk.f32.mxu1 %vm268_vm0, %v6397_v8  ;;  %5246 = vmatprep.mubr.msk.f32.mxu0 %vm268_vm0, %v6303_v49  ;;  %v911_v49 = vld [vmem:[%s5898_s21 + $0x2] sm:$0xff] }
  0xc2   : > { %5011 = vmatmul.mubr.msk.f32.gmra.mrb[26].mxu1 %vm268_vm0, %v6406_v61  ;;  %5247 = vmatmul.mubr.msk.f32.gmra.mrb[10].mxu0 %vm268_vm0, %v6315_v15  ;;  %v6434_v15 = vld [vmem:[%s5898_s21 + $0x170] sm:$0xff] }
  0xc3   : > { %5013 = vmatprep.mubr.msk.f32.mxu1 %vm268_vm0, %v6411_v1  ;;  %5249 = vmatprep.mubr.msk.f32.mxu0 %vm268_vm0, %v6323_v12  ;;  %v912_v12 = vld [vmem:[%s5898_s21 + $0xa] sm:$0xff] }
  0xc6   : > { %5014 = vmatmul.mubr.msk.f32.gmra.mrb[28].mxu1 %vm268_vm0, %v6420_v53  ;;  %5250 = vmatmul.mubr.msk.f32.gmra.mrb[12].mxu0 %vm268_vm0, %v6332_v51 }
  0xc7   : > { %5016 = vmatprep.mubr.msk.f32.mxu1 %vm268_vm0, %v6425_v57  ;;  %5252 = vmatprep.mubr.msk.f32.mxu0 %vm268_vm0, %v6337_v47 }
  0xca   : > { %5017 = vmatmul.mubr.msk.f32.gmra.mrb[30].mxu1 %vm268_vm0, %v6434_v15  ;;  %5253 = vmatmul.mubr.msk.f32.gmra.mrb[14].mxu0 %vm268_vm0, %v6348_v45 }
  0xcb   : > { %5023 = vmatprep.mubr.msk.f32.mxu1 %vm268_vm0, %v911_v49  ;;  %5255 = vmatprep.mubr.msk.f32.mxu0 %vm268_vm0, %v6354_v40  ;;  %v4443_v49 = vld [vmem:[%s5898_s21 + $0x198] sm:$0xff] }
  0xce   : > { %5024 = vmatmul.mubr.msk.f32.vlgmr.msra.gmra.mrb[0].mxu1 %vm268_vm0, %v912_v12  ;;  %5256 = vmatmul.mubr.msk.f32.gmra.mrb[16].mxu0 %vm268_vm0, %v6364_v43  ;;  %v4444_v12 = vld [vmem:[%s5898_s21 + $0x1a0] sm:$0xff] }
  0xcf   : > { %5398 = vmatpush3.bf16.msra.mxu1 %v6185_v14  ;;  %5026 = vmatprep.mubr.msk.f32.mxu1 %vm268_vm0, %v6008_v36  ;;  %v6489_v36 = vld [vmem:[%s5898_s21 + $0x180] sm:$0xff]  ;;  %v7344_v14 = vld [vmem:[#allocation27_spill] sm:$0xff] }
  0xd0   : > { %5258 = vmatprep.mubr.msk.f32.mxu0 %vm268_vm0, %v6369_v42  ;;  %5419 = vmatprep.subr.bf16.mxu1 %v5902_v7 }
  0xd2   : > { %5027 = vmatmul.mubr.msk.f32.gmra.mrb[2].mxu1 %vm268_vm0, %v6019_v39  ;;  %5259 = vmatmul.mubr.msk.f32.gmra.mrb[18].mxu0 %vm268_vm0, %v6378_v38  ;;  %v6500_v39 = vld [vmem:[%s5898_s21 + $0x188] sm:$0xff] }
  0xd3   : > { %5029 = vmatprep.mubr.msk.f32.mxu1 %vm268_vm0, %v6025_v41  ;;  %5261 = vmatprep.mubr.msk.f32.mxu0 %vm268_vm0, %v6383_v29 }
  0xd6   : > { %5030 = vmatmul.mubr.msk.f32.gmra.mrb[4].mxu1 %vm268_vm0, %v6041_v44  ;;  %5262 = vmatmul.mubr.msk.f32.gmra.mrb[20].mxu0 %vm268_vm0, %v6392_v10 }
  0xd7   : > { %5032 = vmatprep.mubr.msk.f32.mxu1 %vm268_vm0, %v6047_v46  ;;  %5264 = vmatprep.mubr.msk.f32.mxu0 %vm268_vm0, %v6397_v8 }
  0xda   : > { %5033 = vmatmul.mubr.msk.f32.gmra.mrb[6].mxu1 %vm268_vm0, %v6062_v48  ;;  %5265 = vmatmul.mubr.msk.f32.gmra.mrb[22].mxu0 %vm268_vm0, %v6406_v61 }
  0xdb   : > { %5035 = vmatprep.mubr.msk.f32.mxu1 %vm268_vm0, %v6068_v50  ;;  %5267 = vmatprep.mubr.msk.f32.mxu0 %vm268_vm0, %v6411_v1 }
  0xde   : > { %5036 = vmatmul.mubr.msk.f32.gmra.mrb[8].mxu1 %vm268_vm0, %v6082_v52  ;;  %5268 = vmatmul.mubr.msk.f32.gmra.mrb[24].mxu0 %vm268_vm0, %v6420_v53 }
  0xdf   : > { %5038 = vmatprep.mubr.msk.f32.mxu1 %vm268_vm0, %v6088_v54  ;;  %5270 = vmatprep.mubr.msk.f32.mxu0 %vm268_vm0, %v6425_v57 }
  0xe2   : > { %5039 = vmatmul.mubr.msk.f32.gmra.mrb[10].mxu1 %vm268_vm0, %v6102_v56  ;;  %5271 = vmatmul.mubr.msk.f32.gmra.mrb[26].mxu0 %vm268_vm0, %v6434_v15 }
  0xe3   : > { %5041 = vmatprep.mubr.msk.f32.mxu1 %vm268_vm0, %v6108_v58  ;;  %5273 = vmatprep.mubr.msk.f32.mxu0 %vm268_vm0, %v6489_v36 }
  0xe6   : > { %5042 = vmatmul.mubr.msk.f32.gmra.mrb[12].mxu1 %vm268_vm0, %v6122_v60  ;;  %5274 = vmatmul.mubr.msk.f32.gmra.mrb[28].mxu0 %vm268_vm0, %v6500_v39 }
  0xe7   : > { %5044 = vmatprep.mubr.msk.f32.mxu1 %vm268_vm0, %v6128_v62  ;;  %5276 = vmatprep.mubr.msk.f32.mxu0 %vm268_vm0, %v4443_v49  ;;  %v7347_v49 = vld [vmem:[#allocation18_spill] sm:$0xff] }
  0xea   : > { %5045 = vmatmul.mubr.msk.f32.gmra.mrb[14].mxu1 %vm268_vm0, %v6142_v0  ;;  %5277 = vmatmul.mubr.msk.f32.gmra.mrb[30].mxu0 %vm268_vm0, %v4444_v12  ;;  %v7348_v12 = vld [vmem:[#allocation29_spill] sm:$0xff] }
  0xeb   : > { %5047 = vmatprep.mubr.msk.f32.mxu1 %vm268_vm0, %v6148_v2  ;;  %5283 = vmatprep.mubr.msk.f32.mxu0 %vm268_vm0, %v5912_v16  ;;  %v7328_v16 = vld [vmem:[#allocation31_spill] sm:$0xff] }
  0xee   : > { %5048 = vmatmul.mubr.msk.f32.gmra.mrb[16].mxu1 %vm268_vm0, %v6162_v4  ;;  %5284 = vmatmul.mubr.msk.f32.vlgmr.msra.gmra.mrb[0].mxu0 %vm268_vm0, %v5917_v17  ;;  %v7329_v17 = vld [vmem:[#allocation8_spill] sm:$0xff] }
  0xef   : > { %5050 = vmatprep.mubr.msk.f32.mxu1 %vm268_vm0, %v6166_v6  ;;  %5418 = vmatpush3.bf16.msra.mxu0 %v6339_v55  ;;  %v7343_v55 = vld [vmem:[#allocation16_spill] sm:$0xff] }
  0xf0   : > { %5286 = vmatprep.mubr.msk.f32.mxu0 %vm268_vm0, %v5922_v20  ;;  %v7330_v20 = vld [vmem:[#allocation33_spill] sm:$0xff] }
  0xf2   : > { %5051 = vmatmul.mubr.msk.f32.gmra.mrb[18].mxu1 %vm268_vm0, %v6177_v11  ;;  %5287 = vmatmul.mubr.msk.f32.gmra.mrb[2].mxu0 %vm268_vm0, %v5932_v22  ;;  %v7331_v22 = vld [vmem:[#allocation9_spill] sm:$0xff] }
  0xf3   : > { %5053 = vmatprep.mubr.msk.f32.mxu1 %vm268_vm0, %v6183_v13  ;;  %5289 = vmatprep.mubr.msk.f32.mxu0 %vm268_vm0, %v5935_v23  ;;  %v7332_v23 = vld [vmem:[#allocation22_spill] sm:$0xff] }
  0xf6   : > { %5054 = vmatmul.mubr.msk.f32.gmra.mrb[20].mxu1 %vm268_vm0, %v6199_v18  ;;  %5290 = vmatmul.mubr.msk.f32.gmra.mrb[4].mxu0 %vm268_vm0, %v5946_v24  ;;  %v7333_v24 = vld [vmem:[#allocation10_spill] sm:$0xff] }
  0xf7   : > { %5056 = vmatprep.mubr.msk.f32.mxu1 %vm268_vm0, %v6205_v21  ;;  %5292 = vmatprep.mubr.msk.f32.mxu0 %vm268_vm0, %v5949_v25  ;;  %v7334_v25 = vld [vmem:[#allocation23_spill] sm:$0xff] }
  0xfa   : > { %5057 = vmatmul.mubr.msk.f32.gmra.mrb[22].mxu1 %vm268_vm0, %v6220_v27  ;;  %5293 = vmatmul.mubr.msk.f32.gmra.mrb[6].mxu0 %vm268_vm0, %v5960_v28  ;;  %v7335_v28 = vld [vmem:[#allocation11_spill] sm:$0xff] }
  0xfb   : > { %5059 = vmatprep.mubr.msk.f32.mxu1 %vm268_vm0, %v6226_v37  ;;  %5295 = vmatprep.mubr.msk.f32.mxu0 %vm268_vm0, %v5965_v30  ;;  %v7336_v30 = vld [vmem:[#allocation12_spill] sm:$0xff] }
  0xfe   : > { %5060 = vmatmul.mubr.msk.f32.gmra.mrb[24].mxu1 %vm268_vm0, %v6240_v5  ;;  %5296 = vmatmul.mubr.msk.f32.gmra.mrb[8].mxu0 %vm268_vm0, %v5977_v31  ;;  %v7337_v31 = vld [vmem:[#allocation13_spill] sm:$0xff] }
  0xff   : > { %5062 = vmatprep.mubr.msk.f32.mxu1 %vm268_vm0, %v6246_v9  ;;  %5298 = vmatprep.mubr.msk.f32.mxu0 %vm268_vm0, %v5980_v32  ;;  %v7338_v32 = vld [vmem:[#allocation24_spill] sm:$0xff] }
 0x102   : > { %5063 = vmatmul.mubr.msk.f32.gmra.mrb[26].mxu1 %vm268_vm0, %v6260_v3  ;;  %5299 = vmatmul.mubr.msk.f32.gmra.mrb[10].mxu0 %vm268_vm0, %v5991_v33  ;;  %v7339_v33 = vld [vmem:[#allocation14_spill] sm:$0xff] }
 0x103   : > { %5065 = vmatprep.mubr.msk.f32.mxu1 %vm268_vm0, %v6266_v63  ;;  %5301 = vmatprep.mubr.msk.f32.mxu0 %vm268_vm0, %v5994_v34  ;;  %v7341_v34 = vld [vmem:[#allocation15_spill] sm:$0xff] }
 0x106   : > { %5066 = vmatmul.mubr.msk.f32.gmra.mrb[28].mxu1 %vm268_vm0, %v6280_v59  ;;  %5302 = vmatmul.mubr.msk.f32.gmra.mrb[12].mxu0 %vm268_vm0, %v6005_v35  ;;  %v7342_v35 = vld [vmem:[#allocation26_spill] sm:$0xff] }
 0x107   : > { %5068 = vmatprep.mubr.msk.f32.mxu1 %vm268_vm0, %v7328_v16  ;;  %5304 = vmatprep.mubr.msk.f32.mxu0 %vm268_vm0, %v7329_v17 }
 0x10a   : > { %5069 = vmatmul.mubr.msk.f32.gmra.mrb[30].mxu1 %vm268_vm0, %v7330_v20  ;;  %5305 = vmatmul.mubr.msk.f32.gmra.mrb[14].mxu0 %vm268_vm0, %v7331_v22  ;;  %v7355_v20 = vld [vmem:[#allocation36_spill] sm:$0xff] }
 0x10b   : > { %5075 = vmatprep.mubr.msk.f32.mxu1 %vm268_vm0, %v7332_v23  ;;  %5307 = vmatprep.mubr.msk.f32.mxu0 %vm268_vm0, %v7333_v24  ;;  %v7349_v23 = vld [vmem:[#allocation19_spill] sm:$0xff] }
 0x10e   : > { %5076 = vmatmul.mubr.msk.f32.vlgmr.msra.gmra.mrb[0].mxu1 %vm268_vm0, %v7334_v25  ;;  %5308 = vmatmul.mubr.msk.f32.gmra.mrb[16].mxu0 %vm268_vm0, %v7335_v28  ;;  %v7350_v25 = vld [vmem:[#allocation30_spill] sm:$0xff] }
 0x10f   : > { %5420 = vmatpush3.bf16.msra.mxu1 %v5902_v7  ;;  %5078 = vmatprep.mubr.msk.f32.mxu1 %vm268_vm0, %v6202_v19  ;;  %v7340_v7 = vld [vmem:[#allocation25_spill] sm:$0xff] }
 0x110   : > { %5310 = vmatprep.mubr.msk.f32.mxu0 %vm268_vm0, %v7336_v30  ;;  %v7345_v19 = vld [vmem:[#allocation17_spill] sm:$0xff] }
 0x112   : > { %5079 = vmatmul.mubr.msk.f32.gmra.mrb[2].mxu1 %vm268_vm0, %v6215_v26  ;;  %5311 = vmatmul.mubr.msk.f32.gmra.mrb[18].mxu0 %vm268_vm0, %v7337_v31  ;;  %v7346_v26 = vld [vmem:[#allocation28_spill] sm:$0xff] }
 0x113   : > { %5081 = vmatprep.mubr.msk.f32.mxu1 %vm268_vm0, %v7338_v32  ;;  %5313 = vmatprep.mubr.msk.f32.mxu0 %vm268_vm0, %v7339_v33  ;;  %v7351_v32 = vld [vmem:[#allocation20_spill] sm:$0xff] }
 0x116   : > { %5082 = vmatmul.mubr.msk.f32.gmra.mrb[4].mxu1 %vm268_vm0, %v7340_v7  ;;  %5314 = vmatmul.mubr.msk.f32.gmra.mrb[20].mxu0 %vm268_vm0, %v7341_v34  ;;  %v6625_v7 = vld [vmem:[%s5898_s21 + $0x181] sm:$0xff] }
 0x117   : > { %5084 = vmatprep.mubr.msk.f32.mxu1 %vm268_vm0, %v7342_v35  ;;  %5316 = vmatprep.mubr.msk.f32.mxu0 %vm268_vm0, %v7343_v55  ;;  %v7352_v35 = vld [vmem:[#allocation32_spill] sm:$0xff] }
 0x11a   : > { %5085 = vmatmul.mubr.msk.f32.gmra.mrb[6].mxu1 %vm268_vm0, %v7344_v14  ;;  %5317 = vmatmul.mubr.msk.f32.gmra.mrb[22].mxu0 %vm268_vm0, %v7345_v19  ;;  %v7353_v14 = vld [vmem:[#allocation21_spill] sm:$0xff] }
 0x11b   : > { %5087 = vmatprep.mubr.msk.f32.mxu1 %vm268_vm0, %v7346_v26  ;;  %5319 = vmatprep.mubr.msk.f32.mxu0 %vm268_vm0, %v7347_v49  ;;  %v7354_v26 = vld [vmem:[#allocation34_spill] sm:$0xff] }
 0x11e   : > { %5088 = vmatmul.mubr.msk.f32.gmra.mrb[8].mxu1 %vm268_vm0, %v7348_v12  ;;  %5320 = vmatmul.mubr.msk.f32.gmra.mrb[24].mxu0 %vm268_vm0, %v7349_v23  ;;  %v6636_v12 = vld [vmem:[%s5898_s21 + $0x189] sm:$0xff] }
 0x11f   : > { %5090 = vmatprep.mubr.msk.f32.mxu1 %vm268_vm0, %v7350_v25  ;;  %5322 = vmatprep.mubr.msk.f32.mxu0 %vm268_vm0, %v7351_v32  ;;  %v4507_v25 = vld [vmem:[%s5898_s21 + $0x199] sm:$0xff]  ;;  %v7356_v32 = vld [vmem:[#allocation38_spill] sm:$0xff] }
 0x122   : > { %5091 = vmatmul.mubr.msk.f32.gmra.mrb[10].mxu1 %vm268_vm0, %v7352_v35  ;;  %5323 = vmatmul.mubr.msk.f32.gmra.mrb[26].mxu0 %vm268_vm0, %v7353_v14  ;;  %v4508_v35 = vld [vmem:[%s5898_s21 + $0x1a1] sm:$0xff] }
 0x123   : > { %5093 = vmatprep.mubr.msk.f32.mxu1 %vm268_vm0, %v7354_v26  ;;  %5325 = vmatprep.mubr.msk.f32.mxu0 %vm268_vm0, %v6625_v7 }
 0x126   : > { %5094 = vmatmul.mubr.msk.f32.gmra.mrb[12].mxu1 %vm268_vm0, %v7355_v20  ;;  %5326 = vmatmul.mubr.msk.f32.gmra.mrb[28].mxu0 %vm268_vm0, %v6636_v12 }
 0x127   : > { %5096 = vmatprep.mubr.msk.f32.mxu1 %vm268_vm0, %v7356_v32  ;;  %5328 = vmatprep.mubr.msk.f32.mxu0 %vm268_vm0, %v4507_v25 }
 0x12a   : > { %5097 = vmatmul.mubr.msk.f32.gmra.mrb[14].mxu1 %vm268_vm0, %v6332_v51  ;;  %5329 = vmatmul.mubr.msk.f32.gmra.mrb[30].mxu0 %vm268_vm0, %v4508_v35 }
 0x12b   : > { %5099 = vmatprep.mubr.msk.f32.mxu1 %vm268_vm0, %v6337_v47  ;;  %5335 = vmatprep.mubr.msk.f32.mxu0 %vm268_vm0, %v6025_v41  ;;  %v7357_v41 = vld [vmem:[#allocation33_spill] sm:$0xff] }
 0x12c   : > { %v7360_v47 = vld [vmem:[#allocation37_spill] sm:$0xff] }
 0x12e   : > { %5100 = vmatmul.mubr.msk.f32.gmra.mrb[16].mxu1 %vm268_vm0, %v6348_v45  ;;  %5336 = vmatmul.mubr.msk.f32.vlgmr.msra.gmra.mrb[0].mxu0 %vm268_vm0, %v6041_v44  ;;  %v7358_v44 = vld [vmem:[#allocation20_spill] sm:$0xff]  ;;  %v7359_v45 = vld [vmem:[#allocation35_spill] sm:$0xff] }
 0x12f   : > { %5102 = vmatprep.mubr.msk.f32.mxu1 %vm268_vm0, %v6354_v40  ;;  %5338 = vmatprep.mubr.msk.f32.mxu0 %vm268_vm0, %v6047_v46  ;;  %v4571_v46 = vld [vmem:[%s5898_s21 + $0x19a] sm:$0xff] }
 0x132   : > { %5103 = vmatmul.mubr.msk.f32.gmra.mrb[18].mxu1 %vm268_vm0, %v6364_v43  ;;  %5339 = vmatmul.mubr.msk.f32.gmra.mrb[2].mxu0 %vm268_vm0, %v6062_v48  ;;  %v4572_v48 = vld [vmem:[%s5898_s21 + $0x1a2] sm:$0xff] }
 0x133   : > { %5105 = vmatprep.mubr.msk.f32.mxu1 %vm268_vm0, %v6369_v42  ;;  %5341 = vmatprep.mubr.msk.f32.mxu0 %vm268_vm0, %v6068_v50 }
 0x136   : > { %5106 = vmatmul.mubr.msk.f32.gmra.mrb[20].mxu1 %vm268_vm0, %v6378_v38  ;;  %5342 = vmatmul.mubr.msk.f32.gmra.mrb[4].mxu0 %vm268_vm0, %v6082_v52 }
 0x137   : > { %5108 = vmatprep.mubr.msk.f32.mxu1 %vm268_vm0, %v6383_v29  ;;  %5344 = vmatprep.mubr.msk.f32.mxu0 %vm268_vm0, %v6088_v54 }
 0x13a   : > { %5109 = vmatmul.mubr.msk.f32.gmra.mrb[22].mxu1 %vm268_vm0, %v6392_v10  ;;  %5345 = vmatmul.mubr.msk.f32.gmra.mrb[6].mxu0 %vm268_vm0, %v6102_v56 }
 0x13b   : > { %5111 = vmatprep.mubr.msk.f32.mxu1 %vm268_vm0, %v6397_v8  ;;  %5347 = vmatprep.mubr.msk.f32.mxu0 %vm268_vm0, %v6108_v58 }
 0x13e   : > { %5112 = vmatmul.mubr.msk.f32.gmra.mrb[24].mxu1 %vm268_vm0, %v6406_v61  ;;  %5348 = vmatmul.mubr.msk.f32.gmra.mrb[8].mxu0 %vm268_vm0, %v6122_v60 }
 0x13f   : > { %5114 = vmatprep.mubr.msk.f32.mxu1 %vm268_vm0, %v6411_v1  ;;  %5350 = vmatprep.mubr.msk.f32.mxu0 %vm268_vm0, %v6128_v62 }
 0x142   : > { %5115 = vmatmul.mubr.msk.f32.gmra.mrb[26].mxu1 %vm268_vm0, %v6420_v53  ;;  %5351 = vmatmul.mubr.msk.f32.gmra.mrb[10].mxu0 %vm268_vm0, %v6142_v0 }
 0x143   : > { %5117 = vmatprep.mubr.msk.f32.mxu1 %vm268_vm0, %v6425_v57  ;;  %5353 = vmatprep.mubr.msk.f32.mxu0 %vm268_vm0, %v6148_v2 }
 0x146   : > { %5118 = vmatmul.mubr.msk.f32.gmra.mrb[28].mxu1 %vm268_vm0, %v6434_v15  ;;  %5354 = vmatmul.mubr.msk.f32.gmra.mrb[12].mxu0 %vm268_vm0, %v6162_v4  ;;  %v6794_v4 = vld [vmem:[#allocation4] ss:$0 sm:$0xff] }
 0x147   : > { %5120 = vmatprep.mubr.msk.f32.mxu1 %vm268_vm0, %v6489_v36  ;;  %5356 = vmatprep.mubr.msk.f32.mxu0 %vm268_vm0, %v6166_v6 }
 0x14a   : > { %5121 = vmatmul.mubr.msk.f32.gmra.mrb[30].mxu1 %vm268_vm0, %v6500_v39  ;;  %5357 = vmatmul.mubr.msk.f32.gmra.mrb[14].mxu0 %vm268_vm0, %v6177_v11 }
 0x14b   : > { %5151 = vmatprep.mubr.msk.f32.mxu1 %vm268_vm0, %v7329_v17  ;;  %5359 = vmatprep.mubr.msk.f32.mxu0 %vm268_vm0, %v6183_v13 }
 0x14e   : > { %5152 = vmatmul.mubr.msk.f32.vlgmr.msra.gmra.mrb[16].mxu1 %vm268_vm0, %v7331_v22  ;;  %5360 = vmatmul.mubr.msk.f32.gmra.mrb[16].mxu0 %vm268_vm0, %v6199_v18 }
 0x14f   : > { %5154 = vmatprep.mubr.msk.f32.mxu1 %vm268_vm0, %v7333_v24  ;;  %5362 = vmatprep.mubr.msk.f32.mxu0 %vm268_vm0, %v6205_v21 }
 0x152   : > { %5155 = vmatmul.mubr.msk.f32.gmra.mrb[18].mxu1 %vm268_vm0, %v7335_v28  ;;  %5363 = vmatmul.mubr.msk.f32.gmra.mrb[18].mxu0 %vm268_vm0, %v6220_v27 }
 0x153   : > { %5157 = vmatprep.mubr.msk.f32.mxu1 %vm268_vm0, %v7336_v30  ;;  %5365 = vmatprep.mubr.msk.f32.mxu0 %vm268_vm0, %v6226_v37 }
 0x156   : > { %5158 = vmatmul.mubr.msk.f32.gmra.mrb[20].mxu1 %vm268_vm0, %v7337_v31  ;;  %5366 = vmatmul.mubr.msk.f32.gmra.mrb[20].mxu0 %vm268_vm0, %v6240_v5 }
 0x157   : > { %5160 = vmatprep.mubr.msk.f32.mxu1 %vm268_vm0, %v7339_v33  ;;  %5368 = vmatprep.mubr.msk.f32.mxu0 %vm268_vm0, %v6246_v9 }
 0x15a   : > { %5161 = vmatmul.mubr.msk.f32.gmra.mrb[22].mxu1 %vm268_vm0, %v7341_v34  ;;  %5369 = vmatmul.mubr.msk.f32.gmra.mrb[22].mxu0 %vm268_vm0, %v6260_v3 }
 0x15b   : > { %5163 = vmatprep.mubr.msk.f32.mxu1 %vm268_vm0, %v7343_v55  ;;  %5371 = vmatprep.mubr.msk.f32.mxu0 %vm268_vm0, %v6266_v63 }
 0x15e   : > { %5164 = vmatmul.mubr.msk.f32.gmra.mrb[24].mxu1 %vm268_vm0, %v7345_v19  ;;  %5372 = vmatmul.mubr.msk.f32.gmra.mrb[24].mxu0 %vm268_vm0, %v6280_v59 }
 0x15f   : > { %5166 = vmatprep.mubr.msk.f32.mxu1 %vm268_vm0, %v7347_v49  ;;  %5374 = vmatprep.mubr.msk.f32.mxu0 %vm268_vm0, %v7328_v16 }
 0x162   : > { %5167 = vmatmul.mubr.msk.f32.gmra.mrb[26].mxu1 %vm268_vm0, %v7349_v23  ;;  %5375 = vmatmul.mubr.msk.f32.gmra.mrb[26].mxu0 %vm268_vm0, %v7357_v41 }
 0x163   : > { %5169 = vmatprep.mubr.msk.f32.mxu1 %vm268_vm0, %v7358_v44  ;;  %5377 = vmatprep.mubr.msk.f32.mxu0 %vm268_vm0, %v7359_v45 }
 0x166   : > { %5170 = vmatmul.mubr.msk.f32.gmra.mrb[28].mxu1 %vm268_vm0, %v7353_v14  ;;  %5378 = vmatmul.mubr.msk.f32.gmra.mrb[28].mxu0 %vm268_vm0, %v7360_v47 }
 0x167   : > { %5172 = vmatprep.mubr.msk.f32.mxu1 %vm268_vm0, %v6625_v7  ;;  %5380 = vmatprep.mubr.msk.f32.mxu0 %vm268_vm0, %v4571_v46 }
 0x16a   : > { %5173 = vmatmul.mubr.msk.f32.gmra.mrb[30].mxu1 %vm268_vm0, %v6636_v12  ;;  %5381 = vmatmul.mubr.msk.f32.gmra.mrb[30].mxu0 %vm268_vm0, %v4572_v48 }
 0x1e1   : > { %v5077_v50 = vpop.f32.mrb[0].mxu1 }
 0x1e2   : > { %v1497_v51 = vpop.f32.mrb[1].mxu1 }
 0x1e5   : > { %v5080_v52 = vpop.f32.mrb[2].mxu1 }
 0x1e6   : > { %v1507_v53 = vpop.f32.mrb[3].mxu1 }
 0x1e9   : > { %v5083_v54 = vpop.f32.mrb[4].mxu1 }
 0x1ea   : > { %v1517_v56 = vpop.f32.mrb[5].mxu1 }
 0x1ed   : > { %v5086_v57 = vpop.f32.mrb[6].mxu1 }
 0x1ee   : > { %v1527_v58 = vpop.f32.mrb[7].mxu1 }
 0x1f1   : > { %v6778_v59 = vpop.f32.mrb[8].mxu1 }
 0x1f2   : > { %v6780_v60 = vpop.f32.mrb[9].mxu1 }
 0x1f5   : > { %v6782_v61 = vpop.f32.mrb[10].mxu1 }
 0x1f6   : > { %v6784_v62 = vpop.f32.mrb[11].mxu1 }
 0x1f9   : > { %v6786_v63 = vpop.f32.mrb[12].mxu1 }
 0x1fa   : > { %v6788_v0 = vpop.f32.mrb[13].mxu1 }
 0x1fd   : > { %v6790_v1 = vpop.f32.mrb[14].mxu1 }
 0x1fe   : > { %v6792_v2 = vpop.f32.mrb[15].mxu1 }
 0x201   : > { %v5337_v3 = vpop.f32.mrb[0].mxu0 }
 0x202   : > { %v5421_v6 = vadd.f32 %v5337_v3, %v5077_v50  ;;  %v3438_v11 = vpop.f32.mrb[1].mxu0 }
 0x203   : > { %v5422_v13 = vadd.f32 %v3438_v11, %v1497_v51 }
 0x204   : > { %v3637_v15 = vadd.f32 %v5421_v6, %v6794_v4 }
 0x205   : > { %v3636_v18 = vadd.f32 %v5422_v13, %v6794_v4  ;;  %v5340_v21 = vpop.f32.mrb[2].mxu0 }
 0x206   : > { %vm3669_vm1 = vcmp.ge.f32.partialorder %v3637_v15, 0.0  ;;  %v3701_v27 = vmul.f32 0.1, %v3637_v15  ;;  %v5423_v29 = vadd.f32 %v5340_v21, %v5080_v52  ;;  %v3448_v37 = vpop.f32.mrb[3].mxu0 }
 0x207   : > { %vm3668_vm3 = vcmp.ge.f32.partialorder %v3636_v18, 0.0  ;;  %v3700_v38 = vmul.f32 0.1, %v3636_v18  ;;  %v5424_v5 = vadd.f32 %v3448_v37, %v1507_v53 }
 0x208   : > { %v6798_v8 = vsel %vm3669_vm1, %v3637_v15, %v3701_v27  ;;  %v3639_v9 = vadd.f32 %v5423_v29, %v6794_v4 }
 0x209   : > { %v3766_v10 = vsel %vm3764_vm2, %v6798_v8, 0.0  ;;  %v6803_v40 = vsel %vm3668_vm3, %v3636_v18, %v3700_v38  ;;  %v3638_v43 = vadd.f32 %v5424_v5, %v6794_v4  ;;  %v5343_v42 = vpop.f32.mrb[4].mxu0 }
 0x20a   : > { %v3765_v36 = vsel %vm3764_vm2, %v6803_v40, 0.0  ;;  %vm3671_vm4 = vcmp.ge.f32.partialorder %v3639_v9, 0.0  ;;  %v3703_v39 = vmul.f32 0.1, %v3639_v9  ;;  %v5425_v16 = vadd.f32 %v5343_v42, %v5083_v54  ;;  %v3458_v17 = vpop.f32.mrb[5].mxu0 }
 0x20b   : > { %vm3670_vm5 = vcmp.ge.f32.partialorder %v3638_v43, 0.0  ;;  %v3702_v20 = vmul.f32 0.1, %v3638_v43  ;;  %v5426_v22 = vadd.f32 %v3458_v17, %v1517_v56  ;;  %v3767_v28 = vadd.f32 %v3766_v10, %v3765_v36 }
 0x20c   : > { %v3641_v24 = vadd.f32 %v5425_v16, %v6794_v4  ;;  %v6809_v30 = vsel %vm3671_vm4, %v3639_v9, %v3703_v39 }
 0x20d   : > { %v6811_v31 = vsel %vm3670_vm5, %v3638_v43, %v3702_v20  ;;  %v3640_v33 = vadd.f32 %v5426_v22, %v6794_v4  ;;  %v5346_v34 = vpop.f32.mrb[6].mxu0  ;;  %v3770_v26 = vsel %vm3764_vm2, %v6809_v30, 0.0 }
 0x20e   : > { %v3768_v55 = vsel %vm3764_vm2, %v6811_v31, 0.0  ;;  %vm3673_vm6 = vcmp.ge.f32.partialorder %v3641_v24, 0.0  ;;  %v3705_v19 = vmul.f32 0.1, %v3641_v24  ;;  %v5427_v49 = vadd.f32 %v5346_v34, %v5086_v57  ;;  %v3468_v23 = vpop.f32.mrb[7].mxu0 }
 0x20f   : > { %v3769_v32 = vadd.f32 %v3768_v55, %v3767_v28  ;;  %vm3672_vm7 = vcmp.ge.f32.partialorder %v3640_v33, 0.0  ;;  %v3704_v7 = vmul.f32 0.1, %v3640_v33  ;;  %v5428_v14 = vadd.f32 %v3468_v23, %v1527_v58 }
 0x210   : > { %v3643_v12 = vadd.f32 %v5427_v49, %v6794_v4  ;;  %v6819_v25 = vsel %vm3673_vm6, %v3641_v24, %v3705_v19 }
 0x211   : > { %v6821_v35 = vsel %vm3672_vm7, %v3640_v33, %v3704_v7  ;;  %v3771_v41 = vadd.f32 %v3770_v26, %v3769_v32  ;;  %v3642_v44 = vadd.f32 %v5428_v14, %v6794_v4  ;;  %v5349_v45 = vpop.f32.mrb[8].mxu0  ;;  %v3774_v54 = vsel %vm3764_vm2, %v6819_v25, 0.0 }
 0x212   : > { %v3772_v46 = vsel %vm3764_vm2, %v6821_v35, 0.0  ;;  %vm3675_vm8 = vcmp.ge.f32.partialorder %v3643_v12, 0.0  ;;  %v3707_v47 = vmul.f32 0.1, %v3643_v12  ;;  %v5429_v48 = vadd.f32 %v5349_v45, %v6778_v59  ;;  %v3478_v50 = vpop.f32.mrb[9].mxu0 }
 0x213   : > { %v3773_v51 = vadd.f32 %v3772_v46, %v3771_v41  ;;  %vm3674_vm9 = vcmp.ge.f32.partialorder %v3642_v44, 0.0  ;;  %v3706_v52 = vmul.f32 0.1, %v3642_v44  ;;  %v5430_v53 = vadd.f32 %v3478_v50, %v6780_v60 }
 0x214   : > { %v3645_v56 = vadd.f32 %v5429_v48, %v6794_v4  ;;  %v6831_v57 = vsel %vm3675_vm8, %v3643_v12, %v3707_v47 }
 0x215   : > { %v6833_v58 = vsel %vm3674_vm9, %v3642_v44, %v3706_v52  ;;  %v3775_v3 = vadd.f32 %v3774_v54, %v3773_v51  ;;  %v3644_v6 = vadd.f32 %v5430_v53, %v6794_v4  ;;  %v5352_v11 = vpop.f32.mrb[10].mxu0  ;;  %v3778_v29 = vsel %vm3764_vm2, %v6831_v57, 0.0 }
 0x216   : > { %v3776_v59 = vsel %vm3764_vm2, %v6833_v58, 0.0  ;;  %vm3677_vm10 = vcmp.ge.f32.partialorder %v3645_v56, 0.0  ;;  %v3709_v13 = vmul.f32 0.1, %v3645_v56  ;;  %v5431_v60 = vadd.f32 %v5352_v11, %v6782_v61  ;;  %v3488_v15 = vpop.f32.mrb[11].mxu0 }
 0x217   : > { %v3777_v18 = vadd.f32 %v3776_v59, %v3775_v3  ;;  %vm3676_vm11 = vcmp.ge.f32.partialorder %v3644_v6, 0.0  ;;  %v3708_v21 = vmul.f32 0.1, %v3644_v6  ;;  %v5432_v27 = vadd.f32 %v3488_v15, %v6784_v62 }
 0x218   : > { %v3647_v37 = vadd.f32 %v5431_v60, %v6794_v4  ;;  %v6843_v38 = vsel %vm3677_vm10, %v3645_v56, %v3709_v13 }
 0x219   : > { %v6845_v5 = vsel %vm3676_vm11, %v3644_v6, %v3708_v21  ;;  %v3779_v9 = vadd.f32 %v3778_v29, %v3777_v18  ;;  %v3646_v10 = vadd.f32 %v5432_v27, %v6794_v4  ;;  %v5355_v43 = vpop.f32.mrb[12].mxu0  ;;  %v3782_v20 = vsel %vm3764_vm2, %v6843_v38, 0.0 }
 0x21a   : > { %v3780_v61 = vsel %vm3764_vm2, %v6845_v5, 0.0  ;;  %vm3679_vm12 = vcmp.ge.f32.partialorder %v3647_v37, 0.0  ;;  %v3711_v42 = vmul.f32 0.1, %v3647_v37  ;;  %v5433_v62 = vadd.f32 %v5355_v43, %v6786_v63  ;;  %v3498_v36 = vpop.f32.mrb[13].mxu0 }
 0x21b   : > { %v3781_v39 = vadd.f32 %v3780_v61, %v3779_v9  ;;  %vm3678_vm13 = vcmp.ge.f32.partialorder %v3646_v10, 0.0  ;;  %v3710_v16 = vmul.f32 0.1, %v3646_v10  ;;  %v5434_v17 = vadd.f32 %v3498_v36, %v6788_v0 }
 0x21c   : > { %v3649_v22 = vadd.f32 %v5433_v62, %v6794_v4  ;;  %v6855_v24 = vsel %vm3679_vm12, %v3647_v37, %v3711_v42 }
 0x21d   : > { %v6857_v28 = vsel %vm3678_vm13, %v3646_v10, %v3710_v16  ;;  %v3783_v33 = vadd.f32 %v3782_v20, %v3781_v39  ;;  %v3648_v34 = vadd.f32 %v5434_v17, %v6794_v4  ;;  %v5358_v55 = vpop.f32.mrb[14].mxu0  ;;  %v3786_v14 = vsel %vm3764_vm2, %v6855_v24, 0.0 }
 0x21e   : > { %v3784_v63 = vsel %vm3764_vm2, %v6857_v28, 0.0  ;;  %vm3681_vm14 = vcmp.ge.f32.partialorder %v3649_v22, 0.0  ;;  %v3713_v19 = vmul.f32 0.1, %v3649_v22  ;;  %v5435_v0 = vadd.f32 %v5358_v55, %v6790_v1  ;;  %v3508_v49 = vpop.f32.mrb[15].mxu0 }
 0x21f   : > { %v3785_v23 = vadd.f32 %v3784_v63, %v3783_v33  ;;  %vm3680_vm15 = vcmp.ge.f32.partialorder %v3648_v34, 0.0  ;;  %v3712_v32 = vmul.f32 0.1, %v3648_v34  ;;  %v5436_v7 = vadd.f32 %v3508_v49, %v6792_v2 }
 0x220   : > { %v3651_v26 = vadd.f32 %v5435_v0, %v6794_v4  ;;  %v6867_v41 = vsel %vm3681_vm14, %v3649_v22, %v3713_v19 }
 0x221   : > { %v5153_v12 = vpop.f32.mrb[16].mxu1  ;;  %v6869_v44 = vsel %vm3680_vm15, %v3648_v34, %v3712_v32  ;;  %v3787_v45 = vadd.f32 %v3786_v14, %v3785_v23  ;;  %v3650_v46 = vadd.f32 %v5436_v7, %v6794_v4  ;;  %v5361_v1 = vpop.f32.mrb[16].mxu0  ;;  %v3790_v56 = vsel %vm3764_vm2, %v6867_v41, 0.0 }
 0x222   : > { %v1965_v47 = vpop.f32.mrb[17].mxu1  ;;  %v3788_v48 = vsel %vm3764_vm2, %v6869_v44, 0.0  ;;  %vm3683_vm0 = vcmp.ge.f32.partialorder %v3651_v26, 0.0  ;;  %v3715_v2 = vmul.f32 0.1, %v3651_v26  ;;  %v5437_v50 = vadd.f32 %v5361_v1, %v5153_v12  ;;  %v3518_v51 = vpop.f32.mrb[17].mxu0 }
 0x223   : > { %v3789_v52 = vadd.f32 %v3788_v48, %v3787_v45  ;;  %vm3682_vm1 = vcmp.ge.f32.partialorder %v3650_v46, 0.0  ;;  %v3714_v53 = vmul.f32 0.1, %v3650_v46  ;;  %v5438_v54 = vadd.f32 %v3518_v51, %v1965_v47 }
 0x224   : > { %v3653_v3 = vadd.f32 %v5437_v50, %v6794_v4  ;;  %v6877_v11 = vsel %vm3683_vm0, %v3651_v26, %v3715_v2 }
 0x225   : > { %v5156_v6 = vpop.f32.mrb[18].mxu1  ;;  %v6879_v59 = vsel %vm3682_vm1, %v3650_v46, %v3714_v53  ;;  %v3791_v13 = vadd.f32 %v3790_v56, %v3789_v52  ;;  %v3652_v60 = vadd.f32 %v5438_v54, %v6794_v4  ;;  %v5364_v15 = vpop.f32.mrb[18].mxu0  ;;  %v3794_v61 = vsel %vm3764_vm2, %v6877_v11, 0.0 }
 0x226   : > { %v1975_v18 = vpop.f32.mrb[19].mxu1  ;;  %v3792_v21 = vsel %vm3764_vm2, %v6879_v59, 0.0  ;;  %vm3685_vm3 = vcmp.ge.f32.partialorder %v3653_v3, 0.0  ;;  %v3717_v27 = vmul.f32 0.1, %v3653_v3  ;;  %v5439_v29 = vadd.f32 %v5364_v15, %v5156_v6  ;;  %v3528_v37 = vpop.f32.mrb[19].mxu0 }
 0x227   : > { %v3793_v9 = vadd.f32 %v3792_v21, %v3791_v13  ;;  %vm3684_vm4 = vcmp.ge.f32.partialorder %v3652_v60, 0.0  ;;  %v3716_v10 = vmul.f32 0.1, %v3652_v60  ;;  %v5440_v43 = vadd.f32 %v3528_v37, %v1975_v18 }
 0x228   : > { %v3655_v42 = vadd.f32 %v5439_v29, %v6794_v4  ;;  %v6887_v36 = vsel %vm3685_vm3, %v3653_v3, %v3717_v27 }
 0x229   : > { %v5159_v62 = vpop.f32.mrb[20].mxu1  ;;  %v6889_v39 = vsel %vm3684_vm4, %v3652_v60, %v3716_v10  ;;  %v3795_v16 = vadd.f32 %v3794_v61, %v3793_v9  ;;  %v3654_v17 = vadd.f32 %v5440_v43, %v6794_v4  ;;  %v5367_v20 = vpop.f32.mrb[20].mxu0  ;;  %v3798_v23 = vsel %vm3764_vm2, %v6887_v36, 0.0 }
 0x22a   : > { %v1985_v22 = vpop.f32.mrb[21].mxu1  ;;  %v3796_v33 = vsel %vm3764_vm2, %v6889_v39, 0.0  ;;  %vm3687_vm5 = vcmp.ge.f32.partialorder %v3655_v42, 0.0  ;;  %v3719_v34 = vmul.f32 0.1, %v3655_v42  ;;  %v5441_v55 = vadd.f32 %v5367_v20, %v5159_v62  ;;  %v3538_v63 = vpop.f32.mrb[21].mxu0 }
 0x22b   : > { %v3797_v19 = vadd.f32 %v3796_v33, %v3795_v16  ;;  %vm3686_vm6 = vcmp.ge.f32.partialorder %v3654_v17, 0.0  ;;  %v3718_v0 = vmul.f32 0.1, %v3654_v17  ;;  %v5442_v49 = vadd.f32 %v3538_v63, %v1985_v22 }
 0x22c   : > { %v3657_v32 = vadd.f32 %v5441_v55, %v6794_v4  ;;  %v6897_v14 = vsel %vm3687_vm5, %v3655_v42, %v3719_v34 }
 0x22d   : > { %v5162_v7 = vpop.f32.mrb[22].mxu1  ;;  %v6899_v26 = vsel %vm3686_vm6, %v3654_v17, %v3718_v0  ;;  %v3799_v12 = vadd.f32 %v3798_v23, %v3797_v19  ;;  %v3656_v45 = vadd.f32 %v5442_v49, %v6794_v4  ;;  %v5370_v46 = vpop.f32.mrb[22].mxu0  ;;  %v3802_v54 = vsel %vm3764_vm2, %v6897_v14, 0.0 }
 0x22e   : > { %v1995_v1 = vpop.f32.mrb[23].mxu1  ;;  %v3800_v47 = vsel %vm3764_vm2, %v6899_v26, 0.0  ;;  %vm3689_vm7 = vcmp.ge.f32.partialorder %v3657_v32, 0.0  ;;  %v3721_v48 = vmul.f32 0.1, %v3657_v32  ;;  %v5443_v2 = vadd.f32 %v5370_v46, %v5162_v7  ;;  %v3548_v50 = vpop.f32.mrb[23].mxu0 }
 0x22f   : > { %v3801_v51 = vadd.f32 %v3800_v47, %v3799_v12  ;;  %vm3688_vm8 = vcmp.ge.f32.partialorder %v3656_v45, 0.0  ;;  %v3720_v52 = vmul.f32 0.1, %v3656_v45  ;;  %v5444_v53 = vadd.f32 %v3548_v50, %v1995_v1 }
 0x230   : > { %v3659_v56 = vadd.f32 %v5443_v2, %v6794_v4  ;;  %v6907_v6 = vsel %vm3689_vm7, %v3657_v32, %v3721_v48 }
 0x231   : > { %v5165_v3 = vpop.f32.mrb[24].mxu1  ;;  %v6909_v13 = vsel %vm3688_vm8, %v3656_v45, %v3720_v52  ;;  %v3803_v60 = vadd.f32 %v3802_v54, %v3801_v51  ;;  %v3658_v15 = vadd.f32 %v5444_v53, %v6794_v4  ;;  %v5373_v18 = vpop.f32.mrb[24].mxu0  ;;  %v3806_v42 = vsel %vm3764_vm2, %v6907_v6, 0.0 }
 0x232   : > { %v2005_v21 = vpop.f32.mrb[25].mxu1  ;;  %v3804_v27 = vsel %vm3764_vm2, %v6909_v13, 0.0  ;;  %vm3691_vm9 = vcmp.ge.f32.partialorder %v3659_v56, 0.0  ;;  %v3723_v29 = vmul.f32 0.1, %v3659_v56  ;;  %v5445_v37 = vadd.f32 %v5373_v18, %v5165_v3  ;;  %v3558_v9 = vpop.f32.mrb[25].mxu0 }
 0x233   : > { %v3805_v10 = vadd.f32 %v3804_v27, %v3803_v60  ;;  %vm3690_vm10 = vcmp.ge.f32.partialorder %v3658_v15, 0.0  ;;  %v3722_v43 = vmul.f32 0.1, %v3658_v15  ;;  %v5446_v61 = vadd.f32 %v3558_v9, %v2005_v21 }
 0x234   : > { %v3661_v62 = vadd.f32 %v5445_v37, %v6794_v4  ;;  %v6917_v17 = vsel %vm3691_vm9, %v3659_v56, %v3723_v29 }
 0x235   : > { %v5168_v16 = vpop.f32.mrb[26].mxu1  ;;  %v6919_v20 = vsel %vm3690_vm10, %v3658_v15, %v3722_v43  ;;  %v3807_v22 = vadd.f32 %v3806_v42, %v3805_v10  ;;  %v3660_v33 = vadd.f32 %v5446_v61, %v6794_v4  ;;  %v5376_v34 = vpop.f32.mrb[26].mxu0  ;;  %v3810_v12 = vsel %vm3764_vm2, %v6917_v17, 0.0 }
 0x236   : > { %v2015_v55 = vpop.f32.mrb[27].mxu1  ;;  %v3808_v63 = vsel %vm3764_vm2, %v6919_v20, 0.0  ;;  %vm3693_vm11 = vcmp.ge.f32.partialorder %v3661_v62, 0.0  ;;  %v3725_v19 = vmul.f32 0.1, %v3661_v62  ;;  %v5447_v0 = vadd.f32 %v5376_v34, %v5168_v16  ;;  %v3568_v49 = vpop.f32.mrb[27].mxu0 }
 0x237   : > { %v3809_v23 = vadd.f32 %v3808_v63, %v3807_v22  ;;  %vm3692_vm12 = vcmp.ge.f32.partialorder %v3660_v33, 0.0  ;;  %v3724_v32 = vmul.f32 0.1, %v3660_v33  ;;  %v5448_v7 = vadd.f32 %v3568_v49, %v2015_v55 }
 0x238   : > { %v3663_v45 = vadd.f32 %v5447_v0, %v6794_v4  ;;  %v6927_v1 = vsel %vm3693_vm11, %v3661_v62, %v3725_v19 }
 0x239   : > { %v5171_v46 = vpop.f32.mrb[28].mxu1  ;;  %v6929_v47 = vsel %vm3692_vm12, %v3660_v33, %v3724_v32  ;;  %v3811_v48 = vadd.f32 %v3810_v12, %v3809_v23  ;;  %v3662_v2 = vadd.f32 %v5448_v7, %v6794_v4  ;;  %v5379_v50 = vpop.f32.mrb[28].mxu0  ;;  %v3814_v18 = vsel %vm3764_vm2, %v6927_v1, 0.0 }
 0x23a   : > { %v2025_v51 = vpop.f32.mrb[29].mxu1  ;;  %v3812_v52 = vsel %vm3764_vm2, %v6929_v47, 0.0  ;;  %vm3695_vm13 = vcmp.ge.f32.partialorder %v3663_v45, 0.0  ;;  %v3727_v53 = vmul.f32 0.1, %v3663_v45  ;;  %v5449_v54 = vadd.f32 %v5379_v50, %v5171_v46  ;;  %v3578_v56 = vpop.f32.mrb[29].mxu0 }
 0x23b   : > { %v3813_v3 = vadd.f32 %v3812_v52, %v3811_v48  ;;  %vm3694_vm14 = vcmp.ge.f32.partialorder %v3662_v2, 0.0  ;;  %v3726_v60 = vmul.f32 0.1, %v3662_v2  ;;  %v5450_v15 = vadd.f32 %v3578_v56, %v2025_v51 }
 0x23c   : > { %v3665_v21 = vadd.f32 %v5449_v54, %v6794_v4  ;;  %v3759_v29 = vsel %vm3695_vm13, %v3663_v45, %v3727_v53 }
 0x23d   : > { %v5174_v27 = vpop.f32.mrb[30].mxu1  ;;  %v3758_v37 = vsel %vm3694_vm14, %v3662_v2, %v3726_v60  ;;  %v3815_v9 = vadd.f32 %v3814_v18, %v3813_v3  ;;  %v3664_v10 = vadd.f32 %v5450_v15, %v6794_v4  ;;  %v5382_v43 = vpop.f32.mrb[30].mxu0  ;;  %v3818_v63 = vsel %vm3764_vm2, %v3759_v29, 0.0 }
 0x23e   : > { %v2035_v61 = vpop.f32.mrb[31].mxu1  ;;  %v3816_v42 = vsel %vm3764_vm2, %v3758_v37, 0.0  ;;  %vm3697_vm15 = vcmp.ge.f32.partialorder %v3665_v21, 0.0  ;;  %v3729_v62 = vmul.f32 0.1, %v3665_v21  ;;  %v5451_v16 = vadd.f32 %v5382_v43, %v5174_v27  ;;  %v3588_v22 = vpop.f32.mrb[31].mxu0 }
 0x23f   : > { %v3817_v33 = vadd.f32 %v3816_v42, %v3815_v9  ;;  %vm3696_vm0 = vcmp.ge.f32.partialorder %v3664_v10, 0.0  ;;  %v3728_v34 = vmul.f32 0.1, %v3664_v10  ;;  %v5452_v55 = vadd.f32 %v3588_v22, %v2035_v61 }
 0x240   : > { %v3667_v19 = vadd.f32 %v5451_v16, %v6794_v4  ;;  %v3761_v0 = vsel %vm3697_vm15, %v3665_v21, %v3729_v62 }
 0x241   : > { %v3760_v49 = vsel %vm3696_vm0, %v3664_v10, %v3728_v34  ;;  %v3819_v23 = vadd.f32 %v3818_v63, %v3817_v33  ;;  %v3666_v32 = vadd.f32 %v5452_v55, %v6794_v4  ;;  %v3822_v48 = vsel %vm3764_vm2, %v3761_v0, 0.0 }
 0x242   : > { %v3820_v7 = vsel %vm3764_vm2, %v3760_v49, 0.0  ;;  %vm3699_vm1 = vcmp.ge.f32.partialorder %v3667_v19, 0.0  ;;  %v3731_v12 = vmul.f32 0.1, %v3667_v19 }
 0x243   : > { %v3821_v45 = vadd.f32 %v3820_v7, %v3819_v23  ;;  %vm3698_vm3 = vcmp.ge.f32.partialorder %v3666_v32, 0.0  ;;  %v3730_v46 = vmul.f32 0.1, %v3666_v32 }
 0x244   : > { %v3763_v2 = vsel %vm3699_vm1, %v3667_v19, %v3731_v12 }
 0x245   : > { %v3762_v50 = vsel %vm3698_vm3, %v3666_v32, %v3730_v46  ;;  %v3823_v51 = vadd.f32 %v3822_v48, %v3821_v45  ;;  %v3826_v54 = vsel %vm3764_vm2, %v3763_v2, 0.0 }
 0x246   : > { %v3824_v52 = vsel %vm3764_vm2, %v3762_v50, 0.0 }
 0x247   : > { %v3825_v53 = vadd.f32 %v3824_v52, %v3823_v51 }
 0x249   : > { %v3827_v56 = vadd.f32 %v3826_v54, %v3825_v53 }
 0x24b   : > { %v3828_v3 = vrot.slane %v3827_v56, 4 }
 0x24d   : > { %v3829_v4 = vadd.f32 %v3828_v3, %v3827_v56 }
 0x24f   : > { %v3830_v60 = vrot.slane %v3829_v4, 2 }
 0x251   : > { %v3831_v15 = vadd.f32 %v3830_v60, %v3829_v4 }
 0x253   : > { %v3832_v18 = vrot.slane %v3831_v15, 1 }
 0x255   : > { %v3833_v21 = vadd.f32 %v3832_v18, %v3831_v15 }
 0x257   : > { %v3835_v27 = vmul.f32 0.00390625, %v3833_v21 }
 0x259   : > { %v6947_v9 = vsub.f32 %v6857_v28, %v3835_v27  ;;  %v6950_v10 = vsub.f32 %v6855_v24, %v3835_v27  ;;  %v6953_v43 = vsub.f32 %v6869_v44, %v3835_v27  ;;  %v6956_v61 = vsub.f32 %v6867_v41, %v3835_v27 }
 0x25a   : > { %v6959_v42 = vsub.f32 %v6879_v59, %v3835_v27  ;;  %v6962_v62 = vsub.f32 %v6877_v11, %v3835_v27  ;;  %v6965_v16 = vsub.f32 %v6889_v39, %v3835_v27  ;;  %v6968_v28 = vsub.f32 %v6887_v36, %v3835_v27 }
 0x25b   : > { %v6971_v24 = vsub.f32 %v6899_v26, %v3835_v27  ;;  %v6974_v44 = vsub.f32 %v6897_v14, %v3835_v27  ;;  %v6977_v41 = vsub.f32 %v6909_v13, %v3835_v27  ;;  %v6980_v59 = vsub.f32 %v6907_v6, %v3835_v27 }
 0x25c   : > { %v6983_v11 = vsub.f32 %v6919_v20, %v3835_v27  ;;  %v6986_v39 = vsub.f32 %v6917_v17, %v3835_v27  ;;  %v6989_v36 = vsub.f32 %v6929_v47, %v3835_v27  ;;  %v6992_v26 = vsub.f32 %v6927_v1, %v3835_v27 }
 0x25d   : > { %v6994_v14 = vsub.f32 %v3758_v37, %v3835_v27  ;;  %v6996_v22 = vsub.f32 %v3759_v29, %v3835_v27  ;;  %v6998_v13 = vsub.f32 %v3760_v49, %v3835_v27  ;;  %v7000_v6 = vsub.f32 %v3761_v0, %v3835_v27 }
 0x25e   : > { %v7002_v33 = vsub.f32 %v3762_v50, %v3835_v27  ;;  %v7004_v20 = vsub.f32 %v3763_v2, %v3835_v27  ;;  %v7007_v17 = vsub.f32 %v6803_v40, %v3835_v27  ;;  %v7010_v47 = vsub.f32 %v6798_v8, %v3835_v27 }
 0x25f   : > { %v7013_v1 = vsub.f32 %v6811_v31, %v3835_v27  ;;  %v7016_v29 = vsub.f32 %v6809_v30, %v3835_v27  ;;  %v7023_v55 = vsub.f32 %v6821_v35, %v3835_v27  ;;  %v7028_v8 = vsub.f32 %v6819_v25, %v3835_v27 }
 0x260   : > { %v3868_v37 = vmul.f32 %v7007_v17, %v7007_v17  ;;  %v3869_v34 = vmul.f32 %v7010_v47, %v7010_v47  ;;  %v7035_v0 = vsub.f32 %v6833_v58, %v3835_v27  ;;  %v7041_v25 = vsub.f32 %v6831_v57, %v3835_v27 }
 0x261   : > { %v3870_v40 = vmul.f32 %v7013_v1, %v7013_v1  ;;  %v3871_v31 = vmul.f32 %v7016_v29, %v7016_v29  ;;  %v3872_v35 = vmul.f32 %v7023_v55, %v7023_v55  ;;  %v3873_v32 = vmul.f32 %v7028_v8, %v7028_v8 }
 0x262   : > { %v3900_v30 = vsel %vm3764_vm2, %v3868_v37, 0.0  ;;  %v3901_v63 = vsel %vm3764_vm2, %v3869_v34, 0.0  ;;  %v7047_v45 = vsub.f32 %v6845_v5, %v3835_v27  ;;  %v3874_v58 = vmul.f32 %v7035_v0, %v7035_v0 }
 0x263   : > { %v3902_v19 = vadd.f32 %v3901_v63, %v3900_v30  ;;  %v3903_v49 = vsel %vm3764_vm2, %v3870_v40, 0.0  ;;  %v3905_v7 = vsel %vm3764_vm2, %v3871_v31, 0.0  ;;  %v3907_v46 = vsel %vm3764_vm2, %v3872_v35, 0.0 }
 0x264   : > { %v7053_v2 = vsub.f32 %v6843_v38, %v3835_v27  ;;  %v3875_v57 = vmul.f32 %v7041_v25, %v7041_v25  ;;  %v3909_v50 = vsel %vm3764_vm2, %v3873_v32, 0.0  ;;  %v3876_v52 = vmul.f32 %v7047_v45, %v7047_v45 }
 0x265   : > { %v3904_v23 = vadd.f32 %v3903_v49, %v3902_v19  ;;  %v3911_v5 = vsel %vm3764_vm2, %v3874_v58, 0.0  ;;  %v3878_v38 = vmul.f32 %v6947_v9, %v6947_v9  ;;  %v3879_v15 = vmul.f32 %v6950_v10, %v6950_v10 }
 0x266   : > { %v3877_v54 = vmul.f32 %v7053_v2, %v7053_v2  ;;  %v3913_v56 = vsel %vm3764_vm2, %v3875_v57, 0.0  ;;  %v3915_v4 = vsel %vm3764_vm2, %v3876_v52, 0.0  ;;  %v3880_v27 = vmul.f32 %v6953_v43, %v6953_v43 }
 0x267   : > { %v3906_v12 = vadd.f32 %v3905_v7, %v3904_v23  ;;  %v3919_v37 = vsel %vm3764_vm2, %v3878_v38, 0.0  ;;  %v3881_v40 = vmul.f32 %v6956_v61, %v6956_v61  ;;  %v3921_v31 = vsel %vm3764_vm2, %v3879_v15, 0.0 }
 0x268   : > { %v3917_v18 = vsel %vm3764_vm2, %v3877_v54, 0.0  ;;  %v3882_v63 = vmul.f32 %v6959_v42, %v6959_v42  ;;  %v3923_v19 = vsel %vm3764_vm2, %v3880_v27, 0.0  ;;  %v3883_v49 = vmul.f32 %v6962_v62, %v6962_v62 }
 0x269   : > { %v3908_v48 = vadd.f32 %v3907_v46, %v3906_v12  ;;  %v3925_v23 = vsel %vm3764_vm2, %v3881_v40, 0.0  ;;  %v3884_v7 = vmul.f32 %v6965_v16, %v6965_v16  ;;  %v3885_v46 = vmul.f32 %v6968_v28, %v6968_v28 }
 0x26a   : > { %v3927_v12 = vsel %vm3764_vm2, %v3882_v63, 0.0 }
 0x26b   : > { %v3910_v51 = vadd.f32 %v3909_v50, %v3908_v48  ;;  %v3929_v48 = vsel %vm3764_vm2, %v3883_v49, 0.0  ;;  %v3886_v50 = vmul.f32 %v6971_v24, %v6971_v24 }
 0x26d   : > { %v3912_v53 = vadd.f32 %v3911_v5, %v3910_v51  ;;  %v3931_v51 = vsel %vm3764_vm2, %v3884_v7, 0.0  ;;  %v3887_v5 = vmul.f32 %v6974_v44, %v6974_v44 }
 0x26f   : > { %v3914_v3 = vadd.f32 %v3913_v56, %v3912_v53  ;;  %v3933_v53 = vsel %vm3764_vm2, %v3885_v46, 0.0  ;;  %v3888_v56 = vmul.f32 %v6977_v41, %v6977_v41 }
 0x271   : > { %v3916_v60 = vadd.f32 %v3915_v4, %v3914_v3  ;;  %v3935_v3 = vsel %vm3764_vm2, %v3886_v50, 0.0  ;;  %v3889_v4 = vmul.f32 %v6980_v59, %v6980_v59 }
 0x273   : > { %v3918_v21 = vadd.f32 %v3917_v18, %v3916_v60  ;;  %v3937_v60 = vsel %vm3764_vm2, %v3887_v5, 0.0  ;;  %v3890_v18 = vmul.f32 %v6983_v11, %v6983_v11 }
 0x275   : > { %v3920_v34 = vadd.f32 %v3919_v37, %v3918_v21  ;;  %v3939_v21 = vsel %vm3764_vm2, %v3888_v56, 0.0  ;;  %v3891_v37 = vmul.f32 %v6986_v39, %v6986_v39 }
 0x277   : > { %v3922_v30 = vadd.f32 %v3921_v31, %v3920_v34  ;;  %v3941_v34 = vsel %vm3764_vm2, %v3889_v4, 0.0  ;;  %v3892_v31 = vmul.f32 %v6989_v36, %v6989_v36 }
 0x279   : > { %v3924_v35 = vadd.f32 %v3923_v19, %v3922_v30  ;;  %v3943_v30 = vsel %vm3764_vm2, %v3890_v18, 0.0  ;;  %v3893_v19 = vmul.f32 %v6992_v26, %v6992_v26 }
 0x27b   : > { %v3926_v32 = vadd.f32 %v3925_v23, %v3924_v35  ;;  %v3945_v35 = vsel %vm3764_vm2, %v3891_v37, 0.0  ;;  %v3894_v23 = vmul.f32 %v6994_v14, %v6994_v14 }
 0x27d   : > { %v3928_v58 = vadd.f32 %v3927_v12, %v3926_v32  ;;  %v3947_v32 = vsel %vm3764_vm2, %v3892_v31, 0.0  ;;  %v3895_v12 = vmul.f32 %v6996_v22, %v6996_v22 }
 0x27f   : > { %v3930_v57 = vadd.f32 %v3929_v48, %v3928_v58  ;;  %v3949_v58 = vsel %vm3764_vm2, %v3893_v19, 0.0  ;;  %v3896_v48 = vmul.f32 %v6998_v13, %v6998_v13 }
 0x281   : > { %v3932_v52 = vadd.f32 %v3931_v51, %v3930_v57  ;;  %v3951_v57 = vsel %vm3764_vm2, %v3894_v23, 0.0  ;;  %v3897_v51 = vmul.f32 %v7000_v6, %v7000_v6 }
 0x283   : > { %v3934_v54 = vadd.f32 %v3933_v53, %v3932_v52  ;;  %v3953_v52 = vsel %vm3764_vm2, %v3895_v12, 0.0  ;;  %v3898_v53 = vmul.f32 %v7002_v33, %v7002_v33 }
 0x285   : > { %v3936_v38 = vadd.f32 %v3935_v3, %v3934_v54  ;;  %v3955_v54 = vsel %vm3764_vm2, %v3896_v48, 0.0  ;;  %v3899_v3 = vmul.f32 %v7004_v20, %v7004_v20 }
 0x287   : > { %v3938_v15 = vadd.f32 %v3937_v60, %v3936_v38  ;;  %v3957_v38 = vsel %vm3764_vm2, %v3897_v51, 0.0  ;;  %v3959_v60 = vsel %vm3764_vm2, %v3898_v53, 0.0  ;;  %v3961_v18 = vsel %vm3764_vm2, %v3899_v3, 0.0 }
 0x289   : > { %v3940_v27 = vadd.f32 %v3939_v21, %v3938_v15 }
 0x28b   : > { %v3942_v40 = vadd.f32 %v3941_v34, %v3940_v27 }
 0x28d   : > { %v3944_v63 = vadd.f32 %v3943_v30, %v3942_v40 }
 0x28f   : > { %v3946_v49 = vadd.f32 %v3945_v35, %v3944_v63 }
 0x291   : > { %v3948_v7 = vadd.f32 %v3947_v32, %v3946_v49 }
 0x293   : > { %v3950_v46 = vadd.f32 %v3949_v58, %v3948_v7 }
 0x295   : > { %v3952_v50 = vadd.f32 %v3951_v57, %v3950_v46 }
 0x297   : > { %v3954_v5 = vadd.f32 %v3953_v52, %v3952_v50 }
 0x299   : > { %v3956_v56 = vadd.f32 %v3955_v54, %v3954_v5 }
 0x29b   : > { %v3958_v4 = vadd.f32 %v3957_v38, %v3956_v56 }
 0x29d   : > { %v3960_v15 = vadd.f32 %v3959_v60, %v3958_v4 }
 0x29f   : > { %v3962_v21 = vadd.f32 %v3961_v18, %v3960_v15 }
 0x2a1   : > { %v3963_v27 = vrot.slane %v3962_v21, 4 }
 0x2a3   : > { %v3964_v37 = vadd.f32 %v3963_v27, %v3962_v21 }
 0x2a5   : > { %v3965_v34 = vrot.slane %v3964_v37, 2 }
 0x2a7   : > { %v3966_v40 = vadd.f32 %v3965_v34, %v3964_v37 }
 0x2a9   : > { %v3967_v31 = vrot.slane %v3966_v40, 1 }
 0x2ab   : > { %v3968_v30 = vadd.f32 %v3967_v31, %v3966_v40 }
 0x2ad   : > { %v3969_v63 = vmul.f32 0.00390625, %v3968_v30 }
 0x2af   : > { %v3970_v19 = vadd.f32 1e-05, %v3969_v63 }
 0x2b1   : > { %5709 = vrsqrt.f32 %v3970_v19 }
 0x2bb   : > { %v5710_v35 = vpop.eup %5709 }
 0x2bc   : > { %v3972_v49 = vmul.f32 %v5710_v35, %v7007_v17  ;;  %v3973_v23 = vmul.f32 %v5710_v35, %v7010_v47  ;;  %v3974_v32 = vmul.f32 %v5710_v35, %v7013_v1  ;;  %v3975_v7 = vmul.f32 %v5710_v35, %v7016_v29 }
 0x2bd   : > { %v3976_v12 = vmul.f32 %v5710_v35, %v7023_v55  ;;  %v3977_v58 = vmul.f32 %v5710_v35, %v7028_v8  ;;  %v3978_v46 = vmul.f32 %v5710_v35, %v7035_v0  ;;  %v3979_v48 = vmul.f32 %v5710_v35, %v7041_v25 }
 0x2be   : > { %v3980_v17 = vmul.f32 %v5710_v35, %v7047_v45  ;;  %v3981_v47 = vmul.f32 %v5710_v35, %v7053_v2  ;;  %v3982_v1 = vmul.f32 %v5710_v35, %v6947_v9  ;;  %v3983_v29 = vmul.f32 %v5710_v35, %v6950_v10  ;;  %4004 = vst.msk [vmem:[%s7136_s25] sm:$0xff] %vm3764_vm2, %v3972_v49 }
 0x2bf   : > { %4005 = vst.msk [vmem:[%s7136_s25 + $0x8] sm:$0xff] %vm3764_vm2, %v3973_v23  ;;  %4006 = vst.msk [vmem:[%s7136_s25 + $0x10] sm:$0xff] %vm3764_vm2, %v3974_v32  ;;  %v3984_v55 = vmul.f32 %v5710_v35, %v6953_v43  ;;  %v3985_v8 = vmul.f32 %v5710_v35, %v6956_v61  ;;  %v3986_v9 = vmul.f32 %v5710_v35, %v6959_v42 }
 0x2c0   : > { %4007 = vst.msk [vmem:[%s7136_s25 + $0x18] sm:$0xff] %vm3764_vm2, %v3975_v7  ;;  %v3987_v10 = vmul.f32 %v5710_v35, %v6962_v62  ;;  %4008 = vst.msk [vmem:[%s7136_s25 + $0x20] sm:$0xff] %vm3764_vm2, %v3976_v12  ;;  %v3988_v43 = vmul.f32 %v5710_v35, %v6965_v16  ;;  %v3989_v61 = vmul.f32 %v5710_v35, %v6968_v28 }
 0x2c1   : > { %4009 = vst.msk [vmem:[%s7136_s25 + $0x28] sm:$0xff] %vm3764_vm2, %v3977_v58  ;;  %4010 = vst.msk [vmem:[%s7136_s25 + $0x30] sm:$0xff] %vm3764_vm2, %v3978_v46  ;;  %v3990_v42 = vmul.f32 %v5710_v35, %v6971_v24  ;;  %v3991_v62 = vmul.f32 %v5710_v35, %v6974_v44  ;;  %v3992_v16 = vmul.f32 %v5710_v35, %v6977_v41 }
 0x2c2   : > { %4011 = vst.msk [vmem:[%s7136_s25 + $0x38] sm:$0xff] %vm3764_vm2, %v3979_v48  ;;  %4012 = vst.msk [vmem:[%s7136_s25 + $0x40] sm:$0xff] %vm3764_vm2, %v3980_v17  ;;  %v3993_v28 = vmul.f32 %v5710_v35, %v6980_v59  ;;  %v3994_v24 = vmul.f32 %v5710_v35, %v6983_v11  ;;  %v3995_v44 = vmul.f32 %v5710_v35, %v6986_v39 }
 0x2c3   : > { %4013 = vst.msk [vmem:[%s7136_s25 + $0x48] sm:$0xff] %vm3764_vm2, %v3981_v47  ;;  %4014 = vst.msk [vmem:[%s7136_s25 + $0x50] sm:$0xff] %vm3764_vm2, %v3982_v1  ;;  %v3996_v41 = vmul.f32 %v5710_v35, %v6989_v36  ;;  %v3997_v59 = vmul.f32 %v5710_v35, %v6992_v26  ;;  %v3998_v11 = vmul.f32 %v5710_v35, %v6994_v14 }
 0x2c4   : > { %4015 = vst.msk [vmem:[%s7136_s25 + $0x58] sm:$0xff] %vm3764_vm2, %v3983_v29  ;;  %4016 = vst.msk [vmem:[%s7136_s25 + $0x60] sm:$0xff] %vm3764_vm2, %v3984_v55  ;;  %v3999_v39 = vmul.f32 %v5710_v35, %v6996_v22  ;;  %v4000_v36 = vmul.f32 %v5710_v35, %v6998_v13  ;;  %v4001_v26 = vmul.f32 %v5710_v35, %v7000_v6 }
 0x2c5   : > { %4017 = vst.msk [vmem:[%s7136_s25 + $0x68] sm:$0xff] %vm3764_vm2, %v3985_v8  ;;  %4018 = vst.msk [vmem:[%s7136_s25 + $0x70] sm:$0xff] %vm3764_vm2, %v3986_v9  ;;  %v4002_v14 = vmul.f32 %v5710_v35, %v7002_v33  ;;  %v4003_v22 = vmul.f32 %v5710_v35, %v7004_v20 }
 0x2c6   : > { %4019 = vst.msk [vmem:[%s7136_s25 + $0x78] sm:$0xff] %vm3764_vm2, %v3987_v10  ;;  %4020 = vst.msk [vmem:[%s7136_s25 + $0x80] sm:$0xff] %vm3764_vm2, %v3988_v43 }
 0x2c7   : > { %4021 = vst.msk [vmem:[%s7136_s25 + $0x88] sm:$0xff] %vm3764_vm2, %v3989_v61  ;;  %4022 = vst.msk [vmem:[%s7136_s25 + $0x90] sm:$0xff] %vm3764_vm2, %v3990_v42 }
 0x2c8   : > { %4023 = vst.msk [vmem:[%s7136_s25 + $0x98] sm:$0xff] %vm3764_vm2, %v3991_v62  ;;  %4024 = vst.msk [vmem:[%s7136_s25 + $0xa0] sm:$0xff] %vm3764_vm2, %v3992_v16 }
 0x2c9   : > { %4025 = vst.msk [vmem:[%s7136_s25 + $0xa8] sm:$0xff] %vm3764_vm2, %v3993_v28  ;;  %4026 = vst.msk [vmem:[%s7136_s25 + $0xb0] sm:$0xff] %vm3764_vm2, %v3994_v24 }
 0x2ca   : > { %4027 = vst.msk [vmem:[%s7136_s25 + $0xb8] sm:$0xff] %vm3764_vm2, %v3995_v44  ;;  %4028 = vst.msk [vmem:[%s7136_s25 + $0xc0] sm:$0xff] %vm3764_vm2, %v3996_v41 }
 0x2cb   : > { %4029 = vst.msk [vmem:[%s7136_s25 + $0xc8] sm:$0xff] %vm3764_vm2, %v3997_v59  ;;  %4030 = vst.msk [vmem:[%s7136_s25 + $0xd0] sm:$0xff] %vm3764_vm2, %v3998_v11 }
 0x2cc   : > { %4031 = vst.msk [vmem:[%s7136_s25 + $0xd8] sm:$0xff] %vm3764_vm2, %v3999_v39  ;;  %4032 = vst.msk [vmem:[%s7136_s25 + $0xe0] sm:$0xff] %vm3764_vm2, %v4000_v36 }
 0x2cd   : > { %4033 = vst.msk [vmem:[%s7136_s25 + $0xe8] sm:$0xff] %vm3764_vm2, %v4001_v26  ;;  %4034 = vst.msk [vmem:[%s7136_s25 + $0xf0] sm:$0xff] %vm3764_vm2, %v4002_v14 }
 0x2ce   : > { %4035 = vst.msk [vmem:[%s7136_s25 + $0xf8] sm:$0xff] %vm3764_vm2, %v4003_v22 }
 0x2cf PF: > { %s15_s12 = sadd.s32 1, %s5781_s12  }
 0x2d0   : > { %p12_p5 = scmp.ge.s32.totalorder %s15_s12, 4  }
 0x2d2   :  { %14 = sbr.rel (!%p12_p5) target bundleno = 2 (0x2), region = 81 }
 0x2d9   :  { %4057 = vsyncpa [#allocation3], 1 }
 0x2da   :  { %4059 = vsyncpa [#allocation3 + $0x1], 1 }
 0x2db   :  { %4060 = vsyncpa [#allocation5], 1 }

// kernel: task_classifier_forward.5
= control target key start
LH: loop header
LB: loop body
LE: loop exit
PB: predicated region body
PF: predicated region fallthrough
CT: control target
= control target key end

     0   :  { %8 = vsyncpa [#allocation3], 0  ;;  %s7222_s0 = inlined_call_operand.vmem [shape: f32[2,18,18,3], index: 0, kind: input, shape index: {}]   ;;  %s7223_s1 = inlined_call_operand.hbm [shape: f32[9,3,16], index: 1, kind: input, shape index: {}]   ;;  %s7224_s2 = inlined_call_operand.hbm [shape: f32[1,16], index: 2, kind: input, shape index: {}]   ;;  %s7225_s3 = inlined_call_operand.vmem [shape: f32[2,256,16], index: 3, kind: output, shape index: {}]  }
   0x1   :  { %9 = vsyncpa [#allocation5], 0  ;;  %s5772_s12 = smov 0  }
   0x2 LB: > { %s5778_s13 = sadd.s32 4294967295, %s5746_s12   ;;  %p4134_p0 = scmp.ge.s32.totalorder %s5746_s12, 1  ;;  %s5746_s12 = sphi %s5772_s12, %s15_s12  }
   0x3   : > { %p114_p1 = scmp.lt.s32.totalorder %s5746_s12, 3  ;;  %s5748_s14 = smov [#allocation2]  }
   0x4   : > { %s126_s15 = sshll.u32 %s5748_s14, 4  ;;  %p7226_p3 = scmp.eq.s32.totalorder %s5778_s13, 0  ;;  %s127_s15 = int_to_ptr.vmem [resolvable:$true] %s126_s15 }
   0x5   : > { %p5782_p2 = pnand %p4134_p0, %p114_p1  ;;  %s5749_s17 = smov [#allocation4]  }
   0x6   : > { %s140_s18 = sshll.u32 %s5749_s17, 4  ;;  %s5676_s22 = scalar_lea.hbm %s7223_s1, 576  ;;  %s5795_s18 = int_to_ptr.vmem [resolvable:$true] %s140_s18 }
   0x7   : > { %s7273_s16 = scalar_select %p5782_p2, 1, 0 }
   0x8   : > { %p5651_p4 = pneg %p5782_p2  ;;  %p5677_p6 = scmp.ne.s32.totalorder %s7223_s1, %s5676_s22 }
   0x9   : > { %p5683_p10 = scmp.lt.u32.totalorder %s5676_s22, %s7223_s1 }
   0xa   : > { %p5791_p5 = pnand %p7226_p3, %p5651_p4 }
   0xc   : > { %p5678_p7 = pneg %p5791_p5 }
   0xe   : > { %p5679_p8 = pnand %p5678_p7, %p5677_p6 }
  0x10   : > { %p5680_p9 = pneg %p5679_p8 }
  0x12   : > { %p5685_p11 = pnand %p5683_p10, %p5680_p9 }
  0x14   : > { %5688 = shalt.err (!%p5685_p11)
}
  0x15   : > { %s5689_s27 = scalar_lea.vmem %s127_s15, 576  ;;  %p5697_p1 = scmp.lt.s32.totalorder %s127_s15, %s127_s15 }
  0x16   : > { %p5690_p12 = scmp.ne.s32.totalorder %s127_s15, %s5689_s27  ;;  %p5698_p4 = scmp.lt.s32.totalorder %s5689_s27, %s5689_s27 }
  0x18   : > { %p5692_p13 = pnand %p5690_p12, %p5678_p7  ;;  %p5699_p3 = por %p5698_p4, %p5697_p1 }
  0x1a   : > { %p5693_p0 = pneg %p5692_p13 }
  0x1c   : > { %p5700_p2 = pnand %p5699_p3, %p5693_p0 }
  0x1e   : > { %5703 = shalt.err (!%p5700_p2)
}
  0x1f   : > { %s5750_s28 = smov 64   ;;  %s5751_s29 = smov 4  }
  0x20   : > { %5654 = dma.hbm_to_vmem [thread:$0]  (!%p5791_p5), %s7223_s1, 576, %s127_s15, [#allocation3], %s5750_s28, %s5750_s28, %s5751_s29  }
  0x21   : > { %s5704_s7 = scalar_lea.hbm %s7224_s2, 16 }
  0x22   : > { %p5705_p6 = scmp.ne.s32.totalorder %s7224_s2, %s5704_s7  ;;  %p5711_p8 = scmp.lt.u32.totalorder %s5704_s7, %s7224_s2 }
  0x24   : > { %p5707_p2 = pnand %p5705_p6, %p5678_p7 }
  0x26   : > { %p5708_p3 = pneg %p5707_p2 }
  0x28   : > { %p5713_p9 = pnand %p5711_p8, %p5708_p3 }
  0x2a   : > { %5716 = shalt.err (!%p5713_p9)
}
  0x2b   : > { %s5717_s14 = scalar_lea.vmem %s5795_s18, 16  ;;  %s5724_s15 = scalar_lea.vmem %s5795_s18, 32 }
  0x2c   : > { %p5718_p10 = scmp.ne.s32.totalorder %s5795_s18, %s5717_s14  ;;  %p5725_p13 = scmp.lt.s32.totalorder %s5795_s18, %s5795_s18 }
  0x2d   : > { %p5726_p0 = scmp.lt.s32.totalorder %s5724_s15, %s5717_s14 }
  0x2e   : > { %p5720_p11 = pnand %p5718_p10, %p5678_p7 }
  0x2f   : > { %p5727_p1 = por %p5726_p0, %p5725_p13 }
  0x30   : > { %p5721_p12 = pneg %p5720_p11 }
  0x32   : > { %p5728_p4 = pnand %p5727_p1, %p5721_p12 }
  0x34   : > { %5731 = shalt.err (!%p5728_p4)
}
  0x35   : > { %5657 = dma.hbm_to_vmem [thread:$0]  (!%p5791_p5), %s7224_s2, 16, %s5795_s18, [#allocation5]  }
  0x36   : > { %p7275_p6 = scmp.ne.s32.totalorder %s7273_s16, 0 }
  0x38   : > { %161 = sbr.rel (%p7275_p6) target bundleno = 719 (0x2cf), region = 32 }
  0x3f   : > { %p7276_p7 = scmp.eq.s32.totalorder %s5778_s13, 0 }
  0x41   : > { %5737 = dma.done.wait (%p7276_p7), [#allocation3], 576   ;;  %p7277_p2 = pmov %p7276_p7 }
  0x43   : > { %5739 = vsyncadd (%p7277_p2), [#allocation3], 4294966720  ;;  %p7278_p3 = pmov %p7277_p2 }
  0x44   : > { %p7279_p8 = pmov %p7277_p2 }
  0x45   : > { %5741 = dma.done.wait (%p7278_p3), [#allocation5], 16  }
  0x46   : > { %5743 = vsyncadd (%p7279_p8), [#allocation5], 4294967280  ;;  %p189_p9 = scmp.lt.s32.totalorder %s5778_s13, 1  ;;  %vm363_vm0 = vcmask 1042432   ;;  %vm266_vm1 = vcmask 23552   ;;  %vm3783_vm3 = vcmask 130048  }
  0x47   : > { %v265_v0 = vld [vmem:[#allocation2 + $0x4] sm:$0x7]  ;;  %v5865_v1 = vld [vmem:[#allocation2 + $0x10] sm:$0x7]  ;;  %v231_v5 = vld [vmem:[#allocation2] sm:$0x7] }
  0x48   : > { %s7345_s13 = smov (!%p189_p9, %s5778_s13), 1  ;;  %4934 = vmatprep.subr.msk.mxu1 %vm363_vm0, %v265_v0  ;;  %5134 = vmatprep.subr.msk.mxu0 %vm363_vm0, %v5865_v1  ;;  %v2120_v7 = vld [vmem:[#allocation2 + $0x14] sm:$0x7]  ;;  %v2511_v11 = vld [vmem:[#allocation2 + $0x18] sm:$0x7] }
  0x49   : > { %s5642_s16 = smul.u32 432, %s7345_s13  ;;  %4935 = vmatpush3.msk.msra.mxu1 %vm363_vm0, %v265_v0  ;;  %5135 = vmatpush3.msk.msra.mxu0 %vm363_vm0, %v5865_v1  ;;  %v5936_v17 = vld [vmem:[#allocation2 + $0x8] sm:$0x7]  ;;  %v6004_v28 = vld [vmem:[#allocation2 + $0x1c] sm:$0x7]  ;;  %s4636_s22 = sshll.u32 %s7345_s13, 8 }
  0x4a   : > { %4984 = vmatprep.subr.msk.mxu1 %vm363_vm0, %v231_v5  ;;  %5184 = vmatprep.subr.msk.mxu0 %vm363_vm0, %v2120_v7  ;;  %v6163_v61 = vld [vmem:[#allocation2 + $0xc] sm:$0x7]  ;;  %s7121_s25 = scalar_lea.vmem %s7225_s3, %s4636_s22 }
  0x4b   : > { %s5863_s21 = scalar_lea.vmem %s7222_s0, %s5642_s16 }
  0x4c   : > { %v232_v2 = vld [vmem:[%s5863_s21 + $0x1] sm:$0xff]  ;;  %v4308_v3 = vld [vmem:[%s5863_s21 + $0x19] sm:$0xff]  ;;  %v233_v4 = vld [vmem:[%s5863_s21 + $0x9] sm:$0xff] }
  0x4d   : > { %4936 = vmatprep.mubr.msk.f32.mxu1 %vm266_vm1, %v232_v2  ;;  %v4309_v6 = vld [vmem:[%s5863_s21 + $0x21] sm:$0xff]  ;;  %5136 = vmatprep.mubr.msk.f32.mxu0 %vm266_vm1, %v4308_v3  ;;  %v5882_v8 = vld [vmem:[%s5863_s21 + $0x31] sm:$0xff]  ;;  %v5889_v9 = vld [vmem:[%s5863_s21 + $0x39] sm:$0xff] }
  0x4e   : > { %4937 = vmatmul.mubr.msk.f32.vlgmr.msra.gmra.mrb[0].mxu1 %vm266_vm1, %v233_v4  ;;  %5137 = vmatmul.mubr.msk.f32.vlgmr.msra.gmra.mrb[0].mxu0 %vm266_vm1, %v4309_v6  ;;  %v5895_v10 = vld [vmem:[%s5863_s21 + $0x49] sm:$0xff]  ;;  %v5905_v12 = vld [vmem:[%s5863_s21 + $0x51] sm:$0xff]  ;;  %v5909_v13 = vld [vmem:[%s5863_s21 + $0x61] sm:$0xff] }
  0x4f   : > { %4985 = vmatpush3.msk.msra.mxu1 %vm363_vm0, %v231_v5  ;;  %5185 = vmatpush3.msk.msra.mxu0 %vm363_vm0, %v2120_v7  ;;  %v5920_v14 = vld [vmem:[%s5863_s21 + $0x69] sm:$0xff]  ;;  %v5923_v15 = vld [vmem:[%s5863_s21 + $0x79] sm:$0xff]  ;;  %v5934_v16 = vld [vmem:[%s5863_s21 + $0x81] sm:$0xff] }
  0x50   : > { %4939 = vmatprep.mubr.msk.f32.mxu1 %vm266_vm1, %v4308_v3  ;;  %5139 = vmatprep.mubr.msk.f32.mxu0 %vm266_vm1, %v5882_v8  ;;  %v5939_v18 = vld [vmem:[%s5863_s21 + $0x91] sm:$0xff]  ;;  %v5952_v19 = vld [vmem:[%s5863_s21 + $0x99] sm:$0xff]  ;;  %v5955_v20 = vld [vmem:[%s5863_s21 + $0xa9] sm:$0xff] }
  0x51   : > { %5234 = vmatprep.subr.msk.mxu0 %vm363_vm0, %v2511_v11  ;;  %5034 = vmatprep.subr.msk.mxu1 %vm363_vm0, %v5936_v17  ;;  %v5966_v21 = vld [vmem:[%s5863_s21 + $0xb1] sm:$0xff]  ;;  %v5969_v22 = vld [vmem:[%s5863_s21 + $0xc1] sm:$0xff]  ;;  %v5980_v23 = vld [vmem:[%s5863_s21 + $0xc9] sm:$0xff] }
  0x52   : > { %4940 = vmatmul.mubr.msk.f32.gmra.mrb[2].mxu1 %vm266_vm1, %v4309_v6  ;;  %5140 = vmatmul.mubr.msk.f32.gmra.mrb[2].mxu0 %vm266_vm1, %v5889_v9  ;;  %v5983_v24 = vld [vmem:[%s5863_s21 + $0x1a] sm:$0xff]  ;;  %v5994_v25 = vld [vmem:[%s5863_s21 + $0x22] sm:$0xff]  ;;  %v6000_v27 = vld [vmem:[%s5863_s21 + $0x32] sm:$0xff] }
  0x53   : > { %4942 = vmatprep.mubr.msk.f32.mxu1 %vm266_vm1, %v5882_v8  ;;  %5142 = vmatprep.mubr.msk.f32.mxu0 %vm266_vm1, %v5895_v10  ;;  %v5997_v26 = vld [vmem:[%s5863_s21 + $0xd9] sm:$0xff]  ;;  %v6011_v29 = vld [vmem:[%s5863_s21 + $0xe1] sm:$0xff]  ;;  %v6020_v31 = vld [vmem:[%s5863_s21 + $0xf1] sm:$0xff] }
  0x54   : > { %7280 = vst [vmem:[#allocation8_spill] sm:$0xff] %v6011_v29  ;;  %v6017_v30 = vld [vmem:[%s5863_s21 + $0x3a] sm:$0xff]  ;;  %7281 = vst [vmem:[#allocation9_spill] sm:$0xff] %v6020_v31  ;;  %v6023_v32 = vld [vmem:[%s5863_s21 + $0x4a] sm:$0xff] }
  0x55   : > { %v6034_v33 = vld [vmem:[%s5863_s21 + $0xf9] sm:$0xff]  ;;  %v6042_v35 = vld [vmem:[%s5863_s21 + $0x109] sm:$0xff]  ;;  %v6054_v37 = vld [vmem:[%s5863_s21 + $0x111] sm:$0xff] }
  0x56   : > { %4943 = vmatmul.mubr.msk.f32.gmra.mrb[4].mxu1 %vm266_vm1, %v5889_v9  ;;  %5143 = vmatmul.mubr.msk.f32.gmra.mrb[4].mxu0 %vm266_vm1, %v5905_v12  ;;  %7282 = vst [vmem:[#allocation10_spill] sm:$0xff] %v6034_v33  ;;  %v6039_v34 = vld [vmem:[%s5863_s21 + $0x52] sm:$0xff]  ;;  %7283 = vst [vmem:[#allocation11_spill] sm:$0xff] %v6042_v35  ;;  %v6045_v36 = vld [vmem:[%s5863_s21 + $0x62] sm:$0xff] }
  0x57   : > { %4945 = vmatprep.mubr.msk.f32.mxu1 %vm266_vm1, %v5895_v10  ;;  %5145 = vmatprep.mubr.msk.f32.mxu0 %vm266_vm1, %v5909_v13  ;;  %7284 = vst [vmem:[#allocation12_spill] sm:$0xff] %v6054_v37  ;;  %v6059_v38 = vld [vmem:[%s5863_s21 + $0x6a] sm:$0xff]  ;;  %v6062_v39 = vld [vmem:[%s5863_s21 + $0x121] sm:$0xff]  ;;  %v6082_v43 = vld [vmem:[%s5863_s21 + $0x139] sm:$0xff] }
  0x58   : > { %7285 = vst [vmem:[#allocation13_spill] sm:$0xff] %v6062_v39  ;;  %v6065_v40 = vld [vmem:[%s5863_s21 + $0x7a] sm:$0xff]  ;;  %v6074_v41 = vld [vmem:[%s5863_s21 + $0x129] sm:$0xff]  ;;  %7287 = vst [vmem:[#allocation15_spill] sm:$0xff] %v6082_v43 }
  0x59   : > { %7286 = vst [vmem:[#allocation14_spill] sm:$0xff] %v6074_v41  ;;  %v6079_v42 = vld [vmem:[%s5863_s21 + $0x82] sm:$0xff]  ;;  %v6085_v44 = vld [vmem:[%s5863_s21 + $0x92] sm:$0xff]  ;;  %v6099_v46 = vld [vmem:[%s5863_s21 + $0x9a] sm:$0xff] }
  0x5a   : > { %4946 = vmatmul.mubr.msk.f32.gmra.mrb[6].mxu1 %vm266_vm1, %v5905_v12  ;;  %5146 = vmatmul.mubr.msk.f32.gmra.mrb[6].mxu0 %vm266_vm1, %v5920_v14  ;;  %v6094_v45 = vld [vmem:[%s5863_s21 + $0x141] sm:$0xff]  ;;  %v6102_v47 = vld [vmem:[%s5863_s21 + $0x151] sm:$0xff]  ;;  %v6114_v49 = vld [vmem:[%s5863_s21 + $0x159] sm:$0xff] }
  0x5b   : > { %4948 = vmatprep.mubr.msk.f32.mxu1 %vm266_vm1, %v5909_v13  ;;  %5148 = vmatprep.mubr.msk.f32.mxu0 %vm266_vm1, %v5923_v15  ;;  %7288 = vst [vmem:[#allocation16_spill] sm:$0xff] %v6094_v45  ;;  %7289 = vst [vmem:[#allocation17_spill] sm:$0xff] %v6102_v47  ;;  %v6105_v48 = vld [vmem:[%s5863_s21 + $0xaa] sm:$0xff]  ;;  %v6119_v50 = vld [vmem:[%s5863_s21 + $0xb2] sm:$0xff] }
  0x5c   : > { %7290 = vst [vmem:[#allocation18_spill] sm:$0xff] %v6114_v49  ;;  %v6122_v51 = vld [vmem:[%s5863_s21 + $0x169] sm:$0xff]  ;;  %v6134_v53 = vld [vmem:[%s5863_s21 + $0x171] sm:$0xff]  ;;  %v199_v55 = vld [vmem:[%s5863_s21] sm:$0xff] }
  0x5d   : > { %7291 = vst [vmem:[#allocation19_spill] sm:$0xff] %v6122_v51  ;;  %v6125_v52 = vld [vmem:[%s5863_s21 + $0xc2] sm:$0xff]  ;;  %7292 = vst [vmem:[#allocation20_spill] sm:$0xff] %v6134_v53  ;;  %v6139_v54 = vld [vmem:[%s5863_s21 + $0xca] sm:$0xff] }
  0x5e   : > { %4949 = vmatmul.mubr.msk.f32.gmra.mrb[8].mxu1 %vm266_vm1, %v5920_v14  ;;  %5149 = vmatmul.mubr.msk.f32.gmra.mrb[8].mxu0 %vm266_vm1, %v5934_v16  ;;  %v6143_v56 = vld [vmem:[%s5863_s21 + $0xda] sm:$0xff]  ;;  %v200_v57 = vld [vmem:[%s5863_s21 + $0x8] sm:$0xff]  ;;  %v6160_v60 = vld [vmem:[%s5863_s21 + $0xf2] sm:$0xff] }
  0x5f   : > { %4951 = vmatprep.mubr.msk.f32.mxu1 %vm266_vm1, %v5923_v15  ;;  %5151 = vmatprep.mubr.msk.f32.mxu0 %vm266_vm1, %v5939_v18  ;;  %v6154_v58 = vld [vmem:[%s5863_s21 + $0xe2] sm:$0xff]  ;;  %v6157_v59 = vld [vmem:[%s5863_s21 + $0x18] sm:$0xff]  ;;  %v6180_v0 = vld [vmem:[%s5863_s21 + $0x30] sm:$0xff] }
  0x60   : > { %7293 = vst [vmem:[#allocation21_spill] sm:$0xff] %v6157_v59  ;;  %v6170_v62 = vld [vmem:[%s5863_s21 + $0x20] sm:$0xff]  ;;  %7295 = vst [vmem:[#allocation23_spill] sm:$0xff] %v6180_v0  ;;  %v6183_v2 = vld [vmem:[%s5863_s21 + $0x10a] sm:$0xff] }
  0x61   : > { %7294 = vst [vmem:[#allocation22_spill] sm:$0xff] %v6170_v62  ;;  %v6177_v63 = vld [vmem:[%s5863_s21 + $0xfa] sm:$0xff]  ;;  %v6199_v4 = vld [vmem:[%s5863_s21 + $0x112] sm:$0xff]  ;;  %v6202_v5 = vld [vmem:[%s5863_s21 + $0x48] sm:$0xff] }
  0x62   : > { %4952 = vmatmul.mubr.msk.f32.gmra.mrb[10].mxu1 %vm266_vm1, %v5934_v16  ;;  %5152 = vmatmul.mubr.msk.f32.gmra.mrb[10].mxu0 %vm266_vm1, %v5952_v19  ;;  %v6194_v3 = vld [vmem:[%s5863_s21 + $0x38] sm:$0xff]  ;;  %7297 = vst [vmem:[#allocation25_spill] sm:$0xff] %v6202_v5  ;;  %v6205_v6 = vld [vmem:[%s5863_s21 + $0x122] sm:$0xff]  ;;  %v6214_v7 = vld [vmem:[%s5863_s21 + $0x50] sm:$0xff] }
  0x63   : > { %4954 = vmatprep.mubr.msk.f32.mxu1 %vm266_vm1, %v5939_v18  ;;  %5154 = vmatprep.mubr.msk.f32.mxu0 %vm266_vm1, %v5955_v20  ;;  %7296 = vst [vmem:[#allocation24_spill] sm:$0xff] %v6194_v3  ;;  %7298 = vst [vmem:[#allocation26_spill] sm:$0xff] %v6214_v7 }
  0x66   : > { %4955 = vmatmul.mubr.msk.f32.gmra.mrb[12].mxu1 %vm266_vm1, %v5952_v19  ;;  %5155 = vmatmul.mubr.msk.f32.gmra.mrb[12].mxu0 %vm266_vm1, %v5966_v21 }
  0x67   : > { %4957 = vmatprep.mubr.msk.f32.mxu1 %vm266_vm1, %v5955_v20  ;;  %5157 = vmatprep.mubr.msk.f32.mxu0 %vm266_vm1, %v5969_v22 }
  0x6a   : > { %4958 = vmatmul.mubr.msk.f32.gmra.mrb[14].mxu1 %vm266_vm1, %v5966_v21  ;;  %5158 = vmatmul.mubr.msk.f32.gmra.mrb[14].mxu0 %vm266_vm1, %v5980_v23 }
  0x6b   : > { %4960 = vmatprep.mubr.msk.f32.mxu1 %vm266_vm1, %v5969_v22  ;;  %5186 = vmatprep.mubr.msk.f32.mxu0 %vm266_vm1, %v5983_v24 }
  0x6e   : > { %4961 = vmatmul.mubr.msk.f32.gmra.mrb[16].mxu1 %vm266_vm1, %v5980_v23  ;;  %5187 = vmatmul.mubr.msk.f32.vlgmr.msra.gmra.mrb[0].mxu0 %vm266_vm1, %v5994_v25 }
  0x6f   : > { %4963 = vmatprep.mubr.msk.f32.mxu1 %vm266_vm1, %v5997_v26  ;;  %5235 = vmatpush3.msk.msra.mxu0 %vm363_vm0, %v2511_v11  ;;  %v6219_v11 = vld [vmem:[%s5863_s21 + $0x12a] sm:$0xff] }
  0x70   : > { %5189 = vmatprep.mubr.msk.f32.mxu0 %vm266_vm1, %v6000_v27  ;;  %5284 = vmatprep.subr.msk.mxu0 %vm363_vm0, %v6004_v28 }
  0x72   : > { %4964 = vmatmul.mubr.msk.f32.gmra.mrb[18].mxu1 %vm266_vm1, %v6011_v29  ;;  %5190 = vmatmul.mubr.msk.f32.gmra.mrb[2].mxu0 %vm266_vm1, %v6017_v30  ;;  %v6311_v29 = vld [vmem:[%s5863_s21 + $0xc8] sm:$0xff] }
  0x73   : > { %4966 = vmatprep.mubr.msk.f32.mxu1 %vm266_vm1, %v6020_v31  ;;  %5192 = vmatprep.mubr.msk.f32.mxu0 %vm266_vm1, %v6023_v32  ;;  %v6299_v31 = vld [vmem:[%s5863_s21 + $0x18a] sm:$0xff] }
  0x74   : > { %7309 = vst [vmem:[#allocation37_spill] sm:$0xff] %v6299_v31 }
  0x76   : > { %4967 = vmatmul.mubr.msk.f32.gmra.mrb[20].mxu1 %vm266_vm1, %v6034_v33  ;;  %5193 = vmatmul.mubr.msk.f32.gmra.mrb[4].mxu0 %vm266_vm1, %v6039_v34  ;;  %v6285_v33 = vld [vmem:[%s5863_s21 + $0x182] sm:$0xff] }
  0x77   : > { %4969 = vmatprep.mubr.msk.f32.mxu1 %vm266_vm1, %v6042_v35  ;;  %5195 = vmatprep.mubr.msk.f32.mxu0 %vm266_vm1, %v6045_v36  ;;  %v6282_v35 = vld [vmem:[%s5863_s21 + $0xa8] sm:$0xff]  ;;  %7307 = vst [vmem:[#allocation35_spill] sm:$0xff] %v6285_v33 }
  0x78   : > { %7306 = vst [vmem:[#allocation34_spill] sm:$0xff] %v6282_v35 }
  0x7a   : > { %4970 = vmatmul.mubr.msk.f32.gmra.mrb[22].mxu1 %vm266_vm1, %v6054_v37  ;;  %5196 = vmatmul.mubr.msk.f32.gmra.mrb[6].mxu0 %vm266_vm1, %v6059_v38  ;;  %v6279_v37 = vld [vmem:[%s5863_s21 + $0x172] sm:$0xff] }
  0x7b   : > { %4972 = vmatprep.mubr.msk.f32.mxu1 %vm266_vm1, %v6062_v39  ;;  %5198 = vmatprep.mubr.msk.f32.mxu0 %vm266_vm1, %v6065_v40  ;;  %v6274_v39 = vld [vmem:[%s5863_s21 + $0x98] sm:$0xff]  ;;  %7305 = vst [vmem:[#allocation33_spill] sm:$0xff] %v6279_v37 }
  0x7c   : > { %7304 = vst [vmem:[#allocation32_spill] sm:$0xff] %v6274_v39 }
  0x7e   : > { %4973 = vmatmul.mubr.msk.f32.gmra.mrb[24].mxu1 %vm266_vm1, %v6074_v41  ;;  %5199 = vmatmul.mubr.msk.f32.gmra.mrb[8].mxu0 %vm266_vm1, %v6079_v42  ;;  %v6265_v41 = vld [vmem:[%s5863_s21 + $0x16a] sm:$0xff] }
  0x7f   : > { %4975 = vmatprep.mubr.msk.f32.mxu1 %vm266_vm1, %v6082_v43  ;;  %5201 = vmatprep.mubr.msk.f32.mxu0 %vm266_vm1, %v6085_v44  ;;  %v6262_v43 = vld [vmem:[%s5863_s21 + $0x90] sm:$0xff] }
  0x80   : > { %7303 = vst [vmem:[#allocation31_spill] sm:$0xff] %v6262_v43 }
  0x82   : > { %4976 = vmatmul.mubr.msk.f32.gmra.mrb[26].mxu1 %vm266_vm1, %v6094_v45  ;;  %5202 = vmatmul.mubr.msk.f32.gmra.mrb[10].mxu0 %vm266_vm1, %v6099_v46  ;;  %v6259_v45 = vld [vmem:[%s5863_s21 + $0x15a] sm:$0xff] }
  0x83   : > { %4978 = vmatprep.mubr.msk.f32.mxu1 %vm266_vm1, %v6102_v47  ;;  %5204 = vmatprep.mubr.msk.f32.mxu0 %vm266_vm1, %v6105_v48  ;;  %v6254_v47 = vld [vmem:[%s5863_s21 + $0x80] sm:$0xff] }
  0x84   : > { %7302 = vst [vmem:[#allocation30_spill] sm:$0xff] %v6254_v47 }
  0x86   : > { %4979 = vmatmul.mubr.msk.f32.gmra.mrb[28].mxu1 %vm266_vm1, %v6114_v49  ;;  %5205 = vmatmul.mubr.msk.f32.gmra.mrb[12].mxu0 %vm266_vm1, %v6119_v50  ;;  %v6245_v49 = vld [vmem:[%s5863_s21 + $0x152] sm:$0xff] }
  0x87   : > { %4981 = vmatprep.mubr.msk.f32.mxu1 %vm266_vm1, %v6122_v51  ;;  %5207 = vmatprep.mubr.msk.f32.mxu0 %vm266_vm1, %v6125_v52  ;;  %v6242_v51 = vld [vmem:[%s5863_s21 + $0x78] sm:$0xff] }
  0x88   : > { %7301 = vst [vmem:[#allocation29_spill] sm:$0xff] %v6242_v51 }
  0x8a   : > { %4982 = vmatmul.mubr.msk.f32.gmra.mrb[30].mxu1 %vm266_vm1, %v6134_v53  ;;  %5208 = vmatmul.mubr.msk.f32.gmra.mrb[14].mxu0 %vm266_vm1, %v6139_v54  ;;  %v6239_v53 = vld [vmem:[%s5863_s21 + $0x142] sm:$0xff] }
  0x8b   : > { %4986 = vmatprep.mubr.msk.f32.mxu1 %vm266_vm1, %v199_v55  ;;  %5210 = vmatprep.mubr.msk.f32.mxu0 %vm266_vm1, %v6143_v56  ;;  %v6225_v55 = vld [vmem:[%s5863_s21 + $0x13a] sm:$0xff] }
  0x8e   : > { %4987 = vmatmul.mubr.msk.f32.vlgmr.msra.gmra.mrb[0].mxu1 %vm266_vm1, %v200_v57  ;;  %5211 = vmatmul.mubr.msk.f32.gmra.mrb[16].mxu0 %vm266_vm1, %v6154_v58  ;;  %v6234_v57 = vld [vmem:[%s5863_s21 + $0x68] sm:$0xff] }
  0x8f   : > { %5035 = vmatpush3.msk.msra.mxu1 %vm363_vm0, %v5936_v17  ;;  %4989 = vmatprep.mubr.msk.f32.mxu1 %vm266_vm1, %v6157_v59  ;;  %v6222_v17 = vld [vmem:[%s5863_s21 + $0x60] sm:$0xff]  ;;  %7300 = vst [vmem:[#allocation28_spill] sm:$0xff] %v6234_v57 }
  0x90   : > { %5213 = vmatprep.mubr.msk.f32.mxu0 %vm266_vm1, %v6160_v60  ;;  %5084 = vmatprep.subr.msk.mxu1 %vm363_vm0, %v6163_v61  ;;  %7299 = vst [vmem:[#allocation27_spill] sm:$0xff] %v6222_v17  ;;  %v6302_v59 = vld [vmem:[%s5863_s21 + $0xc0] sm:$0xff] }
  0x91   : > { %7310 = vst [vmem:[#allocation38_spill] sm:$0xff] %v6302_v59 }
  0x92   : > { %4990 = vmatmul.mubr.msk.f32.gmra.mrb[2].mxu1 %vm266_vm1, %v6170_v62  ;;  %5214 = vmatmul.mubr.msk.f32.gmra.mrb[18].mxu0 %vm266_vm1, %v6177_v63  ;;  %v6294_v62 = vld [vmem:[%s5863_s21 + $0xb0] sm:$0xff] }
  0x93   : > { %4992 = vmatprep.mubr.msk.f32.mxu1 %vm266_vm1, %v6180_v0  ;;  %5216 = vmatprep.mubr.msk.f32.mxu0 %vm266_vm1, %v6183_v2  ;;  %7308 = vst [vmem:[#allocation36_spill] sm:$0xff] %v6294_v62 }
  0x96   : > { %4993 = vmatmul.mubr.msk.f32.gmra.mrb[4].mxu1 %vm266_vm1, %v6194_v3  ;;  %5217 = vmatmul.mubr.msk.f32.gmra.mrb[20].mxu0 %vm266_vm1, %v6199_v4 }
  0x97   : > { %4995 = vmatprep.mubr.msk.f32.mxu1 %vm266_vm1, %v6202_v5  ;;  %5219 = vmatprep.mubr.msk.f32.mxu0 %vm266_vm1, %v6205_v6 }
  0x9a   : > { %4996 = vmatmul.mubr.msk.f32.gmra.mrb[6].mxu1 %vm266_vm1, %v6214_v7  ;;  %5220 = vmatmul.mubr.msk.f32.gmra.mrb[22].mxu0 %vm266_vm1, %v6219_v11 }
  0x9b   : > { %4998 = vmatprep.mubr.msk.f32.mxu1 %vm266_vm1, %v6222_v17  ;;  %5222 = vmatprep.mubr.msk.f32.mxu0 %vm266_vm1, %v6225_v55 }
  0x9e   : > { %4999 = vmatmul.mubr.msk.f32.gmra.mrb[8].mxu1 %vm266_vm1, %v6234_v57  ;;  %5223 = vmatmul.mubr.msk.f32.gmra.mrb[24].mxu0 %vm266_vm1, %v6239_v53 }
  0x9f   : > { %5001 = vmatprep.mubr.msk.f32.mxu1 %vm266_vm1, %v6242_v51  ;;  %5225 = vmatprep.mubr.msk.f32.mxu0 %vm266_vm1, %v6245_v49 }
  0xa2   : > { %5002 = vmatmul.mubr.msk.f32.gmra.mrb[10].mxu1 %vm266_vm1, %v6254_v47  ;;  %5226 = vmatmul.mubr.msk.f32.gmra.mrb[26].mxu0 %vm266_vm1, %v6259_v45 }
  0xa3   : > { %5004 = vmatprep.mubr.msk.f32.mxu1 %vm266_vm1, %v6262_v43  ;;  %5228 = vmatprep.mubr.msk.f32.mxu0 %vm266_vm1, %v6265_v41 }
  0xa6   : > { %5005 = vmatmul.mubr.msk.f32.gmra.mrb[12].mxu1 %vm266_vm1, %v6274_v39  ;;  %5229 = vmatmul.mubr.msk.f32.gmra.mrb[28].mxu0 %vm266_vm1, %v6279_v37  ;;  %v6320_v37 = vld [vmem:[#allocation2 + $0x20] sm:$0x7] }
  0xa7   : > { %5007 = vmatprep.mubr.msk.f32.mxu1 %vm266_vm1, %v6282_v35  ;;  %5231 = vmatprep.mubr.msk.f32.mxu0 %vm266_vm1, %v6285_v33  ;;  %v6316_v33 = vld [vmem:[%s5863_s21 + $0xd8] sm:$0xff] }
  0xaa   : > { %5008 = vmatmul.mubr.msk.f32.gmra.mrb[14].mxu1 %vm266_vm1, %v6294_v62  ;;  %5232 = vmatmul.mubr.msk.f32.gmra.mrb[30].mxu0 %vm266_vm1, %v6299_v31  ;;  %v6327_v31 = vld [vmem:[%s5863_s21 + $0xe0] sm:$0xff] }
  0xab   : > { %5010 = vmatprep.mubr.msk.f32.mxu1 %vm266_vm1, %v6302_v59  ;;  %5236 = vmatprep.mubr.msk.f32.mxu0 %vm266_vm1, %v6180_v0  ;;  %v6334_v0 = vld [vmem:[%s5863_s21 + $0xf0] sm:$0xff] }
  0xae   : > { %5011 = vmatmul.mubr.msk.f32.gmra.mrb[16].mxu1 %vm266_vm1, %v6311_v29  ;;  %5237 = vmatmul.mubr.msk.f32.vlgmr.msra.gmra.mrb[0].mxu0 %vm266_vm1, %v6194_v3  ;;  %v6364_v3 = vld [vmem:[%s5863_s21 + $0x120] sm:$0xff] }
  0xaf   : > { %5013 = vmatprep.mubr.msk.f32.mxu1 %vm266_vm1, %v6316_v33  ;;  %5285 = vmatpush3.msk.msra.mxu0 %vm363_vm0, %v6004_v28  ;;  %v6345_v28 = vld [vmem:[%s5863_s21 + $0xf8] sm:$0xff] }
  0xb0   : > { %5239 = vmatprep.mubr.msk.f32.mxu0 %vm266_vm1, %v6202_v5  ;;  %5334 = vmatprep.subr.msk.mxu0 %vm363_vm0, %v6320_v37  ;;  %v6350_v5 = vld [vmem:[%s5863_s21 + $0x108] sm:$0xff] }
  0xb2   : > { %5014 = vmatmul.mubr.msk.f32.gmra.mrb[18].mxu1 %vm266_vm1, %v6327_v31  ;;  %5240 = vmatmul.mubr.msk.f32.gmra.mrb[2].mxu0 %vm266_vm1, %v6214_v7  ;;  %v6359_v7 = vld [vmem:[%s5863_s21 + $0x110] sm:$0xff] }
  0xb3   : > { %5016 = vmatprep.mubr.msk.f32.mxu1 %vm266_vm1, %v6334_v0  ;;  %5242 = vmatprep.mubr.msk.f32.mxu0 %vm266_vm1, %v6222_v17  ;;  %v6378_v17 = vld [vmem:[%s5863_s21 + $0x138] sm:$0xff] }
  0xb6   : > { %5017 = vmatmul.mubr.msk.f32.gmra.mrb[20].mxu1 %vm266_vm1, %v6345_v28  ;;  %5243 = vmatmul.mubr.msk.f32.gmra.mrb[4].mxu0 %vm266_vm1, %v6234_v57  ;;  %v6373_v57 = vld [vmem:[%s5863_s21 + $0x128] sm:$0xff] }
  0xb7   : > { %5019 = vmatprep.mubr.msk.f32.mxu1 %vm266_vm1, %v6350_v5  ;;  %5245 = vmatprep.mubr.msk.f32.mxu0 %vm266_vm1, %v6242_v51  ;;  %v6392_v51 = vld [vmem:[%s5863_s21 + $0x150] sm:$0xff] }
  0xba   : > { %5020 = vmatmul.mubr.msk.f32.gmra.mrb[22].mxu1 %vm266_vm1, %v6359_v7  ;;  %5246 = vmatmul.mubr.msk.f32.gmra.mrb[6].mxu0 %vm266_vm1, %v6254_v47  ;;  %v6387_v47 = vld [vmem:[%s5863_s21 + $0x140] sm:$0xff] }
  0xbb   : > { %5022 = vmatprep.mubr.msk.f32.mxu1 %vm266_vm1, %v6364_v3  ;;  %5248 = vmatprep.mubr.msk.f32.mxu0 %vm266_vm1, %v6262_v43  ;;  %v6406_v43 = vld [vmem:[%s5863_s21 + $0x168] sm:$0xff] }
  0xbe   : > { %5023 = vmatmul.mubr.msk.f32.gmra.mrb[24].mxu1 %vm266_vm1, %v6373_v57  ;;  %5249 = vmatmul.mubr.msk.f32.gmra.mrb[8].mxu0 %vm266_vm1, %v6274_v39  ;;  %v6401_v39 = vld [vmem:[%s5863_s21 + $0x158] sm:$0xff] }
  0xbf   : > { %5025 = vmatprep.mubr.msk.f32.mxu1 %vm266_vm1, %v6378_v17  ;;  %5251 = vmatprep.mubr.msk.f32.mxu0 %vm266_vm1, %v6282_v35  ;;  %v916_v35 = vld [vmem:[%s5863_s21 + $0x2] sm:$0xff] }
  0xc2   : > { %5026 = vmatmul.mubr.msk.f32.gmra.mrb[26].mxu1 %vm266_vm1, %v6387_v47  ;;  %5252 = vmatmul.mubr.msk.f32.gmra.mrb[10].mxu0 %vm266_vm1, %v6294_v62  ;;  %v6415_v62 = vld [vmem:[%s5863_s21 + $0x170] sm:$0xff] }
  0xc3   : > { %5028 = vmatprep.mubr.msk.f32.mxu1 %vm266_vm1, %v6392_v51  ;;  %5254 = vmatprep.mubr.msk.f32.mxu0 %vm266_vm1, %v6302_v59  ;;  %v917_v59 = vld [vmem:[%s5863_s21 + $0xa] sm:$0xff] }
  0xc6   : > { %5029 = vmatmul.mubr.msk.f32.gmra.mrb[28].mxu1 %vm266_vm1, %v6401_v39  ;;  %5255 = vmatmul.mubr.msk.f32.gmra.mrb[12].mxu0 %vm266_vm1, %v6311_v29 }
  0xc7   : > { %5031 = vmatprep.mubr.msk.f32.mxu1 %vm266_vm1, %v6406_v43  ;;  %5257 = vmatprep.mubr.msk.f32.mxu0 %vm266_vm1, %v6316_v33 }
  0xca   : > { %5032 = vmatmul.mubr.msk.f32.gmra.mrb[30].mxu1 %vm266_vm1, %v6415_v62  ;;  %5258 = vmatmul.mubr.msk.f32.gmra.mrb[14].mxu0 %vm266_vm1, %v6327_v31 }
  0xcb   : > { %5036 = vmatprep.mubr.msk.f32.mxu1 %vm266_vm1, %v916_v35  ;;  %5260 = vmatprep.mubr.msk.f32.mxu0 %vm266_vm1, %v6334_v0  ;;  %v4468_v35 = vld [vmem:[%s5863_s21 + $0x198] sm:$0xff] }
  0xce   : > { %5037 = vmatmul.mubr.msk.f32.vlgmr.msra.gmra.mrb[0].mxu1 %vm266_vm1, %v917_v59  ;;  %5261 = vmatmul.mubr.msk.f32.gmra.mrb[16].mxu0 %vm266_vm1, %v6345_v28  ;;  %v4469_v59 = vld [vmem:[%s5863_s21 + $0x1a0] sm:$0xff] }
  0xcf   : > { %5085 = vmatpush3.msk.msra.mxu1 %vm363_vm0, %v6163_v61  ;;  %5039 = vmatprep.mubr.msk.f32.mxu1 %vm266_vm1, %v5983_v24  ;;  %v6472_v24 = vld [vmem:[%s5863_s21 + $0x180] sm:$0xff] }
  0xd0   : > { %5263 = vmatprep.mubr.msk.f32.mxu0 %vm266_vm1, %v6350_v5  ;;  %5384 = vmatprep.subr.msk.mxu1 %vm363_vm0, %v5865_v1  ;;  %v7327_v61 = vld [vmem:[#allocation28_spill] sm:$0xff] }
  0xd2   : > { %5040 = vmatmul.mubr.msk.f32.gmra.mrb[2].mxu1 %vm266_vm1, %v5994_v25  ;;  %5264 = vmatmul.mubr.msk.f32.gmra.mrb[18].mxu0 %vm266_vm1, %v6359_v7  ;;  %v6483_v25 = vld [vmem:[%s5863_s21 + $0x188] sm:$0xff] }
  0xd3   : > { %5042 = vmatprep.mubr.msk.f32.mxu1 %vm266_vm1, %v6000_v27  ;;  %5266 = vmatprep.mubr.msk.f32.mxu0 %vm266_vm1, %v6364_v3 }
  0xd6   : > { %5043 = vmatmul.mubr.msk.f32.gmra.mrb[4].mxu1 %vm266_vm1, %v6017_v30  ;;  %5267 = vmatmul.mubr.msk.f32.gmra.mrb[20].mxu0 %vm266_vm1, %v6373_v57 }
  0xd7   : > { %5045 = vmatprep.mubr.msk.f32.mxu1 %vm266_vm1, %v6023_v32  ;;  %5269 = vmatprep.mubr.msk.f32.mxu0 %vm266_vm1, %v6378_v17 }
  0xda   : > { %5046 = vmatmul.mubr.msk.f32.gmra.mrb[6].mxu1 %vm266_vm1, %v6039_v34  ;;  %5270 = vmatmul.mubr.msk.f32.gmra.mrb[22].mxu0 %vm266_vm1, %v6387_v47 }
  0xdb   : > { %5048 = vmatprep.mubr.msk.f32.mxu1 %vm266_vm1, %v6045_v36  ;;  %5272 = vmatprep.mubr.msk.f32.mxu0 %vm266_vm1, %v6392_v51 }
  0xde   : > { %5049 = vmatmul.mubr.msk.f32.gmra.mrb[8].mxu1 %vm266_vm1, %v6059_v38  ;;  %5273 = vmatmul.mubr.msk.f32.gmra.mrb[24].mxu0 %vm266_vm1, %v6401_v39 }
  0xdf   : > { %5051 = vmatprep.mubr.msk.f32.mxu1 %vm266_vm1, %v6065_v40  ;;  %5275 = vmatprep.mubr.msk.f32.mxu0 %vm266_vm1, %v6406_v43 }
  0xe2   : > { %5052 = vmatmul.mubr.msk.f32.gmra.mrb[10].mxu1 %vm266_vm1, %v6079_v42  ;;  %5276 = vmatmul.mubr.msk.f32.gmra.mrb[26].mxu0 %vm266_vm1, %v6415_v62 }
  0xe3   : > { %5054 = vmatprep.mubr.msk.f32.mxu1 %vm266_vm1, %v6085_v44  ;;  %5278 = vmatprep.mubr.msk.f32.mxu0 %vm266_vm1, %v6472_v24 }
  0xe6   : > { %5055 = vmatmul.mubr.msk.f32.gmra.mrb[12].mxu1 %vm266_vm1, %v6099_v46  ;;  %5279 = vmatmul.mubr.msk.f32.gmra.mrb[28].mxu0 %vm266_vm1, %v6483_v25 }
  0xe7   : > { %5057 = vmatprep.mubr.msk.f32.mxu1 %vm266_vm1, %v6105_v48  ;;  %5281 = vmatprep.mubr.msk.f32.mxu0 %vm266_vm1, %v4468_v35  ;;  %v7328_v35 = vld [vmem:[#allocation16_spill] sm:$0xff] }
  0xea   : > { %5058 = vmatmul.mubr.msk.f32.gmra.mrb[14].mxu1 %vm266_vm1, %v6119_v50  ;;  %5282 = vmatmul.mubr.msk.f32.gmra.mrb[30].mxu0 %vm266_vm1, %v4469_v59  ;;  %v7329_v59 = vld [vmem:[#allocation29_spill] sm:$0xff] }
  0xeb   : > { %5060 = vmatprep.mubr.msk.f32.mxu1 %vm266_vm1, %v6125_v52  ;;  %5286 = vmatprep.mubr.msk.f32.mxu0 %vm266_vm1, %v5882_v8  ;;  %v7311_v8 = vld [vmem:[#allocation33_spill] sm:$0xff] }
  0xee   : > { %5061 = vmatmul.mubr.msk.f32.gmra.mrb[16].mxu1 %vm266_vm1, %v6139_v54  ;;  %5287 = vmatmul.mubr.msk.f32.vlgmr.msra.gmra.mrb[0].mxu0 %vm266_vm1, %v5889_v9  ;;  %v7312_v9 = vld [vmem:[#allocation8_spill] sm:$0xff] }
  0xef   : > { %5063 = vmatprep.mubr.msk.f32.mxu1 %vm266_vm1, %v6143_v56  ;;  %5335 = vmatpush3.msk.msra.mxu0 %vm363_vm0, %v6320_v37  ;;  %v7326_v37 = vld [vmem:[#allocation15_spill] sm:$0xff] }
  0xf0   : > { %5289 = vmatprep.mubr.msk.f32.mxu0 %vm266_vm1, %v5895_v10  ;;  %v7313_v10 = vld [vmem:[#allocation21_spill] sm:$0xff] }
  0xf2   : > { %5064 = vmatmul.mubr.msk.f32.gmra.mrb[18].mxu1 %vm266_vm1, %v6154_v58  ;;  %5290 = vmatmul.mubr.msk.f32.gmra.mrb[2].mxu0 %vm266_vm1, %v5905_v12  ;;  %v7314_v12 = vld [vmem:[#allocation9_spill] sm:$0xff] }
  0xf3   : > { %5066 = vmatprep.mubr.msk.f32.mxu1 %vm266_vm1, %v6160_v60  ;;  %5292 = vmatprep.mubr.msk.f32.mxu0 %vm266_vm1, %v5909_v13  ;;  %v7315_v13 = vld [vmem:[#allocation22_spill] sm:$0xff] }
  0xf6   : > { %5067 = vmatmul.mubr.msk.f32.gmra.mrb[20].mxu1 %vm266_vm1, %v6177_v63  ;;  %5293 = vmatmul.mubr.msk.f32.gmra.mrb[4].mxu0 %vm266_vm1, %v5920_v14  ;;  %v7316_v14 = vld [vmem:[#allocation10_spill] sm:$0xff] }
  0xf7   : > { %5069 = vmatprep.mubr.msk.f32.mxu1 %vm266_vm1, %v6183_v2  ;;  %5295 = vmatprep.mubr.msk.f32.mxu0 %vm266_vm1, %v5923_v15  ;;  %v7317_v15 = vld [vmem:[#allocation23_spill] sm:$0xff] }
  0xfa   : > { %5070 = vmatmul.mubr.msk.f32.gmra.mrb[22].mxu1 %vm266_vm1, %v6199_v4  ;;  %5296 = vmatmul.mubr.msk.f32.gmra.mrb[6].mxu0 %vm266_vm1, %v5934_v16  ;;  %v7318_v16 = vld [vmem:[#allocation11_spill] sm:$0xff] }
  0xfb   : > { %5072 = vmatprep.mubr.msk.f32.mxu1 %vm266_vm1, %v6205_v6  ;;  %5298 = vmatprep.mubr.msk.f32.mxu0 %vm266_vm1, %v5939_v18  ;;  %v7319_v18 = vld [vmem:[#allocation24_spill] sm:$0xff] }
  0xfe   : > { %5073 = vmatmul.mubr.msk.f32.gmra.mrb[24].mxu1 %vm266_vm1, %v6219_v11  ;;  %5299 = vmatmul.mubr.msk.f32.gmra.mrb[8].mxu0 %vm266_vm1, %v5952_v19  ;;  %v7320_v19 = vld [vmem:[#allocation12_spill] sm:$0xff] }
  0xff   : > { %5075 = vmatprep.mubr.msk.f32.mxu1 %vm266_vm1, %v6225_v55  ;;  %5301 = vmatprep.mubr.msk.f32.mxu0 %vm266_vm1, %v5955_v20  ;;  %v7321_v20 = vld [vmem:[#allocation25_spill] sm:$0xff] }
 0x102   : > { %5076 = vmatmul.mubr.msk.f32.gmra.mrb[26].mxu1 %vm266_vm1, %v6239_v53  ;;  %5302 = vmatmul.mubr.msk.f32.gmra.mrb[10].mxu0 %vm266_vm1, %v5966_v21  ;;  %v7322_v21 = vld [vmem:[#allocation13_spill] sm:$0xff] }
 0x103   : > { %5078 = vmatprep.mubr.msk.f32.mxu1 %vm266_vm1, %v6245_v49  ;;  %5304 = vmatprep.mubr.msk.f32.mxu0 %vm266_vm1, %v5969_v22  ;;  %v7324_v22 = vld [vmem:[#allocation14_spill] sm:$0xff] }
 0x106   : > { %5079 = vmatmul.mubr.msk.f32.gmra.mrb[28].mxu1 %vm266_vm1, %v6259_v45  ;;  %5305 = vmatmul.mubr.msk.f32.gmra.mrb[12].mxu0 %vm266_vm1, %v5980_v23  ;;  %v7325_v23 = vld [vmem:[#allocation27_spill] sm:$0xff] }
 0x107   : > { %5081 = vmatprep.mubr.msk.f32.mxu1 %vm266_vm1, %v6265_v41  ;;  %5307 = vmatprep.mubr.msk.f32.mxu0 %vm266_vm1, %v5997_v26 }
 0x10a   : > { %5082 = vmatmul.mubr.msk.f32.gmra.mrb[30].mxu1 %vm266_vm1, %v7311_v8  ;;  %5308 = vmatmul.mubr.msk.f32.gmra.mrb[14].mxu0 %vm266_vm1, %v7312_v9  ;;  %v7338_v8 = vld [vmem:[#allocation36_spill] sm:$0xff] }
 0x10b   : > { %5086 = vmatprep.mubr.msk.f32.mxu1 %vm266_vm1, %v7313_v10  ;;  %5310 = vmatprep.mubr.msk.f32.mxu0 %vm266_vm1, %v7314_v12  ;;  %v7330_v10 = vld [vmem:[#allocation17_spill] sm:$0xff] }
 0x10e   : > { %5087 = vmatmul.mubr.msk.f32.vlgmr.msra.gmra.mrb[0].mxu1 %vm266_vm1, %v7315_v13  ;;  %5311 = vmatmul.mubr.msk.f32.gmra.mrb[16].mxu0 %vm266_vm1, %v7316_v14  ;;  %v7331_v13 = vld [vmem:[#allocation30_spill] sm:$0xff] }
 0x10f   : > { %5385 = vmatpush3.msk.msra.mxu1 %vm363_vm0, %v5865_v1  ;;  %5089 = vmatprep.mubr.msk.f32.mxu1 %vm266_vm1, %v7317_v15  ;;  %v7323_v1 = vld [vmem:[#allocation26_spill] sm:$0xff] }
 0x110   : > { %5313 = vmatprep.mubr.msk.f32.mxu0 %vm266_vm1, %v7318_v16  ;;  %v7332_v15 = vld [vmem:[#allocation18_spill] sm:$0xff] }
 0x112   : > { %5090 = vmatmul.mubr.msk.f32.gmra.mrb[2].mxu1 %vm266_vm1, %v7319_v18  ;;  %5314 = vmatmul.mubr.msk.f32.gmra.mrb[18].mxu0 %vm266_vm1, %v7320_v19  ;;  %v7333_v18 = vld [vmem:[#allocation31_spill] sm:$0xff] }
 0x113   : > { %5092 = vmatprep.mubr.msk.f32.mxu1 %vm266_vm1, %v7321_v20  ;;  %5316 = vmatprep.mubr.msk.f32.mxu0 %vm266_vm1, %v7322_v21  ;;  %v7334_v20 = vld [vmem:[#allocation19_spill] sm:$0xff] }
 0x116   : > { %5093 = vmatmul.mubr.msk.f32.gmra.mrb[4].mxu1 %vm266_vm1, %v7323_v1  ;;  %5317 = vmatmul.mubr.msk.f32.gmra.mrb[20].mxu0 %vm266_vm1, %v7324_v22  ;;  %v6610_v1 = vld [vmem:[%s5863_s21 + $0x181] sm:$0xff] }
 0x117   : > { %5095 = vmatprep.mubr.msk.f32.mxu1 %vm266_vm1, %v7325_v23  ;;  %5319 = vmatprep.mubr.msk.f32.mxu0 %vm266_vm1, %v7326_v37  ;;  %v7335_v23 = vld [vmem:[#allocation32_spill] sm:$0xff] }
 0x11a   : > { %5096 = vmatmul.mubr.msk.f32.gmra.mrb[6].mxu1 %vm266_vm1, %v7327_v61  ;;  %5320 = vmatmul.mubr.msk.f32.gmra.mrb[22].mxu0 %vm266_vm1, %v7328_v35  ;;  %v7336_v61 = vld [vmem:[#allocation20_spill] sm:$0xff] }
 0x11b   : > { %5098 = vmatprep.mubr.msk.f32.mxu1 %vm266_vm1, %v7329_v59  ;;  %5322 = vmatprep.mubr.msk.f32.mxu0 %vm266_vm1, %v7330_v10  ;;  %v7337_v59 = vld [vmem:[#allocation34_spill] sm:$0xff] }
 0x11e   : > { %5099 = vmatmul.mubr.msk.f32.gmra.mrb[8].mxu1 %vm266_vm1, %v7331_v13  ;;  %5323 = vmatmul.mubr.msk.f32.gmra.mrb[24].mxu0 %vm266_vm1, %v7332_v15  ;;  %v6621_v13 = vld [vmem:[%s5863_s21 + $0x189] sm:$0xff] }
 0x11f   : > { %5101 = vmatprep.mubr.msk.f32.mxu1 %vm266_vm1, %v7333_v18  ;;  %5325 = vmatprep.mubr.msk.f32.mxu0 %vm266_vm1, %v7334_v20  ;;  %v4533_v18 = vld [vmem:[%s5863_s21 + $0x199] sm:$0xff] }
 0x120   : > { %v7339_v20 = vld [vmem:[#allocation38_spill] sm:$0xff] }
 0x122   : > { %5102 = vmatmul.mubr.msk.f32.gmra.mrb[10].mxu1 %vm266_vm1, %v7335_v23  ;;  %5326 = vmatmul.mubr.msk.f32.gmra.mrb[26].mxu0 %vm266_vm1, %v7336_v61  ;;  %v4534_v23 = vld [vmem:[%s5863_s21 + $0x1a1] sm:$0xff] }
 0x123   : > { %5104 = vmatprep.mubr.msk.f32.mxu1 %vm266_vm1, %v7337_v59  ;;  %5328 = vmatprep.mubr.msk.f32.mxu0 %vm266_vm1, %v6610_v1 }
 0x126   : > { %5105 = vmatmul.mubr.msk.f32.gmra.mrb[12].mxu1 %vm266_vm1, %v7338_v8  ;;  %5329 = vmatmul.mubr.msk.f32.gmra.mrb[28].mxu0 %vm266_vm1, %v6621_v13 }
 0x127   : > { %5107 = vmatprep.mubr.msk.f32.mxu1 %vm266_vm1, %v7339_v20  ;;  %5331 = vmatprep.mubr.msk.f32.mxu0 %vm266_vm1, %v4533_v18 }
 0x12a   : > { %5108 = vmatmul.mubr.msk.f32.gmra.mrb[14].mxu1 %vm266_vm1, %v6311_v29  ;;  %5332 = vmatmul.mubr.msk.f32.gmra.mrb[30].mxu0 %vm266_vm1, %v4534_v23  ;;  %v7342_v29 = vld [vmem:[#allocation35_spill] sm:$0xff] }
 0x12b   : > { %5110 = vmatprep.mubr.msk.f32.mxu1 %vm266_vm1, %v6316_v33  ;;  %5336 = vmatprep.mubr.msk.f32.mxu0 %vm266_vm1, %v6000_v27  ;;  %v7341_v27 = vld [vmem:[#allocation19_spill] sm:$0xff] }
 0x12e   : > { %5111 = vmatmul.mubr.msk.f32.gmra.mrb[16].mxu1 %vm266_vm1, %v6327_v31  ;;  %5337 = vmatmul.mubr.msk.f32.vlgmr.msra.gmra.mrb[0].mxu0 %vm266_vm1, %v6017_v30  ;;  %v4598_v30 = vld [vmem:[%s5863_s21 + $0x19a] sm:$0xff]  ;;  %v7343_v31 = vld [vmem:[#allocation37_spill] sm:$0xff] }
 0x12f   : > { %5113 = vmatprep.mubr.msk.f32.mxu1 %vm266_vm1, %v6334_v0  ;;  %5339 = vmatprep.mubr.msk.f32.mxu0 %vm266_vm1, %v6023_v32  ;;  %v4599_v32 = vld [vmem:[%s5863_s21 + $0x1a2] sm:$0xff] }
 0x132   : > { %5114 = vmatmul.mubr.msk.f32.gmra.mrb[18].mxu1 %vm266_vm1, %v6345_v28  ;;  %5340 = vmatmul.mubr.msk.f32.gmra.mrb[2].mxu0 %vm266_vm1, %v6039_v34 }
 0x133   : > { %5116 = vmatprep.mubr.msk.f32.mxu1 %vm266_vm1, %v6350_v5  ;;  %5342 = vmatprep.mubr.msk.f32.mxu0 %vm266_vm1, %v6045_v36 }
 0x136   : > { %5117 = vmatmul.mubr.msk.f32.gmra.mrb[20].mxu1 %vm266_vm1, %v6359_v7  ;;  %5343 = vmatmul.mubr.msk.f32.gmra.mrb[4].mxu0 %vm266_vm1, %v6059_v38 }
 0x137   : > { %5119 = vmatprep.mubr.msk.f32.mxu1 %vm266_vm1, %v6364_v3  ;;  %5345 = vmatprep.mubr.msk.f32.mxu0 %vm266_vm1, %v6065_v40 }
 0x13a   : > { %5120 = vmatmul.mubr.msk.f32.gmra.mrb[22].mxu1 %vm266_vm1, %v6373_v57  ;;  %5346 = vmatmul.mubr.msk.f32.gmra.mrb[6].mxu0 %vm266_vm1, %v6079_v42 }
 0x13b   : > { %5122 = vmatprep.mubr.msk.f32.mxu1 %vm266_vm1, %v6378_v17  ;;  %5348 = vmatprep.mubr.msk.f32.mxu0 %vm266_vm1, %v6085_v44 }
 0x13e   : > { %5123 = vmatmul.mubr.msk.f32.gmra.mrb[24].mxu1 %vm266_vm1, %v6387_v47  ;;  %5349 = vmatmul.mubr.msk.f32.gmra.mrb[8].mxu0 %vm266_vm1, %v6099_v46 }
 0x13f   : > { %5125 = vmatprep.mubr.msk.f32.mxu1 %vm266_vm1, %v6392_v51  ;;  %5351 = vmatprep.mubr.msk.f32.mxu0 %vm266_vm1, %v6105_v48 }
 0x142   : > { %5126 = vmatmul.mubr.msk.f32.gmra.mrb[26].mxu1 %vm266_vm1, %v6401_v39  ;;  %5352 = vmatmul.mubr.msk.f32.gmra.mrb[10].mxu0 %vm266_vm1, %v6119_v50 }
 0x143   : > { %5128 = vmatprep.mubr.msk.f32.mxu1 %vm266_vm1, %v6406_v43  ;;  %5354 = vmatprep.mubr.msk.f32.mxu0 %vm266_vm1, %v6125_v52  ;;  %v6779_v52 = vld [vmem:[#allocation4] ss:$0 sm:$0xff] }
 0x146   : > { %5129 = vmatmul.mubr.msk.f32.gmra.mrb[28].mxu1 %vm266_vm1, %v6415_v62  ;;  %5355 = vmatmul.mubr.msk.f32.gmra.mrb[12].mxu0 %vm266_vm1, %v6139_v54 }
 0x147   : > { %5131 = vmatprep.mubr.msk.f32.mxu1 %vm266_vm1, %v6472_v24  ;;  %5357 = vmatprep.mubr.msk.f32.mxu0 %vm266_vm1, %v6143_v56 }
 0x14a   : > { %5132 = vmatmul.mubr.msk.f32.gmra.mrb[30].mxu1 %vm266_vm1, %v6483_v25  ;;  %5358 = vmatmul.mubr.msk.f32.gmra.mrb[14].mxu0 %vm266_vm1, %v6154_v58 }
 0x14b   : > { %5160 = vmatprep.mubr.msk.f32.mxu1 %vm266_vm1, %v5997_v26  ;;  %5360 = vmatprep.mubr.msk.f32.mxu0 %vm266_vm1, %v6160_v60  ;;  %v7340_v26 = vld [vmem:[#allocation33_spill] sm:$0xff] }
 0x14e   : > { %5161 = vmatmul.mubr.msk.f32.vlgmr.msra.gmra.mrb[16].mxu1 %vm266_vm1, %v7312_v9  ;;  %5361 = vmatmul.mubr.msk.f32.gmra.mrb[16].mxu0 %vm266_vm1, %v6177_v63 }
 0x14f   : > { %5163 = vmatprep.mubr.msk.f32.mxu1 %vm266_vm1, %v7314_v12  ;;  %5363 = vmatprep.mubr.msk.f32.mxu0 %vm266_vm1, %v6183_v2 }
 0x152   : > { %5164 = vmatmul.mubr.msk.f32.gmra.mrb[18].mxu1 %vm266_vm1, %v7316_v14  ;;  %5364 = vmatmul.mubr.msk.f32.gmra.mrb[18].mxu0 %vm266_vm1, %v6199_v4 }
 0x153   : > { %5166 = vmatprep.mubr.msk.f32.mxu1 %vm266_vm1, %v7318_v16  ;;  %5366 = vmatprep.mubr.msk.f32.mxu0 %vm266_vm1, %v6205_v6 }
 0x156   : > { %5167 = vmatmul.mubr.msk.f32.gmra.mrb[20].mxu1 %vm266_vm1, %v7320_v19  ;;  %5367 = vmatmul.mubr.msk.f32.gmra.mrb[20].mxu0 %vm266_vm1, %v6219_v11 }
 0x157   : > { %5169 = vmatprep.mubr.msk.f32.mxu1 %vm266_vm1, %v7322_v21  ;;  %5369 = vmatprep.mubr.msk.f32.mxu0 %vm266_vm1, %v6225_v55 }
 0x15a   : > { %5170 = vmatmul.mubr.msk.f32.gmra.mrb[22].mxu1 %vm266_vm1, %v7324_v22  ;;  %5370 = vmatmul.mubr.msk.f32.gmra.mrb[22].mxu0 %vm266_vm1, %v6239_v53 }
 0x15b   : > { %5172 = vmatprep.mubr.msk.f32.mxu1 %vm266_vm1, %v7326_v37  ;;  %5372 = vmatprep.mubr.msk.f32.mxu0 %vm266_vm1, %v6245_v49 }
 0x15e   : > { %5173 = vmatmul.mubr.msk.f32.gmra.mrb[24].mxu1 %vm266_vm1, %v7328_v35  ;;  %5373 = vmatmul.mubr.msk.f32.gmra.mrb[24].mxu0 %vm266_vm1, %v6259_v45 }
 0x15f   : > { %5175 = vmatprep.mubr.msk.f32.mxu1 %vm266_vm1, %v7330_v10  ;;  %5375 = vmatprep.mubr.msk.f32.mxu0 %vm266_vm1, %v6265_v41 }
 0x162   : > { %5176 = vmatmul.mubr.msk.f32.gmra.mrb[26].mxu1 %vm266_vm1, %v7332_v15  ;;  %5376 = vmatmul.mubr.msk.f32.gmra.mrb[26].mxu0 %vm266_vm1, %v7340_v26 }
 0x163   : > { %5178 = vmatprep.mubr.msk.f32.mxu1 %vm266_vm1, %v7341_v27  ;;  %5378 = vmatprep.mubr.msk.f32.mxu0 %vm266_vm1, %v7342_v29 }
 0x166   : > { %5179 = vmatmul.mubr.msk.f32.gmra.mrb[28].mxu1 %vm266_vm1, %v7336_v61  ;;  %5379 = vmatmul.mubr.msk.f32.gmra.mrb[28].mxu0 %vm266_vm1, %v7343_v31 }
 0x167   : > { %5181 = vmatprep.mubr.msk.f32.mxu1 %vm266_vm1, %v6610_v1  ;;  %5381 = vmatprep.mubr.msk.f32.mxu0 %vm266_vm1, %v4598_v30 }
 0x16a   : > { %5182 = vmatmul.mubr.msk.f32.gmra.mrb[30].mxu1 %vm266_vm1, %v6621_v13  ;;  %5382 = vmatmul.mubr.msk.f32.gmra.mrb[30].mxu0 %vm266_vm1, %v4599_v32 }
 0x1e1   : > { %v5088_v33 = vpop.f32.mrb[0].mxu1 }
 0x1e2   : > { %v1506_v34 = vpop.f32.mrb[1].mxu1 }
 0x1e5   : > { %v5091_v36 = vpop.f32.mrb[2].mxu1 }
 0x1e6   : > { %v1516_v38 = vpop.f32.mrb[3].mxu1 }
 0x1e9   : > { %v5094_v39 = vpop.f32.mrb[4].mxu1 }
 0x1ea   : > { %v1526_v40 = vpop.f32.mrb[5].mxu1 }
 0x1ed   : > { %v5097_v41 = vpop.f32.mrb[6].mxu1 }
 0x1ee   : > { %v1536_v42 = vpop.f32.mrb[7].mxu1 }
 0x1f1   : > { %v6763_v43 = vpop.f32.mrb[8].mxu1 }
 0x1f2   : > { %v6765_v44 = vpop.f32.mrb[9].mxu1 }
 0x1f5   : > { %v6767_v45 = vpop.f32.mrb[10].mxu1 }
 0x1f6   : > { %v6769_v46 = vpop.f32.mrb[11].mxu1 }
 0x1f9   : > { %v6771_v47 = vpop.f32.mrb[12].mxu1 }
 0x1fa   : > { %v6773_v48 = vpop.f32.mrb[13].mxu1 }
 0x1fd   : > { %v6775_v49 = vpop.f32.mrb[14].mxu1 }
 0x1fe   : > { %v6777_v50 = vpop.f32.mrb[15].mxu1 }
 0x201   : > { %v5338_v51 = vpop.f32.mrb[0].mxu0 }
 0x202   : > { %v5386_v53 = vadd.f32 %v5338_v51, %v5088_v33  ;;  %v3457_v54 = vpop.f32.mrb[1].mxu0 }
 0x203   : > { %v5387_v56 = vadd.f32 %v3457_v54, %v1506_v34 }
 0x204   : > { %v3656_v58 = vadd.f32 %v5386_v53, %v6779_v52 }
 0x205   : > { %v3655_v60 = vadd.f32 %v5387_v56, %v6779_v52  ;;  %v5341_v62 = vpop.f32.mrb[2].mxu0 }
 0x206   : > { %vm3688_vm2 = vcmp.ge.f32.partialorder %v3656_v58, 0.0  ;;  %v3720_v63 = vmul.f32 0.1, %v3656_v58  ;;  %v5388_v0 = vadd.f32 %v5341_v62, %v5091_v36  ;;  %v3467_v2 = vpop.f32.mrb[3].mxu0 }
 0x207   : > { %vm3687_vm4 = vcmp.ge.f32.partialorder %v3655_v60, 0.0  ;;  %v3719_v3 = vmul.f32 0.1, %v3655_v60  ;;  %v5389_v4 = vadd.f32 %v3467_v2, %v1516_v38 }
 0x208   : > { %v6783_v5 = vsel %vm3688_vm2, %v3656_v58, %v3720_v63  ;;  %v3658_v6 = vadd.f32 %v5388_v0, %v6779_v52 }
 0x209   : > { %v3785_v7 = vsel %vm3783_vm3, %v6783_v5, 0.0  ;;  %v6788_v11 = vsel %vm3687_vm4, %v3655_v60, %v3719_v3  ;;  %v3657_v17 = vadd.f32 %v5389_v4, %v6779_v52  ;;  %v5344_v55 = vpop.f32.mrb[4].mxu0 }
 0x20a   : > { %v3784_v57 = vsel %vm3783_vm3, %v6788_v11, 0.0  ;;  %vm3690_vm5 = vcmp.ge.f32.partialorder %v3658_v6, 0.0  ;;  %v3722_v28 = vmul.f32 0.1, %v3658_v6  ;;  %v5390_v24 = vadd.f32 %v5344_v55, %v5094_v39  ;;  %v3477_v25 = vpop.f32.mrb[5].mxu0 }
 0x20b   : > { %vm3689_vm6 = vcmp.ge.f32.partialorder %v3657_v17, 0.0  ;;  %v3721_v8 = vmul.f32 0.1, %v3657_v17  ;;  %v5391_v9 = vadd.f32 %v3477_v25, %v1526_v40  ;;  %v3786_v14 = vadd.f32 %v3785_v7, %v3784_v57 }
 0x20c   : > { %v3660_v12 = vadd.f32 %v5390_v24, %v6779_v52  ;;  %v6794_v16 = vsel %vm3690_vm5, %v3658_v6, %v3722_v28 }
 0x20d   : > { %v6796_v19 = vsel %vm3689_vm6, %v3657_v17, %v3721_v8  ;;  %v3659_v21 = vadd.f32 %v5391_v9, %v6779_v52  ;;  %v5347_v22 = vpop.f32.mrb[6].mxu0  ;;  %v3789_v59 = vsel %vm3783_vm3, %v6794_v16, 0.0 }
 0x20e   : > { %v3787_v37 = vsel %vm3783_vm3, %v6796_v19, 0.0  ;;  %vm3692_vm7 = vcmp.ge.f32.partialorder %v3660_v12, 0.0  ;;  %v3724_v35 = vmul.f32 0.1, %v3660_v12  ;;  %v5392_v10 = vadd.f32 %v5347_v22, %v5097_v41  ;;  %v3487_v15 = vpop.f32.mrb[7].mxu0 }
 0x20f   : > { %v3788_v20 = vadd.f32 %v3787_v37, %v3786_v14  ;;  %vm3691_vm8 = vcmp.ge.f32.partialorder %v3659_v21, 0.0  ;;  %v3723_v1 = vmul.f32 0.1, %v3659_v21  ;;  %v5393_v61 = vadd.f32 %v3487_v15, %v1536_v42 }
 0x210   : > { %v3662_v13 = vadd.f32 %v5392_v10, %v6779_v52  ;;  %v6804_v18 = vsel %vm3692_vm7, %v3660_v12, %v3724_v35 }
 0x211   : > { %v6806_v23 = vsel %vm3691_vm8, %v3659_v21, %v3723_v1  ;;  %v3790_v26 = vadd.f32 %v3789_v59, %v3788_v20  ;;  %v3661_v27 = vadd.f32 %v5393_v61, %v6779_v52  ;;  %v5350_v29 = vpop.f32.mrb[8].mxu0  ;;  %v3793_v39 = vsel %vm3783_vm3, %v6804_v18, 0.0 }
 0x212   : > { %v3791_v30 = vsel %vm3783_vm3, %v6806_v23, 0.0  ;;  %vm3694_vm9 = vcmp.ge.f32.partialorder %v3662_v13, 0.0  ;;  %v3726_v31 = vmul.f32 0.1, %v3662_v13  ;;  %v5394_v32 = vadd.f32 %v5350_v29, %v6763_v43  ;;  %v3497_v33 = vpop.f32.mrb[9].mxu0 }
 0x213   : > { %v3792_v34 = vadd.f32 %v3791_v30, %v3790_v26  ;;  %vm3693_vm10 = vcmp.ge.f32.partialorder %v3661_v27, 0.0  ;;  %v3725_v36 = vmul.f32 0.1, %v3661_v27  ;;  %v5395_v38 = vadd.f32 %v3497_v33, %v6765_v44 }
 0x214   : > { %v3664_v40 = vadd.f32 %v5394_v32, %v6779_v52  ;;  %v6816_v41 = vsel %vm3694_vm9, %v3662_v13, %v3726_v31 }
 0x215   : > { %v6818_v42 = vsel %vm3693_vm10, %v3661_v27, %v3725_v36  ;;  %v3794_v51 = vadd.f32 %v3793_v39, %v3792_v34  ;;  %v3663_v53 = vadd.f32 %v5395_v38, %v6779_v52  ;;  %v5353_v54 = vpop.f32.mrb[10].mxu0  ;;  %v3797_v0 = vsel %vm3783_vm3, %v6816_v41, 0.0 }
 0x216   : > { %v3795_v43 = vsel %vm3783_vm3, %v6818_v42, 0.0  ;;  %vm3696_vm11 = vcmp.ge.f32.partialorder %v3664_v40, 0.0  ;;  %v3728_v56 = vmul.f32 0.1, %v3664_v40  ;;  %v5396_v44 = vadd.f32 %v5353_v54, %v6767_v45  ;;  %v3507_v58 = vpop.f32.mrb[11].mxu0 }
 0x217   : > { %v3796_v60 = vadd.f32 %v3795_v43, %v3794_v51  ;;  %vm3695_vm12 = vcmp.ge.f32.partialorder %v3663_v53, 0.0  ;;  %v3727_v62 = vmul.f32 0.1, %v3663_v53  ;;  %v5397_v63 = vadd.f32 %v3507_v58, %v6769_v46 }
 0x218   : > { %v3666_v2 = vadd.f32 %v5396_v44, %v6779_v52  ;;  %v6828_v3 = vsel %vm3696_vm11, %v3664_v40, %v3728_v56 }
 0x219   : > { %v6830_v4 = vsel %vm3695_vm12, %v3663_v53, %v3727_v62  ;;  %v3798_v6 = vadd.f32 %v3797_v0, %v3796_v60  ;;  %v3665_v7 = vadd.f32 %v5397_v63, %v6779_v52  ;;  %v5356_v17 = vpop.f32.mrb[12].mxu0  ;;  %v3801_v8 = vsel %vm3783_vm3, %v6828_v3, 0.0 }
 0x21a   : > { %v3799_v45 = vsel %vm3783_vm3, %v6830_v4, 0.0  ;;  %vm3698_vm13 = vcmp.ge.f32.partialorder %v3666_v2, 0.0  ;;  %v3730_v55 = vmul.f32 0.1, %v3666_v2  ;;  %v5398_v46 = vadd.f32 %v5356_v17, %v6771_v47  ;;  %v3517_v57 = vpop.f32.mrb[13].mxu0 }
 0x21b   : > { %v3800_v28 = vadd.f32 %v3799_v45, %v3798_v6  ;;  %vm3697_vm14 = vcmp.ge.f32.partialorder %v3665_v7, 0.0  ;;  %v3729_v24 = vmul.f32 0.1, %v3665_v7  ;;  %v5399_v25 = vadd.f32 %v3517_v57, %v6773_v48 }
 0x21c   : > { %v3668_v9 = vadd.f32 %v5398_v46, %v6779_v52  ;;  %v6840_v12 = vsel %vm3698_vm13, %v3666_v2, %v3730_v55 }
 0x21d   : > { %v6842_v14 = vsel %vm3697_vm14, %v3665_v7, %v3729_v24  ;;  %v3802_v21 = vadd.f32 %v3801_v8, %v3800_v28  ;;  %v3667_v22 = vadd.f32 %v5399_v25, %v6779_v52  ;;  %v5359_v37 = vpop.f32.mrb[14].mxu0  ;;  %v3805_v61 = vsel %vm3783_vm3, %v6840_v12, 0.0 }
 0x21e   : > { %v3803_v47 = vsel %vm3783_vm3, %v6842_v14, 0.0  ;;  %vm3700_vm15 = vcmp.ge.f32.partialorder %v3668_v9, 0.0  ;;  %v3732_v35 = vmul.f32 0.1, %v3668_v9  ;;  %v5400_v48 = vadd.f32 %v5359_v37, %v6775_v49  ;;  %v3527_v10 = vpop.f32.mrb[15].mxu0 }
 0x21f   : > { %v3804_v15 = vadd.f32 %v3803_v47, %v3802_v21  ;;  %vm3699_vm0 = vcmp.ge.f32.partialorder %v3667_v22, 0.0  ;;  %v3731_v20 = vmul.f32 0.1, %v3667_v22  ;;  %v5401_v1 = vadd.f32 %v3527_v10, %v6777_v50 }
 0x220   : > { %v3670_v59 = vadd.f32 %v5400_v48, %v6779_v52  ;;  %v6852_v26 = vsel %vm3700_vm15, %v3668_v9, %v3732_v35 }
 0x221   : > { %v5162_v13 = vpop.f32.mrb[16].mxu1  ;;  %v6854_v27 = vsel %vm3699_vm0, %v3667_v22, %v3731_v20  ;;  %v3806_v29 = vadd.f32 %v3805_v61, %v3804_v15  ;;  %v3669_v30 = vadd.f32 %v5401_v1, %v6779_v52  ;;  %v5362_v49 = vpop.f32.mrb[16].mxu0  ;;  %v3809_v40 = vsel %vm3783_vm3, %v6852_v26, 0.0 }
 0x222   : > { %v1976_v31 = vpop.f32.mrb[17].mxu1  ;;  %v3807_v32 = vsel %vm3783_vm3, %v6854_v27, 0.0  ;;  %vm3702_vm1 = vcmp.ge.f32.partialorder %v3670_v59, 0.0  ;;  %v3734_v50 = vmul.f32 0.1, %v3670_v59  ;;  %v5402_v33 = vadd.f32 %v5362_v49, %v5162_v13  ;;  %v3537_v34 = vpop.f32.mrb[17].mxu0 }
 0x223   : > { %v3808_v36 = vadd.f32 %v3807_v32, %v3806_v29  ;;  %vm3701_vm2 = vcmp.ge.f32.partialorder %v3669_v30, 0.0  ;;  %v3733_v38 = vmul.f32 0.1, %v3669_v30  ;;  %v5403_v39 = vadd.f32 %v3537_v34, %v1976_v31 }
 0x224   : > { %v3672_v51 = vadd.f32 %v5402_v33, %v6779_v52  ;;  %v6862_v54 = vsel %vm3702_vm1, %v3670_v59, %v3734_v50 }
 0x225   : > { %v5165_v53 = vpop.f32.mrb[18].mxu1  ;;  %v6864_v43 = vsel %vm3701_vm2, %v3669_v30, %v3733_v38  ;;  %v3810_v56 = vadd.f32 %v3809_v40, %v3808_v36  ;;  %v3671_v44 = vadd.f32 %v5403_v39, %v6779_v52  ;;  %v5365_v58 = vpop.f32.mrb[18].mxu0  ;;  %v3813_v45 = vsel %vm3783_vm3, %v6862_v54, 0.0 }
 0x226   : > { %v1986_v60 = vpop.f32.mrb[19].mxu1  ;;  %v3811_v62 = vsel %vm3783_vm3, %v6864_v43, 0.0  ;;  %vm3704_vm4 = vcmp.ge.f32.partialorder %v3672_v51, 0.0  ;;  %v3736_v63 = vmul.f32 0.1, %v3672_v51  ;;  %v5404_v0 = vadd.f32 %v5365_v58, %v5165_v53  ;;  %v3547_v2 = vpop.f32.mrb[19].mxu0 }
 0x227   : > { %v3812_v6 = vadd.f32 %v3811_v62, %v3810_v56  ;;  %vm3703_vm5 = vcmp.ge.f32.partialorder %v3671_v44, 0.0  ;;  %v3735_v7 = vmul.f32 0.1, %v3671_v44  ;;  %v5405_v17 = vadd.f32 %v3547_v2, %v1986_v60 }
 0x228   : > { %v3674_v55 = vadd.f32 %v5404_v0, %v6779_v52  ;;  %v6872_v57 = vsel %vm3704_vm4, %v3672_v51, %v3736_v63 }
 0x229   : > { %v5168_v46 = vpop.f32.mrb[20].mxu1  ;;  %v6874_v28 = vsel %vm3703_vm5, %v3671_v44, %v3735_v7  ;;  %v3814_v24 = vadd.f32 %v3813_v45, %v3812_v6  ;;  %v3673_v25 = vadd.f32 %v5405_v17, %v6779_v52  ;;  %v5368_v8 = vpop.f32.mrb[20].mxu0  ;;  %v3817_v15 = vsel %vm3783_vm3, %v6872_v57, 0.0 }
 0x22a   : > { %v1996_v9 = vpop.f32.mrb[21].mxu1  ;;  %v3815_v21 = vsel %vm3783_vm3, %v6874_v28, 0.0  ;;  %vm3706_vm6 = vcmp.ge.f32.partialorder %v3674_v55, 0.0  ;;  %v3738_v22 = vmul.f32 0.1, %v3674_v55  ;;  %v5406_v37 = vadd.f32 %v5368_v8, %v5168_v46  ;;  %v3557_v47 = vpop.f32.mrb[21].mxu0 }
 0x22b   : > { %v3816_v35 = vadd.f32 %v3815_v21, %v3814_v24  ;;  %vm3705_vm7 = vcmp.ge.f32.partialorder %v3673_v25, 0.0  ;;  %v3737_v48 = vmul.f32 0.1, %v3673_v25  ;;  %v5407_v10 = vadd.f32 %v3557_v47, %v1996_v9 }
 0x22c   : > { %v3676_v20 = vadd.f32 %v5406_v37, %v6779_v52  ;;  %v6882_v61 = vsel %vm3706_vm6, %v3674_v55, %v3738_v22 }
 0x22d   : > { %v5171_v1 = vpop.f32.mrb[22].mxu1  ;;  %v6884_v59 = vsel %vm3705_vm7, %v3673_v25, %v3737_v48  ;;  %v3818_v13 = vadd.f32 %v3817_v15, %v3816_v35  ;;  %v3675_v29 = vadd.f32 %v5407_v10, %v6779_v52  ;;  %v5371_v30 = vpop.f32.mrb[22].mxu0  ;;  %v3821_v39 = vsel %vm3783_vm3, %v6882_v61, 0.0 }
 0x22e   : > { %v2006_v49 = vpop.f32.mrb[23].mxu1  ;;  %v3819_v31 = vsel %vm3783_vm3, %v6884_v59, 0.0  ;;  %vm3708_vm8 = vcmp.ge.f32.partialorder %v3676_v20, 0.0  ;;  %v3740_v32 = vmul.f32 0.1, %v3676_v20  ;;  %v5408_v50 = vadd.f32 %v5371_v30, %v5171_v1  ;;  %v3567_v33 = vpop.f32.mrb[23].mxu0 }
 0x22f   : > { %v3820_v34 = vadd.f32 %v3819_v31, %v3818_v13  ;;  %vm3707_vm9 = vcmp.ge.f32.partialorder %v3675_v29, 0.0  ;;  %v3739_v36 = vmul.f32 0.1, %v3675_v29  ;;  %v5409_v38 = vadd.f32 %v3567_v33, %v2006_v49 }
 0x230   : > { %v3678_v40 = vadd.f32 %v5408_v50, %v6779_v52  ;;  %v6892_v53 = vsel %vm3708_vm8, %v3676_v20, %v3740_v32 }
 0x231   : > { %v5174_v51 = vpop.f32.mrb[24].mxu1  ;;  %v6894_v56 = vsel %vm3707_vm9, %v3675_v29, %v3739_v36  ;;  %v3822_v44 = vadd.f32 %v3821_v39, %v3820_v34  ;;  %v3677_v58 = vadd.f32 %v5409_v38, %v6779_v52  ;;  %v5374_v60 = vpop.f32.mrb[24].mxu0  ;;  %v3825_v55 = vsel %vm3783_vm3, %v6892_v53, 0.0 }
 0x232   : > { %v2016_v62 = vpop.f32.mrb[25].mxu1  ;;  %v3823_v63 = vsel %vm3783_vm3, %v6894_v56, 0.0  ;;  %vm3710_vm10 = vcmp.ge.f32.partialorder %v3678_v40, 0.0  ;;  %v3742_v0 = vmul.f32 0.1, %v3678_v40  ;;  %v5410_v2 = vadd.f32 %v5374_v60, %v5174_v51  ;;  %v3577_v6 = vpop.f32.mrb[25].mxu0 }
 0x233   : > { %v3824_v7 = vadd.f32 %v3823_v63, %v3822_v44  ;;  %vm3709_vm11 = vcmp.ge.f32.partialorder %v3677_v58, 0.0  ;;  %v3741_v17 = vmul.f32 0.1, %v3677_v58  ;;  %v5411_v45 = vadd.f32 %v3577_v6, %v2016_v62 }
 0x234   : > { %v3680_v46 = vadd.f32 %v5410_v2, %v6779_v52  ;;  %v6902_v25 = vsel %vm3710_vm10, %v3678_v40, %v3742_v0 }
 0x235   : > { %v5177_v24 = vpop.f32.mrb[26].mxu1  ;;  %v6904_v8 = vsel %vm3709_vm11, %v3677_v58, %v3741_v17  ;;  %v3826_v9 = vadd.f32 %v3825_v55, %v3824_v7  ;;  %v3679_v21 = vadd.f32 %v5411_v45, %v6779_v52  ;;  %v5377_v22 = vpop.f32.mrb[26].mxu0  ;;  %v3829_v13 = vsel %vm3783_vm3, %v6902_v25, 0.0 }
 0x236   : > { %v2026_v37 = vpop.f32.mrb[27].mxu1  ;;  %v3827_v47 = vsel %vm3783_vm3, %v6904_v8, 0.0  ;;  %vm3712_vm12 = vcmp.ge.f32.partialorder %v3680_v46, 0.0  ;;  %v3744_v35 = vmul.f32 0.1, %v3680_v46  ;;  %v5412_v48 = vadd.f32 %v5377_v22, %v5177_v24  ;;  %v3587_v10 = vpop.f32.mrb[27].mxu0 }
 0x237   : > { %v3828_v15 = vadd.f32 %v3827_v47, %v3826_v9  ;;  %vm3711_vm13 = vcmp.ge.f32.partialorder %v3679_v21, 0.0  ;;  %v3743_v20 = vmul.f32 0.1, %v3679_v21  ;;  %v5413_v1 = vadd.f32 %v3587_v10, %v2026_v37 }
 0x238   : > { %v3682_v29 = vadd.f32 %v5412_v48, %v6779_v52  ;;  %v6912_v49 = vsel %vm3712_vm12, %v3680_v46, %v3744_v35 }
 0x239   : > { %v5180_v30 = vpop.f32.mrb[28].mxu1  ;;  %v6914_v31 = vsel %vm3711_vm13, %v3679_v21, %v3743_v20  ;;  %v3830_v32 = vadd.f32 %v3829_v13, %v3828_v15  ;;  %v3681_v50 = vadd.f32 %v5413_v1, %v6779_v52  ;;  %v5380_v33 = vpop.f32.mrb[28].mxu0  ;;  %v3833_v60 = vsel %vm3783_vm3, %v6912_v49, 0.0 }
 0x23a   : > { %v2036_v34 = vpop.f32.mrb[29].mxu1  ;;  %v3831_v36 = vsel %vm3783_vm3, %v6914_v31, 0.0  ;;  %vm3714_vm14 = vcmp.ge.f32.partialorder %v3682_v29, 0.0  ;;  %v3746_v38 = vmul.f32 0.1, %v3682_v29  ;;  %v5414_v39 = vadd.f32 %v5380_v33, %v5180_v30  ;;  %v3597_v40 = vpop.f32.mrb[29].mxu0 }
 0x23b   : > { %v3832_v51 = vadd.f32 %v3831_v36, %v3830_v32  ;;  %vm3713_vm15 = vcmp.ge.f32.partialorder %v3681_v50, 0.0  ;;  %v3745_v44 = vmul.f32 0.1, %v3681_v50  ;;  %v5415_v58 = vadd.f32 %v3597_v40, %v2036_v34 }
 0x23c   : > { %v3684_v62 = vadd.f32 %v5414_v39, %v6779_v52  ;;  %v3778_v0 = vsel %vm3714_vm14, %v3682_v29, %v3746_v38 }
 0x23d   : > { %v5183_v63 = vpop.f32.mrb[30].mxu1  ;;  %v3777_v2 = vsel %vm3713_vm15, %v3681_v50, %v3745_v44  ;;  %v3834_v6 = vadd.f32 %v3833_v60, %v3832_v51  ;;  %v3683_v7 = vadd.f32 %v5415_v58, %v6779_v52  ;;  %v5383_v17 = vpop.f32.mrb[30].mxu0  ;;  %v3837_v47 = vsel %vm3783_vm3, %v3778_v0, 0.0 }
 0x23e   : > { %v2046_v45 = vpop.f32.mrb[31].mxu1  ;;  %v3835_v55 = vsel %vm3783_vm3, %v3777_v2, 0.0  ;;  %vm3716_vm0 = vcmp.ge.f32.partialorder %v3684_v62, 0.0  ;;  %v3748_v46 = vmul.f32 0.1, %v3684_v62  ;;  %v5416_v24 = vadd.f32 %v5383_v17, %v5183_v63  ;;  %v3607_v9 = vpop.f32.mrb[31].mxu0 }
 0x23f   : > { %v3836_v21 = vadd.f32 %v3835_v55, %v3834_v6  ;;  %vm3715_vm1 = vcmp.ge.f32.partialorder %v3683_v7, 0.0  ;;  %v3747_v22 = vmul.f32 0.1, %v3683_v7  ;;  %v5417_v37 = vadd.f32 %v3607_v9, %v2046_v45 }
 0x240   : > { %v3686_v35 = vadd.f32 %v5416_v24, %v6779_v52  ;;  %v3780_v48 = vsel %vm3716_vm0, %v3684_v62, %v3748_v46 }
 0x241   : > { %v3779_v10 = vsel %vm3715_vm1, %v3683_v7, %v3747_v22  ;;  %v3838_v15 = vadd.f32 %v3837_v47, %v3836_v21  ;;  %v3685_v20 = vadd.f32 %v5417_v37, %v6779_v52  ;;  %v3841_v32 = vsel %vm3783_vm3, %v3780_v48, 0.0 }
 0x242   : > { %v3839_v1 = vsel %vm3783_vm3, %v3779_v10, 0.0  ;;  %vm3718_vm2 = vcmp.ge.f32.partialorder %v3686_v35, 0.0  ;;  %v3750_v13 = vmul.f32 0.1, %v3686_v35 }
 0x243   : > { %v3840_v29 = vadd.f32 %v3839_v1, %v3838_v15  ;;  %vm3717_vm4 = vcmp.ge.f32.partialorder %v3685_v20, 0.0  ;;  %v3749_v30 = vmul.f32 0.1, %v3685_v20 }
 0x244   : > { %v3782_v50 = vsel %vm3718_vm2, %v3686_v35, %v3750_v13 }
 0x245   : > { %v3781_v33 = vsel %vm3717_vm4, %v3685_v20, %v3749_v30  ;;  %v3842_v34 = vadd.f32 %v3841_v32, %v3840_v29  ;;  %v3845_v39 = vsel %vm3783_vm3, %v3782_v50, 0.0 }
 0x246   : > { %v3843_v36 = vsel %vm3783_vm3, %v3781_v33, 0.0 }
 0x247   : > { %v3844_v38 = vadd.f32 %v3843_v36, %v3842_v34 }
 0x249   : > { %v3846_v40 = vadd.f32 %v3845_v39, %v3844_v38 }
 0x24b   : > { %v3847_v51 = vrot.slane %v3846_v40, 4 }
 0x24d   : > { %v3848_v52 = vadd.f32 %v3847_v51, %v3846_v40 }
 0x24f   : > { %v3849_v44 = vrot.slane %v3848_v52, 2 }
 0x251   : > { %v3850_v58 = vadd.f32 %v3849_v44, %v3848_v52 }
 0x253   : > { %v3851_v60 = vrot.slane %v3850_v58, 1 }
 0x255   : > { %v3852_v62 = vadd.f32 %v3851_v60, %v3850_v58 }
 0x257   : > { %v3854_v63 = vmul.f32 0.00390625, %v3852_v62 }
 0x259   : > { %v6932_v6 = vsub.f32 %v6842_v14, %v3854_v63  ;;  %v6935_v7 = vsub.f32 %v6840_v12, %v3854_v63  ;;  %v6938_v17 = vsub.f32 %v6854_v27, %v3854_v63  ;;  %v6941_v45 = vsub.f32 %v6852_v26, %v3854_v63 }
 0x25a   : > { %v6944_v55 = vsub.f32 %v6864_v43, %v3854_v63  ;;  %v6947_v46 = vsub.f32 %v6862_v54, %v3854_v63  ;;  %v6950_v24 = vsub.f32 %v6874_v28, %v3854_v63  ;;  %v6953_v14 = vsub.f32 %v6872_v57, %v3854_v63 }
 0x25b   : > { %v6956_v12 = vsub.f32 %v6884_v59, %v3854_v63  ;;  %v6959_v27 = vsub.f32 %v6882_v61, %v3854_v63  ;;  %v6962_v26 = vsub.f32 %v6894_v56, %v3854_v63  ;;  %v6965_v43 = vsub.f32 %v6892_v53, %v3854_v63 }
 0x25c   : > { %v6968_v54 = vsub.f32 %v6904_v8, %v3854_v63  ;;  %v6971_v28 = vsub.f32 %v6902_v25, %v3854_v63  ;;  %v6974_v57 = vsub.f32 %v6914_v31, %v3854_v63  ;;  %v6977_v59 = vsub.f32 %v6912_v49, %v3854_v63 }
 0x25d   : > { %v6979_v61 = vsub.f32 %v3777_v2, %v3854_v63  ;;  %v6981_v9 = vsub.f32 %v3778_v0, %v3854_v63  ;;  %v6983_v56 = vsub.f32 %v3779_v10, %v3854_v63  ;;  %v6985_v53 = vsub.f32 %v3780_v48, %v3854_v63 }
 0x25e   : > { %v6987_v21 = vsub.f32 %v3781_v33, %v3854_v63  ;;  %v6989_v8 = vsub.f32 %v3782_v50, %v3854_v63  ;;  %v6992_v25 = vsub.f32 %v6788_v11, %v3854_v63  ;;  %v6995_v31 = vsub.f32 %v6783_v5, %v3854_v63 }
 0x25f   : > { %v6998_v49 = vsub.f32 %v6796_v19, %v3854_v63  ;;  %v7001_v0 = vsub.f32 %v6794_v16, %v3854_v63  ;;  %v7008_v37 = vsub.f32 %v6806_v23, %v3854_v63  ;;  %v7013_v5 = vsub.f32 %v6804_v18, %v3854_v63 }
 0x260   : > { %v3887_v2 = vmul.f32 %v6992_v25, %v6992_v25  ;;  %v3888_v22 = vmul.f32 %v6995_v31, %v6995_v31  ;;  %v7020_v48 = vsub.f32 %v6818_v42, %v3854_v63  ;;  %v7026_v18 = vsub.f32 %v6816_v41, %v3854_v63 }
 0x261   : > { %v3889_v11 = vmul.f32 %v6998_v49, %v6998_v49  ;;  %v3890_v19 = vmul.f32 %v7001_v0, %v7001_v0  ;;  %v3891_v23 = vmul.f32 %v7008_v37, %v7008_v37  ;;  %v3892_v20 = vmul.f32 %v7013_v5, %v7013_v5 }
 0x262   : > { %v3919_v16 = vsel %vm3783_vm3, %v3887_v2, 0.0  ;;  %v3920_v47 = vsel %vm3783_vm3, %v3888_v22, 0.0  ;;  %v7032_v29 = vsub.f32 %v6830_v4, %v3854_v63  ;;  %v3893_v42 = vmul.f32 %v7020_v48, %v7020_v48 }
 0x263   : > { %v3921_v35 = vadd.f32 %v3920_v47, %v3919_v16  ;;  %v3922_v10 = vsel %vm3783_vm3, %v3889_v11, 0.0  ;;  %v3924_v1 = vsel %vm3783_vm3, %v3890_v19, 0.0  ;;  %v3926_v30 = vsel %vm3783_vm3, %v3891_v23, 0.0 }
 0x264   : > { %v7038_v50 = vsub.f32 %v6828_v3, %v3854_v63  ;;  %v3894_v41 = vmul.f32 %v7026_v18, %v7026_v18  ;;  %v3928_v33 = vsel %vm3783_vm3, %v3892_v20, 0.0  ;;  %v3895_v36 = vmul.f32 %v7032_v29, %v7032_v29 }
 0x265   : > { %v3923_v15 = vadd.f32 %v3922_v10, %v3921_v35  ;;  %v3930_v4 = vsel %vm3783_vm3, %v3893_v42, 0.0  ;;  %v3897_v3 = vmul.f32 %v6932_v6, %v6932_v6  ;;  %v3898_v58 = vmul.f32 %v6935_v7, %v6935_v7 }
 0x266   : > { %v3896_v39 = vmul.f32 %v7038_v50, %v7038_v50  ;;  %v3932_v40 = vsel %vm3783_vm3, %v3894_v41, 0.0  ;;  %v3934_v52 = vsel %vm3783_vm3, %v3895_v36, 0.0  ;;  %v3899_v63 = vmul.f32 %v6938_v17, %v6938_v17 }
 0x267   : > { %v3925_v13 = vadd.f32 %v3924_v1, %v3923_v15  ;;  %v3938_v2 = vsel %vm3783_vm3, %v3897_v3, 0.0  ;;  %v3900_v11 = vmul.f32 %v6941_v45, %v6941_v45  ;;  %v3940_v19 = vsel %vm3783_vm3, %v3898_v58, 0.0 }
 0x268   : > { %v3936_v60 = vsel %vm3783_vm3, %v3896_v39, 0.0  ;;  %v3901_v47 = vmul.f32 %v6944_v55, %v6944_v55  ;;  %v3942_v35 = vsel %vm3783_vm3, %v3899_v63, 0.0  ;;  %v3902_v10 = vmul.f32 %v6947_v46, %v6947_v46 }
 0x269   : > { %v3927_v32 = vadd.f32 %v3926_v30, %v3925_v13  ;;  %v3944_v15 = vsel %vm3783_vm3, %v3900_v11, 0.0  ;;  %v3903_v1 = vmul.f32 %v6950_v24, %v6950_v24  ;;  %v3904_v30 = vmul.f32 %v6953_v14, %v6953_v14 }
 0x26a   : > { %v3946_v13 = vsel %vm3783_vm3, %v3901_v47, 0.0 }
 0x26b   : > { %v3929_v34 = vadd.f32 %v3928_v33, %v3927_v32  ;;  %v3948_v32 = vsel %vm3783_vm3, %v3902_v10, 0.0  ;;  %v3905_v33 = vmul.f32 %v6956_v12, %v6956_v12 }
 0x26d   : > { %v3931_v38 = vadd.f32 %v3930_v4, %v3929_v34  ;;  %v3950_v34 = vsel %vm3783_vm3, %v3903_v1, 0.0  ;;  %v3906_v4 = vmul.f32 %v6959_v27, %v6959_v27 }
 0x26f   : > { %v3933_v51 = vadd.f32 %v3932_v40, %v3931_v38  ;;  %v3952_v38 = vsel %vm3783_vm3, %v3904_v30, 0.0  ;;  %v3907_v40 = vmul.f32 %v6962_v26, %v6962_v26 }
 0x271   : > { %v3935_v44 = vadd.f32 %v3934_v52, %v3933_v51  ;;  %v3954_v51 = vsel %vm3783_vm3, %v3905_v33, 0.0  ;;  %v3908_v52 = vmul.f32 %v6965_v43, %v6965_v43 }
 0x273   : > { %v3937_v62 = vadd.f32 %v3936_v60, %v3935_v44  ;;  %v3956_v44 = vsel %vm3783_vm3, %v3906_v4, 0.0  ;;  %v3909_v60 = vmul.f32 %v6968_v54, %v6968_v54 }
 0x275   : > { %v3939_v22 = vadd.f32 %v3938_v2, %v3937_v62  ;;  %v3958_v62 = vsel %vm3783_vm3, %v3907_v40, 0.0  ;;  %v3910_v2 = vmul.f32 %v6971_v28, %v6971_v28 }
 0x277   : > { %v3941_v16 = vadd.f32 %v3940_v19, %v3939_v22  ;;  %v3960_v22 = vsel %vm3783_vm3, %v3908_v52, 0.0  ;;  %v3911_v19 = vmul.f32 %v6974_v57, %v6974_v57 }
 0x279   : > { %v3943_v23 = vadd.f32 %v3942_v35, %v3941_v16  ;;  %v3962_v16 = vsel %vm3783_vm3, %v3909_v60, 0.0  ;;  %v3912_v35 = vmul.f32 %v6977_v59, %v6977_v59 }
 0x27b   : > { %v3945_v20 = vadd.f32 %v3944_v15, %v3943_v23  ;;  %v3964_v23 = vsel %vm3783_vm3, %v3910_v2, 0.0  ;;  %v3913_v15 = vmul.f32 %v6979_v61, %v6979_v61 }
 0x27d   : > { %v3947_v42 = vadd.f32 %v3946_v13, %v3945_v20  ;;  %v3966_v20 = vsel %vm3783_vm3, %v3911_v19, 0.0  ;;  %v3914_v13 = vmul.f32 %v6981_v9, %v6981_v9 }
 0x27f   : > { %v3949_v41 = vadd.f32 %v3948_v32, %v3947_v42  ;;  %v3968_v42 = vsel %vm3783_vm3, %v3912_v35, 0.0  ;;  %v3915_v32 = vmul.f32 %v6983_v56, %v6983_v56 }
 0x281   : > { %v3951_v36 = vadd.f32 %v3950_v34, %v3949_v41  ;;  %v3970_v41 = vsel %vm3783_vm3, %v3913_v15, 0.0  ;;  %v3916_v34 = vmul.f32 %v6985_v53, %v6985_v53 }
 0x283   : > { %v3953_v39 = vadd.f32 %v3952_v38, %v3951_v36  ;;  %v3972_v36 = vsel %vm3783_vm3, %v3914_v13, 0.0  ;;  %v3917_v38 = vmul.f32 %v6987_v21, %v6987_v21 }
 0x285   : > { %v3955_v3 = vadd.f32 %v3954_v51, %v3953_v39  ;;  %v3974_v39 = vsel %vm3783_vm3, %v3915_v32, 0.0  ;;  %v3918_v51 = vmul.f32 %v6989_v8, %v6989_v8 }
 0x287   : > { %v3957_v58 = vadd.f32 %v3956_v44, %v3955_v3  ;;  %v3976_v3 = vsel %vm3783_vm3, %v3916_v34, 0.0  ;;  %v3978_v44 = vsel %vm3783_vm3, %v3917_v38, 0.0  ;;  %v3980_v60 = vsel %vm3783_vm3, %v3918_v51, 0.0 }
 0x289   : > { %v3959_v63 = vadd.f32 %v3958_v62, %v3957_v58 }
 0x28b   : > { %v3961_v11 = vadd.f32 %v3960_v22, %v3959_v63 }
 0x28d   : > { %v3963_v47 = vadd.f32 %v3962_v16, %v3961_v11 }
 0x28f   : > { %v3965_v10 = vadd.f32 %v3964_v23, %v3963_v47 }
 0x291   : > { %v3967_v1 = vadd.f32 %v3966_v20, %v3965_v10 }
 0x293   : > { %v3969_v30 = vadd.f32 %v3968_v42, %v3967_v1 }
 0x295   : > { %v3971_v33 = vadd.f32 %v3970_v41, %v3969_v30 }
 0x297   : > { %v3973_v4 = vadd.f32 %v3972_v36, %v3971_v33 }
 0x299   : > { %v3975_v40 = vadd.f32 %v3974_v39, %v3973_v4 }
 0x29b   : > { %v3977_v52 = vadd.f32 %v3976_v3, %v3975_v40 }
 0x29d   : > { %v3979_v58 = vadd.f32 %v3978_v44, %v3977_v52 }
 0x29f   : > { %v3981_v62 = vadd.f32 %v3980_v60, %v3979_v58 }
 0x2a1   : > { %v3982_v63 = vrot.slane %v3981_v62, 4 }
 0x2a3   : > { %v3983_v2 = vadd.f32 %v3982_v63, %v3981_v62 }
 0x2a5   : > { %v3984_v22 = vrot.slane %v3983_v2, 2 }
 0x2a7   : > { %v3985_v11 = vadd.f32 %v3984_v22, %v3983_v2 }
 0x2a9   : > { %v3986_v19 = vrot.slane %v3985_v11, 1 }
 0x2ab   : > { %v3987_v16 = vadd.f32 %v3986_v19, %v3985_v11 }
 0x2ad   : > { %v3988_v47 = vmul.f32 0.00390625, %v3987_v16 }
 0x2af   : > { %v3989_v35 = vadd.f32 1e-05, %v3988_v47 }
 0x2b1   : > { %5674 = vrsqrt.f32 %v3989_v35 }
 0x2bb   : > { %v5675_v23 = vpop.eup %5674 }
 0x2bc   : > { %v3991_v10 = vmul.f32 %v5675_v23, %v6992_v25  ;;  %v3992_v15 = vmul.f32 %v5675_v23, %v6995_v31  ;;  %v3993_v20 = vmul.f32 %v5675_v23, %v6998_v49  ;;  %v3994_v1 = vmul.f32 %v5675_v23, %v7001_v0 }
 0x2bd   : > { %v3995_v13 = vmul.f32 %v5675_v23, %v7008_v37  ;;  %v3996_v42 = vmul.f32 %v5675_v23, %v7013_v5  ;;  %v3997_v30 = vmul.f32 %v5675_v23, %v7020_v48  ;;  %v3998_v32 = vmul.f32 %v5675_v23, %v7026_v18 }
 0x2be   : > { %v3999_v25 = vmul.f32 %v5675_v23, %v7032_v29  ;;  %v4000_v31 = vmul.f32 %v5675_v23, %v7038_v50  ;;  %v4001_v49 = vmul.f32 %v5675_v23, %v6932_v6  ;;  %v4002_v0 = vmul.f32 %v5675_v23, %v6935_v7  ;;  %4023 = vst.msk [vmem:[%s7121_s25] sm:$0xff] %vm3783_vm3, %v3991_v10 }
 0x2bf   : > { %4024 = vst.msk [vmem:[%s7121_s25 + $0x8] sm:$0xff] %vm3783_vm3, %v3992_v15  ;;  %4025 = vst.msk [vmem:[%s7121_s25 + $0x10] sm:$0xff] %vm3783_vm3, %v3993_v20  ;;  %v4003_v37 = vmul.f32 %v5675_v23, %v6938_v17  ;;  %v4004_v5 = vmul.f32 %v5675_v23, %v6941_v45  ;;  %v4005_v6 = vmul.f32 %v5675_v23, %v6944_v55 }
 0x2c0   : > { %4026 = vst.msk [vmem:[%s7121_s25 + $0x18] sm:$0xff] %vm3783_vm3, %v3994_v1  ;;  %v4006_v7 = vmul.f32 %v5675_v23, %v6947_v46  ;;  %4027 = vst.msk [vmem:[%s7121_s25 + $0x20] sm:$0xff] %vm3783_vm3, %v3995_v13  ;;  %v4007_v17 = vmul.f32 %v5675_v23, %v6950_v24  ;;  %v4008_v45 = vmul.f32 %v5675_v23, %v6953_v14 }
 0x2c1   : > { %4028 = vst.msk [vmem:[%s7121_s25 + $0x28] sm:$0xff] %vm3783_vm3, %v3996_v42  ;;  %4029 = vst.msk [vmem:[%s7121_s25 + $0x30] sm:$0xff] %vm3783_vm3, %v3997_v30  ;;  %v4009_v55 = vmul.f32 %v5675_v23, %v6956_v12  ;;  %v4010_v46 = vmul.f32 %v5675_v23, %v6959_v27  ;;  %v4011_v24 = vmul.f32 %v5675_v23, %v6962_v26 }
 0x2c2   : > { %4030 = vst.msk [vmem:[%s7121_s25 + $0x38] sm:$0xff] %vm3783_vm3, %v3998_v32  ;;  %4031 = vst.msk [vmem:[%s7121_s25 + $0x40] sm:$0xff] %vm3783_vm3, %v3999_v25  ;;  %v4012_v14 = vmul.f32 %v5675_v23, %v6965_v43  ;;  %v4013_v12 = vmul.f32 %v5675_v23, %v6968_v54  ;;  %v4014_v27 = vmul.f32 %v5675_v23, %v6971_v28 }
 0x2c3   : > { %4032 = vst.msk [vmem:[%s7121_s25 + $0x48] sm:$0xff] %vm3783_vm3, %v4000_v31  ;;  %4033 = vst.msk [vmem:[%s7121_s25 + $0x50] sm:$0xff] %vm3783_vm3, %v4001_v49  ;;  %v4015_v26 = vmul.f32 %v5675_v23, %v6974_v57  ;;  %v4016_v43 = vmul.f32 %v5675_v23, %v6977_v59  ;;  %v4017_v54 = vmul.f32 %v5675_v23, %v6979_v61 }
 0x2c4   : > { %4034 = vst.msk [vmem:[%s7121_s25 + $0x58] sm:$0xff] %vm3783_vm3, %v4002_v0  ;;  %4035 = vst.msk [vmem:[%s7121_s25 + $0x60] sm:$0xff] %vm3783_vm3, %v4003_v37  ;;  %v4018_v28 = vmul.f32 %v5675_v23, %v6981_v9  ;;  %v4019_v57 = vmul.f32 %v5675_v23, %v6983_v56  ;;  %v4020_v59 = vmul.f32 %v5675_v23, %v6985_v53 }
 0x2c5   : > { %4036 = vst.msk [vmem:[%s7121_s25 + $0x68] sm:$0xff] %vm3783_vm3, %v4004_v5  ;;  %4037 = vst.msk [vmem:[%s7121_s25 + $0x70] sm:$0xff] %vm3783_vm3, %v4005_v6  ;;  %v4021_v61 = vmul.f32 %v5675_v23, %v6987_v21  ;;  %v4022_v9 = vmul.f32 %v5675_v23, %v6989_v8 }
 0x2c6   : > { %4038 = vst.msk [vmem:[%s7121_s25 + $0x78] sm:$0xff] %vm3783_vm3, %v4006_v7  ;;  %4039 = vst.msk [vmem:[%s7121_s25 + $0x80] sm:$0xff] %vm3783_vm3, %v4007_v17 }
 0x2c7   : > { %4040 = vst.msk [vmem:[%s7121_s25 + $0x88] sm:$0xff] %vm3783_vm3, %v4008_v45  ;;  %4041 = vst.msk [vmem:[%s7121_s25 + $0x90] sm:$0xff] %vm3783_vm3, %v4009_v55 }
 0x2c8   : > { %4042 = vst.msk [vmem:[%s7121_s25 + $0x98] sm:$0xff] %vm3783_vm3, %v4010_v46  ;;  %4043 = vst.msk [vmem:[%s7121_s25 + $0xa0] sm:$0xff] %vm3783_vm3, %v4011_v24 }
 0x2c9   : > { %4044 = vst.msk [vmem:[%s7121_s25 + $0xa8] sm:$0xff] %vm3783_vm3, %v4012_v14  ;;  %4045 = vst.msk [vmem:[%s7121_s25 + $0xb0] sm:$0xff] %vm3783_vm3, %v4013_v12 }
 0x2ca   : > { %4046 = vst.msk [vmem:[%s7121_s25 + $0xb8] sm:$0xff] %vm3783_vm3, %v4014_v27  ;;  %4047 = vst.msk [vmem:[%s7121_s25 + $0xc0] sm:$0xff] %vm3783_vm3, %v4015_v26 }
 0x2cb   : > { %4048 = vst.msk [vmem:[%s7121_s25 + $0xc8] sm:$0xff] %vm3783_vm3, %v4016_v43  ;;  %4049 = vst.msk [vmem:[%s7121_s25 + $0xd0] sm:$0xff] %vm3783_vm3, %v4017_v54 }
 0x2cc   : > { %4050 = vst.msk [vmem:[%s7121_s25 + $0xd8] sm:$0xff] %vm3783_vm3, %v4018_v28  ;;  %4051 = vst.msk [vmem:[%s7121_s25 + $0xe0] sm:$0xff] %vm3783_vm3, %v4019_v57 }
 0x2cd   : > { %4052 = vst.msk [vmem:[%s7121_s25 + $0xe8] sm:$0xff] %vm3783_vm3, %v4020_v59  ;;  %4053 = vst.msk [vmem:[%s7121_s25 + $0xf0] sm:$0xff] %vm3783_vm3, %v4021_v61 }
 0x2ce   : > { %4054 = vst.msk [vmem:[%s7121_s25 + $0xf8] sm:$0xff] %vm3783_vm3, %v4022_v9 }
 0x2cf PF: > { %s15_s12 = sadd.s32 1, %s5746_s12  }
 0x2d0   : > { %p12_p5 = scmp.ge.s32.totalorder %s15_s12, 4  }
 0x2d2   :  { %14 = sbr.rel (!%p12_p5) target bundleno = 2 (0x2), region = 81 }
 0x2d9   :  { %4076 = vsyncpa [#allocation3], 1 }
 0x2da   :  { %4078 = vsyncpa [#allocation3 + $0x1], 1 }
 0x2db   :  { %4079 = vsyncpa [#allocation5], 1 }

// kernel: task_classifier_forward.7
= control target key start
LH: loop header
LB: loop body
LE: loop exit
PB: predicated region body
PF: predicated region fallthrough
CT: control target
= control target key end

     0   :  { %8 = vsyncpa [#allocation3], 0  ;;  %s7353_s0 = inlined_call_operand.vmem [shape: f32[2,18,18,32], index: 0, kind: input, shape index: {}]   ;;  %s7354_s1 = inlined_call_operand.hbm [shape: f32[9,32,64], index: 1, kind: input, shape index: {}]   ;;  %s7355_s2 = inlined_call_operand.hbm [shape: f32[1,64], index: 2, kind: input, shape index: {}]   ;;  %s7356_s3 = inlined_call_operand.vmem [shape: f32[2,256,64], index: 3, kind: output, shape index: {}]  }
   0x1   :  { %9 = vsyncpa [#allocation5], 0  ;;  %s5917_s12 = smov 0  }
   0x2 LB: > { %s5923_s13 = sadd.s32 4294967295, %s5891_s12   ;;  %p4133_p0 = scmp.ge.s32.totalorder %s5891_s12, 1  ;;  %s5891_s12 = sphi %s5917_s12, %s15_s12  }
   0x3   : > { %p114_p1 = scmp.lt.s32.totalorder %s5891_s12, 3  ;;  %s5893_s14 = smov [#allocation2]  }
   0x4   : > { %s126_s15 = sshll.u32 %s5893_s14, 4  ;;  %p7357_p3 = scmp.eq.s32.totalorder %s5923_s13, 0  ;;  %s127_s15 = int_to_ptr.vmem [resolvable:$true] %s126_s15 }
   0x5   : > { %p5927_p2 = pnand %p4133_p0, %p114_p1  ;;  %s5894_s17 = smov [#allocation4]  }
   0x6   : > { %s140_s18 = sshll.u32 %s5894_s17, 4  ;;  %s5821_s22 = scalar_lea.hbm %s7354_s1, 4608  ;;  %s5940_s18 = int_to_ptr.vmem [resolvable:$true] %s140_s18 }
   0x7   : > { %s7412_s16 = scalar_select %p5927_p2, 1, 0 }
   0x8   : > { %p5796_p4 = pneg %p5927_p2  ;;  %p5822_p6 = scmp.ne.s32.totalorder %s7354_s1, %s5821_s22 }
   0x9   : > { %p5828_p10 = scmp.lt.u32.totalorder %s5821_s22, %s7354_s1 }
   0xa   : > { %p5936_p5 = pnand %p7357_p3, %p5796_p4 }
   0xc   : > { %p5823_p7 = pneg %p5936_p5 }
   0xe   : > { %p5824_p8 = pnand %p5823_p7, %p5822_p6 }
  0x10   : > { %p5825_p9 = pneg %p5824_p8 }
  0x12   : > { %p5830_p11 = pnand %p5828_p10, %p5825_p9 }
  0x14   : > { %5833 = shalt.err (!%p5830_p11)
}
  0x15   : > { %s5834_s27 = scalar_lea.vmem %s127_s15, 4608  ;;  %p5842_p1 = scmp.lt.s32.totalorder %s127_s15, %s127_s15 }
  0x16   : > { %p5835_p12 = scmp.ne.s32.totalorder %s127_s15, %s5834_s27  ;;  %p5843_p4 = scmp.lt.s32.totalorder %s5834_s27, %s5834_s27 }
  0x18   : > { %p5837_p13 = pnand %p5835_p12, %p5823_p7  ;;  %p5844_p3 = por %p5843_p4, %p5842_p1 }
  0x1a   : > { %p5838_p0 = pneg %p5837_p13 }
  0x1c   : > { %p5845_p2 = pnand %p5844_p3, %p5838_p0 }
  0x1e   : > { %5848 = shalt.err (!%p5845_p2)
}
  0x1f   : > { %s5895_s28 = smov 128   ;;  %s5896_s29 = smov 8  }
  0x20   : > { %5799 = dma.hbm_to_vmem [thread:$0]  (!%p5936_p5), %s7354_s1, 4608, %s127_s15, [#allocation3], %s5895_s28, %s5895_s28, %s5896_s29  }
  0x21   : > { %s5849_s7 = scalar_lea.hbm %s7355_s2, 16 }
  0x22   : > { %p5850_p6 = scmp.ne.s32.totalorder %s7355_s2, %s5849_s7  ;;  %p5856_p8 = scmp.lt.u32.totalorder %s5849_s7, %s7355_s2 }
  0x24   : > { %p5852_p2 = pnand %p5850_p6, %p5823_p7 }
  0x26   : > { %p5853_p3 = pneg %p5852_p2 }
  0x28   : > { %p5858_p9 = pnand %p5856_p8, %p5853_p3 }
  0x2a   : > { %5861 = shalt.err (!%p5858_p9)
}
  0x2b   : > { %s5862_s14 = scalar_lea.vmem %s5940_s18, 16  ;;  %s5869_s15 = scalar_lea.vmem %s5940_s18, 32 }
  0x2c   : > { %p5863_p10 = scmp.ne.s32.totalorder %s5940_s18, %s5862_s14  ;;  %p5870_p13 = scmp.lt.s32.totalorder %s5940_s18, %s5940_s18 }
  0x2d   : > { %p5871_p0 = scmp.lt.s32.totalorder %s5869_s15, %s5862_s14 }
  0x2e   : > { %p5865_p11 = pnand %p5863_p10, %p5823_p7 }
  0x2f   : > { %p5872_p1 = por %p5871_p0, %p5870_p13 }
  0x30   : > { %p5866_p12 = pneg %p5865_p11 }
  0x32   : > { %p5873_p4 = pnand %p5872_p1, %p5866_p12 }
  0x34   : > { %5876 = shalt.err (!%p5873_p4)
}
  0x35   : > { %5802 = dma.hbm_to_vmem [thread:$0]  (!%p5936_p5), %s7355_s2, 16, %s5940_s18, [#allocation5]  }
  0x36   : > { %p7414_p6 = scmp.ne.s32.totalorder %s7412_s16, 0 }
  0x38   : > { %161 = sbr.rel (%p7414_p6) target bundleno = 723 (0x2d3), region = 32 }
  0x3f   : > { %p7415_p7 = scmp.eq.s32.totalorder %s5923_s13, 0 }
  0x41   : > { %5882 = dma.done.wait (%p7415_p7), [#allocation3], 4608   ;;  %p7416_p2 = pmov %p7415_p7 }
  0x43   : > { %5884 = vsyncadd (%p7416_p2), [#allocation3], 4294962688  ;;  %p7417_p3 = pmov %p7416_p2 }
  0x44   : > { %p7418_p8 = pmov %p7416_p2 }
  0x45   : > { %5886 = dma.done.wait (%p7417_p3), [#allocation5], 16  }
  0x46   : > { %5888 = vsyncadd (%p7418_p8), [#allocation5], 4294967280  ;;  %p189_p9 = scmp.lt.s32.totalorder %s5923_s13, 1  ;;  %v268_v0 = vld [vmem:[#allocation2 + $0x20] sm:$0xff]  ;;  %v269_v1 = vld [vmem:[#allocation2 + $0x28] sm:$0xff]  ;;  %vm272_vm0 = vcmask 261120  }
  0x47   : > { %v1729_v2 = vld [vmem:[#allocation2 + $0x80] sm:$0xff]  ;;  %v5455_v3 = vpack.c.bf16 %v269_v1, %v268_v0  ;;  %v1730_v4 = vld [vmem:[#allocation2 + $0x88] sm:$0xff]  ;;  %v270_v5 = vld [vmem:[#allocation2 + $0x30] sm:$0xff]  ;;  %vm3782_vm2 = vcmask 523264  }
  0x48   : > { %s7492_s13 = smov (!%p189_p9, %s5923_s13), 1  ;;  %v271_v6 = vld [vmem:[#allocation2 + $0x38] sm:$0xff]  ;;  %v6010_v7 = vpack.c.bf16 %v1730_v4, %v1729_v2  ;;  %v1731_v9 = vld [vmem:[#allocation2 + $0x90] sm:$0xff]  ;;  %v231_v14 = vld [vmem:[#allocation2] sm:$0xff] }
  0x49   : > { %s5787_s16 = smul.u32 432, %s7492_s13  ;;  %v5459_v8 = vpack.c.bf16 %v271_v6, %v270_v5  ;;  %v1732_v10 = vld [vmem:[#allocation2 + $0x98] sm:$0xff]  ;;  %5456 = vmatprep.subr.bf16.mxu1 %v5455_v3  ;;  %v232_v15 = vld [vmem:[#allocation2 + $0x8] sm:$0xff]  ;;  %v2119_v16 = vld [vmem:[#allocation2 + $0xa0] sm:$0xff]  ;;  %s4626_s22 = sshll.u32 %s7492_s13, 8 }
  0x4a   : > { %v6013_v12 = vpack.c.bf16 %v1732_v10, %v1731_v9  ;;  %5488 = vmatprep.subr.bf16.mxu0 %v6010_v7  ;;  %5458 = vmatpush3.bf16.msra.mxu1 %v5455_v3  ;;  %v5463_v17 = vpack.c.bf16 %v232_v15, %v231_v14  ;;  %v2120_v18 = vld [vmem:[#allocation2 + $0xa8] sm:$0xff]  ;;  %v2121_v21 = vld [vmem:[#allocation2 + $0xb0] sm:$0xff]  ;;  %v2122_v22 = vld [vmem:[#allocation2 + $0xb8] sm:$0xff]  ;;  %s7252_s25 = scalar_lea.vmem %s7356_s3, %s4626_s22 }
  0x4b   : > { %s6008_s21 = scalar_lea.vmem %s7353_s0, %s5787_s16  ;;  %5490 = vmatpush3.bf16.msra.mxu0 %v6010_v7  ;;  %5460 = vmatprep.subr.bf16.mxu1 %v5459_v8  ;;  %v5495_v19 = vpack.c.bf16 %v2120_v18, %v2119_v16  ;;  %v5499_v24 = vpack.c.bf16 %v2122_v22, %v2121_v21  ;;  %v233_v26 = vld [vmem:[#allocation2 + $0x10] sm:$0xff]  ;;  %v234_v27 = vld [vmem:[#allocation2 + $0x18] sm:$0xff]  ;;  %v2510_v29 = vld [vmem:[#allocation2 + $0xc0] sm:$0xff] }
  0x4c   : > { %v235_v11 = vld [vmem:[%s6008_s21 + $0x1] sm:$0xff]  ;;  %7419 = vst [vmem:[#allocation8_spill] sm:$0xff] %v6013_v12  ;;  %v4303_v13 = vld [vmem:[%s6008_s21 + $0x19] sm:$0xff]  ;;  %5492 = vmatprep.subr.bf16.mxu0 %v6013_v12  ;;  %v236_v20 = vld [vmem:[%s6008_s21 + $0x9] sm:$0xff]  ;;  %v5467_v28 = vpack.c.bf16 %v234_v27, %v233_v26 }
  0x4d   : > { %4959 = vmatprep.mubr.msk.f32.mxu1 %vm272_vm0, %v235_v11  ;;  %5183 = vmatprep.mubr.msk.f32.mxu0 %vm272_vm0, %v4303_v13  ;;  %v4304_v23 = vld [vmem:[%s6008_s21 + $0x21] sm:$0xff]  ;;  %v6026_v25 = vld [vmem:[%s6008_s21 + $0x31] sm:$0xff]  ;;  %v6031_v31 = vld [vmem:[%s6008_s21 + $0x39] sm:$0xff] }
  0x4e   : > { %5462 = vmatpush3.bf16.msra.mxu1 %v5459_v8  ;;  %v2511_v30 = vld [vmem:[#allocation2 + $0xc8] sm:$0xff]  ;;  %v6046_v34 = vld [vmem:[%s6008_s21 + $0x51] sm:$0xff]  ;;  %v6063_v37 = vld [vmem:[%s6008_s21 + $0x79] sm:$0xff] }
  0x4f   : > { %5494 = vmatpush3.bf16.msra.mxu0 %v6013_v12  ;;  %5464 = vmatprep.subr.bf16.mxu1 %v5463_v17  ;;  %v6036_v32 = vld [vmem:[%s6008_s21 + $0x49] sm:$0xff]  ;;  %v5503_v33 = vpack.c.bf16 %v2511_v30, %v2510_v29  ;;  %v6049_v35 = vld [vmem:[%s6008_s21 + $0x61] sm:$0xff]  ;;  %v6079_v42 = vld [vmem:[%s6008_s21 + $0x91] sm:$0xff] }
  0x50   : > { %5496 = vmatprep.subr.bf16.mxu0 %v5495_v19  ;;  %v6060_v36 = vld [vmem:[%s6008_s21 + $0x69] sm:$0xff]  ;;  %v948_v38 = vld [vmem:[#allocation2 + $0x40] sm:$0xff]  ;;  %v6105_v45 = vld [vmem:[%s6008_s21 + $0xb1] sm:$0xff] }
  0x51   : > { %4960 = vmatmul.mubr.msk.f32.vlgmr.msra.gmra.mrb[0].mxu1 %vm272_vm0, %v236_v20  ;;  %v949_v39 = vld [vmem:[#allocation2 + $0x48] sm:$0xff]  ;;  %v6091_v43 = vld [vmem:[%s6008_s21 + $0x99] sm:$0xff]  ;;  %v2512_v49 = vld [vmem:[#allocation2 + $0xd0] sm:$0xff] }
  0x52   : > { %5184 = vmatmul.mubr.msk.f32.vlgmr.msra.gmra.mrb[0].mxu0 %vm272_vm0, %v4304_v23  ;;  %5466 = vmatpush3.bf16.msra.mxu1 %v5463_v17  ;;  %v6071_v40 = vpack.c.bf16 %v949_v39, %v948_v38  ;;  %v6076_v41 = vld [vmem:[%s6008_s21 + $0x81] sm:$0xff]  ;;  %v6094_v44 = vld [vmem:[%s6008_s21 + $0xa9] sm:$0xff]  ;;  %v2513_v50 = vld [vmem:[#allocation2 + $0xd8] sm:$0xff] }
  0x53   : > { %5498 = vmatpush3.bf16.msra.mxu0 %v5495_v19  ;;  %4962 = vmatprep.mubr.msk.f32.mxu1 %vm272_vm0, %v4303_v13  ;;  %v6108_v46 = vld [vmem:[%s6008_s21 + $0xc1] sm:$0xff]  ;;  %v6119_v47 = vld [vmem:[%s6008_s21 + $0xc9] sm:$0xff]  ;;  %v6136_v52 = vld [vmem:[%s6008_s21 + $0xd9] sm:$0xff]  ;;  %v5507_v54 = vpack.c.bf16 %v2513_v50, %v2512_v49 }
  0x54   : > { %5186 = vmatprep.mubr.msk.f32.mxu0 %vm272_vm0, %v6026_v25  ;;  %5500 = vmatprep.subr.bf16.mxu0 %v5499_v24  ;;  %7420 = vst [vmem:[#allocation9_spill] sm:$0xff] %v6119_v47  ;;  %v6122_v48 = vld [vmem:[%s6008_s21 + $0x1a] sm:$0xff]  ;;  %v6133_v51 = vld [vmem:[%s6008_s21 + $0x22] sm:$0xff]  ;;  %7421 = vst [vmem:[#allocation10_spill] sm:$0xff] %v6136_v52 }
  0x55   : > { %4963 = vmatmul.mubr.msk.f32.gmra.mrb[2].mxu1 %vm272_vm0, %v4304_v23  ;;  %5468 = vmatprep.subr.bf16.mxu1 %v5467_v28  ;;  %v6139_v53 = vld [vmem:[%s6008_s21 + $0x32] sm:$0xff]  ;;  %v2900_v55 = vld [vmem:[#allocation2 + $0xe0] sm:$0xff]  ;;  %v2901_v56 = vld [vmem:[#allocation2 + $0xe8] sm:$0xff] }
  0x56   : > { %5187 = vmatmul.mubr.msk.f32.gmra.mrb[2].mxu0 %vm272_vm0, %v6031_v31  ;;  %4965 = vmatprep.mubr.msk.f32.mxu1 %vm272_vm0, %v6026_v25  ;;  %v6148_v57 = vld [vmem:[%s6008_s21 + $0xe1] sm:$0xff]  ;;  %v6156_v59 = vld [vmem:[%s6008_s21 + $0xf1] sm:$0xff]  ;;  %v6161_v61 = vpack.c.bf16 %v2901_v56, %v2900_v55  ;;  %v6170_v62 = vld [vmem:[%s6008_s21 + $0xf9] sm:$0xff] }
  0x57   : > { %5189 = vmatprep.mubr.msk.f32.mxu0 %vm272_vm0, %v6036_v32  ;;  %5502 = vmatpush3.bf16.msra.mxu0 %v5499_v24  ;;  %7422 = vst [vmem:[#allocation11_spill] sm:$0xff] %v6148_v57  ;;  %v6153_v58 = vld [vmem:[%s6008_s21 + $0x3a] sm:$0xff]  ;;  %7423 = vst [vmem:[#allocation12_spill] sm:$0xff] %v6156_v59  ;;  %v6159_v60 = vld [vmem:[%s6008_s21 + $0x4a] sm:$0xff] }
  0x58   : > { %5504 = vmatprep.subr.bf16.mxu0 %v5503_v33  ;;  %5470 = vmatpush3.bf16.msra.mxu1 %v5467_v28  ;;  %7424 = vst [vmem:[#allocation13_spill] sm:$0xff] %v6170_v62  ;;  %v6175_v63 = vld [vmem:[%s6008_s21 + $0x52] sm:$0xff]  ;;  %v6178_v0 = vld [vmem:[%s6008_s21 + $0x109] sm:$0xff]  ;;  %v6199_v4 = vld [vmem:[%s6008_s21 + $0x121] sm:$0xff] }
  0x59   : > { %4966 = vmatmul.mubr.msk.f32.gmra.mrb[4].mxu1 %vm272_vm0, %v6031_v31  ;;  %5472 = vmatprep.subr.bf16.mxu1 %v6071_v40  ;;  %7425 = vst [vmem:[#allocation14_spill] sm:$0xff] %v6178_v0  ;;  %v6181_v1 = vld [vmem:[%s6008_s21 + $0x62] sm:$0xff]  ;;  %v6191_v2 = vld [vmem:[%s6008_s21 + $0x111] sm:$0xff]  ;;  %7427 = vst [vmem:[#allocation16_spill] sm:$0xff] %v6199_v4 }
  0x5a   : > { %5190 = vmatmul.mubr.msk.f32.gmra.mrb[4].mxu0 %vm272_vm0, %v6046_v34  ;;  %4968 = vmatprep.mubr.msk.f32.mxu1 %vm272_vm0, %v6036_v32  ;;  %7426 = vst [vmem:[#allocation15_spill] sm:$0xff] %v6191_v2  ;;  %v6196_v3 = vld [vmem:[%s6008_s21 + $0x6a] sm:$0xff]  ;;  %v6202_v5 = vld [vmem:[%s6008_s21 + $0x7a] sm:$0xff]  ;;  %v6216_v8 = vld [vmem:[%s6008_s21 + $0x82] sm:$0xff] }
  0x5b   : > { %5192 = vmatprep.mubr.msk.f32.mxu0 %vm272_vm0, %v6049_v35  ;;  %v6211_v6 = vld [vmem:[%s6008_s21 + $0x129] sm:$0xff]  ;;  %v6219_v9 = vld [vmem:[%s6008_s21 + $0x139] sm:$0xff]  ;;  %v6231_v11 = vld [vmem:[%s6008_s21 + $0x141] sm:$0xff] }
  0x5c   : > { %7428 = vst [vmem:[#allocation17_spill] sm:$0xff] %v6211_v6  ;;  %7429 = vst [vmem:[#allocation18_spill] sm:$0xff] %v6219_v9  ;;  %v6222_v10 = vld [vmem:[%s6008_s21 + $0x92] sm:$0xff]  ;;  %v6236_v13 = vld [vmem:[%s6008_s21 + $0x9a] sm:$0xff] }
  0x5d   : > { %4969 = vmatmul.mubr.msk.f32.gmra.mrb[6].mxu1 %vm272_vm0, %v6046_v34  ;;  %7430 = vst [vmem:[#allocation19_spill] sm:$0xff] %v6231_v11  ;;  %v6239_v14 = vld [vmem:[%s6008_s21 + $0x151] sm:$0xff]  ;;  %v6251_v16 = vld [vmem:[%s6008_s21 + $0x159] sm:$0xff]  ;;  %v6259_v18 = vld [vmem:[%s6008_s21 + $0x169] sm:$0xff] }
  0x5e   : > { %5193 = vmatmul.mubr.msk.f32.gmra.mrb[6].mxu0 %vm272_vm0, %v6060_v36  ;;  %4971 = vmatprep.mubr.msk.f32.mxu1 %vm272_vm0, %v6049_v35  ;;  %7431 = vst [vmem:[#allocation20_spill] sm:$0xff] %v6239_v14  ;;  %v6242_v15 = vld [vmem:[%s6008_s21 + $0xaa] sm:$0xff]  ;;  %7432 = vst [vmem:[#allocation21_spill] sm:$0xff] %v6251_v16  ;;  %v6256_v17 = vld [vmem:[%s6008_s21 + $0xb2] sm:$0xff] }
  0x5f   : > { %5195 = vmatprep.mubr.msk.f32.mxu0 %vm272_vm0, %v6063_v37  ;;  %7433 = vst [vmem:[#allocation22_spill] sm:$0xff] %v6259_v18  ;;  %v6262_v19 = vld [vmem:[%s6008_s21 + $0xc2] sm:$0xff]  ;;  %v6271_v20 = vld [vmem:[%s6008_s21 + $0x171] sm:$0xff]  ;;  %v6280_v23 = vld [vmem:[%s6008_s21 + $0xda] sm:$0xff] }
  0x60   : > { %7434 = vst [vmem:[#allocation23_spill] sm:$0xff] %v6271_v20  ;;  %v6276_v21 = vld [vmem:[%s6008_s21 + $0xca] sm:$0xff]  ;;  %v199_v22 = vld [vmem:[%s6008_s21] sm:$0xff]  ;;  %v951_v26 = vld [vmem:[#allocation2 + $0x58] sm:$0xff] }
  0x61   : > { %4972 = vmatmul.mubr.msk.f32.gmra.mrb[8].mxu1 %vm272_vm0, %v6060_v36  ;;  %v950_v24 = vld [vmem:[#allocation2 + $0x50] sm:$0xff]  ;;  %v200_v27 = vld [vmem:[%s6008_s21 + $0x8] sm:$0xff]  ;;  %v6294_v29 = vld [vmem:[%s6008_s21 + $0x18] sm:$0xff] }
  0x62   : > { %5196 = vmatmul.mubr.msk.f32.gmra.mrb[8].mxu0 %vm272_vm0, %v6076_v41  ;;  %4974 = vmatprep.mubr.msk.f32.mxu1 %vm272_vm0, %v6063_v37  ;;  %v6291_v28 = vld [vmem:[%s6008_s21 + $0xe2] sm:$0xff]  ;;  %7435 = vst [vmem:[#allocation24_spill] sm:$0xff] %v6294_v29  ;;  %v6297_v30 = vld [vmem:[%s6008_s21 + $0xf2] sm:$0xff]  ;;  %v6311_v50 = vld [vmem:[%s6008_s21 + $0xfa] sm:$0xff] }
  0x63   : > { %5198 = vmatprep.mubr.msk.f32.mxu0 %vm272_vm0, %v6079_v42  ;;  %v1339_v38 = vld [vmem:[#allocation2 + $0x60] sm:$0xff]  ;;  %v1340_v39 = vld [vmem:[#allocation2 + $0x68] sm:$0xff]  ;;  %v6414_v12 = vld [vmem:[%s6008_s21 + $0x172] sm:$0xff] }
  0x64   : > { %v6304_v49 = vld [vmem:[%s6008_s21 + $0x20] sm:$0xff]  ;;  %v6317_v55 = vld [vmem:[%s6008_s21 + $0x10a] sm:$0xff]  ;;  %v6319_v56 = vpack.c.bf16 %v1340_v39, %v1339_v38  ;;  %7447 = vst [vmem:[#allocation36_spill] sm:$0xff] %v6414_v12 }
  0x65   : > { %4975 = vmatmul.mubr.msk.f32.gmra.mrb[10].mxu1 %vm272_vm0, %v6076_v41  ;;  %7436 = vst [vmem:[#allocation25_spill] sm:$0xff] %v6304_v49  ;;  %v6357_v38 = vld [vmem:[%s6008_s21 + $0x60] sm:$0xff] }
  0x66   : > { %5199 = vmatmul.mubr.msk.f32.gmra.mrb[10].mxu0 %vm272_vm0, %v6091_v43  ;;  %4977 = vmatprep.mubr.msk.f32.mxu1 %vm272_vm0, %v6079_v42  ;;  %7439 = vst [vmem:[#allocation28_spill] sm:$0xff] %v6357_v38  ;;  %v6360_v39 = vld [vmem:[%s6008_s21 + $0x13a] sm:$0xff] }
  0x67   : > { %5201 = vmatprep.mubr.msk.f32.mxu0 %vm272_vm0, %v6094_v44 }
  0x69   : > { %4978 = vmatmul.mubr.msk.f32.gmra.mrb[12].mxu1 %vm272_vm0, %v6091_v43 }
  0x6a   : > { %5202 = vmatmul.mubr.msk.f32.gmra.mrb[12].mxu0 %vm272_vm0, %v6105_v45  ;;  %4980 = vmatprep.mubr.msk.f32.mxu1 %vm272_vm0, %v6094_v44 }
  0x6b   : > { %5204 = vmatprep.mubr.msk.f32.mxu0 %vm272_vm0, %v6108_v46 }
  0x6d   : > { %4981 = vmatmul.mubr.msk.f32.gmra.mrb[14].mxu1 %vm272_vm0, %v6105_v45 }
  0x6e   : > { %5205 = vmatmul.mubr.msk.f32.gmra.mrb[14].mxu0 %vm272_vm0, %v6119_v47  ;;  %4983 = vmatprep.mubr.msk.f32.mxu1 %vm272_vm0, %v6108_v46 }
  0x6f   : > { %5239 = vmatprep.mubr.msk.f32.mxu0 %vm272_vm0, %v6122_v48 }
  0x71   : > { %4984 = vmatmul.mubr.msk.f32.gmra.mrb[16].mxu1 %vm272_vm0, %v6119_v47  ;;  %v3290_v47 = vld [vmem:[#allocation2 + $0x100] sm:$0xff] }
  0x72   : > { %5240 = vmatmul.mubr.msk.f32.vlgmr.msra.gmra.mrb[0].mxu0 %vm272_vm0, %v6133_v51  ;;  %4986 = vmatprep.mubr.msk.f32.mxu1 %vm272_vm0, %v6136_v52  ;;  %v2903_v52 = vld [vmem:[#allocation2 + $0xf8] sm:$0xff] }
  0x73   : > { %5506 = vmatpush3.bf16.msra.mxu0 %v5503_v33  ;;  %5242 = vmatprep.mubr.msk.f32.mxu0 %vm272_vm0, %v6139_v53  ;;  %v5475_v33 = vpack.c.bf16 %v951_v26, %v950_v24  ;;  %v6336_v24 = vld [vmem:[%s6008_s21 + $0x48] sm:$0xff] }
  0x74   : > { %5508 = vmatprep.subr.bf16.mxu0 %v5507_v54  ;;  %7437 = vst [vmem:[#allocation26_spill] sm:$0xff] %v6336_v24  ;;  %v6339_v26 = vld [vmem:[%s6008_s21 + $0x122] sm:$0xff] }
  0x75   : > { %4987 = vmatmul.mubr.msk.f32.gmra.mrb[18].mxu1 %vm272_vm0, %v6148_v57  ;;  %v2902_v57 = vld [vmem:[#allocation2 + $0xf0] sm:$0xff] }
  0x76   : > { %5243 = vmatmul.mubr.msk.f32.gmra.mrb[2].mxu0 %vm272_vm0, %v6153_v58  ;;  %4989 = vmatprep.mubr.msk.f32.mxu1 %vm272_vm0, %v6156_v59  ;;  %v6434_v59 = vld [vmem:[%s6008_s21 + $0x18a] sm:$0xff] }
  0x77   : > { %5245 = vmatprep.mubr.msk.f32.mxu0 %vm272_vm0, %v6159_v60  ;;  %5510 = vmatpush3.bf16.msra.mxu0 %v5507_v54  ;;  %v6314_v54 = vld [vmem:[%s6008_s21 + $0x30] sm:$0xff]  ;;  %7451 = vst [vmem:[#allocation40_spill] sm:$0xff] %v6434_v59 }
  0x78   : > { %5512 = vmatprep.subr.bf16.mxu0 %v6161_v61 }
  0x79   : > { %4990 = vmatmul.mubr.msk.f32.gmra.mrb[20].mxu1 %vm272_vm0, %v6170_v62  ;;  %v6420_v62 = vld [vmem:[%s6008_s21 + $0x182] sm:$0xff] }
  0x7a   : > { %5246 = vmatmul.mubr.msk.f32.gmra.mrb[4].mxu0 %vm272_vm0, %v6175_v63  ;;  %4992 = vmatprep.mubr.msk.f32.mxu1 %vm272_vm0, %v6178_v0  ;;  %v6417_v0 = vld [vmem:[%s6008_s21 + $0xa8] sm:$0xff]  ;;  %7449 = vst [vmem:[#allocation38_spill] sm:$0xff] %v6420_v62 }
  0x7b   : > { %5248 = vmatprep.mubr.msk.f32.mxu0 %vm272_vm0, %v6181_v1  ;;  %7448 = vst [vmem:[#allocation37_spill] sm:$0xff] %v6417_v0 }
  0x7d   : > { %4993 = vmatmul.mubr.msk.f32.gmra.mrb[22].mxu1 %vm272_vm0, %v6191_v2  ;;  %v6409_v2 = vld [vmem:[%s6008_s21 + $0x98] sm:$0xff] }
  0x7e   : > { %5249 = vmatmul.mubr.msk.f32.gmra.mrb[6].mxu0 %vm272_vm0, %v6196_v3  ;;  %4995 = vmatprep.mubr.msk.f32.mxu1 %vm272_vm0, %v6199_v4  ;;  %v6400_v4 = vld [vmem:[%s6008_s21 + $0x16a] sm:$0xff]  ;;  %7446 = vst [vmem:[#allocation35_spill] sm:$0xff] %v6409_v2 }
  0x7f   : > { %5251 = vmatprep.mubr.msk.f32.mxu0 %vm272_vm0, %v6202_v5  ;;  %7445 = vst [vmem:[#allocation34_spill] sm:$0xff] %v6400_v4 }
  0x81   : > { %4996 = vmatmul.mubr.msk.f32.gmra.mrb[24].mxu1 %vm272_vm0, %v6211_v6  ;;  %v6397_v6 = vld [vmem:[%s6008_s21 + $0x90] sm:$0xff] }
  0x82   : > { %5252 = vmatmul.mubr.msk.f32.gmra.mrb[8].mxu0 %vm272_vm0, %v6216_v8  ;;  %4998 = vmatprep.mubr.msk.f32.mxu1 %vm272_vm0, %v6219_v9  ;;  %v6394_v9 = vld [vmem:[%s6008_s21 + $0x15a] sm:$0xff]  ;;  %7444 = vst [vmem:[#allocation33_spill] sm:$0xff] %v6397_v6 }
  0x83   : > { %5254 = vmatprep.mubr.msk.f32.mxu0 %vm272_vm0, %v6222_v10  ;;  %7443 = vst [vmem:[#allocation32_spill] sm:$0xff] %v6394_v9 }
  0x85   : > { %4999 = vmatmul.mubr.msk.f32.gmra.mrb[26].mxu1 %vm272_vm0, %v6231_v11  ;;  %v6389_v11 = vld [vmem:[%s6008_s21 + $0x80] sm:$0xff] }
  0x86   : > { %5255 = vmatmul.mubr.msk.f32.gmra.mrb[10].mxu0 %vm272_vm0, %v6236_v13  ;;  %5001 = vmatprep.mubr.msk.f32.mxu1 %vm272_vm0, %v6239_v14  ;;  %v6380_v14 = vld [vmem:[%s6008_s21 + $0x152] sm:$0xff]  ;;  %7442 = vst [vmem:[#allocation31_spill] sm:$0xff] %v6389_v11 }
  0x87   : > { %5257 = vmatprep.mubr.msk.f32.mxu0 %vm272_vm0, %v6242_v15 }
  0x89   : > { %5002 = vmatmul.mubr.msk.f32.gmra.mrb[28].mxu1 %vm272_vm0, %v6251_v16  ;;  %v6377_v16 = vld [vmem:[%s6008_s21 + $0x78] sm:$0xff] }
  0x8a   : > { %5258 = vmatmul.mubr.msk.f32.gmra.mrb[12].mxu0 %vm272_vm0, %v6256_v17  ;;  %5004 = vmatprep.mubr.msk.f32.mxu1 %vm272_vm0, %v6259_v18  ;;  %v6374_v18 = vld [vmem:[%s6008_s21 + $0x142] sm:$0xff]  ;;  %7441 = vst [vmem:[#allocation30_spill] sm:$0xff] %v6377_v16 }
  0x8b   : > { %5260 = vmatprep.mubr.msk.f32.mxu0 %vm272_vm0, %v6262_v19 }
  0x8d   : > { %5005 = vmatmul.mubr.msk.f32.gmra.mrb[30].mxu1 %vm272_vm0, %v6271_v20  ;;  %v6369_v20 = vld [vmem:[%s6008_s21 + $0x68] sm:$0xff] }
  0x8e   : > { %5261 = vmatmul.mubr.msk.f32.gmra.mrb[14].mxu0 %vm272_vm0, %v6276_v21  ;;  %5015 = vmatprep.mubr.msk.f32.mxu1 %vm272_vm0, %v199_v22  ;;  %v6333_v22 = vld [vmem:[%s6008_s21 + $0x112] sm:$0xff]  ;;  %7440 = vst [vmem:[#allocation29_spill] sm:$0xff] %v6369_v20 }
  0x8f   : > { %5263 = vmatprep.mubr.msk.f32.mxu0 %vm272_vm0, %v6280_v23 }
  0x91   : > { %5016 = vmatmul.mubr.msk.f32.vlgmr.msra.gmra.mrb[0].mxu1 %vm272_vm0, %v200_v27  ;;  %v6349_v27 = vld [vmem:[%s6008_s21 + $0x50] sm:$0xff] }
  0x92   : > { %5264 = vmatmul.mubr.msk.f32.gmra.mrb[16].mxu0 %vm272_vm0, %v6291_v28  ;;  %5474 = vmatpush3.bf16.msra.mxu1 %v6071_v40  ;;  %v6328_v40 = vld [vmem:[%s6008_s21 + $0x38] sm:$0xff]  ;;  %7438 = vst [vmem:[#allocation27_spill] sm:$0xff] %v6349_v27 }
  0x93   : > { %5018 = vmatprep.mubr.msk.f32.mxu1 %vm272_vm0, %v6294_v29  ;;  %5266 = vmatprep.mubr.msk.f32.mxu0 %vm272_vm0, %v6297_v30  ;;  %v6437_v29 = vld [vmem:[%s6008_s21 + $0xc0] sm:$0xff] }
  0x94   : > { %5476 = vmatprep.subr.bf16.mxu1 %v5475_v33  ;;  %7452 = vst [vmem:[#allocation41_spill] sm:$0xff] %v6437_v29 }
  0x95   : > { %5019 = vmatmul.mubr.msk.f32.gmra.mrb[2].mxu1 %vm272_vm0, %v6304_v49  ;;  %v6429_v49 = vld [vmem:[%s6008_s21 + $0xb0] sm:$0xff] }
  0x96   : > { %5267 = vmatmul.mubr.msk.f32.gmra.mrb[18].mxu0 %vm272_vm0, %v6311_v50  ;;  %5021 = vmatprep.mubr.msk.f32.mxu1 %vm272_vm0, %v6314_v54  ;;  %7450 = vst [vmem:[#allocation39_spill] sm:$0xff] %v6429_v49 }
  0x97   : > { %5269 = vmatprep.mubr.msk.f32.mxu0 %vm272_vm0, %v6317_v55  ;;  %5478 = vmatpush3.bf16.msra.mxu1 %v5475_v33  ;;  %v6354_v33 = vld [vmem:[%s6008_s21 + $0x12a] sm:$0xff] }
  0x98   : > { %5480 = vmatprep.subr.bf16.mxu1 %v6319_v56 }
  0x99   : > { %5022 = vmatmul.mubr.msk.f32.gmra.mrb[4].mxu1 %vm272_vm0, %v6328_v40 }
  0x9a   : > { %5270 = vmatmul.mubr.msk.f32.gmra.mrb[20].mxu0 %vm272_vm0, %v6333_v22  ;;  %5024 = vmatprep.mubr.msk.f32.mxu1 %vm272_vm0, %v6336_v24 }
  0x9b   : > { %5272 = vmatprep.mubr.msk.f32.mxu0 %vm272_vm0, %v6339_v26 }
  0x9d   : > { %5025 = vmatmul.mubr.msk.f32.gmra.mrb[6].mxu1 %vm272_vm0, %v6349_v27 }
  0x9e   : > { %5273 = vmatmul.mubr.msk.f32.gmra.mrb[22].mxu0 %vm272_vm0, %v6354_v33  ;;  %5027 = vmatprep.mubr.msk.f32.mxu1 %vm272_vm0, %v6357_v38 }
  0x9f   : > { %5275 = vmatprep.mubr.msk.f32.mxu0 %vm272_vm0, %v6360_v39 }
  0xa1   : > { %5028 = vmatmul.mubr.msk.f32.gmra.mrb[8].mxu1 %vm272_vm0, %v6369_v20 }
  0xa2   : > { %5276 = vmatmul.mubr.msk.f32.gmra.mrb[24].mxu0 %vm272_vm0, %v6374_v18  ;;  %5030 = vmatprep.mubr.msk.f32.mxu1 %vm272_vm0, %v6377_v16 }
  0xa3   : > { %5278 = vmatprep.mubr.msk.f32.mxu0 %vm272_vm0, %v6380_v14 }
  0xa5   : > { %5031 = vmatmul.mubr.msk.f32.gmra.mrb[10].mxu1 %vm272_vm0, %v6389_v11 }
  0xa6   : > { %5279 = vmatmul.mubr.msk.f32.gmra.mrb[26].mxu0 %vm272_vm0, %v6394_v9  ;;  %5033 = vmatprep.mubr.msk.f32.mxu1 %vm272_vm0, %v6397_v6  ;;  %v3291_v9 = vld [vmem:[#allocation2 + $0x108] sm:$0xff] }
  0xa7   : > { %5281 = vmatprep.mubr.msk.f32.mxu0 %vm272_vm0, %v6400_v4  ;;  %v5515_v4 = vpack.c.bf16 %v2903_v52, %v2902_v57  ;;  %v6466_v52 = vld [vmem:[%s6008_s21 + $0xf0] sm:$0xff]  ;;  %v6468_v57 = vpack.c.bf16 %v3291_v9, %v3290_v47  ;;  %v6497_v9 = vld [vmem:[%s6008_s21 + $0x120] sm:$0xff] }
  0xa8   : > { %v6492_v47 = vld [vmem:[%s6008_s21 + $0x110] sm:$0xff] }
  0xa9   : > { %5034 = vmatmul.mubr.msk.f32.gmra.mrb[12].mxu1 %vm272_vm0, %v6409_v2 }
  0xaa   : > { %5282 = vmatmul.mubr.msk.f32.gmra.mrb[28].mxu0 %vm272_vm0, %v6414_v12  ;;  %5036 = vmatprep.mubr.msk.f32.mxu1 %vm272_vm0, %v6417_v0  ;;  %v6446_v12 = vld [vmem:[%s6008_s21 + $0xc8] sm:$0xff] }
  0xab   : > { %5284 = vmatprep.mubr.msk.f32.mxu0 %vm272_vm0, %v6420_v62  ;;  %7453 = vst [vmem:[#allocation42_spill] sm:$0xff] %v6446_v12  ;;  %v6451_v62 = vld [vmem:[%s6008_s21 + $0xd8] sm:$0xff] }
  0xad   : > { %5037 = vmatmul.mubr.msk.f32.gmra.mrb[14].mxu1 %vm272_vm0, %v6429_v49 }
  0xae   : > { %5285 = vmatmul.mubr.msk.f32.gmra.mrb[30].mxu0 %vm272_vm0, %v6434_v59  ;;  %5039 = vmatprep.mubr.msk.f32.mxu1 %vm272_vm0, %v6437_v29  ;;  %v6460_v59 = vld [vmem:[%s6008_s21 + $0xe0] sm:$0xff] }
  0xaf   : > { %5295 = vmatprep.mubr.msk.f32.mxu0 %vm272_vm0, %v6314_v54 }
  0xb1   : > { %5040 = vmatmul.mubr.msk.f32.gmra.mrb[16].mxu1 %vm272_vm0, %v6446_v12 }
  0xb2   : > { %5296 = vmatmul.mubr.msk.f32.vlgmr.msra.gmra.mrb[0].mxu0 %vm272_vm0, %v6328_v40  ;;  %5042 = vmatprep.mubr.msk.f32.mxu1 %vm272_vm0, %v6451_v62 }
  0xb3   : > { %5514 = vmatpush3.bf16.msra.mxu0 %v6161_v61  ;;  %5298 = vmatprep.mubr.msk.f32.mxu0 %vm272_vm0, %v6336_v24  ;;  %v6477_v61 = vld [vmem:[%s6008_s21 + $0xf8] sm:$0xff]  ;;  %v6482_v24 = vld [vmem:[%s6008_s21 + $0x108] sm:$0xff] }
  0xb4   : > { %5516 = vmatprep.subr.bf16.mxu0 %v5515_v4 }
  0xb5   : > { %5043 = vmatmul.mubr.msk.f32.gmra.mrb[18].mxu1 %vm272_vm0, %v6460_v59 }
  0xb6   : > { %5299 = vmatmul.mubr.msk.f32.gmra.mrb[2].mxu0 %vm272_vm0, %v6349_v27  ;;  %5045 = vmatprep.mubr.msk.f32.mxu1 %vm272_vm0, %v6466_v52 }
  0xb7   : > { %5301 = vmatprep.mubr.msk.f32.mxu0 %vm272_vm0, %v6357_v38  ;;  %5518 = vmatpush3.bf16.msra.mxu0 %v5515_v4  ;;  %v6506_v4 = vld [vmem:[%s6008_s21 + $0x128] sm:$0xff]  ;;  %v1342_v38 = vld [vmem:[#allocation2 + $0x78] sm:$0xff] }
  0xb8   : > { %5520 = vmatprep.subr.bf16.mxu0 %v6468_v57 }
  0xb9   : > { %5046 = vmatmul.mubr.msk.f32.gmra.mrb[20].mxu1 %vm272_vm0, %v6477_v61 }
  0xba   : > { %5302 = vmatmul.mubr.msk.f32.gmra.mrb[4].mxu0 %vm272_vm0, %v6369_v20  ;;  %5048 = vmatprep.mubr.msk.f32.mxu1 %vm272_vm0, %v6482_v24  ;;  %v6511_v20 = vld [vmem:[%s6008_s21 + $0x138] sm:$0xff] }
  0xbb   : > { %5304 = vmatprep.mubr.msk.f32.mxu0 %vm272_vm0, %v6377_v16  ;;  %v6525_v16 = vld [vmem:[%s6008_s21 + $0x150] sm:$0xff] }
  0xbd   : > { %5049 = vmatmul.mubr.msk.f32.gmra.mrb[22].mxu1 %vm272_vm0, %v6492_v47 }
  0xbe   : > { %5305 = vmatmul.mubr.msk.f32.gmra.mrb[6].mxu0 %vm272_vm0, %v6389_v11  ;;  %5051 = vmatprep.mubr.msk.f32.mxu1 %vm272_vm0, %v6497_v9  ;;  %v6520_v11 = vld [vmem:[%s6008_s21 + $0x140] sm:$0xff] }
  0xbf   : > { %5307 = vmatprep.mubr.msk.f32.mxu0 %vm272_vm0, %v6397_v6  ;;  %v6539_v6 = vld [vmem:[%s6008_s21 + $0x168] sm:$0xff] }
  0xc1   : > { %5052 = vmatmul.mubr.msk.f32.gmra.mrb[24].mxu1 %vm272_vm0, %v6506_v4 }
  0xc2   : > { %5308 = vmatmul.mubr.msk.f32.gmra.mrb[8].mxu0 %vm272_vm0, %v6409_v2  ;;  %5054 = vmatprep.mubr.msk.f32.mxu1 %vm272_vm0, %v6511_v20  ;;  %v6534_v2 = vld [vmem:[%s6008_s21 + $0x158] sm:$0xff] }
  0xc3   : > { %5310 = vmatprep.mubr.msk.f32.mxu0 %vm272_vm0, %v6417_v0  ;;  %v915_v0 = vld [vmem:[%s6008_s21 + $0x2] sm:$0xff] }
  0xc5   : > { %5055 = vmatmul.mubr.msk.f32.gmra.mrb[26].mxu1 %vm272_vm0, %v6520_v11 }
  0xc6   : > { %5311 = vmatmul.mubr.msk.f32.gmra.mrb[10].mxu0 %vm272_vm0, %v6429_v49  ;;  %5057 = vmatprep.mubr.msk.f32.mxu1 %vm272_vm0, %v6525_v16  ;;  %v6548_v49 = vld [vmem:[%s6008_s21 + $0x170] sm:$0xff] }
  0xc7   : > { %5313 = vmatprep.mubr.msk.f32.mxu0 %vm272_vm0, %v6437_v29  ;;  %v1341_v29 = vld [vmem:[#allocation2 + $0x70] sm:$0xff] }
  0xc8   : > { %v5483_v27 = vpack.c.bf16 %v1342_v38, %v1341_v29  ;;  %v3292_v29 = vld [vmem:[#allocation2 + $0x110] sm:$0xff] }
  0xc9   : > { %5058 = vmatmul.mubr.msk.f32.gmra.mrb[28].mxu1 %vm272_vm0, %v6534_v2  ;;  %v7467_v38 = vld [vmem:[#allocation26_spill] sm:$0xff] }
  0xca   : > { %5314 = vmatmul.mubr.msk.f32.gmra.mrb[12].mxu0 %vm272_vm0, %v6446_v12  ;;  %5060 = vmatprep.mubr.msk.f32.mxu1 %vm272_vm0, %v6539_v6  ;;  %v916_v12 = vld [vmem:[%s6008_s21 + $0xa] sm:$0xff] }
  0xcb   : > { %5316 = vmatprep.mubr.msk.f32.mxu0 %vm272_vm0, %v6451_v62 }
  0xcd   : > { %5061 = vmatmul.mubr.msk.f32.gmra.mrb[30].mxu1 %vm272_vm0, %v6548_v49 }
  0xce   : > { %5317 = vmatmul.mubr.msk.f32.gmra.mrb[14].mxu0 %vm272_vm0, %v6460_v59  ;;  %5071 = vmatprep.mubr.msk.f32.mxu1 %vm272_vm0, %v915_v0  ;;  %v4462_v0 = vld [vmem:[%s6008_s21 + $0x1a0] sm:$0xff] }
  0xcf   : > { %5319 = vmatprep.mubr.msk.f32.mxu0 %vm272_vm0, %v6466_v52 }
  0xd1   : > { %5072 = vmatmul.mubr.msk.f32.vlgmr.msra.gmra.mrb[0].mxu1 %vm272_vm0, %v916_v12  ;;  %v6603_v12 = vld [vmem:[%s6008_s21 + $0x180] sm:$0xff] }
  0xd2   : > { %5320 = vmatmul.mubr.msk.f32.gmra.mrb[16].mxu0 %vm272_vm0, %v6477_v61  ;;  %5482 = vmatpush3.bf16.msra.mxu1 %v6319_v56  ;;  %v3293_v56 = vld [vmem:[#allocation2 + $0x118] sm:$0xff] }
  0xd3   : > { %5074 = vmatprep.mubr.msk.f32.mxu1 %vm272_vm0, %v6122_v48  ;;  %5322 = vmatprep.mubr.msk.f32.mxu0 %vm272_vm0, %v6482_v24  ;;  %v6614_v48 = vld [vmem:[%s6008_s21 + $0x188] sm:$0xff] }
  0xd4   : > { %5484 = vmatprep.subr.bf16.mxu1 %v5483_v27 }
  0xd5   : > { %5075 = vmatmul.mubr.msk.f32.gmra.mrb[2].mxu1 %vm272_vm0, %v6133_v51  ;;  %v4461_v51 = vld [vmem:[%s6008_s21 + $0x198] sm:$0xff] }
  0xd6   : > { %5323 = vmatmul.mubr.msk.f32.gmra.mrb[18].mxu0 %vm272_vm0, %v6492_v47  ;;  %5077 = vmatprep.mubr.msk.f32.mxu1 %vm272_vm0, %v6139_v53 }
  0xd7   : > { %5325 = vmatprep.mubr.msk.f32.mxu0 %vm272_vm0, %v6497_v9  ;;  %5486 = vmatpush3.bf16.msra.mxu1 %v5483_v27  ;;  %v5523_v27 = vpack.c.bf16 %v3293_v56, %v3292_v29  ;;  %v7474_v29 = vld [vmem:[#allocation19_spill] sm:$0xff]  ;;  %v7475_v56 = vld [vmem:[#allocation30_spill] sm:$0xff] }
  0xd8   : > { %5527 = vmatprep.subr.bf16.mxu1 %v6010_v7 }
  0xd9   : > { %5078 = vmatmul.mubr.msk.f32.gmra.mrb[4].mxu1 %vm272_vm0, %v6153_v58 }
  0xda   : > { %5326 = vmatmul.mubr.msk.f32.gmra.mrb[20].mxu0 %vm272_vm0, %v6506_v4  ;;  %5080 = vmatprep.mubr.msk.f32.mxu1 %vm272_vm0, %v6159_v60 }
  0xdb   : > { %5328 = vmatprep.mubr.msk.f32.mxu0 %vm272_vm0, %v6511_v20 }
  0xdd   : > { %5081 = vmatmul.mubr.msk.f32.gmra.mrb[6].mxu1 %vm272_vm0, %v6175_v63 }
  0xde   : > { %5329 = vmatmul.mubr.msk.f32.gmra.mrb[22].mxu0 %vm272_vm0, %v6520_v11  ;;  %5083 = vmatprep.mubr.msk.f32.mxu1 %vm272_vm0, %v6181_v1 }
  0xdf   : > { %5331 = vmatprep.mubr.msk.f32.mxu0 %vm272_vm0, %v6525_v16 }
  0xe1   : > { %5084 = vmatmul.mubr.msk.f32.gmra.mrb[8].mxu1 %vm272_vm0, %v6196_v3 }
  0xe2   : > { %5332 = vmatmul.mubr.msk.f32.gmra.mrb[24].mxu0 %vm272_vm0, %v6534_v2  ;;  %5086 = vmatprep.mubr.msk.f32.mxu1 %vm272_vm0, %v6202_v5 }
  0xe3   : > { %5334 = vmatprep.mubr.msk.f32.mxu0 %vm272_vm0, %v6539_v6 }
  0xe5   : > { %5087 = vmatmul.mubr.msk.f32.gmra.mrb[10].mxu1 %vm272_vm0, %v6216_v8 }
  0xe6   : > { %5335 = vmatmul.mubr.msk.f32.gmra.mrb[26].mxu0 %vm272_vm0, %v6548_v49  ;;  %5089 = vmatprep.mubr.msk.f32.mxu1 %vm272_vm0, %v6222_v10 }
  0xe7   : > { %5337 = vmatprep.mubr.msk.f32.mxu0 %vm272_vm0, %v6603_v12 }
  0xe9   : > { %5090 = vmatmul.mubr.msk.f32.gmra.mrb[12].mxu1 %vm272_vm0, %v6236_v13 }
  0xea   : > { %5338 = vmatmul.mubr.msk.f32.gmra.mrb[28].mxu0 %vm272_vm0, %v6614_v48  ;;  %5092 = vmatprep.mubr.msk.f32.mxu1 %vm272_vm0, %v6242_v15 }
  0xeb   : > { %5340 = vmatprep.mubr.msk.f32.mxu0 %vm272_vm0, %v4461_v51  ;;  %v7471_v51 = vld [vmem:[#allocation28_spill] sm:$0xff] }
  0xed   : > { %5093 = vmatmul.mubr.msk.f32.gmra.mrb[14].mxu1 %vm272_vm0, %v6256_v17 }
  0xee   : > { %5341 = vmatmul.mubr.msk.f32.gmra.mrb[30].mxu0 %vm272_vm0, %v4462_v0  ;;  %5095 = vmatprep.mubr.msk.f32.mxu1 %vm272_vm0, %v6262_v19  ;;  %v7473_v0 = vld [vmem:[#allocation29_spill] sm:$0xff] }
  0xef   : > { %5351 = vmatprep.mubr.msk.f32.mxu0 %vm272_vm0, %v6026_v25  ;;  %v7454_v25 = vld [vmem:[#allocation32_spill] sm:$0xff] }
  0xf1   : > { %5096 = vmatmul.mubr.msk.f32.gmra.mrb[16].mxu1 %vm272_vm0, %v6276_v21 }
  0xf2   : > { %5352 = vmatmul.mubr.msk.f32.vlgmr.msra.gmra.mrb[0].mxu0 %vm272_vm0, %v6031_v31  ;;  %5098 = vmatprep.mubr.msk.f32.mxu1 %vm272_vm0, %v6280_v23  ;;  %v7455_v31 = vld [vmem:[#allocation9_spill] sm:$0xff] }
  0xf3   : > { %5522 = vmatpush3.bf16.msra.mxu0 %v6468_v57  ;;  %5354 = vmatprep.mubr.msk.f32.mxu0 %vm272_vm0, %v6036_v32  ;;  %v7456_v32 = vld [vmem:[#allocation34_spill] sm:$0xff]  ;;  %v7468_v57 = vld [vmem:[#allocation16_spill] sm:$0xff] }
  0xf4   : > { %5524 = vmatprep.subr.bf16.mxu0 %v5523_v27 }
  0xf5   : > { %5099 = vmatmul.mubr.msk.f32.gmra.mrb[18].mxu1 %vm272_vm0, %v6291_v28 }
  0xf6   : > { %5355 = vmatmul.mubr.msk.f32.gmra.mrb[2].mxu0 %vm272_vm0, %v6046_v34  ;;  %5101 = vmatprep.mubr.msk.f32.mxu1 %vm272_vm0, %v6297_v30  ;;  %v7457_v34 = vld [vmem:[#allocation10_spill] sm:$0xff] }
  0xf7   : > { %5357 = vmatprep.mubr.msk.f32.mxu0 %vm272_vm0, %v6049_v35  ;;  %5526 = vmatpush3.bf16.msra.mxu0 %v5523_v27  ;;  %v7458_v35 = vld [vmem:[#allocation36_spill] sm:$0xff] }
  0xf8   : > { %v7476_v27 = vld [vmem:[#allocation20_spill] sm:$0xff] }
  0xf9   : > { %5102 = vmatmul.mubr.msk.f32.gmra.mrb[20].mxu1 %vm272_vm0, %v6311_v50 }
  0xfa   : > { %5358 = vmatmul.mubr.msk.f32.gmra.mrb[4].mxu0 %vm272_vm0, %v6060_v36  ;;  %5104 = vmatprep.mubr.msk.f32.mxu1 %vm272_vm0, %v6317_v55  ;;  %v7459_v36 = vld [vmem:[#allocation11_spill] sm:$0xff] }
  0xfb   : > { %5360 = vmatprep.mubr.msk.f32.mxu0 %vm272_vm0, %v6063_v37  ;;  %v7460_v37 = vld [vmem:[#allocation24_spill] sm:$0xff] }
  0xfd   : > { %5105 = vmatmul.mubr.msk.f32.gmra.mrb[22].mxu1 %vm272_vm0, %v6333_v22 }
  0xfe   : > { %5361 = vmatmul.mubr.msk.f32.gmra.mrb[6].mxu0 %vm272_vm0, %v6076_v41  ;;  %5107 = vmatprep.mubr.msk.f32.mxu1 %vm272_vm0, %v6339_v26  ;;  %v7461_v41 = vld [vmem:[#allocation12_spill] sm:$0xff] }
  0xff   : > { %5363 = vmatprep.mubr.msk.f32.mxu0 %vm272_vm0, %v6079_v42  ;;  %v7462_v42 = vld [vmem:[#allocation25_spill] sm:$0xff] }
 0x101   : > { %5108 = vmatmul.mubr.msk.f32.gmra.mrb[24].mxu1 %vm272_vm0, %v6354_v33 }
 0x102   : > { %5364 = vmatmul.mubr.msk.f32.gmra.mrb[8].mxu0 %vm272_vm0, %v6091_v43  ;;  %5110 = vmatprep.mubr.msk.f32.mxu1 %vm272_vm0, %v6360_v39  ;;  %v7463_v43 = vld [vmem:[#allocation13_spill] sm:$0xff] }
 0x103   : > { %5366 = vmatprep.mubr.msk.f32.mxu0 %vm272_vm0, %v6094_v44  ;;  %v7464_v44 = vld [vmem:[#allocation14_spill] sm:$0xff] }
 0x105   : > { %5111 = vmatmul.mubr.msk.f32.gmra.mrb[26].mxu1 %vm272_vm0, %v6374_v18 }
 0x106   : > { %5367 = vmatmul.mubr.msk.f32.gmra.mrb[10].mxu0 %vm272_vm0, %v6105_v45  ;;  %5113 = vmatprep.mubr.msk.f32.mxu1 %vm272_vm0, %v6380_v14  ;;  %v7465_v45 = vld [vmem:[#allocation8_spill] sm:$0xff] }
 0x107   : > { %5369 = vmatprep.mubr.msk.f32.mxu0 %vm272_vm0, %v6108_v46  ;;  %v7466_v46 = vld [vmem:[#allocation15_spill] sm:$0xff] }
 0x109   : > { %5114 = vmatmul.mubr.msk.f32.gmra.mrb[28].mxu1 %vm272_vm0, %v7454_v25 }
 0x10a   : > { %5370 = vmatmul.mubr.msk.f32.gmra.mrb[12].mxu0 %vm272_vm0, %v7455_v31  ;;  %5116 = vmatprep.mubr.msk.f32.mxu1 %vm272_vm0, %v7456_v32  ;;  %v7477_v31 = vld [vmem:[#allocation31_spill] sm:$0xff] }
 0x10b   : > { %5372 = vmatprep.mubr.msk.f32.mxu0 %vm272_vm0, %v7457_v34 }
 0x10d   : > { %5117 = vmatmul.mubr.msk.f32.gmra.mrb[30].mxu1 %vm272_vm0, %v7458_v35 }
 0x10e   : > { %5373 = vmatmul.mubr.msk.f32.gmra.mrb[14].mxu0 %vm272_vm0, %v7459_v36  ;;  %5127 = vmatprep.mubr.msk.f32.mxu1 %vm272_vm0, %v7460_v37  ;;  %v7478_v37 = vld [vmem:[#allocation21_spill] sm:$0xff] }
 0x10f   : > { %5375 = vmatprep.mubr.msk.f32.mxu0 %vm272_vm0, %v7461_v41 }
 0x111   : > { %5128 = vmatmul.mubr.msk.f32.vlgmr.msra.gmra.mrb[0].mxu1 %vm272_vm0, %v7462_v42  ;;  %v7479_v42 = vld [vmem:[#allocation33_spill] sm:$0xff] }
 0x112   : > { %5376 = vmatmul.mubr.msk.f32.gmra.mrb[16].mxu0 %vm272_vm0, %v7463_v43  ;;  %5529 = vmatpush3.bf16.msra.mxu1 %v6010_v7  ;;  %v7469_v7 = vld [vmem:[#allocation27_spill] sm:$0xff] }
 0x113   : > { %5130 = vmatprep.mubr.msk.f32.mxu1 %vm272_vm0, %v6314_v54  ;;  %5378 = vmatprep.mubr.msk.f32.mxu0 %vm272_vm0, %v7464_v44  ;;  %v7470_v54 = vld [vmem:[#allocation17_spill] sm:$0xff] }
 0x114   : > { %5528 = vmatprep.subr.bf16.mxu1 %v7465_v45 }
 0x115   : > { %5131 = vmatmul.mubr.msk.f32.gmra.mrb[2].mxu1 %vm272_vm0, %v6328_v40  ;;  %v7472_v40 = vld [vmem:[#allocation18_spill] sm:$0xff] }
 0x116   : > { %5379 = vmatmul.mubr.msk.f32.gmra.mrb[18].mxu0 %vm272_vm0, %v7466_v46  ;;  %5133 = vmatprep.mubr.msk.f32.mxu1 %vm272_vm0, %v7467_v38  ;;  %v6741_v38 = vld [vmem:[%s6008_s21 + $0x181] sm:$0xff] }
 0x117   : > { %5381 = vmatprep.mubr.msk.f32.mxu0 %vm272_vm0, %v7468_v57  ;;  %5530 = vmatpush3.bf16.msra.mxu1 %v7465_v45  ;;  %v7480_v45 = vld [vmem:[#allocation22_spill] sm:$0xff] }
 0x119   : > { %5134 = vmatmul.mubr.msk.f32.gmra.mrb[4].mxu1 %vm272_vm0, %v7469_v7  ;;  %v7481_v7 = vld [vmem:[#allocation35_spill] sm:$0xff] }
 0x11a   : > { %5382 = vmatmul.mubr.msk.f32.gmra.mrb[20].mxu0 %vm272_vm0, %v7470_v54  ;;  %5136 = vmatprep.mubr.msk.f32.mxu1 %vm272_vm0, %v7471_v51  ;;  %v7482_v51 = vld [vmem:[#allocation23_spill] sm:$0xff] }
 0x11b   : > { %5384 = vmatprep.mubr.msk.f32.mxu0 %vm272_vm0, %v7472_v40 }
 0x11d   : > { %5137 = vmatmul.mubr.msk.f32.gmra.mrb[6].mxu1 %vm272_vm0, %v7473_v0  ;;  %v7483_v0 = vld [vmem:[#allocation37_spill] sm:$0xff] }
 0x11e   : > { %5385 = vmatmul.mubr.msk.f32.gmra.mrb[22].mxu0 %vm272_vm0, %v7474_v29  ;;  %5139 = vmatprep.mubr.msk.f32.mxu1 %vm272_vm0, %v7475_v56  ;;  %v6752_v56 = vld [vmem:[%s6008_s21 + $0x189] sm:$0xff] }
 0x11f   : > { %5387 = vmatprep.mubr.msk.f32.mxu0 %vm272_vm0, %v7476_v27 }
 0x121   : > { %5140 = vmatmul.mubr.msk.f32.gmra.mrb[8].mxu1 %vm272_vm0, %v7477_v31  ;;  %v4525_v31 = vld [vmem:[%s6008_s21 + $0x199] sm:$0xff] }
 0x122   : > { %5388 = vmatmul.mubr.msk.f32.gmra.mrb[24].mxu0 %vm272_vm0, %v7478_v37  ;;  %5142 = vmatprep.mubr.msk.f32.mxu1 %vm272_vm0, %v7479_v42  ;;  %v7484_v42 = vld [vmem:[#allocation39_spill] sm:$0xff] }
 0x123   : > { %5390 = vmatprep.mubr.msk.f32.mxu0 %vm272_vm0, %v7480_v45  ;;  %v7485_v45 = vld [vmem:[#allocation41_spill] sm:$0xff] }
 0x125   : > { %5143 = vmatmul.mubr.msk.f32.gmra.mrb[10].mxu1 %vm272_vm0, %v7481_v7  ;;  %v4526_v7 = vld [vmem:[%s6008_s21 + $0x1a1] sm:$0xff] }
 0x126   : > { %5391 = vmatmul.mubr.msk.f32.gmra.mrb[26].mxu0 %vm272_vm0, %v7482_v51  ;;  %5145 = vmatprep.mubr.msk.f32.mxu1 %vm272_vm0, %v7483_v0  ;;  %v7486_v51 = vld [vmem:[#allocation42_spill] sm:$0xff] }
 0x127   : > { %5393 = vmatprep.mubr.msk.f32.mxu0 %vm272_vm0, %v6741_v38 }
 0x129   : > { %5146 = vmatmul.mubr.msk.f32.gmra.mrb[12].mxu1 %vm272_vm0, %v7484_v42 }
 0x12a   : > { %5394 = vmatmul.mubr.msk.f32.gmra.mrb[28].mxu0 %vm272_vm0, %v6752_v56  ;;  %5148 = vmatprep.mubr.msk.f32.mxu1 %vm272_vm0, %v7485_v45 }
 0x12b   : > { %5396 = vmatprep.mubr.msk.f32.mxu0 %vm272_vm0, %v4525_v31 }
 0x12d   : > { %5149 = vmatmul.mubr.msk.f32.gmra.mrb[14].mxu1 %vm272_vm0, %v7486_v51 }
 0x12e   : > { %5397 = vmatmul.mubr.msk.f32.gmra.mrb[30].mxu0 %vm272_vm0, %v4526_v7  ;;  %5151 = vmatprep.mubr.msk.f32.mxu1 %vm272_vm0, %v6451_v62  ;;  %v7490_v62 = vld [vmem:[#allocation40_spill] sm:$0xff] }
 0x12f   : > { %5407 = vmatprep.mubr.msk.f32.mxu0 %vm272_vm0, %v6139_v53  ;;  %v7487_v53 = vld [vmem:[#allocation22_spill] sm:$0xff] }
 0x131   : > { %5152 = vmatmul.mubr.msk.f32.gmra.mrb[16].mxu1 %vm272_vm0, %v6460_v59  ;;  %v4589_v59 = vld [vmem:[%s6008_s21 + $0x19a] sm:$0xff] }
 0x132   : > { %5408 = vmatmul.mubr.msk.f32.vlgmr.msra.gmra.mrb[0].mxu0 %vm272_vm0, %v6153_v58  ;;  %5154 = vmatprep.mubr.msk.f32.mxu1 %vm272_vm0, %v6466_v52  ;;  %v7488_v58 = vld [vmem:[#allocation38_spill] sm:$0xff] }
 0x133   : > { %5410 = vmatprep.mubr.msk.f32.mxu0 %vm272_vm0, %v6159_v60  ;;  %v7489_v60 = vld [vmem:[#allocation23_spill] sm:$0xff] }
 0x135   : > { %5155 = vmatmul.mubr.msk.f32.gmra.mrb[18].mxu1 %vm272_vm0, %v6477_v61 }
 0x136   : > { %5411 = vmatmul.mubr.msk.f32.gmra.mrb[2].mxu0 %vm272_vm0, %v6175_v63  ;;  %5157 = vmatprep.mubr.msk.f32.mxu1 %vm272_vm0, %v6482_v24  ;;  %v4590_v63 = vld [vmem:[%s6008_s21 + $0x1a2] sm:$0xff] }
 0x137   : > { %5413 = vmatprep.mubr.msk.f32.mxu0 %vm272_vm0, %v6181_v1 }
 0x139   : > { %5158 = vmatmul.mubr.msk.f32.gmra.mrb[20].mxu1 %vm272_vm0, %v6492_v47 }
 0x13a   : > { %5414 = vmatmul.mubr.msk.f32.gmra.mrb[4].mxu0 %vm272_vm0, %v6196_v3  ;;  %5160 = vmatprep.mubr.msk.f32.mxu1 %vm272_vm0, %v6497_v9 }
 0x13b   : > { %5416 = vmatprep.mubr.msk.f32.mxu0 %vm272_vm0, %v6202_v5 }
 0x13d   : > { %5161 = vmatmul.mubr.msk.f32.gmra.mrb[22].mxu1 %vm272_vm0, %v6506_v4 }
 0x13e   : > { %5417 = vmatmul.mubr.msk.f32.gmra.mrb[6].mxu0 %vm272_vm0, %v6216_v8  ;;  %5163 = vmatprep.mubr.msk.f32.mxu1 %vm272_vm0, %v6511_v20 }
 0x13f   : > { %5419 = vmatprep.mubr.msk.f32.mxu0 %vm272_vm0, %v6222_v10 }
 0x141   : > { %5164 = vmatmul.mubr.msk.f32.gmra.mrb[24].mxu1 %vm272_vm0, %v6520_v11 }
 0x142   : > { %5420 = vmatmul.mubr.msk.f32.gmra.mrb[8].mxu0 %vm272_vm0, %v6236_v13  ;;  %5166 = vmatprep.mubr.msk.f32.mxu1 %vm272_vm0, %v6525_v16 }
 0x143   : > { %5422 = vmatprep.mubr.msk.f32.mxu0 %vm272_vm0, %v6242_v15 }
 0x145   : > { %5167 = vmatmul.mubr.msk.f32.gmra.mrb[26].mxu1 %vm272_vm0, %v6534_v2 }
 0x146   : > { %5423 = vmatmul.mubr.msk.f32.gmra.mrb[10].mxu0 %vm272_vm0, %v6256_v17  ;;  %5169 = vmatprep.mubr.msk.f32.mxu1 %vm272_vm0, %v6539_v6 }
 0x147   : > { %5425 = vmatprep.mubr.msk.f32.mxu0 %vm272_vm0, %v6262_v19 }
 0x149   : > { %5170 = vmatmul.mubr.msk.f32.gmra.mrb[28].mxu1 %vm272_vm0, %v6548_v49 }
 0x14a   : > { %5426 = vmatmul.mubr.msk.f32.gmra.mrb[12].mxu0 %vm272_vm0, %v6276_v21  ;;  %5172 = vmatprep.mubr.msk.f32.mxu1 %vm272_vm0, %v6603_v12 }
 0x14b   : > { %5428 = vmatprep.mubr.msk.f32.mxu0 %vm272_vm0, %v6280_v23  ;;  %v6910_v23 = vld [vmem:[#allocation4] ss:$0 sm:$0xff] }
 0x14d   : > { %5173 = vmatmul.mubr.msk.f32.gmra.mrb[30].mxu1 %vm272_vm0, %v6614_v48 }
 0x14e   : > { %5429 = vmatmul.mubr.msk.f32.gmra.mrb[14].mxu0 %vm272_vm0, %v6291_v28  ;;  %5207 = vmatprep.mubr.msk.f32.mxu1 %vm272_vm0, %v7457_v34 }
 0x14f   : > { %5431 = vmatprep.mubr.msk.f32.mxu0 %vm272_vm0, %v6297_v30 }
 0x151   : > { %5208 = vmatmul.mubr.msk.f32.vlgmr.msra.gmra.mrb[16].mxu1 %vm272_vm0, %v7459_v36 }
 0x152   : > { %5432 = vmatmul.mubr.msk.f32.gmra.mrb[16].mxu0 %vm272_vm0, %v6311_v50  ;;  %5210 = vmatprep.mubr.msk.f32.mxu1 %vm272_vm0, %v7461_v41 }
 0x153   : > { %5434 = vmatprep.mubr.msk.f32.mxu0 %vm272_vm0, %v6317_v55 }
 0x155   : > { %5211 = vmatmul.mubr.msk.f32.gmra.mrb[18].mxu1 %vm272_vm0, %v7463_v43 }
 0x156   : > { %5435 = vmatmul.mubr.msk.f32.gmra.mrb[18].mxu0 %vm272_vm0, %v6333_v22  ;;  %5213 = vmatprep.mubr.msk.f32.mxu1 %vm272_vm0, %v7464_v44 }
 0x157   : > { %5437 = vmatprep.mubr.msk.f32.mxu0 %vm272_vm0, %v6339_v26 }
 0x159   : > { %5214 = vmatmul.mubr.msk.f32.gmra.mrb[20].mxu1 %vm272_vm0, %v7466_v46 }
 0x15a   : > { %5438 = vmatmul.mubr.msk.f32.gmra.mrb[20].mxu0 %vm272_vm0, %v6354_v33  ;;  %5216 = vmatprep.mubr.msk.f32.mxu1 %vm272_vm0, %v7468_v57 }
 0x15b   : > { %5440 = vmatprep.mubr.msk.f32.mxu0 %vm272_vm0, %v6360_v39 }
 0x15d   : > { %5217 = vmatmul.mubr.msk.f32.gmra.mrb[22].mxu1 %vm272_vm0, %v7470_v54 }
 0x15e   : > { %5441 = vmatmul.mubr.msk.f32.gmra.mrb[22].mxu0 %vm272_vm0, %v6374_v18  ;;  %5219 = vmatprep.mubr.msk.f32.mxu1 %vm272_vm0, %v7472_v40 }
 0x15f   : > { %5443 = vmatprep.mubr.msk.f32.mxu0 %vm272_vm0, %v6380_v14 }
 0x161   : > { %5220 = vmatmul.mubr.msk.f32.gmra.mrb[24].mxu1 %vm272_vm0, %v7474_v29 }
 0x162   : > { %5444 = vmatmul.mubr.msk.f32.gmra.mrb[24].mxu0 %vm272_vm0, %v7454_v25  ;;  %5222 = vmatprep.mubr.msk.f32.mxu1 %vm272_vm0, %v7476_v27 }
 0x163   : > { %5446 = vmatprep.mubr.msk.f32.mxu0 %vm272_vm0, %v7456_v32 }
 0x165   : > { %5223 = vmatmul.mubr.msk.f32.gmra.mrb[26].mxu1 %vm272_vm0, %v7478_v37 }
 0x166   : > { %5447 = vmatmul.mubr.msk.f32.gmra.mrb[26].mxu0 %vm272_vm0, %v7458_v35  ;;  %5225 = vmatprep.mubr.msk.f32.mxu1 %vm272_vm0, %v7487_v53 }
 0x167   : > { %5449 = vmatprep.mubr.msk.f32.mxu0 %vm272_vm0, %v7488_v58 }
 0x169   : > { %5226 = vmatmul.mubr.msk.f32.gmra.mrb[28].mxu1 %vm272_vm0, %v7489_v60 }
 0x16a   : > { %5450 = vmatmul.mubr.msk.f32.gmra.mrb[28].mxu0 %vm272_vm0, %v7490_v62  ;;  %5228 = vmatprep.mubr.msk.f32.mxu1 %vm272_vm0, %v6741_v38 }
 0x16b   : > { %5452 = vmatprep.mubr.msk.f32.mxu0 %vm272_vm0, %v4589_v59 }
 0x16d   : > { %5229 = vmatmul.mubr.msk.f32.gmra.mrb[30].mxu1 %vm272_vm0, %v6752_v56 }
 0x16e   : > { %5453 = vmatmul.mubr.msk.f32.gmra.mrb[30].mxu0 %vm272_vm0, %v4590_v63 }
 0x1e4   : > { %v5129_v1 = vpop.f32.mrb[0].mxu1 }
 0x1e5   : > { %v1505_v2 = vpop.f32.mrb[1].mxu1 }
 0x1e8   : > { %v5132_v3 = vpop.f32.mrb[2].mxu1 }
 0x1e9   : > { %v1515_v5 = vpop.f32.mrb[3].mxu1 }
 0x1ec   : > { %v5135_v6 = vpop.f32.mrb[4].mxu1 }
 0x1ed   : > { %v1525_v8 = vpop.f32.mrb[5].mxu1 }
 0x1f0   : > { %v5138_v10 = vpop.f32.mrb[6].mxu1 }
 0x1f1   : > { %v1535_v11 = vpop.f32.mrb[7].mxu1 }
 0x1f4   : > { %v6894_v13 = vpop.f32.mrb[8].mxu1 }
 0x1f5   : > { %v6896_v14 = vpop.f32.mrb[9].mxu1 }
 0x1f8   : > { %v6898_v15 = vpop.f32.mrb[10].mxu1 }
 0x1f9   : > { %v6900_v16 = vpop.f32.mrb[11].mxu1 }
 0x1fc   : > { %v6902_v17 = vpop.f32.mrb[12].mxu1 }
 0x1fd   : > { %v6904_v18 = vpop.f32.mrb[13].mxu1 }
 0x200   : > { %v6906_v19 = vpop.f32.mrb[14].mxu1 }
 0x201   : > { %v6908_v20 = vpop.f32.mrb[15].mxu1 }
 0x205   : > { %v5409_v21 = vpop.f32.mrb[0].mxu0 }
 0x206   : > { %v5531_v28 = vadd.f32 %v5409_v21, %v5129_v1  ;;  %v3456_v30 = vpop.f32.mrb[1].mxu0 }
 0x207   : > { %v5532_v49 = vadd.f32 %v3456_v30, %v1505_v2 }
 0x208   : > { %v3655_v50 = vadd.f32 %v5531_v28, %v6910_v23 }
 0x209   : > { %v3654_v55 = vadd.f32 %v5532_v49, %v6910_v23  ;;  %v5412_v22 = vpop.f32.mrb[2].mxu0 }
 0x20a   : > { %vm3687_vm1 = vcmp.ge.f32.partialorder %v3655_v50, 0.0  ;;  %v3719_v24 = vmul.f32 0.1, %v3655_v50  ;;  %v5533_v26 = vadd.f32 %v5412_v22, %v5132_v3  ;;  %v3466_v33 = vpop.f32.mrb[3].mxu0 }
 0x20b   : > { %vm3686_vm3 = vcmp.ge.f32.partialorder %v3654_v55, 0.0  ;;  %v3718_v39 = vmul.f32 0.1, %v3654_v55  ;;  %v5534_v52 = vadd.f32 %v3466_v33, %v1515_v5 }
 0x20c   : > { %v6914_v61 = vsel %vm3687_vm1, %v3655_v50, %v3719_v24  ;;  %v3657_v47 = vadd.f32 %v5533_v26, %v6910_v23 }
 0x20d   : > { %v3784_v9 = vsel %vm3782_vm2, %v6914_v61, 0.0  ;;  %v6919_v4 = vsel %vm3686_vm3, %v3654_v55, %v3718_v39  ;;  %v3656_v12 = vadd.f32 %v5534_v52, %v6910_v23  ;;  %v5415_v48 = vpop.f32.mrb[4].mxu0 }
 0x20e   : > { %v3783_v25 = vsel %vm3782_vm2, %v6919_v4, 0.0  ;;  %vm3689_vm4 = vcmp.ge.f32.partialorder %v3657_v47, 0.0  ;;  %v3721_v32 = vmul.f32 0.1, %v3657_v47  ;;  %v5535_v34 = vadd.f32 %v5415_v48, %v5135_v6  ;;  %v3476_v35 = vpop.f32.mrb[5].mxu0 }
 0x20f   : > { %vm3688_vm5 = vcmp.ge.f32.partialorder %v3656_v12, 0.0  ;;  %v3720_v36 = vmul.f32 0.1, %v3656_v12  ;;  %v5536_v41 = vadd.f32 %v3476_v35, %v1525_v8  ;;  %v3785_v44 = vadd.f32 %v3784_v9, %v3783_v25 }
 0x210   : > { %v3659_v43 = vadd.f32 %v5535_v34, %v6910_v23  ;;  %v6925_v46 = vsel %vm3689_vm4, %v3657_v47, %v3721_v32 }
 0x211   : > { %v6927_v57 = vsel %vm3688_vm5, %v3656_v12, %v3720_v36  ;;  %v3658_v54 = vadd.f32 %v5536_v41, %v6910_v23  ;;  %v5418_v40 = vpop.f32.mrb[6].mxu0  ;;  %v3788_v56 = vsel %vm3782_vm2, %v6925_v46, 0.0 }
 0x212   : > { %v3786_v29 = vsel %vm3782_vm2, %v6927_v57, 0.0  ;;  %vm3691_vm6 = vcmp.ge.f32.partialorder %v3659_v43, 0.0  ;;  %v3723_v27 = vmul.f32 0.1, %v3659_v43  ;;  %v5537_v37 = vadd.f32 %v5418_v40, %v5138_v10  ;;  %v3486_v45 = vpop.f32.mrb[7].mxu0 }
 0x213   : > { %v3787_v38 = vadd.f32 %v3786_v29, %v3785_v44  ;;  %vm3690_vm7 = vcmp.ge.f32.partialorder %v3658_v54, 0.0  ;;  %v3722_v51 = vmul.f32 0.1, %v3658_v54  ;;  %v5538_v0 = vadd.f32 %v3486_v45, %v1535_v11 }
 0x214   : > { %v3661_v31 = vadd.f32 %v5537_v37, %v6910_v23  ;;  %v6935_v42 = vsel %vm3691_vm6, %v3659_v43, %v3723_v27 }
 0x215   : > { %v6937_v7 = vsel %vm3690_vm7, %v3658_v54, %v3722_v51  ;;  %v3789_v53 = vadd.f32 %v3788_v56, %v3787_v38  ;;  %v3660_v58 = vadd.f32 %v5538_v0, %v6910_v23  ;;  %v5421_v59 = vpop.f32.mrb[8].mxu0  ;;  %v3792_v6 = vsel %vm3782_vm2, %v6935_v42, 0.0 }
 0x216   : > { %v3790_v60 = vsel %vm3782_vm2, %v6937_v7, 0.0  ;;  %vm3693_vm8 = vcmp.ge.f32.partialorder %v3661_v31, 0.0  ;;  %v3725_v62 = vmul.f32 0.1, %v3661_v31  ;;  %v5539_v63 = vadd.f32 %v5421_v59, %v6894_v13  ;;  %v3496_v1 = vpop.f32.mrb[9].mxu0 }
 0x217   : > { %v3791_v2 = vadd.f32 %v3790_v60, %v3789_v53  ;;  %vm3692_vm9 = vcmp.ge.f32.partialorder %v3660_v58, 0.0  ;;  %v3724_v3 = vmul.f32 0.1, %v3660_v58  ;;  %v5540_v5 = vadd.f32 %v3496_v1, %v6896_v14 }
 0x218   : > { %v3663_v8 = vadd.f32 %v5539_v63, %v6910_v23  ;;  %v6947_v10 = vsel %vm3693_vm8, %v3661_v31, %v3725_v62 }
 0x219   : > { %v6949_v11 = vsel %vm3692_vm9, %v3660_v58, %v3724_v3  ;;  %v3793_v21 = vadd.f32 %v3792_v6, %v3791_v2  ;;  %v3662_v28 = vadd.f32 %v5540_v5, %v6910_v23  ;;  %v5424_v30 = vpop.f32.mrb[10].mxu0  ;;  %v3796_v26 = vsel %vm3782_vm2, %v6947_v10, 0.0 }
 0x21a   : > { %v3794_v13 = vsel %vm3782_vm2, %v6949_v11, 0.0  ;;  %vm3695_vm10 = vcmp.ge.f32.partialorder %v3663_v8, 0.0  ;;  %v3727_v49 = vmul.f32 0.1, %v3663_v8  ;;  %v5541_v14 = vadd.f32 %v5424_v30, %v6898_v15  ;;  %v3506_v50 = vpop.f32.mrb[11].mxu0 }
 0x21b   : > { %v3795_v55 = vadd.f32 %v3794_v13, %v3793_v21  ;;  %vm3694_vm11 = vcmp.ge.f32.partialorder %v3662_v28, 0.0  ;;  %v3726_v22 = vmul.f32 0.1, %v3662_v28  ;;  %v5542_v24 = vadd.f32 %v3506_v50, %v6900_v16 }
 0x21c   : > { %v3665_v33 = vadd.f32 %v5541_v14, %v6910_v23  ;;  %v6959_v39 = vsel %vm3695_vm10, %v3663_v8, %v3727_v49 }
 0x21d   : > { %v6961_v52 = vsel %vm3694_vm11, %v3662_v28, %v3726_v22  ;;  %v3797_v47 = vadd.f32 %v3796_v26, %v3795_v55  ;;  %v3664_v9 = vadd.f32 %v5542_v24, %v6910_v23  ;;  %v5427_v12 = vpop.f32.mrb[12].mxu0  ;;  %v3800_v36 = vsel %vm3782_vm2, %v6959_v39, 0.0 }
 0x21e   : > { %v3798_v15 = vsel %vm3782_vm2, %v6961_v52, 0.0  ;;  %vm3697_vm12 = vcmp.ge.f32.partialorder %v3665_v33, 0.0  ;;  %v3729_v48 = vmul.f32 0.1, %v3665_v33  ;;  %v5543_v16 = vadd.f32 %v5427_v12, %v6902_v17  ;;  %v3516_v25 = vpop.f32.mrb[13].mxu0 }
 0x21f   : > { %v3799_v32 = vadd.f32 %v3798_v15, %v3797_v47  ;;  %vm3696_vm13 = vcmp.ge.f32.partialorder %v3664_v9, 0.0  ;;  %v3728_v34 = vmul.f32 0.1, %v3664_v9  ;;  %v5544_v35 = vadd.f32 %v3516_v25, %v6904_v18 }
 0x220   : > { %v3667_v41 = vadd.f32 %v5543_v16, %v6910_v23  ;;  %v6971_v43 = vsel %vm3697_vm12, %v3665_v33, %v3729_v48 }
 0x221   : > { %v6973_v44 = vsel %vm3696_vm13, %v3664_v9, %v3728_v34  ;;  %v3801_v54 = vadd.f32 %v3800_v36, %v3799_v32  ;;  %v3666_v40 = vadd.f32 %v5544_v35, %v6910_v23  ;;  %v5430_v29 = vpop.f32.mrb[14].mxu0  ;;  %v3804_v0 = vsel %vm3782_vm2, %v6971_v43, 0.0 }
 0x222   : > { %v3802_v17 = vsel %vm3782_vm2, %v6973_v44, 0.0  ;;  %vm3699_vm14 = vcmp.ge.f32.partialorder %v3667_v41, 0.0  ;;  %v3731_v27 = vmul.f32 0.1, %v3667_v41  ;;  %v5545_v18 = vadd.f32 %v5430_v29, %v6906_v19  ;;  %v3526_v37 = vpop.f32.mrb[15].mxu0 }
 0x223   : > { %v3803_v45 = vadd.f32 %v3802_v17, %v3801_v54  ;;  %vm3698_vm15 = vcmp.ge.f32.partialorder %v3666_v40, 0.0  ;;  %v3730_v38 = vmul.f32 0.1, %v3666_v40  ;;  %v5546_v51 = vadd.f32 %v3526_v37, %v6908_v20 }
 0x224   : > { %v3669_v56 = vadd.f32 %v5545_v18, %v6910_v23  ;;  %v5209_v31 = vpop.f32.mrb[16].mxu1  ;;  %v6983_v53 = vsel %vm3699_vm14, %v3667_v41, %v3731_v27 }
 0x225   : > { %v6985_v58 = vsel %vm3698_vm15, %v3666_v40, %v3730_v38  ;;  %v3805_v59 = vadd.f32 %v3804_v0, %v3803_v45  ;;  %v3668_v60 = vadd.f32 %v5546_v51, %v6910_v23  ;;  %v5433_v19 = vpop.f32.mrb[16].mxu0  ;;  %v1975_v62 = vpop.f32.mrb[17].mxu1  ;;  %v3808_v8 = vsel %vm3782_vm2, %v6983_v53, 0.0 }
 0x226   : > { %v3806_v63 = vsel %vm3782_vm2, %v6985_v58, 0.0  ;;  %vm3701_vm0 = vcmp.ge.f32.partialorder %v3669_v56, 0.0  ;;  %v3733_v20 = vmul.f32 0.1, %v3669_v56  ;;  %v5547_v1 = vadd.f32 %v5433_v19, %v5209_v31  ;;  %v3536_v2 = vpop.f32.mrb[17].mxu0 }
 0x227   : > { %v3807_v3 = vadd.f32 %v3806_v63, %v3805_v59  ;;  %vm3700_vm1 = vcmp.ge.f32.partialorder %v3668_v60, 0.0  ;;  %v3732_v5 = vmul.f32 0.1, %v3668_v60  ;;  %v5548_v6 = vadd.f32 %v3536_v2, %v1975_v62 }
 0x228   : > { %v3671_v21 = vadd.f32 %v5547_v1, %v6910_v23  ;;  %v5212_v28 = vpop.f32.mrb[18].mxu1  ;;  %v6993_v30 = vsel %vm3701_vm0, %v3669_v56, %v3733_v20 }
 0x229   : > { %v6995_v13 = vsel %vm3700_vm1, %v3668_v60, %v3732_v5  ;;  %v3809_v49 = vadd.f32 %v3808_v8, %v3807_v3  ;;  %v3670_v14 = vadd.f32 %v5548_v6, %v6910_v23  ;;  %v5436_v50 = vpop.f32.mrb[18].mxu0  ;;  %v1985_v55 = vpop.f32.mrb[19].mxu1  ;;  %v3812_v15 = vsel %vm3782_vm2, %v6993_v30, 0.0 }
 0x22a   : > { %v3810_v22 = vsel %vm3782_vm2, %v6995_v13, 0.0  ;;  %vm3703_vm3 = vcmp.ge.f32.partialorder %v3671_v21, 0.0  ;;  %v3735_v24 = vmul.f32 0.1, %v3671_v21  ;;  %v5549_v26 = vadd.f32 %v5436_v50, %v5212_v28  ;;  %v3546_v33 = vpop.f32.mrb[19].mxu0 }
 0x22b   : > { %v3811_v47 = vadd.f32 %v3810_v22, %v3809_v49  ;;  %vm3702_vm4 = vcmp.ge.f32.partialorder %v3670_v14, 0.0  ;;  %v3734_v9 = vmul.f32 0.1, %v3670_v14  ;;  %v5550_v12 = vadd.f32 %v3546_v33, %v1985_v55 }
 0x22c   : > { %v3673_v48 = vadd.f32 %v5549_v26, %v6910_v23  ;;  %v5215_v16 = vpop.f32.mrb[20].mxu1  ;;  %v7003_v25 = vsel %vm3703_vm3, %v3671_v21, %v3735_v24 }
 0x22d   : > { %v7005_v32 = vsel %vm3702_vm4, %v3670_v14, %v3734_v9  ;;  %v3813_v34 = vadd.f32 %v3812_v15, %v3811_v47  ;;  %v3672_v35 = vadd.f32 %v5550_v12, %v6910_v23  ;;  %v5439_v36 = vpop.f32.mrb[20].mxu0  ;;  %v1995_v41 = vpop.f32.mrb[21].mxu1  ;;  %v3816_v45 = vsel %vm3782_vm2, %v7003_v25, 0.0 }
 0x22e   : > { %v3814_v54 = vsel %vm3782_vm2, %v7005_v32, 0.0  ;;  %vm3705_vm5 = vcmp.ge.f32.partialorder %v3673_v48, 0.0  ;;  %v3737_v40 = vmul.f32 0.1, %v3673_v48  ;;  %v5551_v29 = vadd.f32 %v5439_v36, %v5215_v16  ;;  %v3556_v17 = vpop.f32.mrb[21].mxu0 }
 0x22f   : > { %v3815_v27 = vadd.f32 %v3814_v54, %v3813_v34  ;;  %vm3704_vm6 = vcmp.ge.f32.partialorder %v3672_v35, 0.0  ;;  %v3736_v18 = vmul.f32 0.1, %v3672_v35  ;;  %v5552_v37 = vadd.f32 %v3556_v17, %v1995_v41 }
 0x230   : > { %v3675_v38 = vadd.f32 %v5551_v29, %v6910_v23  ;;  %v5218_v51 = vpop.f32.mrb[22].mxu1  ;;  %v7013_v0 = vsel %vm3705_vm5, %v3673_v48, %v3737_v40 }
 0x231   : > { %v7015_v56 = vsel %vm3704_vm6, %v3672_v35, %v3736_v18  ;;  %v3817_v31 = vadd.f32 %v3816_v45, %v3815_v27  ;;  %v3674_v59 = vadd.f32 %v5552_v37, %v6910_v23  ;;  %v5442_v60 = vpop.f32.mrb[22].mxu0  ;;  %v2005_v19 = vpop.f32.mrb[23].mxu1  ;;  %v3820_v6 = vsel %vm3782_vm2, %v7013_v0, 0.0 }
 0x232   : > { %v3818_v62 = vsel %vm3782_vm2, %v7015_v56, 0.0  ;;  %vm3707_vm7 = vcmp.ge.f32.partialorder %v3675_v38, 0.0  ;;  %v3739_v63 = vmul.f32 0.1, %v3675_v38  ;;  %v5553_v20 = vadd.f32 %v5442_v60, %v5218_v51  ;;  %v3566_v1 = vpop.f32.mrb[23].mxu0 }
 0x233   : > { %v3819_v2 = vadd.f32 %v3818_v62, %v3817_v31  ;;  %vm3706_vm8 = vcmp.ge.f32.partialorder %v3674_v59, 0.0  ;;  %v3738_v3 = vmul.f32 0.1, %v3674_v59  ;;  %v5554_v5 = vadd.f32 %v3566_v1, %v2005_v19 }
 0x234   : > { %v3677_v8 = vadd.f32 %v5553_v20, %v6910_v23  ;;  %v5221_v21 = vpop.f32.mrb[24].mxu1  ;;  %v7023_v28 = vsel %vm3707_vm7, %v3675_v38, %v3739_v63 }
 0x235   : > { %v7025_v49 = vsel %vm3706_vm8, %v3674_v59, %v3738_v3  ;;  %v3821_v14 = vadd.f32 %v3820_v6, %v3819_v2  ;;  %v3676_v50 = vadd.f32 %v5554_v5, %v6910_v23  ;;  %v5445_v55 = vpop.f32.mrb[24].mxu0  ;;  %v2015_v22 = vpop.f32.mrb[25].mxu1  ;;  %v3824_v48 = vsel %vm3782_vm2, %v7023_v28, 0.0 }
 0x236   : > { %v3822_v24 = vsel %vm3782_vm2, %v7025_v49, 0.0  ;;  %vm3709_vm9 = vcmp.ge.f32.partialorder %v3677_v8, 0.0  ;;  %v3741_v26 = vmul.f32 0.1, %v3677_v8  ;;  %v5555_v33 = vadd.f32 %v5445_v55, %v5221_v21  ;;  %v3576_v47 = vpop.f32.mrb[25].mxu0 }
 0x237   : > { %v3823_v9 = vadd.f32 %v3822_v24, %v3821_v14  ;;  %vm3708_vm10 = vcmp.ge.f32.partialorder %v3676_v50, 0.0  ;;  %v3740_v12 = vmul.f32 0.1, %v3676_v50  ;;  %v5556_v15 = vadd.f32 %v3576_v47, %v2015_v22 }
 0x238   : > { %v3679_v16 = vadd.f32 %v5555_v33, %v6910_v23  ;;  %v5224_v34 = vpop.f32.mrb[26].mxu1  ;;  %v7033_v35 = vsel %vm3709_vm9, %v3677_v8, %v3741_v26 }
 0x239   : > { %v7035_v36 = vsel %vm3708_vm10, %v3676_v50, %v3740_v12  ;;  %v3825_v41 = vadd.f32 %v3824_v48, %v3823_v9  ;;  %v3678_v54 = vadd.f32 %v5556_v15, %v6910_v23  ;;  %v5448_v40 = vpop.f32.mrb[26].mxu0  ;;  %v2025_v29 = vpop.f32.mrb[27].mxu1  ;;  %v3828_v31 = vsel %vm3782_vm2, %v7033_v35, 0.0 }
 0x23a   : > { %v3826_v17 = vsel %vm3782_vm2, %v7035_v36, 0.0  ;;  %vm3711_vm11 = vcmp.ge.f32.partialorder %v3679_v16, 0.0  ;;  %v3743_v27 = vmul.f32 0.1, %v3679_v16  ;;  %v5557_v18 = vadd.f32 %v5448_v40, %v5224_v34  ;;  %v3586_v37 = vpop.f32.mrb[27].mxu0 }
 0x23b   : > { %v3827_v45 = vadd.f32 %v3826_v17, %v3825_v41  ;;  %vm3710_vm12 = vcmp.ge.f32.partialorder %v3678_v54, 0.0  ;;  %v3742_v38 = vmul.f32 0.1, %v3678_v54  ;;  %v5558_v51 = vadd.f32 %v3586_v37, %v2025_v29 }
 0x23c   : > { %v3681_v59 = vadd.f32 %v5557_v18, %v6910_v23  ;;  %v5227_v60 = vpop.f32.mrb[28].mxu1  ;;  %v7043_v19 = vsel %vm3711_vm11, %v3679_v16, %v3743_v27 }
 0x23d   : > { %v7045_v62 = vsel %vm3710_vm12, %v3678_v54, %v3742_v38  ;;  %v3829_v63 = vadd.f32 %v3828_v31, %v3827_v45  ;;  %v3680_v20 = vadd.f32 %v5558_v51, %v6910_v23  ;;  %v5451_v1 = vpop.f32.mrb[28].mxu0  ;;  %v2035_v2 = vpop.f32.mrb[29].mxu1  ;;  %v3832_v55 = vsel %vm3782_vm2, %v7043_v19, 0.0 }
 0x23e   : > { %v3830_v3 = vsel %vm3782_vm2, %v7045_v62, 0.0  ;;  %vm3713_vm13 = vcmp.ge.f32.partialorder %v3681_v59, 0.0  ;;  %v3745_v5 = vmul.f32 0.1, %v3681_v59  ;;  %v5559_v6 = vadd.f32 %v5451_v1, %v5227_v60  ;;  %v3596_v8 = vpop.f32.mrb[29].mxu0 }
 0x23f   : > { %v3831_v21 = vadd.f32 %v3830_v3, %v3829_v63  ;;  %vm3712_vm14 = vcmp.ge.f32.partialorder %v3680_v20, 0.0  ;;  %v3744_v14 = vmul.f32 0.1, %v3680_v20  ;;  %v5560_v50 = vadd.f32 %v3596_v8, %v2035_v2 }
 0x240   : > { %v3683_v22 = vadd.f32 %v5559_v6, %v6910_v23  ;;  %v5230_v24 = vpop.f32.mrb[30].mxu1  ;;  %v3777_v26 = vsel %vm3713_vm13, %v3681_v59, %v3745_v5 }
 0x241   : > { %v3776_v33 = vsel %vm3712_vm14, %v3680_v20, %v3744_v14  ;;  %v3833_v47 = vadd.f32 %v3832_v55, %v3831_v21  ;;  %v3682_v9 = vadd.f32 %v5560_v50, %v6910_v23  ;;  %v5454_v12 = vpop.f32.mrb[30].mxu0  ;;  %v2045_v15 = vpop.f32.mrb[31].mxu1  ;;  %v3836_v17 = vsel %vm3782_vm2, %v3777_v26, 0.0 }
 0x242   : > { %v3834_v48 = vsel %vm3782_vm2, %v3776_v33, 0.0  ;;  %vm3715_vm15 = vcmp.ge.f32.partialorder %v3683_v22, 0.0  ;;  %v3747_v16 = vmul.f32 0.1, %v3683_v22  ;;  %v5561_v34 = vadd.f32 %v5454_v12, %v5230_v24  ;;  %v3606_v41 = vpop.f32.mrb[31].mxu0 }
 0x243   : > { %v3835_v54 = vadd.f32 %v3834_v48, %v3833_v47  ;;  %vm3714_vm0 = vcmp.ge.f32.partialorder %v3682_v9, 0.0  ;;  %v3746_v40 = vmul.f32 0.1, %v3682_v9  ;;  %v5562_v29 = vadd.f32 %v3606_v41, %v2045_v15 }
 0x244   : > { %v3685_v27 = vadd.f32 %v5561_v34, %v6910_v23  ;;  %v3779_v18 = vsel %vm3715_vm15, %v3683_v22, %v3747_v16 }
 0x245   : > { %v3778_v37 = vsel %vm3714_vm0, %v3682_v9, %v3746_v40  ;;  %v3837_v45 = vadd.f32 %v3836_v17, %v3835_v54  ;;  %v3684_v38 = vadd.f32 %v5562_v29, %v6910_v23  ;;  %v3840_v63 = vsel %vm3782_vm2, %v3779_v18, 0.0 }
 0x246   : > { %v3838_v51 = vsel %vm3782_vm2, %v3778_v37, 0.0  ;;  %vm3717_vm1 = vcmp.ge.f32.partialorder %v3685_v27, 0.0  ;;  %v3749_v31 = vmul.f32 0.1, %v3685_v27 }
 0x247   : > { %v3839_v59 = vadd.f32 %v3838_v51, %v3837_v45  ;;  %vm3716_vm3 = vcmp.ge.f32.partialorder %v3684_v38, 0.0  ;;  %v3748_v60 = vmul.f32 0.1, %v3684_v38 }
 0x248   : > { %v3781_v20 = vsel %vm3717_vm1, %v3685_v27, %v3749_v31 }
 0x249   : > { %v3780_v1 = vsel %vm3716_vm3, %v3684_v38, %v3748_v60  ;;  %v3841_v2 = vadd.f32 %v3840_v63, %v3839_v59  ;;  %v3844_v6 = vsel %vm3782_vm2, %v3781_v20, 0.0 }
 0x24a   : > { %v3842_v3 = vsel %vm3782_vm2, %v3780_v1, 0.0 }
 0x24b   : > { %v3843_v5 = vadd.f32 %v3842_v3, %v3841_v2 }
 0x24d   : > { %v3845_v8 = vadd.f32 %v3844_v6, %v3843_v5 }
 0x24f   : > { %v3846_v21 = vrot.slane %v3845_v8, 4 }
 0x251   : > { %v3847_v23 = vadd.f32 %v3846_v21, %v3845_v8 }
 0x253   : > { %v3848_v14 = vrot.slane %v3847_v23, 2 }
 0x255   : > { %v3849_v50 = vadd.f32 %v3848_v14, %v3847_v23 }
 0x257   : > { %v3850_v55 = vrot.slane %v3849_v50, 1 }
 0x259   : > { %v3851_v22 = vadd.f32 %v3850_v55, %v3849_v50 }
 0x25b   : > { %v3853_v24 = vmul.f32 0.00390625, %v3851_v22 }
 0x25d   : > { %v7063_v47 = vsub.f32 %v6973_v44, %v3853_v24  ;;  %v7066_v9 = vsub.f32 %v6971_v43, %v3853_v24  ;;  %v7069_v12 = vsub.f32 %v6985_v58, %v3853_v24  ;;  %v7072_v15 = vsub.f32 %v6983_v53, %v3853_v24 }
 0x25e   : > { %v7075_v48 = vsub.f32 %v6995_v13, %v3853_v24  ;;  %v7078_v16 = vsub.f32 %v6993_v30, %v3853_v24  ;;  %v7081_v34 = vsub.f32 %v7005_v32, %v3853_v24  ;;  %v7084_v44 = vsub.f32 %v7003_v25, %v3853_v24 }
 0x25f   : > { %v7087_v43 = vsub.f32 %v7015_v56, %v3853_v24  ;;  %v7090_v58 = vsub.f32 %v7013_v0, %v3853_v24  ;;  %v7093_v53 = vsub.f32 %v7025_v49, %v3853_v24  ;;  %v7096_v13 = vsub.f32 %v7023_v28, %v3853_v24 }
 0x260   : > { %v7099_v30 = vsub.f32 %v7035_v36, %v3853_v24  ;;  %v7102_v32 = vsub.f32 %v7033_v35, %v3853_v24  ;;  %v7105_v25 = vsub.f32 %v7045_v62, %v3853_v24  ;;  %v7108_v56 = vsub.f32 %v7043_v19, %v3853_v24 }
 0x261   : > { %v7110_v0 = vsub.f32 %v3776_v33, %v3853_v24  ;;  %v7112_v41 = vsub.f32 %v3777_v26, %v3853_v24  ;;  %v7114_v49 = vsub.f32 %v3778_v37, %v3853_v24  ;;  %v7116_v28 = vsub.f32 %v3779_v18, %v3853_v24 }
 0x262   : > { %v7118_v54 = vsub.f32 %v3780_v1, %v3853_v24  ;;  %v7120_v36 = vsub.f32 %v3781_v20, %v3853_v24  ;;  %v7123_v35 = vsub.f32 %v6919_v4, %v3853_v24  ;;  %v7126_v62 = vsub.f32 %v6914_v61, %v3853_v24 }
 0x263   : > { %v7129_v19 = vsub.f32 %v6927_v57, %v3853_v24  ;;  %v7132_v26 = vsub.f32 %v6925_v46, %v3853_v24  ;;  %v7139_v29 = vsub.f32 %v6937_v7, %v3853_v24  ;;  %v7144_v61 = vsub.f32 %v6935_v42, %v3853_v24 }
 0x264   : > { %v3886_v33 = vmul.f32 %v7123_v35, %v7123_v35  ;;  %v3887_v40 = vmul.f32 %v7126_v62, %v7126_v62  ;;  %v7151_v18 = vsub.f32 %v6949_v11, %v3853_v24  ;;  %v7157_v42 = vsub.f32 %v6947_v10, %v3853_v24 }
 0x265   : > { %v3888_v4 = vmul.f32 %v7129_v19, %v7129_v19  ;;  %v3889_v57 = vmul.f32 %v7132_v26, %v7132_v26  ;;  %v3890_v7 = vmul.f32 %v7139_v29, %v7139_v29  ;;  %v3891_v38 = vmul.f32 %v7144_v61, %v7144_v61 }
 0x266   : > { %v3918_v46 = vsel %vm3782_vm2, %v3886_v33, 0.0  ;;  %v3919_v17 = vsel %vm3782_vm2, %v3887_v40, 0.0  ;;  %v7163_v59 = vsub.f32 %v6961_v52, %v3853_v24  ;;  %v3892_v11 = vmul.f32 %v7151_v18, %v7151_v18 }
 0x267   : > { %v3920_v27 = vadd.f32 %v3919_v17, %v3918_v46  ;;  %v3921_v37 = vsel %vm3782_vm2, %v3888_v4, 0.0  ;;  %v3923_v51 = vsel %vm3782_vm2, %v3889_v57, 0.0  ;;  %v3925_v60 = vsel %vm3782_vm2, %v3890_v7, 0.0 }
 0x268   : > { %v7169_v20 = vsub.f32 %v6959_v39, %v3853_v24  ;;  %v3893_v10 = vmul.f32 %v7157_v42, %v7157_v42  ;;  %v3927_v1 = vsel %vm3782_vm2, %v3891_v38, 0.0  ;;  %v3894_v3 = vmul.f32 %v7163_v59, %v7163_v59 }
 0x269   : > { %v3922_v45 = vadd.f32 %v3921_v37, %v3920_v27  ;;  %v3929_v52 = vsel %vm3782_vm2, %v3892_v11, 0.0  ;;  %v3896_v39 = vmul.f32 %v7063_v47, %v7063_v47  ;;  %v3897_v50 = vmul.f32 %v7066_v9, %v7066_v9 }
 0x26a   : > { %v3895_v6 = vmul.f32 %v7169_v20, %v7169_v20  ;;  %v3931_v8 = vsel %vm3782_vm2, %v3893_v10, 0.0  ;;  %v3933_v23 = vsel %vm3782_vm2, %v3894_v3, 0.0  ;;  %v3898_v24 = vmul.f32 %v7069_v12, %v7069_v12 }
 0x26b   : > { %v3924_v31 = vadd.f32 %v3923_v51, %v3922_v45  ;;  %v3937_v33 = vsel %vm3782_vm2, %v3896_v39, 0.0  ;;  %v3899_v4 = vmul.f32 %v7072_v15, %v7072_v15  ;;  %v3939_v57 = vsel %vm3782_vm2, %v3897_v50, 0.0 }
 0x26c   : > { %v3935_v55 = vsel %vm3782_vm2, %v3895_v6, 0.0  ;;  %v3900_v17 = vmul.f32 %v7075_v48, %v7075_v48  ;;  %v3941_v27 = vsel %vm3782_vm2, %v3898_v24, 0.0  ;;  %v3901_v37 = vmul.f32 %v7078_v16, %v7078_v16 }
 0x26d   : > { %v3926_v63 = vadd.f32 %v3925_v60, %v3924_v31  ;;  %v3943_v45 = vsel %vm3782_vm2, %v3899_v4, 0.0  ;;  %v3902_v51 = vmul.f32 %v7081_v34, %v7081_v34  ;;  %v3903_v60 = vmul.f32 %v7084_v44, %v7084_v44 }
 0x26e   : > { %v3945_v31 = vsel %vm3782_vm2, %v3900_v17, 0.0 }
 0x26f   : > { %v3928_v2 = vadd.f32 %v3927_v1, %v3926_v63  ;;  %v3947_v63 = vsel %vm3782_vm2, %v3901_v37, 0.0  ;;  %v3904_v1 = vmul.f32 %v7087_v43, %v7087_v43 }
 0x271   : > { %v3930_v5 = vadd.f32 %v3929_v52, %v3928_v2  ;;  %v3949_v2 = vsel %vm3782_vm2, %v3902_v51, 0.0  ;;  %v3905_v52 = vmul.f32 %v7090_v58, %v7090_v58 }
 0x273   : > { %v3932_v21 = vadd.f32 %v3931_v8, %v3930_v5  ;;  %v3951_v5 = vsel %vm3782_vm2, %v3903_v60, 0.0  ;;  %v3906_v8 = vmul.f32 %v7093_v53, %v7093_v53 }
 0x275   : > { %v3934_v14 = vadd.f32 %v3933_v23, %v3932_v21  ;;  %v3953_v21 = vsel %vm3782_vm2, %v3904_v1, 0.0  ;;  %v3907_v23 = vmul.f32 %v7096_v13, %v7096_v13 }
 0x277   : > { %v3936_v22 = vadd.f32 %v3935_v55, %v3934_v14  ;;  %v3955_v14 = vsel %vm3782_vm2, %v3905_v52, 0.0  ;;  %v3908_v55 = vmul.f32 %v7099_v30, %v7099_v30 }
 0x279   : > { %v3938_v40 = vadd.f32 %v3937_v33, %v3936_v22  ;;  %v3957_v22 = vsel %vm3782_vm2, %v3906_v8, 0.0  ;;  %v3909_v33 = vmul.f32 %v7102_v32, %v7102_v32 }
 0x27b   : > { %v3940_v46 = vadd.f32 %v3939_v57, %v3938_v40  ;;  %v3959_v40 = vsel %vm3782_vm2, %v3907_v23, 0.0  ;;  %v3910_v57 = vmul.f32 %v7105_v25, %v7105_v25 }
 0x27d   : > { %v3942_v7 = vadd.f32 %v3941_v27, %v3940_v46  ;;  %v3961_v46 = vsel %vm3782_vm2, %v3908_v55, 0.0  ;;  %v3911_v27 = vmul.f32 %v7108_v56, %v7108_v56 }
 0x27f   : > { %v3944_v38 = vadd.f32 %v3943_v45, %v3942_v7  ;;  %v3963_v7 = vsel %vm3782_vm2, %v3909_v33, 0.0  ;;  %v3912_v45 = vmul.f32 %v7110_v0, %v7110_v0 }
 0x281   : > { %v3946_v11 = vadd.f32 %v3945_v31, %v3944_v38  ;;  %v3965_v38 = vsel %vm3782_vm2, %v3910_v57, 0.0  ;;  %v3913_v31 = vmul.f32 %v7112_v41, %v7112_v41 }
 0x283   : > { %v3948_v10 = vadd.f32 %v3947_v63, %v3946_v11  ;;  %v3967_v11 = vsel %vm3782_vm2, %v3911_v27, 0.0  ;;  %v3914_v63 = vmul.f32 %v7114_v49, %v7114_v49 }
 0x285   : > { %v3950_v3 = vadd.f32 %v3949_v2, %v3948_v10  ;;  %v3969_v10 = vsel %vm3782_vm2, %v3912_v45, 0.0  ;;  %v3915_v2 = vmul.f32 %v7116_v28, %v7116_v28 }
 0x287   : > { %v3952_v6 = vadd.f32 %v3951_v5, %v3950_v3  ;;  %v3971_v3 = vsel %vm3782_vm2, %v3913_v31, 0.0  ;;  %v3916_v5 = vmul.f32 %v7118_v54, %v7118_v54 }
 0x289   : > { %v3954_v39 = vadd.f32 %v3953_v21, %v3952_v6  ;;  %v3973_v6 = vsel %vm3782_vm2, %v3914_v63, 0.0  ;;  %v3917_v21 = vmul.f32 %v7120_v36, %v7120_v36 }
 0x28b   : > { %v3956_v50 = vadd.f32 %v3955_v14, %v3954_v39  ;;  %v3975_v39 = vsel %vm3782_vm2, %v3915_v2, 0.0  ;;  %v3977_v14 = vsel %vm3782_vm2, %v3916_v5, 0.0  ;;  %v3979_v55 = vsel %vm3782_vm2, %v3917_v21, 0.0 }
 0x28d   : > { %v3958_v24 = vadd.f32 %v3957_v22, %v3956_v50 }
 0x28f   : > { %v3960_v4 = vadd.f32 %v3959_v40, %v3958_v24 }
 0x291   : > { %v3962_v17 = vadd.f32 %v3961_v46, %v3960_v4 }
 0x293   : > { %v3964_v37 = vadd.f32 %v3963_v7, %v3962_v17 }
 0x295   : > { %v3966_v51 = vadd.f32 %v3965_v38, %v3964_v37 }
 0x297   : > { %v3968_v60 = vadd.f32 %v3967_v11, %v3966_v51 }
 0x299   : > { %v3970_v1 = vadd.f32 %v3969_v10, %v3968_v60 }
 0x29b   : > { %v3972_v52 = vadd.f32 %v3971_v3, %v3970_v1 }
 0x29d   : > { %v3974_v8 = vadd.f32 %v3973_v6, %v3972_v52 }
 0x29f   : > { %v3976_v23 = vadd.f32 %v3975_v39, %v3974_v8 }
 0x2a1   : > { %v3978_v50 = vadd.f32 %v3977_v14, %v3976_v23 }
 0x2a3   : > { %v3980_v22 = vadd.f32 %v3979_v55, %v3978_v50 }
 0x2a5   : > { %v3981_v24 = vrot.slane %v3980_v22, 4 }
 0x2a7   : > { %v3982_v33 = vadd.f32 %v3981_v24, %v3980_v22 }
 0x2a9   : > { %v3983_v40 = vrot.slane %v3982_v33, 2 }
 0x2ab   : > { %v3984_v4 = vadd.f32 %v3983_v40, %v3982_v33 }
 0x2ad   : > { %v3985_v57 = vrot.slane %v3984_v4, 1 }
 0x2af   : > { %v3986_v46 = vadd.f32 %v3985_v57, %v3984_v4 }
 0x2b1   : > { %v3987_v17 = vmul.f32 0.00390625, %v3986_v46 }
 0x2b3   : > { %v3988_v27 = vadd.f32 1e-05, %v3987_v17 }
 0x2b5   : > { %5819 = vrsqrt.f32 %v3988_v27 }
 0x2bf   : > { %v5820_v7 = vpop.eup %5819 }
 0x2c0   : > { %v3990_v37 = vmul.f32 %v5820_v7, %v7123_v35  ;;  %v3991_v45 = vmul.f32 %v5820_v7, %v7126_v62  ;;  %v3992_v38 = vmul.f32 %v5820_v7, %v7129_v19  ;;  %v3993_v51 = vmul.f32 %v5820_v7, %v7132_v26 }
 0x2c1   : > { %v3994_v31 = vmul.f32 %v5820_v7, %v7139_v29  ;;  %v3995_v11 = vmul.f32 %v5820_v7, %v7144_v61  ;;  %v3996_v60 = vmul.f32 %v5820_v7, %v7151_v18  ;;  %v3997_v63 = vmul.f32 %v5820_v7, %v7157_v42 }
 0x2c2   : > { %v3998_v35 = vmul.f32 %v5820_v7, %v7163_v59  ;;  %v3999_v62 = vmul.f32 %v5820_v7, %v7169_v20  ;;  %v4000_v19 = vmul.f32 %v5820_v7, %v7063_v47  ;;  %v4001_v26 = vmul.f32 %v5820_v7, %v7066_v9  ;;  %4022 = vst.msk [vmem:[%s7252_s25] sm:$0xff] %vm3782_vm2, %v3990_v37 }
 0x2c3   : > { %4023 = vst.msk [vmem:[%s7252_s25 + $0x8] sm:$0xff] %vm3782_vm2, %v3991_v45  ;;  %4024 = vst.msk [vmem:[%s7252_s25 + $0x10] sm:$0xff] %vm3782_vm2, %v3992_v38  ;;  %v4002_v29 = vmul.f32 %v5820_v7, %v7069_v12  ;;  %v4003_v61 = vmul.f32 %v5820_v7, %v7072_v15  ;;  %v4004_v47 = vmul.f32 %v5820_v7, %v7075_v48 }
 0x2c4   : > { %4025 = vst.msk [vmem:[%s7252_s25 + $0x18] sm:$0xff] %vm3782_vm2, %v3993_v51  ;;  %v4005_v9 = vmul.f32 %v5820_v7, %v7078_v16  ;;  %4026 = vst.msk [vmem:[%s7252_s25 + $0x20] sm:$0xff] %vm3782_vm2, %v3994_v31  ;;  %v4006_v12 = vmul.f32 %v5820_v7, %v7081_v34  ;;  %v4007_v15 = vmul.f32 %v5820_v7, %v7084_v44 }
 0x2c5   : > { %4027 = vst.msk [vmem:[%s7252_s25 + $0x28] sm:$0xff] %vm3782_vm2, %v3995_v11  ;;  %4028 = vst.msk [vmem:[%s7252_s25 + $0x30] sm:$0xff] %vm3782_vm2, %v3996_v60  ;;  %v4008_v48 = vmul.f32 %v5820_v7, %v7087_v43  ;;  %v4009_v16 = vmul.f32 %v5820_v7, %v7090_v58  ;;  %v4010_v34 = vmul.f32 %v5820_v7, %v7093_v53 }
 0x2c6   : > { %4029 = vst.msk [vmem:[%s7252_s25 + $0x38] sm:$0xff] %vm3782_vm2, %v3997_v63  ;;  %4030 = vst.msk [vmem:[%s7252_s25 + $0x40] sm:$0xff] %vm3782_vm2, %v3998_v35  ;;  %v4011_v44 = vmul.f32 %v5820_v7, %v7096_v13  ;;  %v4012_v43 = vmul.f32 %v5820_v7, %v7099_v30  ;;  %v4013_v58 = vmul.f32 %v5820_v7, %v7102_v32 }
 0x2c7   : > { %4031 = vst.msk [vmem:[%s7252_s25 + $0x48] sm:$0xff] %vm3782_vm2, %v3999_v62  ;;  %4032 = vst.msk [vmem:[%s7252_s25 + $0x50] sm:$0xff] %vm3782_vm2, %v4000_v19  ;;  %v4014_v53 = vmul.f32 %v5820_v7, %v7105_v25  ;;  %v4015_v13 = vmul.f32 %v5820_v7, %v7108_v56  ;;  %v4016_v30 = vmul.f32 %v5820_v7, %v7110_v0 }
 0x2c8   : > { %4033 = vst.msk [vmem:[%s7252_s25 + $0x58] sm:$0xff] %vm3782_vm2, %v4001_v26  ;;  %4034 = vst.msk [vmem:[%s7252_s25 + $0x60] sm:$0xff] %vm3782_vm2, %v4002_v29  ;;  %v4017_v32 = vmul.f32 %v5820_v7, %v7112_v41  ;;  %v4018_v25 = vmul.f32 %v5820_v7, %v7114_v49  ;;  %v4019_v56 = vmul.f32 %v5820_v7, %v7116_v28 }
 0x2c9   : > { %4035 = vst.msk [vmem:[%s7252_s25 + $0x68] sm:$0xff] %vm3782_vm2, %v4003_v61  ;;  %4036 = vst.msk [vmem:[%s7252_s25 + $0x70] sm:$0xff] %vm3782_vm2, %v4004_v47  ;;  %v4020_v0 = vmul.f32 %v5820_v7, %v7118_v54  ;;  %v4021_v41 = vmul.f32 %v5820_v7, %v7120_v36 }
 0x2ca   : > { %4037 = vst.msk [vmem:[%s7252_s25 + $0x78] sm:$0xff] %vm3782_vm2, %v4005_v9  ;;  %4038 = vst.msk [vmem:[%s7252_s25 + $0x80] sm:$0xff] %vm3782_vm2, %v4006_v12 }
 0x2cb   : > { %4039 = vst.msk [vmem:[%s7252_s25 + $0x88] sm:$0xff] %vm3782_vm2, %v4007_v15  ;;  %4040 = vst.msk [vmem:[%s7252_s25 + $0x90] sm:$0xff] %vm3782_vm2, %v4008_v48 }
 0x2cc   : > { %4041 = vst.msk [vmem:[%s7252_s25 + $0x98] sm:$0xff] %vm3782_vm2, %v4009_v16  ;;  %4042 = vst.msk [vmem:[%s7252_s25 + $0xa0] sm:$0xff] %vm3782_vm2, %v4010_v34 }
 0x2cd   : > { %4043 = vst.msk [vmem:[%s7252_s25 + $0xa8] sm:$0xff] %vm3782_vm2, %v4011_v44  ;;  %4044 = vst.msk [vmem:[%s7252_s25 + $0xb0] sm:$0xff] %vm3782_vm2, %v4012_v43 }
 0x2ce   : > { %4045 = vst.msk [vmem:[%s7252_s25 + $0xb8] sm:$0xff] %vm3782_vm2, %v4013_v58  ;;  %4046 = vst.msk [vmem:[%s7252_s25 + $0xc0] sm:$0xff] %vm3782_vm2, %v4014_v53 }
 0x2cf   : > { %4047 = vst.msk [vmem:[%s7252_s25 + $0xc8] sm:$0xff] %vm3782_vm2, %v4015_v13  ;;  %4048 = vst.msk [vmem:[%s7252_s25 + $0xd0] sm:$0xff] %vm3782_vm2, %v4016_v30 }
 0x2d0   : > { %4049 = vst.msk [vmem:[%s7252_s25 + $0xd8] sm:$0xff] %vm3782_vm2, %v4017_v32  ;;  %4050 = vst.msk [vmem:[%s7252_s25 + $0xe0] sm:$0xff] %vm3782_vm2, %v4018_v25 }
 0x2d1   : > { %4051 = vst.msk [vmem:[%s7252_s25 + $0xe8] sm:$0xff] %vm3782_vm2, %v4019_v56  ;;  %4052 = vst.msk [vmem:[%s7252_s25 + $0xf0] sm:$0xff] %vm3782_vm2, %v4020_v0 }
 0x2d2   : > { %4053 = vst.msk [vmem:[%s7252_s25 + $0xf8] sm:$0xff] %vm3782_vm2, %v4021_v41 }
 0x2d3 PF: > { %s15_s12 = sadd.s32 1, %s5891_s12  }
 0x2d4   : > { %p12_p5 = scmp.ge.s32.totalorder %s15_s12, 4  }
 0x2d6   :  { %14 = sbr.rel (!%p12_p5) target bundleno = 2 (0x2), region = 81 }
 0x2dd   :  { %4075 = vsyncpa [#allocation3], 1 }
 0x2de   :  { %4077 = vsyncpa [#allocation3 + $0x1], 1 }
 0x2df   :  { %4078 = vsyncpa [#allocation5], 1 }

// kernel: task_classifier_forward.8
= control target key start
LH: loop header
LB: loop body
LE: loop exit
PB: predicated region body
PF: predicated region fallthrough
CT: control target
= control target key end

     0   :  { %8 = vsyncpa [#allocation3], 0  ;;  %s6980_s0 = inlined_call_operand.vmem [shape: f32[2,18,18,64], index: 0, kind: input, shape index: {}]   ;;  %s6981_s1 = inlined_call_operand.hbm [shape: f32[9,64,128], index: 1, kind: input, shape index: {}]   ;;  %s6982_s2 = inlined_call_operand.hbm [shape: f32[1,128], index: 2, kind: input, shape index: {}]   ;;  %s6983_s3 = inlined_call_operand.vmem [shape: f32[2,256,128], index: 3, kind: output, shape index: {}]  }
   0x1   :  { %9 = vsyncpa [#allocation5], 0  ;;  %s5895_s12 = smov 0  }
   0x2 LB: > { %s5901_s13 = sadd.s32 4294967295, %s5869_s12   ;;  %p3929_p0 = scmp.ge.s32.totalorder %s5869_s12, 1  ;;  %s5869_s12 = sphi %s5895_s12, %s15_s12  }
   0x3   : > { %p114_p1 = scmp.lt.s32.totalorder %s5869_s12, 3  ;;  %s5871_s14 = smov [#allocation2]  }
   0x4   : > { %s126_s15 = sshll.u32 %s5871_s14, 4  ;;  %p6984_p3 = scmp.eq.s32.totalorder %s5901_s13, 0  ;;  %s127_s15 = int_to_ptr.vmem [resolvable:$true] %s126_s15 }
   0x5   : > { %p5905_p2 = pnand %p3929_p0, %p114_p1  ;;  %s5872_s17 = smov [#allocation4]  }
   0x6   : > { %s140_s18 = sshll.u32 %s5872_s17, 4  ;;  %s5799_s22 = scalar_lea.hbm %s6981_s1, 9216  ;;  %s5918_s18 = int_to_ptr.vmem [resolvable:$true] %s140_s18 }
   0x7   : > { %s7031_s16 = scalar_select %p5905_p2, 1, 0 }
   0x8   : > { %p5776_p4 = pneg %p5905_p2  ;;  %p5800_p6 = scmp.ne.s32.totalorder %s6981_s1, %s5799_s22 }
   0x9   : > { %p5806_p10 = scmp.lt.u32.totalorder %s5799_s22, %s6981_s1 }
   0xa   : > { %p5914_p5 = pnand %p6984_p3, %p5776_p4 }
   0xc   : > { %p5801_p7 = pneg %p5914_p5 }
   0xe   : > { %p5802_p8 = pnand %p5801_p7, %p5800_p6 }
  0x10   : > { %p5803_p9 = pneg %p5802_p8 }
  0x12   : > { %p5808_p11 = pnand %p5806_p10, %p5803_p9 }
  0x14   : > { %5811 = shalt.err (!%p5808_p11)
}
  0x15   : > { %s5812_s27 = scalar_lea.vmem %s127_s15, 9216  ;;  %p5820_p1 = scmp.lt.s32.totalorder %s127_s15, %s127_s15 }
  0x16   : > { %p5813_p12 = scmp.ne.s32.totalorder %s127_s15, %s5812_s27  ;;  %p5821_p4 = scmp.lt.s32.totalorder %s5812_s27, %s5812_s27 }
  0x18   : > { %p5815_p13 = pnand %p5813_p12, %p5801_p7  ;;  %p5822_p3 = por %p5821_p4, %p5820_p1 }
  0x1a   : > { %p5816_p0 = pneg %p5815_p13 }
  0x1c   : > { %p5823_p2 = pnand %p5822_p3, %p5816_p0 }
  0x1e   : > { %5826 = shalt.err (!%p5823_p2)
}
  0x1f   : > { %s5873_s28 = smov 128   ;;  %s5874_s29 = smov 8  }
  0x20   : > { %5779 = dma.hbm_to_vmem [thread:$0]  (!%p5914_p5), %s6981_s1, 9216, %s127_s15, [#allocation3], %s5873_s28, %s5873_s28, %s5874_s29  }
  0x21   : > { %s5827_s7 = scalar_lea.hbm %s6982_s2, 16 }
  0x22   : > { %p5828_p6 = scmp.ne.s32.totalorder %s6982_s2, %s5827_s7  ;;  %p5834_p8 = scmp.lt.u32.totalorder %s5827_s7, %s6982_s2 }
  0x24   : > { %p5830_p2 = pnand %p5828_p6, %p5801_p7 }
  0x26   : > { %p5831_p3 = pneg %p5830_p2 }
  0x28   : > { %p5836_p9 = pnand %p5834_p8, %p5831_p3 }
  0x2a   : > { %5839 = shalt.err (!%p5836_p9)
}
  0x2b   : > { %s5840_s14 = scalar_lea.vmem %s5918_s18, 16  ;;  %s5847_s15 = scalar_lea.vmem %s5918_s18, 32 }
  0x2c   : > { %p5841_p10 = scmp.ne.s32.totalorder %s5918_s18, %s5840_s14  ;;  %p5848_p13 = scmp.lt.s32.totalorder %s5918_s18, %s5918_s18 }
  0x2d   : > { %p5849_p0 = scmp.lt.s32.totalorder %s5847_s15, %s5840_s14 }
  0x2e   : > { %p5843_p11 = pnand %p5841_p10, %p5801_p7 }
  0x2f   : > { %p5850_p1 = por %p5849_p0, %p5848_p13 }
  0x30   : > { %p5844_p12 = pneg %p5843_p11 }
  0x32   : > { %p5851_p4 = pnand %p5850_p1, %p5844_p12 }
  0x34   : > { %5854 = shalt.err (!%p5851_p4)
}
  0x35   : > { %5782 = dma.hbm_to_vmem [thread:$0]  (!%p5914_p5), %s6982_s2, 16, %s5918_s18, [#allocation5]  }
  0x36   : > { %p7033_p6 = scmp.ne.s32.totalorder %s7031_s16, 0 }
  0x38   : > { %161 = sbr.rel (%p7033_p6) target bundleno = 595 (0x253), region = 32 }
  0x3f   : > { %p7034_p7 = scmp.eq.s32.totalorder %s5901_s13, 0 }
  0x41   : > { %5860 = dma.done.wait (%p7034_p7), [#allocation3], 9216   ;;  %p7035_p2 = pmov %p7034_p7 }
  0x43   : > { %5862 = vsyncadd (%p7035_p2), [#allocation3], 4294958080  ;;  %p7036_p3 = pmov %p7035_p2 }
  0x44   : > { %p7037_p8 = pmov %p7035_p2 }
  0x45   : > { %5864 = dma.done.wait (%p7036_p3), [#allocation5], 16  }
  0x46   : > { %5866 = vsyncadd (%p7037_p8), [#allocation5], 4294967280  ;;  %p189_p9 = scmp.lt.s32.totalorder %s5901_s13, 1  ;;  %v272_v0 = vld [vmem:[#allocation2 + $0x40] sm:$0xff]  ;;  %v273_v1 = vld [vmem:[#allocation2 + $0x48] sm:$0xff]  ;;  %vm280_vm0 = vcmask 523264  }
  0x47   : > { %v1745_v2 = vld [vmem:[#allocation2 + $0x100] sm:$0xff]  ;;  %v5359_v3 = vpack.c.bf16 %v273_v1, %v272_v0  ;;  %v1746_v4 = vld [vmem:[#allocation2 + $0x108] sm:$0xff]  ;;  %v274_v5 = vld [vmem:[#allocation2 + $0x50] sm:$0xff] }
  0x48   : > { %s7117_s13 = smov (!%p189_p9, %s5901_s13), 1  ;;  %v275_v6 = vld [vmem:[#allocation2 + $0x58] sm:$0xff]  ;;  %v5983_v7 = vpack.c.bf16 %v1746_v4, %v1745_v2  ;;  %v1747_v9 = vld [vmem:[#allocation2 + $0x110] sm:$0xff]  ;;  %v276_v11 = vld [vmem:[#allocation2 + $0x60] sm:$0xff] }
  0x49   : > { %s5767_s16 = smul.u32 432, %s7117_s13  ;;  %v5363_v8 = vpack.c.bf16 %v275_v6, %v274_v5  ;;  %v1748_v10 = vld [vmem:[#allocation2 + $0x118] sm:$0xff]  ;;  %5360 = vmatprep.subr.bf16.mxu1 %v5359_v3  ;;  %v277_v13 = vld [vmem:[#allocation2 + $0x68] sm:$0xff]  ;;  %v1749_v14 = vld [vmem:[#allocation2 + $0x120] sm:$0xff]  ;;  %s4422_s22 = sshll.u32 %s7117_s13, 8 }
  0x4a   : > { %v5990_v12 = vpack.c.bf16 %v1748_v10, %v1747_v9  ;;  %v1750_v15 = vld [vmem:[#allocation2 + $0x128] sm:$0xff]  ;;  %5424 = vmatprep.subr.bf16.mxu0 %v5983_v7  ;;  %5362 = vmatpush3.bf16.msra.mxu1 %v5359_v3  ;;  %v5367_v16 = vpack.c.bf16 %v277_v13, %v276_v11  ;;  %v278_v20 = vld [vmem:[#allocation2 + $0x70] sm:$0xff]  ;;  %v279_v21 = vld [vmem:[#allocation2 + $0x78] sm:$0xff]  ;;  %s6906_s25 = scalar_lea.vmem %s6983_s3, %s4422_s22 }
  0x4b   : > { %s5988_s21 = scalar_lea.vmem %s6980_s0, %s5767_s16  ;;  %5426 = vmatpush3.bf16.msra.mxu0 %v5983_v7  ;;  %5364 = vmatprep.subr.bf16.mxu1 %v5363_v8  ;;  %v5997_v19 = vpack.c.bf16 %v1750_v15, %v1749_v14  ;;  %v1751_v22 = vld [vmem:[#allocation2 + $0x130] sm:$0xff]  ;;  %v1752_v23 = vld [vmem:[#allocation2 + $0x138] sm:$0xff]  ;;  %v5371_v24 = vpack.c.bf16 %v279_v21, %v278_v20  ;;  %v231_v26 = vld [vmem:[#allocation2] sm:$0xff] }
  0x4c   : > { %7038 = vst [vmem:[#allocation8_spill] sm:$0xff] %v5990_v12  ;;  %v239_v17 = vld [vmem:[%s5988_s21 + $0x1] sm:$0xff]  ;;  %v4099_v18 = vld [vmem:[%s5988_s21 + $0x19] sm:$0xff]  ;;  %5428 = vmatprep.subr.bf16.mxu0 %v5990_v12  ;;  %v6003_v25 = vpack.c.bf16 %v1752_v23, %v1751_v22  ;;  %v2141_v32 = vld [vmem:[#allocation2 + $0x150] sm:$0xff] }
  0x4d   : > { %7039 = vst [vmem:[#allocation9_spill] sm:$0xff] %v5997_v19  ;;  %4799 = vmatprep.mubr.msk.f32.mxu1 %vm280_vm0, %v239_v17  ;;  %5055 = vmatprep.mubr.msk.f32.mxu0 %vm280_vm0, %v4099_v18  ;;  %v232_v27 = vld [vmem:[#allocation2 + $0x8] sm:$0xff]  ;;  %v2139_v28 = vld [vmem:[#allocation2 + $0x140] sm:$0xff]  ;;  %v2142_v33 = vld [vmem:[#allocation2 + $0x158] sm:$0xff] }
  0x4e   : > { %5366 = vmatpush3.bf16.msra.mxu1 %v5363_v8  ;;  %7040 = vst [vmem:[#allocation10_spill] sm:$0xff] %v6003_v25  ;;  %v2140_v29 = vld [vmem:[#allocation2 + $0x148] sm:$0xff]  ;;  %v5375_v30 = vpack.c.bf16 %v232_v27, %v231_v26  ;;  %v233_v35 = vld [vmem:[#allocation2 + $0x10] sm:$0xff]  ;;  %v234_v36 = vld [vmem:[#allocation2 + $0x18] sm:$0xff]  ;;  %v5443_v38 = vpack.c.bf16 %v2142_v33, %v2141_v32 }
  0x4f   : > { %5430 = vmatpush3.bf16.msra.mxu0 %v5990_v12  ;;  %5368 = vmatprep.subr.bf16.mxu1 %v5367_v16  ;;  %v5439_v31 = vpack.c.bf16 %v2140_v29, %v2139_v28  ;;  %v240_v34 = vld [vmem:[%s5988_s21 + $0x9] sm:$0xff]  ;;  %v4100_v37 = vld [vmem:[%s5988_s21 + $0x21] sm:$0xff]  ;;  %v6012_v39 = vld [vmem:[%s5988_s21 + $0x31] sm:$0xff]  ;;  %v5379_v40 = vpack.c.bf16 %v234_v36, %v233_v35 }
  0x50   : > { %5432 = vmatprep.subr.bf16.mxu0 %v5997_v19  ;;  %v2143_v41 = vld [vmem:[#allocation2 + $0x160] sm:$0xff]  ;;  %v2144_v42 = vld [vmem:[#allocation2 + $0x168] sm:$0xff]  ;;  %v2145_v48 = vld [vmem:[#allocation2 + $0x170] sm:$0xff] }
  0x51   : > { %v235_v43 = vld [vmem:[#allocation2 + $0x20] sm:$0xff]  ;;  %v236_v44 = vld [vmem:[#allocation2 + $0x28] sm:$0xff]  ;;  %v5447_v47 = vpack.c.bf16 %v2144_v42, %v2143_v41  ;;  %v2146_v49 = vld [vmem:[#allocation2 + $0x178] sm:$0xff] }
  0x52   : > { %5370 = vmatpush3.bf16.msra.mxu1 %v5367_v16  ;;  %v6017_v45 = vld [vmem:[%s5988_s21 + $0x39] sm:$0xff]  ;;  %v6022_v46 = vld [vmem:[%s5988_s21 + $0x49] sm:$0xff]  ;;  %v5383_v50 = vpack.c.bf16 %v236_v44, %v235_v43  ;;  %v6032_v53 = vld [vmem:[%s5988_s21 + $0x51] sm:$0xff]  ;;  %v5451_v55 = vpack.c.bf16 %v2146_v49, %v2145_v48 }
  0x53   : > { %5434 = vmatpush3.bf16.msra.mxu0 %v5997_v19  ;;  %5372 = vmatprep.subr.bf16.mxu1 %v5371_v24  ;;  %v237_v51 = vld [vmem:[#allocation2 + $0x30] sm:$0xff]  ;;  %v238_v52 = vld [vmem:[#allocation2 + $0x38] sm:$0xff]  ;;  %v6035_v54 = vld [vmem:[%s5988_s21 + $0x61] sm:$0xff] }
  0x54   : > { %5436 = vmatprep.subr.bf16.mxu0 %v6003_v25  ;;  %v2534_v56 = vld [vmem:[#allocation2 + $0x180] sm:$0xff]  ;;  %v2535_v57 = vld [vmem:[#allocation2 + $0x188] sm:$0xff]  ;;  %v5387_v58 = vpack.c.bf16 %v238_v52, %v237_v51  ;;  %v6065_v2 = vld [vmem:[%s5988_s21 + $0x91] sm:$0xff] }
  0x55   : > { %v6046_v59 = vld [vmem:[%s5988_s21 + $0x69] sm:$0xff]  ;;  %v956_v60 = vld [vmem:[#allocation2 + $0x80] sm:$0xff]  ;;  %v5455_v63 = vpack.c.bf16 %v2535_v57, %v2534_v56  ;;  %v6091_v5 = vld [vmem:[%s5988_s21 + $0xb1] sm:$0xff] }
  0x56   : > { %5374 = vmatpush3.bf16.msra.mxu1 %v5371_v24  ;;  %v957_v61 = vld [vmem:[#allocation2 + $0x88] sm:$0xff]  ;;  %v6049_v62 = vld [vmem:[%s5988_s21 + $0x79] sm:$0xff]  ;;  %v2536_v10 = vld [vmem:[#allocation2 + $0x190] sm:$0xff] }
  0x57   : > { %5438 = vmatpush3.bf16.msra.mxu0 %v6003_v25  ;;  %5376 = vmatprep.subr.bf16.mxu1 %v5375_v30  ;;  %v6053_v0 = vpack.c.bf16 %v957_v61, %v956_v60  ;;  %v6062_v1 = vld [vmem:[%s5988_s21 + $0x81] sm:$0xff]  ;;  %v6077_v3 = vld [vmem:[%s5988_s21 + $0x99] sm:$0xff]  ;;  %v6080_v4 = vld [vmem:[%s5988_s21 + $0xa9] sm:$0xff] }
  0x58   : > { %5440 = vmatprep.subr.bf16.mxu0 %v5439_v31  ;;  %v6094_v6 = vld [vmem:[%s5988_s21 + $0xc1] sm:$0xff]  ;;  %v6105_v8 = vld [vmem:[%s5988_s21 + $0xc9] sm:$0xff]  ;;  %v2537_v11 = vld [vmem:[#allocation2 + $0x198] sm:$0xff] }
  0x59   : > { %4800 = vmatmul.mubr.msk.f32.vlgmr.msra.gmra.mrb[0].mxu1 %vm280_vm0, %v240_v34  ;;  %7041 = vst [vmem:[#allocation11_spill] sm:$0xff] %v6094_v6  ;;  %7042 = vst [vmem:[#allocation12_spill] sm:$0xff] %v6105_v8  ;;  %v6108_v9 = vld [vmem:[%s5988_s21 + $0x1a] sm:$0xff]  ;;  %v6119_v13 = vld [vmem:[%s5988_s21 + $0x22] sm:$0xff]  ;;  %v5459_v16 = vpack.c.bf16 %v2537_v11, %v2536_v10 }
  0x5a   : > { %5056 = vmatmul.mubr.msk.f32.vlgmr.msra.gmra.mrb[0].mxu0 %vm280_vm0, %v4100_v37  ;;  %5378 = vmatpush3.bf16.msra.mxu1 %v5375_v30  ;;  %v6122_v14 = vld [vmem:[%s5988_s21 + $0xd9] sm:$0xff]  ;;  %v6134_v20 = vld [vmem:[%s5988_s21 + $0xe1] sm:$0xff]  ;;  %v6142_v22 = vld [vmem:[%s5988_s21 + $0xf1] sm:$0xff] }
  0x5b   : > { %5442 = vmatpush3.bf16.msra.mxu0 %v5439_v31  ;;  %4802 = vmatprep.mubr.msk.f32.mxu1 %vm280_vm0, %v4099_v18  ;;  %7043 = vst [vmem:[#allocation13_spill] sm:$0xff] %v6122_v14  ;;  %v6125_v15 = vld [vmem:[%s5988_s21 + $0x32] sm:$0xff]  ;;  %v2538_v17 = vld [vmem:[#allocation2 + $0x1a0] sm:$0xff]  ;;  %v2539_v18 = vld [vmem:[#allocation2 + $0x1a8] sm:$0xff] }
  0x5c   : > { %5058 = vmatprep.mubr.msk.f32.mxu0 %vm280_vm0, %v6012_v39  ;;  %5444 = vmatprep.subr.bf16.mxu0 %v5443_v38  ;;  %7044 = vst [vmem:[#allocation14_spill] sm:$0xff] %v6134_v20  ;;  %v6139_v21 = vld [vmem:[%s5988_s21 + $0x3a] sm:$0xff]  ;;  %7045 = vst [vmem:[#allocation15_spill] sm:$0xff] %v6142_v22  ;;  %v6145_v23 = vld [vmem:[%s5988_s21 + $0x4a] sm:$0xff]  ;;  %v5463_v24 = vpack.c.bf16 %v2539_v18, %v2538_v17 }
  0x5d   : > { %4803 = vmatmul.mubr.msk.f32.gmra.mrb[2].mxu1 %vm280_vm0, %v4100_v37  ;;  %5380 = vmatprep.subr.bf16.mxu1 %v5379_v40  ;;  %v2540_v26 = vld [vmem:[#allocation2 + $0x1b0] sm:$0xff]  ;;  %v2541_v27 = vld [vmem:[#allocation2 + $0x1b8] sm:$0xff]  ;;  %v6165_v31 = vld [vmem:[%s5988_s21 + $0x62] sm:$0xff] }
  0x5e   : > { %5059 = vmatmul.mubr.msk.f32.gmra.mrb[2].mxu0 %vm280_vm0, %v6017_v45  ;;  %4805 = vmatprep.mubr.msk.f32.mxu1 %vm280_vm0, %v6012_v39  ;;  %v6154_v28 = vld [vmem:[%s5988_s21 + $0xf9] sm:$0xff]  ;;  %v6162_v30 = vld [vmem:[%s5988_s21 + $0x109] sm:$0xff]  ;;  %v5467_v32 = vpack.c.bf16 %v2541_v27, %v2540_v26  ;;  %v6174_v35 = vld [vmem:[%s5988_s21 + $0x111] sm:$0xff] }
  0x5f   : > { %5061 = vmatprep.mubr.msk.f32.mxu0 %vm280_vm0, %v6022_v46  ;;  %5446 = vmatpush3.bf16.msra.mxu0 %v5443_v38  ;;  %7046 = vst [vmem:[#allocation16_spill] sm:$0xff] %v6154_v28  ;;  %v6159_v29 = vld [vmem:[%s5988_s21 + $0x52] sm:$0xff]  ;;  %7047 = vst [vmem:[#allocation17_spill] sm:$0xff] %v6162_v30  ;;  %v2928_v33 = vld [vmem:[#allocation2 + $0x1c0] sm:$0xff] }
  0x60   : > { %5448 = vmatprep.subr.bf16.mxu0 %v5447_v47  ;;  %5382 = vmatpush3.bf16.msra.mxu1 %v5379_v40  ;;  %v2929_v34 = vld [vmem:[#allocation2 + $0x1c8] sm:$0xff]  ;;  %7048 = vst [vmem:[#allocation18_spill] sm:$0xff] %v6174_v35  ;;  %v6185_v38 = vld [vmem:[%s5988_s21 + $0x7a] sm:$0xff]  ;;  %v6207_v44 = vld [vmem:[%s5988_s21 + $0x92] sm:$0xff] }
  0x61   : > { %4806 = vmatmul.mubr.msk.f32.gmra.mrb[4].mxu1 %vm280_vm0, %v6017_v45  ;;  %5384 = vmatprep.subr.bf16.mxu1 %v5383_v50  ;;  %v6179_v36 = vld [vmem:[%s5988_s21 + $0x6a] sm:$0xff]  ;;  %v6182_v37 = vld [vmem:[%s5988_s21 + $0x121] sm:$0xff]  ;;  %v6187_v40 = vpack.c.bf16 %v2929_v34, %v2928_v33  ;;  %v6204_v43 = vld [vmem:[%s5988_s21 + $0x139] sm:$0xff] }
  0x62   : > { %5062 = vmatmul.mubr.msk.f32.gmra.mrb[4].mxu0 %vm280_vm0, %v6032_v53  ;;  %4808 = vmatprep.mubr.msk.f32.mxu1 %vm280_vm0, %v6022_v46  ;;  %7049 = vst [vmem:[#allocation19_spill] sm:$0xff] %v6182_v37  ;;  %v6196_v41 = vld [vmem:[%s5988_s21 + $0x129] sm:$0xff]  ;;  %7051 = vst [vmem:[#allocation21_spill] sm:$0xff] %v6204_v43  ;;  %v6222_v48 = vld [vmem:[%s5988_s21 + $0x9a] sm:$0xff] }
  0x63   : > { %5064 = vmatprep.mubr.msk.f32.mxu0 %vm280_vm0, %v6035_v54  ;;  %5450 = vmatpush3.bf16.msra.mxu0 %v5447_v47  ;;  %7050 = vst [vmem:[#allocation20_spill] sm:$0xff] %v6196_v41  ;;  %v6201_v42 = vld [vmem:[%s5988_s21 + $0x82] sm:$0xff]  ;;  %v6225_v49 = vld [vmem:[%s5988_s21 + $0x151] sm:$0xff]  ;;  %v6237_v51 = vld [vmem:[%s5988_s21 + $0x159] sm:$0xff] }
  0x64   : > { %5452 = vmatprep.subr.bf16.mxu0 %v5451_v55  ;;  %5386 = vmatpush3.bf16.msra.mxu1 %v5383_v50  ;;  %v6217_v47 = vld [vmem:[%s5988_s21 + $0x141] sm:$0xff]  ;;  %7053 = vst [vmem:[#allocation23_spill] sm:$0xff] %v6225_v49  ;;  %v6228_v50 = vld [vmem:[%s5988_s21 + $0xaa] sm:$0xff]  ;;  %7054 = vst [vmem:[#allocation24_spill] sm:$0xff] %v6237_v51 }
  0x65   : > { %4809 = vmatmul.mubr.msk.f32.gmra.mrb[6].mxu1 %vm280_vm0, %v6032_v53  ;;  %5388 = vmatprep.subr.bf16.mxu1 %v5387_v58  ;;  %7052 = vst [vmem:[#allocation22_spill] sm:$0xff] %v6217_v47  ;;  %v6242_v52 = vld [vmem:[%s5988_s21 + $0xb2] sm:$0xff]  ;;  %v6248_v56 = vld [vmem:[%s5988_s21 + $0xc2] sm:$0xff]  ;;  %v6266_v61 = vld [vmem:[%s5988_s21 + $0xda] sm:$0xff] }
  0x66   : > { %5065 = vmatmul.mubr.msk.f32.gmra.mrb[6].mxu0 %vm280_vm0, %v6046_v59  ;;  %4811 = vmatprep.mubr.msk.f32.mxu1 %vm280_vm0, %v6035_v54  ;;  %v6257_v57 = vld [vmem:[%s5988_s21 + $0x171] sm:$0xff]  ;;  %v199_v60 = vld [vmem:[%s5988_s21] sm:$0xff]  ;;  %v200_v11 = vld [vmem:[%s5988_s21 + $0x8] sm:$0xff] }
  0x67   : > { %5067 = vmatprep.mubr.msk.f32.mxu0 %vm280_vm0, %v6049_v62  ;;  %5454 = vmatpush3.bf16.msra.mxu0 %v5451_v55  ;;  %v6245_v55 = vld [vmem:[%s5988_s21 + $0x169] sm:$0xff]  ;;  %7056 = vst [vmem:[#allocation26_spill] sm:$0xff] %v6257_v57  ;;  %v959_v10 = vld [vmem:[#allocation2 + $0x98] sm:$0xff]  ;;  %v960_v26 = vld [vmem:[#allocation2 + $0xa0] sm:$0xff] }
  0x68   : > { %5456 = vmatprep.subr.bf16.mxu0 %v5455_v63  ;;  %5390 = vmatpush3.bf16.msra.mxu1 %v5387_v58  ;;  %7055 = vst [vmem:[#allocation25_spill] sm:$0xff] %v6245_v55  ;;  %v6262_v58 = vld [vmem:[%s5988_s21 + $0xca] sm:$0xff]  ;;  %v6280_v17 = vld [vmem:[%s5988_s21 + $0x18] sm:$0xff] }
  0x69   : > { %4812 = vmatmul.mubr.msk.f32.gmra.mrb[8].mxu1 %vm280_vm0, %v6046_v59  ;;  %5392 = vmatprep.subr.bf16.mxu1 %v6053_v0  ;;  %7057 = vst [vmem:[#allocation27_spill] sm:$0xff] %v6280_v17  ;;  %v6283_v18 = vld [vmem:[%s5988_s21 + $0xf2] sm:$0xff]  ;;  %v961_v27 = vld [vmem:[#allocation2 + $0xa8] sm:$0xff]  ;;  %v6297_v33 = vld [vmem:[%s5988_s21 + $0xfa] sm:$0xff] }
  0x6a   : > { %5068 = vmatmul.mubr.msk.f32.gmra.mrb[8].mxu0 %vm280_vm0, %v6062_v1  ;;  %4814 = vmatprep.mubr.msk.f32.mxu1 %vm280_vm0, %v6049_v62  ;;  %v6300_v34 = vld [vmem:[%s5988_s21 + $0x30] sm:$0xff] }
  0x6b   : > { %5070 = vmatprep.mubr.msk.f32.mxu0 %vm280_vm0, %v6065_v2  ;;  %7059 = vst [vmem:[#allocation29_spill] sm:$0xff] %v6300_v34  ;;  %v6383_v19 = vld [vmem:[%s5988_s21 + $0x90] sm:$0xff] }
  0x6c   : > { %7066 = vst [vmem:[#allocation36_spill] sm:$0xff] %v6383_v19  ;;  %v6400_v12 = vld [vmem:[%s5988_s21 + $0x172] sm:$0xff] }
  0x6d   : > { %4815 = vmatmul.mubr.msk.f32.gmra.mrb[10].mxu1 %vm280_vm0, %v6062_v1  ;;  %7069 = vst [vmem:[#allocation39_spill] sm:$0xff] %v6400_v12 }
  0x6e   : > { %5071 = vmatmul.mubr.msk.f32.gmra.mrb[10].mxu0 %vm280_vm0, %v6077_v3  ;;  %4817 = vmatprep.mubr.msk.f32.mxu1 %vm280_vm0, %v6065_v2 }
  0x6f   : > { %5073 = vmatprep.mubr.msk.f32.mxu0 %vm280_vm0, %v6080_v4 }
  0x71   : > { %4818 = vmatmul.mubr.msk.f32.gmra.mrb[12].mxu1 %vm280_vm0, %v6077_v3 }
  0x72   : > { %5074 = vmatmul.mubr.msk.f32.gmra.mrb[12].mxu0 %vm280_vm0, %v6091_v5  ;;  %4820 = vmatprep.mubr.msk.f32.mxu1 %vm280_vm0, %v6080_v4 }
  0x73   : > { %5076 = vmatprep.mubr.msk.f32.mxu0 %vm280_vm0, %v6094_v6 }
  0x75   : > { %4821 = vmatmul.mubr.msk.f32.gmra.mrb[14].mxu1 %vm280_vm0, %v6091_v5 }
  0x76   : > { %5077 = vmatmul.mubr.msk.f32.gmra.mrb[14].mxu0 %vm280_vm0, %v6105_v8  ;;  %4823 = vmatprep.mubr.msk.f32.mxu1 %vm280_vm0, %v6094_v6  ;;  %v6475_v6 = vld [vmem:[%s5988_s21 + $0x110] sm:$0xff] }
  0x77   : > { %5119 = vmatprep.mubr.msk.f32.mxu0 %vm280_vm0, %v6108_v9 }
  0x79   : > { %4824 = vmatmul.mubr.msk.f32.gmra.mrb[16].mxu1 %vm280_vm0, %v6105_v8  ;;  %v2932_v8 = vld [vmem:[#allocation2 + $0x1e0] sm:$0xff] }
  0x7a   : > { %5120 = vmatmul.mubr.msk.f32.vlgmr.msra.gmra.mrb[0].mxu0 %vm280_vm0, %v6119_v13  ;;  %4826 = vmatprep.mubr.msk.f32.mxu1 %vm280_vm0, %v6122_v14  ;;  %v2931_v14 = vld [vmem:[#allocation2 + $0x1d8] sm:$0xff] }
  0x7b   : > { %5458 = vmatpush3.bf16.msra.mxu0 %v5455_v63  ;;  %5122 = vmatprep.mubr.msk.f32.mxu0 %vm280_vm0, %v6125_v15  ;;  %v958_v63 = vld [vmem:[#allocation2 + $0x90] sm:$0xff] }
  0x7c   : > { %5460 = vmatprep.subr.bf16.mxu0 %v5459_v16 }
  0x7d   : > { %4827 = vmatmul.mubr.msk.f32.gmra.mrb[18].mxu1 %vm280_vm0, %v6134_v20  ;;  %v2930_v20 = vld [vmem:[#allocation2 + $0x1d0] sm:$0xff] }
  0x7e   : > { %5123 = vmatmul.mubr.msk.f32.gmra.mrb[2].mxu0 %vm280_vm0, %v6139_v21  ;;  %4829 = vmatprep.mubr.msk.f32.mxu1 %vm280_vm0, %v6142_v22  ;;  %v6420_v22 = vld [vmem:[%s5988_s21 + $0x18a] sm:$0xff] }
  0x7f   : > { %5125 = vmatprep.mubr.msk.f32.mxu0 %vm280_vm0, %v6145_v23  ;;  %5462 = vmatpush3.bf16.msra.mxu0 %v5459_v16  ;;  %v6277_v16 = vld [vmem:[%s5988_s21 + $0xe2] sm:$0xff]  ;;  %7073 = vst [vmem:[#allocation43_spill] sm:$0xff] %v6420_v22 }
  0x80   : > { %5464 = vmatprep.subr.bf16.mxu0 %v5463_v24 }
  0x81   : > { %4830 = vmatmul.mubr.msk.f32.gmra.mrb[20].mxu1 %vm280_vm0, %v6154_v28  ;;  %v6406_v28 = vld [vmem:[%s5988_s21 + $0x182] sm:$0xff] }
  0x82   : > { %5126 = vmatmul.mubr.msk.f32.gmra.mrb[4].mxu0 %vm280_vm0, %v6159_v29  ;;  %4832 = vmatprep.mubr.msk.f32.mxu1 %vm280_vm0, %v6162_v30  ;;  %v6403_v30 = vld [vmem:[%s5988_s21 + $0xa8] sm:$0xff]  ;;  %7071 = vst [vmem:[#allocation41_spill] sm:$0xff] %v6406_v28 }
  0x83   : > { %5128 = vmatprep.mubr.msk.f32.mxu0 %vm280_vm0, %v6165_v31  ;;  %5466 = vmatpush3.bf16.msra.mxu0 %v5463_v24  ;;  %v5395_v24 = vpack.c.bf16 %v959_v10, %v958_v63  ;;  %v5399_v63 = vpack.c.bf16 %v961_v27, %v960_v26  ;;  %v963_v10 = vld [vmem:[#allocation2 + $0xb8] sm:$0xff]  ;;  %v6320_v27 = vld [vmem:[%s5988_s21 + $0x48] sm:$0xff]  ;;  %7070 = vst [vmem:[#allocation40_spill] sm:$0xff] %v6403_v30 }
  0x84   : > { %5468 = vmatprep.subr.bf16.mxu0 %v5467_v32  ;;  %v6317_v26 = vld [vmem:[%s5988_s21 + $0x112] sm:$0xff]  ;;  %7061 = vst [vmem:[#allocation31_spill] sm:$0xff] %v6320_v27 }
  0x85   : > { %4833 = vmatmul.mubr.msk.f32.gmra.mrb[22].mxu1 %vm280_vm0, %v6174_v35  ;;  %v6395_v35 = vld [vmem:[%s5988_s21 + $0x98] sm:$0xff] }
  0x86   : > { %5129 = vmatmul.mubr.msk.f32.gmra.mrb[6].mxu0 %vm280_vm0, %v6179_v36  ;;  %4835 = vmatprep.mubr.msk.f32.mxu1 %vm280_vm0, %v6182_v37  ;;  %v6386_v37 = vld [vmem:[%s5988_s21 + $0x16a] sm:$0xff]  ;;  %7068 = vst [vmem:[#allocation38_spill] sm:$0xff] %v6395_v35 }
  0x87   : > { %5131 = vmatprep.mubr.msk.f32.mxu0 %vm280_vm0, %v6185_v38  ;;  %5470 = vmatpush3.bf16.msra.mxu0 %v5467_v32  ;;  %v6290_v32 = vld [vmem:[%s5988_s21 + $0x20] sm:$0xff]  ;;  %7067 = vst [vmem:[#allocation37_spill] sm:$0xff] %v6386_v37 }
  0x88   : > { %5472 = vmatprep.subr.bf16.mxu0 %v6187_v40  ;;  %7058 = vst [vmem:[#allocation28_spill] sm:$0xff] %v6290_v32 }
  0x89   : > { %4836 = vmatmul.mubr.msk.f32.gmra.mrb[24].mxu1 %vm280_vm0, %v6196_v41  ;;  %v6375_v41 = vld [vmem:[%s5988_s21 + $0x80] sm:$0xff] }
  0x8a   : > { %5132 = vmatmul.mubr.msk.f32.gmra.mrb[8].mxu0 %vm280_vm0, %v6201_v42  ;;  %4838 = vmatprep.mubr.msk.f32.mxu1 %vm280_vm0, %v6204_v43  ;;  %v6354_v43 = vld [vmem:[%s5988_s21 + $0x68] sm:$0xff]  ;;  %7064 = vst [vmem:[#allocation34_spill] sm:$0xff] %v6375_v41 }
  0x8b   : > { %5134 = vmatprep.mubr.msk.f32.mxu0 %vm280_vm0, %v6207_v44 }
  0x8d   : > { %4839 = vmatmul.mubr.msk.f32.gmra.mrb[26].mxu1 %vm280_vm0, %v6217_v47  ;;  %v6332_v47 = vld [vmem:[%s5988_s21 + $0x50] sm:$0xff] }
  0x8e   : > { %5135 = vmatmul.mubr.msk.f32.gmra.mrb[10].mxu0 %vm280_vm0, %v6222_v48  ;;  %4841 = vmatprep.mubr.msk.f32.mxu1 %vm280_vm0, %v6225_v49  ;;  %v1352_v49 = vld [vmem:[#allocation2 + $0xc8] sm:$0xff]  ;;  %7062 = vst [vmem:[#allocation32_spill] sm:$0xff] %v6332_v47 }
  0x8f   : > { %5137 = vmatprep.mubr.msk.f32.mxu0 %vm280_vm0, %v6228_v50 }
  0x91   : > { %4842 = vmatmul.mubr.msk.f32.gmra.mrb[28].mxu1 %vm280_vm0, %v6237_v51  ;;  %v1351_v51 = vld [vmem:[#allocation2 + $0xc0] sm:$0xff] }
  0x92   : > { %5138 = vmatmul.mubr.msk.f32.gmra.mrb[12].mxu0 %vm280_vm0, %v6242_v52  ;;  %4844 = vmatprep.mubr.msk.f32.mxu1 %vm280_vm0, %v6245_v55  ;;  %v6345_v25 = vpack.c.bf16 %v1352_v49, %v1351_v51  ;;  %v6362_v49 = vld [vmem:[%s5988_s21 + $0x78] sm:$0xff] }
  0x93   : > { %5140 = vmatprep.mubr.msk.f32.mxu0 %vm280_vm0, %v6248_v56  ;;  %7063 = vst [vmem:[#allocation33_spill] sm:$0xff] %v6362_v49  ;;  %v6365_v51 = vld [vmem:[%s5988_s21 + $0x152] sm:$0xff] }
  0x95   : > { %4845 = vmatmul.mubr.msk.f32.gmra.mrb[30].mxu1 %vm280_vm0, %v6257_v57  ;;  %v6323_v57 = vld [vmem:[%s5988_s21 + $0x122] sm:$0xff] }
  0x96   : > { %5141 = vmatmul.mubr.msk.f32.gmra.mrb[14].mxu0 %vm280_vm0, %v6262_v58  ;;  %4863 = vmatprep.mubr.msk.f32.mxu1 %vm280_vm0, %v199_v60  ;;  %v6303_v60 = vld [vmem:[%s5988_s21 + $0x10a] sm:$0xff] }
  0x97   : > { %5143 = vmatprep.mubr.msk.f32.mxu0 %vm280_vm0, %v6266_v61 }
  0x99   : > { %4864 = vmatmul.mubr.msk.f32.vlgmr.msra.gmra.mrb[0].mxu1 %vm280_vm0, %v200_v11  ;;  %v6312_v11 = vld [vmem:[%s5988_s21 + $0x38] sm:$0xff] }
  0x9a   : > { %5144 = vmatmul.mubr.msk.f32.gmra.mrb[16].mxu0 %vm280_vm0, %v6277_v16  ;;  %5394 = vmatpush3.bf16.msra.mxu1 %v6053_v0  ;;  %v962_v0 = vld [vmem:[#allocation2 + $0xb0] sm:$0xff]  ;;  %7060 = vst [vmem:[#allocation30_spill] sm:$0xff] %v6312_v11 }
  0x9b   : > { %4866 = vmatprep.mubr.msk.f32.mxu1 %vm280_vm0, %v6280_v17  ;;  %5146 = vmatprep.mubr.msk.f32.mxu0 %vm280_vm0, %v6283_v18  ;;  %v5403_v55 = vpack.c.bf16 %v963_v10, %v962_v0  ;;  %v6340_v0 = vld [vmem:[%s5988_s21 + $0x60] sm:$0xff] }
  0x9c   : > { %5396 = vmatprep.subr.bf16.mxu1 %v5395_v24  ;;  %v6343_v10 = vld [vmem:[%s5988_s21 + $0x13a] sm:$0xff] }
  0x9d   : > { %4867 = vmatmul.mubr.msk.f32.gmra.mrb[2].mxu1 %vm280_vm0, %v6290_v32  ;;  %v6415_v32 = vld [vmem:[%s5988_s21 + $0xb0] sm:$0xff]  ;;  %v6423_v17 = vld [vmem:[%s5988_s21 + $0xc0] sm:$0xff] }
  0x9e   : > { %5147 = vmatmul.mubr.msk.f32.gmra.mrb[18].mxu0 %vm280_vm0, %v6297_v33  ;;  %4869 = vmatprep.mubr.msk.f32.mxu1 %vm280_vm0, %v6300_v34  ;;  %7072 = vst [vmem:[#allocation42_spill] sm:$0xff] %v6415_v32  ;;  %7074 = vst [vmem:[#allocation44_spill] sm:$0xff] %v6423_v17 }
  0x9f   : > { %5149 = vmatprep.mubr.msk.f32.mxu0 %vm280_vm0, %v6303_v60  ;;  %5398 = vmatpush3.bf16.msra.mxu1 %v5395_v24  ;;  %v6337_v24 = vld [vmem:[%s5988_s21 + $0x12a] sm:$0xff] }
  0xa0   : > { %5400 = vmatprep.subr.bf16.mxu1 %v5399_v63 }
  0xa1   : > { %4870 = vmatmul.mubr.msk.f32.gmra.mrb[4].mxu1 %vm280_vm0, %v6312_v11 }
  0xa2   : > { %5150 = vmatmul.mubr.msk.f32.gmra.mrb[20].mxu0 %vm280_vm0, %v6317_v26  ;;  %4872 = vmatprep.mubr.msk.f32.mxu1 %vm280_vm0, %v6320_v27 }
  0xa3   : > { %5152 = vmatprep.mubr.msk.f32.mxu0 %vm280_vm0, %v6323_v57  ;;  %5402 = vmatpush3.bf16.msra.mxu1 %v5399_v63  ;;  %v6359_v63 = vld [vmem:[%s5988_s21 + $0x142] sm:$0xff] }
  0xa4   : > { %5404 = vmatprep.subr.bf16.mxu1 %v5403_v55 }
  0xa5   : > { %4873 = vmatmul.mubr.msk.f32.gmra.mrb[6].mxu1 %vm280_vm0, %v6332_v47 }
  0xa6   : > { %5153 = vmatmul.mubr.msk.f32.gmra.mrb[22].mxu0 %vm280_vm0, %v6337_v24  ;;  %4875 = vmatprep.mubr.msk.f32.mxu1 %vm280_vm0, %v6340_v0 }
  0xa7   : > { %5155 = vmatprep.mubr.msk.f32.mxu0 %vm280_vm0, %v6343_v10  ;;  %5406 = vmatpush3.bf16.msra.mxu1 %v5403_v55  ;;  %v6380_v55 = vld [vmem:[%s5988_s21 + $0x15a] sm:$0xff] }
  0xa8   : > { %5408 = vmatprep.subr.bf16.mxu1 %v6345_v25  ;;  %7065 = vst [vmem:[#allocation35_spill] sm:$0xff] %v6380_v55 }
  0xa9   : > { %4876 = vmatmul.mubr.msk.f32.gmra.mrb[8].mxu1 %vm280_vm0, %v6354_v43 }
  0xaa   : > { %5156 = vmatmul.mubr.msk.f32.gmra.mrb[24].mxu0 %vm280_vm0, %v6359_v63  ;;  %4878 = vmatprep.mubr.msk.f32.mxu1 %vm280_vm0, %v6362_v49 }
  0xab   : > { %5158 = vmatprep.mubr.msk.f32.mxu0 %vm280_vm0, %v6365_v51 }
  0xad   : > { %4879 = vmatmul.mubr.msk.f32.gmra.mrb[10].mxu1 %vm280_vm0, %v6375_v41 }
  0xae   : > { %5159 = vmatmul.mubr.msk.f32.gmra.mrb[26].mxu0 %vm280_vm0, %v6380_v55  ;;  %4881 = vmatprep.mubr.msk.f32.mxu1 %vm280_vm0, %v6383_v19  ;;  %v2933_v55 = vld [vmem:[#allocation2 + $0x1e8] sm:$0xff] }
  0xaf   : > { %5161 = vmatprep.mubr.msk.f32.mxu0 %vm280_vm0, %v6386_v37  ;;  %v5475_v37 = vpack.c.bf16 %v2931_v14, %v2930_v20  ;;  %v6452_v14 = vld [vmem:[%s5988_s21 + $0xf0] sm:$0xff]  ;;  %v5479_v20 = vpack.c.bf16 %v2933_v55, %v2932_v8  ;;  %v3322_v55 = vld [vmem:[#allocation2 + $0x200] sm:$0xff] }
  0xb1   : > { %4882 = vmatmul.mubr.msk.f32.gmra.mrb[12].mxu1 %vm280_vm0, %v6395_v35 }
  0xb2   : > { %5162 = vmatmul.mubr.msk.f32.gmra.mrb[28].mxu0 %vm280_vm0, %v6400_v12  ;;  %4884 = vmatprep.mubr.msk.f32.mxu1 %vm280_vm0, %v6403_v30  ;;  %v6432_v12 = vld [vmem:[%s5988_s21 + $0xc8] sm:$0xff] }
  0xb3   : > { %5164 = vmatprep.mubr.msk.f32.mxu0 %vm280_vm0, %v6406_v28  ;;  %7075 = vst [vmem:[#allocation45_spill] sm:$0xff] %v6432_v12  ;;  %v6437_v28 = vld [vmem:[%s5988_s21 + $0xd8] sm:$0xff] }
  0xb4   : > { %7076 = vst [vmem:[#allocation46_spill] sm:$0xff] %v6437_v28 }
  0xb5   : > { %4885 = vmatmul.mubr.msk.f32.gmra.mrb[14].mxu1 %vm280_vm0, %v6415_v32 }
  0xb6   : > { %5165 = vmatmul.mubr.msk.f32.gmra.mrb[30].mxu0 %vm280_vm0, %v6420_v22  ;;  %4887 = vmatprep.mubr.msk.f32.mxu1 %vm280_vm0, %v6423_v17  ;;  %v6446_v22 = vld [vmem:[%s5988_s21 + $0xe0] sm:$0xff] }
  0xb7   : > { %5183 = vmatprep.mubr.msk.f32.mxu0 %vm280_vm0, %v6300_v34  ;;  %v2934_v34 = vld [vmem:[#allocation2 + $0x1f0] sm:$0xff] }
  0xb9   : > { %4888 = vmatmul.mubr.msk.f32.gmra.mrb[16].mxu1 %vm280_vm0, %v6432_v12 }
  0xba   : > { %5184 = vmatmul.mubr.msk.f32.vlgmr.msra.gmra.mrb[0].mxu0 %vm280_vm0, %v6312_v11  ;;  %4890 = vmatprep.mubr.msk.f32.mxu1 %vm280_vm0, %v6437_v28  ;;  %v2935_v11 = vld [vmem:[#allocation2 + $0x1f8] sm:$0xff] }
  0xbb   : > { %5474 = vmatpush3.bf16.msra.mxu0 %v6187_v40  ;;  %5186 = vmatprep.mubr.msk.f32.mxu0 %vm280_vm0, %v6320_v27  ;;  %v6461_v40 = vld [vmem:[%s5988_s21 + $0xf8] sm:$0xff]  ;;  %v6466_v27 = vld [vmem:[%s5988_s21 + $0x108] sm:$0xff]  ;;  %v5483_v8 = vpack.c.bf16 %v2935_v11, %v2934_v34 }
  0xbc   : > { %5476 = vmatprep.subr.bf16.mxu0 %v5475_v37  ;;  %v6491_v11 = vld [vmem:[%s5988_s21 + $0x128] sm:$0xff] }
  0xbd   : > { %4891 = vmatmul.mubr.msk.f32.gmra.mrb[18].mxu1 %vm280_vm0, %v6446_v22 }
  0xbe   : > { %5187 = vmatmul.mubr.msk.f32.gmra.mrb[2].mxu0 %vm280_vm0, %v6332_v47  ;;  %4893 = vmatprep.mubr.msk.f32.mxu1 %vm280_vm0, %v6452_v14  ;;  %v3323_v47 = vld [vmem:[#allocation2 + $0x208] sm:$0xff] }
  0xbf   : > { %5189 = vmatprep.mubr.msk.f32.mxu0 %vm280_vm0, %v6340_v0  ;;  %5478 = vmatpush3.bf16.msra.mxu0 %v5475_v37  ;;  %v6480_v37 = vld [vmem:[%s5988_s21 + $0x120] sm:$0xff]  ;;  %v6482_v34 = vpack.c.bf16 %v3323_v47, %v3322_v55  ;;  %v6511_v55 = vld [vmem:[%s5988_s21 + $0x150] sm:$0xff] }
  0xc0   : > { %5480 = vmatprep.subr.bf16.mxu0 %v5479_v20  ;;  %v6506_v47 = vld [vmem:[%s5988_s21 + $0x140] sm:$0xff] }
  0xc1   : > { %4894 = vmatmul.mubr.msk.f32.gmra.mrb[20].mxu1 %vm280_vm0, %v6461_v40 }
  0xc2   : > { %5190 = vmatmul.mubr.msk.f32.gmra.mrb[4].mxu0 %vm280_vm0, %v6354_v43  ;;  %4896 = vmatprep.mubr.msk.f32.mxu1 %vm280_vm0, %v6466_v27 }
  0xc3   : > { %5192 = vmatprep.mubr.msk.f32.mxu0 %vm280_vm0, %v6362_v49  ;;  %5482 = vmatpush3.bf16.msra.mxu0 %v5479_v20  ;;  %v6496_v20 = vld [vmem:[%s5988_s21 + $0x138] sm:$0xff]  ;;  %v1355_v49 = vld [vmem:[#allocation2 + $0xe0] sm:$0xff] }
  0xc4   : > { %5484 = vmatprep.subr.bf16.mxu0 %v5483_v8 }
  0xc5   : > { %4897 = vmatmul.mubr.msk.f32.gmra.mrb[22].mxu1 %vm280_vm0, %v6475_v6 }
  0xc6   : > { %5193 = vmatmul.mubr.msk.f32.gmra.mrb[6].mxu0 %vm280_vm0, %v6375_v41  ;;  %4899 = vmatprep.mubr.msk.f32.mxu1 %vm280_vm0, %v6480_v37 }
  0xc7   : > { %5195 = vmatprep.mubr.msk.f32.mxu0 %vm280_vm0, %v6383_v19  ;;  %5486 = vmatpush3.bf16.msra.mxu0 %v5483_v8  ;;  %v6520_v8 = vld [vmem:[%s5988_s21 + $0x158] sm:$0xff] }
  0xc8   : > { %5488 = vmatprep.subr.bf16.mxu0 %v6482_v34  ;;  %v1354_v19 = vld [vmem:[#allocation2 + $0xd8] sm:$0xff] }
  0xc9   : > { %4900 = vmatmul.mubr.msk.f32.gmra.mrb[24].mxu1 %vm280_vm0, %v6491_v11 }
  0xca   : > { %5196 = vmatmul.mubr.msk.f32.gmra.mrb[8].mxu0 %vm280_vm0, %v6395_v35  ;;  %4902 = vmatprep.mubr.msk.f32.mxu1 %vm280_vm0, %v6496_v20  ;;  %v6525_v35 = vld [vmem:[%s5988_s21 + $0x168] sm:$0xff] }
  0xcb   : > { %5198 = vmatprep.mubr.msk.f32.mxu0 %vm280_vm0, %v6403_v30  ;;  %v923_v30 = vld [vmem:[%s5988_s21 + $0x2] sm:$0xff] }
  0xcd   : > { %4903 = vmatmul.mubr.msk.f32.gmra.mrb[26].mxu1 %vm280_vm0, %v6506_v47 }
  0xce   : > { %5199 = vmatmul.mubr.msk.f32.gmra.mrb[10].mxu0 %vm280_vm0, %v6415_v32  ;;  %4905 = vmatprep.mubr.msk.f32.mxu1 %vm280_vm0, %v6511_v55  ;;  %v6534_v32 = vld [vmem:[%s5988_s21 + $0x170] sm:$0xff] }
  0xcf   : > { %5201 = vmatprep.mubr.msk.f32.mxu0 %vm280_vm0, %v6423_v17  ;;  %v1353_v17 = vld [vmem:[#allocation2 + $0xd0] sm:$0xff] }
  0xd0   : > { %v5411_v41 = vpack.c.bf16 %v1354_v19, %v1353_v17  ;;  %v1357_v19 = vld [vmem:[#allocation2 + $0xf0] sm:$0xff] }
  0xd1   : > { %4906 = vmatmul.mubr.msk.f32.gmra.mrb[28].mxu1 %vm280_vm0, %v6520_v8  ;;  %v3324_v17 = vld [vmem:[#allocation2 + $0x210] sm:$0xff] }
  0xd2   : > { %5202 = vmatmul.mubr.msk.f32.gmra.mrb[12].mxu0 %vm280_vm0, %v6432_v12  ;;  %4908 = vmatprep.mubr.msk.f32.mxu1 %vm280_vm0, %v6525_v35  ;;  %v924_v12 = vld [vmem:[%s5988_s21 + $0xa] sm:$0xff] }
  0xd3   : > { %5204 = vmatprep.mubr.msk.f32.mxu0 %vm280_vm0, %v6437_v28  ;;  %v1356_v28 = vld [vmem:[#allocation2 + $0xe8] sm:$0xff] }
  0xd5   : > { %4909 = vmatmul.mubr.msk.f32.gmra.mrb[30].mxu1 %vm280_vm0, %v6534_v32 }
  0xd6   : > { %5205 = vmatmul.mubr.msk.f32.gmra.mrb[14].mxu0 %vm280_vm0, %v6446_v22  ;;  %4927 = vmatprep.mubr.msk.f32.mxu1 %vm280_vm0, %v923_v30  ;;  %v5415_v30 = vpack.c.bf16 %v1356_v28, %v1355_v49  ;;  %v4257_v28 = vld [vmem:[%s5988_s21 + $0x198] sm:$0xff] }
  0xd7   : > { %5207 = vmatprep.mubr.msk.f32.mxu0 %vm280_vm0, %v6452_v14  ;;  %v3325_v49 = vld [vmem:[#allocation2 + $0x218] sm:$0xff] }
  0xd9   : > { %4928 = vmatmul.mubr.msk.f32.vlgmr.msra.gmra.mrb[0].mxu1 %vm280_vm0, %v924_v12  ;;  %v1358_v12 = vld [vmem:[#allocation2 + $0xf8] sm:$0xff] }
  0xda   : > { %5208 = vmatmul.mubr.msk.f32.gmra.mrb[16].mxu0 %vm280_vm0, %v6461_v40  ;;  %5410 = vmatpush3.bf16.msra.mxu1 %v6345_v25  ;;  %v5419_v25 = vpack.c.bf16 %v1358_v12, %v1357_v19  ;;  %v3326_v19 = vld [vmem:[#allocation2 + $0x220] sm:$0xff]  ;;  %v3327_v12 = vld [vmem:[#allocation2 + $0x228] sm:$0xff] }
  0xdb   : > { %4930 = vmatprep.mubr.msk.f32.mxu1 %vm280_vm0, %v6108_v9  ;;  %5210 = vmatprep.mubr.msk.f32.mxu0 %vm280_vm0, %v6466_v27  ;;  %v6589_v9 = vld [vmem:[%s5988_s21 + $0x180] sm:$0xff] }
  0xdc   : > { %5412 = vmatprep.subr.bf16.mxu1 %v5411_v41 }
  0xdd   : > { %4931 = vmatmul.mubr.msk.f32.gmra.mrb[2].mxu1 %vm280_vm0, %v6119_v13  ;;  %v6600_v13 = vld [vmem:[%s5988_s21 + $0x188] sm:$0xff] }
  0xde   : > { %5211 = vmatmul.mubr.msk.f32.gmra.mrb[18].mxu0 %vm280_vm0, %v6475_v6  ;;  %4933 = vmatprep.mubr.msk.f32.mxu1 %vm280_vm0, %v6125_v15 }
  0xdf   : > { %5213 = vmatprep.mubr.msk.f32.mxu0 %vm280_vm0, %v6480_v37  ;;  %5414 = vmatpush3.bf16.msra.mxu1 %v5411_v41  ;;  %v4258_v41 = vld [vmem:[%s5988_s21 + $0x1a0] sm:$0xff] }
  0xe0   : > { %5416 = vmatprep.subr.bf16.mxu1 %v5415_v30 }
  0xe1   : > { %4934 = vmatmul.mubr.msk.f32.gmra.mrb[4].mxu1 %vm280_vm0, %v6139_v21 }
  0xe2   : > { %5214 = vmatmul.mubr.msk.f32.gmra.mrb[20].mxu0 %vm280_vm0, %v6491_v11  ;;  %4936 = vmatprep.mubr.msk.f32.mxu1 %vm280_vm0, %v6145_v23 }
  0xe3   : > { %5216 = vmatprep.mubr.msk.f32.mxu0 %vm280_vm0, %v6496_v20  ;;  %5418 = vmatpush3.bf16.msra.mxu1 %v5415_v30  ;;  %v5491_v30 = vpack.c.bf16 %v3325_v49, %v3324_v17  ;;  %v7089_v17 = vld [vmem:[#allocation17_spill] sm:$0xff]  ;;  %v7090_v49 = vld [vmem:[#allocation8_spill] sm:$0xff] }
  0xe4   : > { %5420 = vmatprep.subr.bf16.mxu1 %v5419_v25 }
  0xe5   : > { %4937 = vmatmul.mubr.msk.f32.gmra.mrb[6].mxu1 %vm280_vm0, %v6159_v29 }
  0xe6   : > { %5217 = vmatmul.mubr.msk.f32.gmra.mrb[22].mxu0 %vm280_vm0, %v6506_v47  ;;  %4939 = vmatprep.mubr.msk.f32.mxu1 %vm280_vm0, %v6165_v31 }
  0xe7   : > { %5219 = vmatprep.mubr.msk.f32.mxu0 %vm280_vm0, %v6511_v55  ;;  %5422 = vmatpush3.bf16.msra.mxu1 %v5419_v25  ;;  %v5495_v25 = vpack.c.bf16 %v3327_v12, %v3326_v19  ;;  %v7092_v19 = vld [vmem:[#allocation18_spill] sm:$0xff]  ;;  %v7093_v12 = vld [vmem:[#allocation31_spill] sm:$0xff] }
  0xe8   : > { %5503 = vmatprep.subr.bf16.mxu1 %v5983_v7 }
  0xe9   : > { %4940 = vmatmul.mubr.msk.f32.gmra.mrb[8].mxu1 %vm280_vm0, %v6179_v36 }
  0xea   : > { %5220 = vmatmul.mubr.msk.f32.gmra.mrb[24].mxu0 %vm280_vm0, %v6520_v8  ;;  %4942 = vmatprep.mubr.msk.f32.mxu1 %vm280_vm0, %v6185_v38 }
  0xeb   : > { %5222 = vmatprep.mubr.msk.f32.mxu0 %vm280_vm0, %v6525_v35 }
  0xed   : > { %4943 = vmatmul.mubr.msk.f32.gmra.mrb[10].mxu1 %vm280_vm0, %v6201_v42 }
  0xee   : > { %5223 = vmatmul.mubr.msk.f32.gmra.mrb[26].mxu0 %vm280_vm0, %v6534_v32  ;;  %4945 = vmatprep.mubr.msk.f32.mxu1 %vm280_vm0, %v6207_v44 }
  0xef   : > { %5225 = vmatprep.mubr.msk.f32.mxu0 %vm280_vm0, %v6589_v9 }
  0xf1   : > { %4946 = vmatmul.mubr.msk.f32.gmra.mrb[12].mxu1 %vm280_vm0, %v6222_v48 }
  0xf2   : > { %5226 = vmatmul.mubr.msk.f32.gmra.mrb[28].mxu0 %vm280_vm0, %v6600_v13  ;;  %4948 = vmatprep.mubr.msk.f32.mxu1 %vm280_vm0, %v6228_v50 }
  0xf3   : > { %5228 = vmatprep.mubr.msk.f32.mxu0 %vm280_vm0, %v4257_v28  ;;  %v3329_v28 = vld [vmem:[#allocation2 + $0x238] sm:$0xff] }
  0xf5   : > { %4949 = vmatmul.mubr.msk.f32.gmra.mrb[14].mxu1 %vm280_vm0, %v6242_v52 }
  0xf6   : > { %5229 = vmatmul.mubr.msk.f32.gmra.mrb[30].mxu0 %vm280_vm0, %v4258_v41  ;;  %4951 = vmatprep.mubr.msk.f32.mxu1 %vm280_vm0, %v6248_v56  ;;  %v7088_v41 = vld [vmem:[#allocation29_spill] sm:$0xff] }
  0xf7   : > { %5247 = vmatprep.mubr.msk.f32.mxu0 %vm280_vm0, %v6012_v39  ;;  %v3328_v39 = vld [vmem:[#allocation2 + $0x230] sm:$0xff] }
  0xf9   : > { %4952 = vmatmul.mubr.msk.f32.gmra.mrb[16].mxu1 %vm280_vm0, %v6262_v58 }
  0xfa   : > { %5248 = vmatmul.mubr.msk.f32.vlgmr.msra.gmra.mrb[0].mxu0 %vm280_vm0, %v6017_v45  ;;  %4954 = vmatprep.mubr.msk.f32.mxu1 %vm280_vm0, %v6266_v61  ;;  %v5499_v45 = vpack.c.bf16 %v3329_v28, %v3328_v39  ;;  %v7096_v39 = vld [vmem:[#allocation32_spill] sm:$0xff] }
  0xfb   : > { %5490 = vmatpush3.bf16.msra.mxu0 %v6482_v34  ;;  %5250 = vmatprep.mubr.msk.f32.mxu0 %vm280_vm0, %v6022_v46  ;;  %v7077_v46 = vld [vmem:[#allocation11_spill] sm:$0xff]  ;;  %v7087_v34 = vld [vmem:[#allocation16_spill] sm:$0xff] }
  0xfc   : > { %5492 = vmatprep.subr.bf16.mxu0 %v5491_v30  ;;  %v7097_v28 = vld [vmem:[#allocation20_spill] sm:$0xff] }
  0xfd   : > { %4955 = vmatmul.mubr.msk.f32.gmra.mrb[18].mxu1 %vm280_vm0, %v6277_v16 }
  0xfe   : > { %5251 = vmatmul.mubr.msk.f32.gmra.mrb[2].mxu0 %vm280_vm0, %v6032_v53  ;;  %4957 = vmatprep.mubr.msk.f32.mxu1 %vm280_vm0, %v6283_v18  ;;  %v7078_v53 = vld [vmem:[#allocation35_spill] sm:$0xff] }
  0xff   : > { %5253 = vmatprep.mubr.msk.f32.mxu0 %vm280_vm0, %v6035_v54  ;;  %5494 = vmatpush3.bf16.msra.mxu0 %v5491_v30  ;;  %v7079_v54 = vld [vmem:[#allocation12_spill] sm:$0xff]  ;;  %v7091_v30 = vld [vmem:[#allocation30_spill] sm:$0xff] }
 0x100   : > { %5496 = vmatprep.subr.bf16.mxu0 %v5495_v25 }
 0x101   : > { %4958 = vmatmul.mubr.msk.f32.gmra.mrb[20].mxu1 %vm280_vm0, %v6297_v33 }
 0x102   : > { %5254 = vmatmul.mubr.msk.f32.gmra.mrb[4].mxu0 %vm280_vm0, %v6046_v59  ;;  %4960 = vmatprep.mubr.msk.f32.mxu1 %vm280_vm0, %v6303_v60  ;;  %v7080_v59 = vld [vmem:[#allocation37_spill] sm:$0xff] }
 0x103   : > { %5256 = vmatprep.mubr.msk.f32.mxu0 %vm280_vm0, %v6049_v62  ;;  %5498 = vmatpush3.bf16.msra.mxu0 %v5495_v25  ;;  %v7081_v62 = vld [vmem:[#allocation13_spill] sm:$0xff]  ;;  %v7094_v25 = vld [vmem:[#allocation19_spill] sm:$0xff] }
 0x104   : > { %5500 = vmatprep.subr.bf16.mxu0 %v5499_v45 }
 0x105   : > { %4961 = vmatmul.mubr.msk.f32.gmra.mrb[22].mxu1 %vm280_vm0, %v6317_v26 }
 0x106   : > { %5257 = vmatmul.mubr.msk.f32.gmra.mrb[6].mxu0 %vm280_vm0, %v6062_v1  ;;  %4963 = vmatprep.mubr.msk.f32.mxu1 %vm280_vm0, %v6323_v57  ;;  %v7082_v1 = vld [vmem:[#allocation39_spill] sm:$0xff] }
 0x107   : > { %5259 = vmatprep.mubr.msk.f32.mxu0 %vm280_vm0, %v6065_v2  ;;  %5502 = vmatpush3.bf16.msra.mxu0 %v5499_v45  ;;  %v7083_v2 = vld [vmem:[#allocation14_spill] sm:$0xff]  ;;  %v7098_v45 = vld [vmem:[#allocation21_spill] sm:$0xff] }
 0x109   : > { %4964 = vmatmul.mubr.msk.f32.gmra.mrb[24].mxu1 %vm280_vm0, %v6337_v24 }
 0x10a   : > { %5260 = vmatmul.mubr.msk.f32.gmra.mrb[8].mxu0 %vm280_vm0, %v6077_v3  ;;  %4966 = vmatprep.mubr.msk.f32.mxu1 %vm280_vm0, %v6343_v10  ;;  %v7084_v3 = vld [vmem:[#allocation27_spill] sm:$0xff] }
 0x10b   : > { %5262 = vmatprep.mubr.msk.f32.mxu0 %vm280_vm0, %v6080_v4  ;;  %v7085_v4 = vld [vmem:[#allocation15_spill] sm:$0xff] }
 0x10d   : > { %4967 = vmatmul.mubr.msk.f32.gmra.mrb[26].mxu1 %vm280_vm0, %v6359_v63 }
 0x10e   : > { %5263 = vmatmul.mubr.msk.f32.gmra.mrb[10].mxu0 %vm280_vm0, %v6091_v5  ;;  %4969 = vmatprep.mubr.msk.f32.mxu1 %vm280_vm0, %v6365_v51  ;;  %v7086_v5 = vld [vmem:[#allocation28_spill] sm:$0xff] }
 0x10f   : > { %5265 = vmatprep.mubr.msk.f32.mxu0 %vm280_vm0, %v7077_v46  ;;  %v7099_v46 = vld [vmem:[#allocation10_spill] sm:$0xff] }
 0x111   : > { %4970 = vmatmul.mubr.msk.f32.gmra.mrb[28].mxu1 %vm280_vm0, %v7078_v53 }
 0x112   : > { %5266 = vmatmul.mubr.msk.f32.gmra.mrb[12].mxu0 %vm280_vm0, %v7079_v54  ;;  %4972 = vmatprep.mubr.msk.f32.mxu1 %vm280_vm0, %v7080_v59  ;;  %v7100_v54 = vld [vmem:[#allocation22_spill] sm:$0xff] }
 0x113   : > { %5268 = vmatprep.mubr.msk.f32.mxu0 %vm280_vm0, %v7081_v62  ;;  %v7101_v62 = vld [vmem:[#allocation33_spill] sm:$0xff] }
 0x115   : > { %4973 = vmatmul.mubr.msk.f32.gmra.mrb[30].mxu1 %vm280_vm0, %v7082_v1 }
 0x116   : > { %5269 = vmatmul.mubr.msk.f32.gmra.mrb[14].mxu0 %vm280_vm0, %v7083_v2  ;;  %4991 = vmatprep.mubr.msk.f32.mxu1 %vm280_vm0, %v7084_v3  ;;  %v7102_v2 = vld [vmem:[#allocation23_spill] sm:$0xff]  ;;  %v7104_v3 = vld [vmem:[#allocation24_spill] sm:$0xff] }
 0x117   : > { %5271 = vmatprep.mubr.msk.f32.mxu0 %vm280_vm0, %v7085_v4  ;;  %v7105_v4 = vld [vmem:[#allocation36_spill] sm:$0xff] }
 0x119   : > { %4992 = vmatmul.mubr.msk.f32.vlgmr.msra.gmra.mrb[0].mxu1 %vm280_vm0, %v7086_v5  ;;  %v6731_v5 = vld [vmem:[%s5988_s21 + $0x181] sm:$0xff] }
 0x11a   : > { %5272 = vmatmul.mubr.msk.f32.gmra.mrb[16].mxu0 %vm280_vm0, %v7087_v34  ;;  %5507 = vmatpush3.bf16.msra.mxu1 %v5983_v7  ;;  %v7095_v7 = vld [vmem:[#allocation9_spill] sm:$0xff]  ;;  %v7107_v34 = vld [vmem:[#allocation38_spill] sm:$0xff] }
 0x11b   : > { %4994 = vmatprep.mubr.msk.f32.mxu1 %vm280_vm0, %v7088_v41  ;;  %5274 = vmatprep.mubr.msk.f32.mxu0 %vm280_vm0, %v7089_v17  ;;  %v7108_v41 = vld [vmem:[#allocation26_spill] sm:$0xff]  ;;  %v7109_v17 = vld [vmem:[#allocation40_spill] sm:$0xff] }
 0x11c   : > { %5504 = vmatprep.subr.bf16.mxu1 %v7090_v49 }
 0x11d   : > { %4995 = vmatmul.mubr.msk.f32.gmra.mrb[2].mxu1 %vm280_vm0, %v7091_v30  ;;  %v4321_v30 = vld [vmem:[%s5988_s21 + $0x199] sm:$0xff] }
 0x11e   : > { %5275 = vmatmul.mubr.msk.f32.gmra.mrb[18].mxu0 %vm280_vm0, %v7092_v19  ;;  %4997 = vmatprep.mubr.msk.f32.mxu1 %vm280_vm0, %v7093_v12  ;;  %v7110_v19 = vld [vmem:[#allocation42_spill] sm:$0xff]  ;;  %v7111_v12 = vld [vmem:[#allocation44_spill] sm:$0xff] }
 0x11f   : > { %5277 = vmatprep.mubr.msk.f32.mxu0 %vm280_vm0, %v7094_v25  ;;  %5508 = vmatpush3.bf16.msra.mxu1 %v7090_v49  ;;  %v6742_v49 = vld [vmem:[%s5988_s21 + $0x189] sm:$0xff]  ;;  %v4322_v25 = vld [vmem:[%s5988_s21 + $0x1a1] sm:$0xff] }
 0x120   : > { %5505 = vmatprep.subr.bf16.mxu1 %v7095_v7 }
 0x121   : > { %4998 = vmatmul.mubr.msk.f32.gmra.mrb[4].mxu1 %vm280_vm0, %v7096_v39  ;;  %v7113_v39 = vld [vmem:[#allocation46_spill] sm:$0xff] }
 0x122   : > { %5278 = vmatmul.mubr.msk.f32.gmra.mrb[20].mxu0 %vm280_vm0, %v7097_v28  ;;  %5000 = vmatprep.mubr.msk.f32.mxu1 %vm280_vm0, %v6340_v0  ;;  %v7103_v0 = vld [vmem:[#allocation34_spill] sm:$0xff] }
 0x123   : > { %5280 = vmatprep.mubr.msk.f32.mxu0 %vm280_vm0, %v7098_v45  ;;  %5509 = vmatpush3.bf16.msra.mxu1 %v7095_v7  ;;  %v7112_v7 = vld [vmem:[#allocation45_spill] sm:$0xff] }
 0x124   : > { %5506 = vmatprep.subr.bf16.mxu1 %v7099_v46 }
 0x125   : > { %5001 = vmatmul.mubr.msk.f32.gmra.mrb[6].mxu1 %vm280_vm0, %v6354_v43  ;;  %v7106_v43 = vld [vmem:[#allocation25_spill] sm:$0xff] }
 0x126   : > { %5281 = vmatmul.mubr.msk.f32.gmra.mrb[22].mxu0 %vm280_vm0, %v7100_v54  ;;  %5003 = vmatprep.mubr.msk.f32.mxu1 %vm280_vm0, %v7101_v62 }
 0x127   : > { %5283 = vmatprep.mubr.msk.f32.mxu0 %vm280_vm0, %v7102_v2  ;;  %5510 = vmatpush3.bf16.msra.mxu1 %v7099_v46 }
 0x129   : > { %5004 = vmatmul.mubr.msk.f32.gmra.mrb[8].mxu1 %vm280_vm0, %v7103_v0 }
 0x12a   : > { %5284 = vmatmul.mubr.msk.f32.gmra.mrb[24].mxu0 %vm280_vm0, %v7104_v3  ;;  %5006 = vmatprep.mubr.msk.f32.mxu1 %vm280_vm0, %v7105_v4 }
 0x12b   : > { %5286 = vmatprep.mubr.msk.f32.mxu0 %vm280_vm0, %v7106_v43 }
 0x12d   : > { %5007 = vmatmul.mubr.msk.f32.gmra.mrb[10].mxu1 %vm280_vm0, %v7107_v34 }
 0x12e   : > { %5287 = vmatmul.mubr.msk.f32.gmra.mrb[26].mxu0 %vm280_vm0, %v7108_v41  ;;  %5009 = vmatprep.mubr.msk.f32.mxu1 %vm280_vm0, %v7109_v17 }
 0x12f   : > { %5289 = vmatprep.mubr.msk.f32.mxu0 %vm280_vm0, %v6731_v5 }
 0x131   : > { %5010 = vmatmul.mubr.msk.f32.gmra.mrb[12].mxu1 %vm280_vm0, %v7110_v19 }
 0x132   : > { %5290 = vmatmul.mubr.msk.f32.gmra.mrb[28].mxu0 %vm280_vm0, %v6742_v49  ;;  %5012 = vmatprep.mubr.msk.f32.mxu1 %vm280_vm0, %v7111_v12 }
 0x133   : > { %5292 = vmatprep.mubr.msk.f32.mxu0 %vm280_vm0, %v4321_v30 }
 0x135   : > { %5013 = vmatmul.mubr.msk.f32.gmra.mrb[14].mxu1 %vm280_vm0, %v7112_v7 }
 0x136   : > { %5293 = vmatmul.mubr.msk.f32.gmra.mrb[30].mxu0 %vm280_vm0, %v4322_v25  ;;  %5015 = vmatprep.mubr.msk.f32.mxu1 %vm280_vm0, %v7113_v39 }
 0x137   : > { %5311 = vmatprep.mubr.msk.f32.mxu0 %vm280_vm0, %v6125_v15  ;;  %v4116_v15 = vld [vmem:[%s5988_s21 + $0xe1] sm:$0xff] }
 0x139   : > { %5016 = vmatmul.mubr.msk.f32.gmra.mrb[16].mxu1 %vm280_vm0, %v6446_v22  ;;  %v4118_v22 = vld [vmem:[%s5988_s21 + $0xf9] sm:$0xff] }
 0x13a   : > { %5312 = vmatmul.mubr.msk.f32.vlgmr.msra.gmra.mrb[0].mxu0 %vm280_vm0, %v6139_v21  ;;  %5018 = vmatprep.mubr.msk.f32.mxu1 %vm280_vm0, %v6452_v14  ;;  %v4117_v21 = vld [vmem:[%s5988_s21 + $0xf1] sm:$0xff] }
 0x13b   : > { %5314 = vmatprep.mubr.msk.f32.mxu0 %vm280_vm0, %v6145_v23  ;;  %v4119_v23 = vld [vmem:[%s5988_s21 + $0x109] sm:$0xff] }
 0x13d   : > { %5019 = vmatmul.mubr.msk.f32.gmra.mrb[18].mxu1 %vm280_vm0, %v6461_v40 }
 0x13e   : > { %5315 = vmatmul.mubr.msk.f32.gmra.mrb[2].mxu0 %vm280_vm0, %v6159_v29  ;;  %5021 = vmatprep.mubr.msk.f32.mxu1 %vm280_vm0, %v6466_v27  ;;  %v4120_v29 = vld [vmem:[%s5988_s21 + $0x111] sm:$0xff] }
 0x13f   : > { %5317 = vmatprep.mubr.msk.f32.mxu0 %vm280_vm0, %v6165_v31  ;;  %v4121_v31 = vld [vmem:[%s5988_s21 + $0x121] sm:$0xff] }
 0x141   : > { %5022 = vmatmul.mubr.msk.f32.gmra.mrb[20].mxu1 %vm280_vm0, %v6475_v6  ;;  %v4115_v6 = vld [vmem:[%s5988_s21 + $0xd9] sm:$0xff] }
 0x142   : > { %5318 = vmatmul.mubr.msk.f32.gmra.mrb[4].mxu0 %vm280_vm0, %v6179_v36  ;;  %5024 = vmatprep.mubr.msk.f32.mxu1 %vm280_vm0, %v6480_v37  ;;  %v4123_v36 = vld [vmem:[%s5988_s21 + $0x139] sm:$0xff] }
 0x143   : > { %5320 = vmatprep.mubr.msk.f32.mxu0 %vm280_vm0, %v6185_v38  ;;  %v4124_v38 = vld [vmem:[%s5988_s21 + $0x141] sm:$0xff] }
 0x145   : > { %5025 = vmatmul.mubr.msk.f32.gmra.mrb[22].mxu1 %vm280_vm0, %v6491_v11 }
 0x146   : > { %5321 = vmatmul.mubr.msk.f32.gmra.mrb[6].mxu0 %vm280_vm0, %v6201_v42  ;;  %5027 = vmatprep.mubr.msk.f32.mxu1 %vm280_vm0, %v6496_v20  ;;  %v4125_v42 = vld [vmem:[%s5988_s21 + $0x151] sm:$0xff] }
 0x147   : > { %5323 = vmatprep.mubr.msk.f32.mxu0 %vm280_vm0, %v6207_v44  ;;  %v4126_v44 = vld [vmem:[%s5988_s21 + $0x159] sm:$0xff] }
 0x149   : > { %5028 = vmatmul.mubr.msk.f32.gmra.mrb[24].mxu1 %vm280_vm0, %v6506_v47  ;;  %v6898_v47 = vld [vmem:[#allocation4] ss:$0 sm:$0xff] }
 0x14a   : > { %5324 = vmatmul.mubr.msk.f32.gmra.mrb[8].mxu0 %vm280_vm0, %v6222_v48  ;;  %5030 = vmatprep.mubr.msk.f32.mxu1 %vm280_vm0, %v6511_v55  ;;  %v4127_v48 = vld [vmem:[%s5988_s21 + $0x169] sm:$0xff] }
 0x14b   : > { %5326 = vmatprep.mubr.msk.f32.mxu0 %vm280_vm0, %v6228_v50  ;;  %v4128_v50 = vld [vmem:[%s5988_s21 + $0x171] sm:$0xff] }
 0x14d   : > { %5031 = vmatmul.mubr.msk.f32.gmra.mrb[26].mxu1 %vm280_vm0, %v6520_v8 }
 0x14e   : > { %5327 = vmatmul.mubr.msk.f32.gmra.mrb[10].mxu0 %vm280_vm0, %v6242_v52  ;;  %5033 = vmatprep.mubr.msk.f32.mxu1 %vm280_vm0, %v6525_v35  ;;  %v4122_v35 = vld [vmem:[%s5988_s21 + $0x129] sm:$0xff] }
 0x14f   : > { %5329 = vmatprep.mubr.msk.f32.mxu0 %vm280_vm0, %v6248_v56  ;;  %v7114_v52 = vld [vmem:[#allocation41_spill] sm:$0xff]  ;;  %v4385_v56 = vld [vmem:[%s5988_s21 + $0x19a] sm:$0xff] }
 0x151   : > { %5034 = vmatmul.mubr.msk.f32.gmra.mrb[28].mxu1 %vm280_vm0, %v6534_v32 }
 0x152   : > { %5330 = vmatmul.mubr.msk.f32.gmra.mrb[12].mxu0 %vm280_vm0, %v6262_v58  ;;  %5036 = vmatprep.mubr.msk.f32.mxu1 %vm280_vm0, %v6589_v9  ;;  %v4386_v58 = vld [vmem:[%s5988_s21 + $0x1a2] sm:$0xff] }
 0x153   : > { %5332 = vmatprep.mubr.msk.f32.mxu0 %vm280_vm0, %v6266_v61 }
 0x155   : > { %5037 = vmatmul.mubr.msk.f32.gmra.mrb[30].mxu1 %vm280_vm0, %v6600_v13 }
 0x156   : > { %5333 = vmatmul.mubr.msk.f32.gmra.mrb[14].mxu0 %vm280_vm0, %v6277_v16  ;;  %5079 = vmatprep.mubr.msk.f32.mxu1 %vm280_vm0, %v4115_v6 }
 0x157   : > { %5335 = vmatprep.mubr.msk.f32.mxu0 %vm280_vm0, %v6283_v18 }
 0x159   : > { %5080 = vmatmul.mubr.msk.f32.vlgmr.msra.gmra.mrb[16].mxu1 %vm280_vm0, %v4116_v15 }
 0x15a   : > { %5336 = vmatmul.mubr.msk.f32.gmra.mrb[16].mxu0 %vm280_vm0, %v6297_v33  ;;  %5082 = vmatprep.mubr.msk.f32.mxu1 %vm280_vm0, %v4117_v21 }
 0x15b   : > { %5338 = vmatprep.mubr.msk.f32.mxu0 %vm280_vm0, %v6303_v60 }
 0x15d   : > { %5083 = vmatmul.mubr.msk.f32.gmra.mrb[18].mxu1 %vm280_vm0, %v4118_v22 }
 0x15e   : > { %5339 = vmatmul.mubr.msk.f32.gmra.mrb[18].mxu0 %vm280_vm0, %v6317_v26  ;;  %5085 = vmatprep.mubr.msk.f32.mxu1 %vm280_vm0, %v4119_v23 }
 0x15f   : > { %5341 = vmatprep.mubr.msk.f32.mxu0 %vm280_vm0, %v6323_v57  ;;  %v7115_v57 = vld [vmem:[#allocation43_spill] sm:$0xff] }
 0x161   : > { %5086 = vmatmul.mubr.msk.f32.gmra.mrb[20].mxu1 %vm280_vm0, %v4120_v29 }
 0x162   : > { %5342 = vmatmul.mubr.msk.f32.gmra.mrb[20].mxu0 %vm280_vm0, %v6337_v24  ;;  %5088 = vmatprep.mubr.msk.f32.mxu1 %vm280_vm0, %v4121_v31 }
 0x163   : > { %5344 = vmatprep.mubr.msk.f32.mxu0 %vm280_vm0, %v6343_v10 }
 0x165   : > { %5089 = vmatmul.mubr.msk.f32.gmra.mrb[22].mxu1 %vm280_vm0, %v4122_v35 }
 0x166   : > { %5345 = vmatmul.mubr.msk.f32.gmra.mrb[22].mxu0 %vm280_vm0, %v6359_v63  ;;  %5091 = vmatprep.mubr.msk.f32.mxu1 %vm280_vm0, %v4123_v36 }
 0x167   : > { %5347 = vmatprep.mubr.msk.f32.mxu0 %vm280_vm0, %v6365_v51 }
 0x169   : > { %5092 = vmatmul.mubr.msk.f32.gmra.mrb[24].mxu1 %vm280_vm0, %v4124_v38 }
 0x16a   : > { %5348 = vmatmul.mubr.msk.f32.gmra.mrb[24].mxu0 %vm280_vm0, %v7078_v53  ;;  %5094 = vmatprep.mubr.msk.f32.mxu1 %vm280_vm0, %v4125_v42 }
 0x16b   : > { %5350 = vmatprep.mubr.msk.f32.mxu0 %vm280_vm0, %v7080_v59 }
 0x16d   : > { %5095 = vmatmul.mubr.msk.f32.gmra.mrb[26].mxu1 %vm280_vm0, %v4126_v44 }
 0x16e   : > { %5351 = vmatmul.mubr.msk.f32.gmra.mrb[26].mxu0 %vm280_vm0, %v7082_v1  ;;  %5097 = vmatprep.mubr.msk.f32.mxu1 %vm280_vm0, %v4127_v48 }
 0x16f   : > { %5353 = vmatprep.mubr.msk.f32.mxu0 %vm280_vm0, %v7114_v52 }
 0x171   : > { %5098 = vmatmul.mubr.msk.f32.gmra.mrb[28].mxu1 %vm280_vm0, %v4128_v50 }
 0x172   : > { %5354 = vmatmul.mubr.msk.f32.gmra.mrb[28].mxu0 %vm280_vm0, %v7115_v57  ;;  %5100 = vmatprep.mubr.msk.f32.mxu1 %vm280_vm0, %v6731_v5 }
 0x173   : > { %5356 = vmatprep.mubr.msk.f32.mxu0 %vm280_vm0, %v4385_v56 }
 0x175   : > { %5101 = vmatmul.mubr.msk.f32.gmra.mrb[30].mxu1 %vm280_vm0, %v6742_v49 }
 0x176   : > { %5357 = vmatmul.mubr.msk.f32.gmra.mrb[30].mxu0 %vm280_vm0, %v4386_v58 }
 0x1ec   : > { %v4993_v61 = vpop.f32.mrb[0].mxu1 }
 0x1ed   : > { %v1521_v16 = vpop.f32.mrb[1].mxu1 }
 0x1f0   : > { %v4996_v18 = vpop.f32.mrb[2].mxu1 }
 0x1f1   : > { %v1531_v32 = vpop.f32.mrb[3].mxu1 }
 0x1f4   : > { %v4999_v33 = vpop.f32.mrb[4].mxu1 }
 0x1f5   : > { %v1541_v60 = vpop.f32.mrb[5].mxu1 }
 0x1f8   : > { %v5002_v26 = vpop.f32.mrb[6].mxu1 }
 0x1f9   : > { %v1551_v27 = vpop.f32.mrb[7].mxu1 }
 0x1fc   : > { %v5005_v24 = vpop.f32.mrb[8].mxu1 }
 0x1fd   : > { %v6884_v10 = vpop.f32.mrb[9].mxu1 }
 0x200   : > { %v6886_v63 = vpop.f32.mrb[10].mxu1 }
 0x201   : > { %v6888_v51 = vpop.f32.mrb[11].mxu1 }
 0x204   : > { %v6890_v14 = vpop.f32.mrb[12].mxu1 }
 0x205   : > { %v6892_v40 = vpop.f32.mrb[13].mxu1 }
 0x208   : > { %v6894_v37 = vpop.f32.mrb[14].mxu1 }
 0x209   : > { %v6896_v11 = vpop.f32.mrb[15].mxu1 }
 0x20d   : > { %v5313_v20 = vpop.f32.mrb[0].mxu0 }
 0x20e   : > { %v5511_v55 = vadd.f32 %v5313_v20, %v4993_v61  ;;  %v3492_v8 = vpop.f32.mrb[1].mxu0 }
 0x20f   : > { %v5512_v9 = vadd.f32 %v3492_v8, %v1521_v16 }
 0x210   : > { %v3691_v13 = vadd.f32 %v5511_v55, %v6898_v47 }
 0x211   : > { %v3690_v53 = vadd.f32 %v5512_v9, %v6898_v47  ;;  %v5316_v59 = vpop.f32.mrb[2].mxu0 }
 0x212   : > { %vm3723_vm1 = vcmp.ge.f32.partialorder %v3691_v13, 0.0  ;;  %v3755_v1 = vmul.f32 0.1, %v3691_v13  ;;  %v5513_v28 = vadd.f32 %v5316_v59, %v4996_v18  ;;  %v3502_v45 = vpop.f32.mrb[3].mxu0 }
 0x213   : > { %vm3722_vm2 = vcmp.ge.f32.partialorder %v3690_v53, 0.0  ;;  %v3754_v46 = vmul.f32 0.1, %v3690_v53  ;;  %v5514_v54 = vadd.f32 %v3502_v45, %v1531_v32 }
 0x214   : > { %v3787_v62 = vsel %vm3723_vm1, %v3691_v13, %v3755_v1  ;;  %v3693_v2 = vadd.f32 %v5513_v28, %v6898_v47 }
 0x215   : > { %3819 = vst [vmem:[%s6906_s25 + $0x8] sm:$0xff] %v3787_v62  ;;  %v3786_v0 = vsel %vm3722_vm2, %v3690_v53, %v3754_v46  ;;  %v3692_v3 = vadd.f32 %v5514_v54, %v6898_v47  ;;  %v5319_v4 = vpop.f32.mrb[4].mxu0 }
 0x216   : > { %3818 = vst [vmem:[%s6906_s25] sm:$0xff] %v3786_v0  ;;  %vm3725_vm3 = vcmp.ge.f32.partialorder %v3693_v2, 0.0  ;;  %v3757_v43 = vmul.f32 0.1, %v3693_v2  ;;  %v5515_v5 = vadd.f32 %v5319_v4, %v4999_v33  ;;  %v3512_v34 = vpop.f32.mrb[5].mxu0 }
 0x217   : > { %vm3724_vm4 = vcmp.ge.f32.partialorder %v3692_v3, 0.0  ;;  %v3756_v41 = vmul.f32 0.1, %v3692_v3  ;;  %v5516_v17 = vadd.f32 %v3512_v34, %v1541_v60 }
 0x218   : > { %v3789_v49 = vsel %vm3725_vm3, %v3693_v2, %v3757_v43  ;;  %v3695_v30 = vadd.f32 %v5515_v5, %v6898_v47 }
 0x219   : > { %3821 = vst [vmem:[%s6906_s25 + $0x18] sm:$0xff] %v3789_v49  ;;  %v3788_v19 = vsel %vm3724_vm4, %v3692_v3, %v3756_v41  ;;  %v3694_v12 = vadd.f32 %v5516_v17, %v6898_v47  ;;  %v5322_v25 = vpop.f32.mrb[6].mxu0 }
 0x21a   : > { %3820 = vst [vmem:[%s6906_s25 + $0x10] sm:$0xff] %v3788_v19  ;;  %vm3727_vm5 = vcmp.ge.f32.partialorder %v3695_v30, 0.0  ;;  %v3759_v7 = vmul.f32 0.1, %v3695_v30  ;;  %v5517_v39 = vadd.f32 %v5322_v25, %v5002_v26  ;;  %v3522_v6 = vpop.f32.mrb[7].mxu0 }
 0x21b   : > { %vm3726_vm6 = vcmp.ge.f32.partialorder %v3694_v12, 0.0  ;;  %v3758_v15 = vmul.f32 0.1, %v3694_v12  ;;  %v5518_v21 = vadd.f32 %v3522_v6, %v1551_v27 }
 0x21c   : > { %v3791_v22 = vsel %vm3727_vm5, %v3695_v30, %v3759_v7  ;;  %v3697_v23 = vadd.f32 %v5517_v39, %v6898_v47 }
 0x21d   : > { %3823 = vst [vmem:[%s6906_s25 + $0x28] sm:$0xff] %v3791_v22  ;;  %v3790_v29 = vsel %vm3726_vm6, %v3694_v12, %v3758_v15  ;;  %v3696_v31 = vadd.f32 %v5518_v21, %v6898_v47  ;;  %v5325_v35 = vpop.f32.mrb[8].mxu0 }
 0x21e   : > { %3822 = vst [vmem:[%s6906_s25 + $0x20] sm:$0xff] %v3790_v29  ;;  %vm3729_vm7 = vcmp.ge.f32.partialorder %v3697_v23, 0.0  ;;  %v3761_v36 = vmul.f32 0.1, %v3697_v23  ;;  %v5519_v38 = vadd.f32 %v5325_v35, %v5005_v24  ;;  %v3532_v42 = vpop.f32.mrb[9].mxu0 }
 0x21f   : > { %vm3728_vm8 = vcmp.ge.f32.partialorder %v3696_v31, 0.0  ;;  %v3760_v44 = vmul.f32 0.1, %v3696_v31  ;;  %v5520_v48 = vadd.f32 %v3532_v42, %v6884_v10 }
 0x220   : > { %v3793_v50 = vsel %vm3729_vm7, %v3697_v23, %v3761_v36  ;;  %v3699_v52 = vadd.f32 %v5519_v38, %v6898_v47 }
 0x221   : > { %3825 = vst [vmem:[%s6906_s25 + $0x38] sm:$0xff] %v3793_v50  ;;  %v3792_v56 = vsel %vm3728_vm8, %v3696_v31, %v3760_v44  ;;  %v3698_v57 = vadd.f32 %v5520_v48, %v6898_v47  ;;  %v5328_v58 = vpop.f32.mrb[10].mxu0 }
 0x222   : > { %3824 = vst [vmem:[%s6906_s25 + $0x30] sm:$0xff] %v3792_v56  ;;  %vm3731_vm9 = vcmp.ge.f32.partialorder %v3699_v52, 0.0  ;;  %v3763_v61 = vmul.f32 0.1, %v3699_v52  ;;  %v5521_v16 = vadd.f32 %v5328_v58, %v6886_v63  ;;  %v3542_v18 = vpop.f32.mrb[11].mxu0 }
 0x223   : > { %vm3730_vm10 = vcmp.ge.f32.partialorder %v3698_v57, 0.0  ;;  %v3762_v32 = vmul.f32 0.1, %v3698_v57  ;;  %v5522_v33 = vadd.f32 %v3542_v18, %v6888_v51 }
 0x224   : > { %v3795_v60 = vsel %vm3731_vm9, %v3699_v52, %v3763_v61  ;;  %v3701_v26 = vadd.f32 %v5521_v16, %v6898_v47 }
 0x225   : > { %3827 = vst [vmem:[%s6906_s25 + $0x48] sm:$0xff] %v3795_v60  ;;  %v3794_v27 = vsel %vm3730_vm10, %v3698_v57, %v3762_v32  ;;  %v3700_v24 = vadd.f32 %v5522_v33, %v6898_v47  ;;  %v5331_v10 = vpop.f32.mrb[12].mxu0 }
 0x226   : > { %3826 = vst [vmem:[%s6906_s25 + $0x40] sm:$0xff] %v3794_v27  ;;  %vm3733_vm11 = vcmp.ge.f32.partialorder %v3701_v26, 0.0  ;;  %v3765_v20 = vmul.f32 0.1, %v3701_v26  ;;  %v5523_v63 = vadd.f32 %v5331_v10, %v6890_v14  ;;  %v3552_v55 = vpop.f32.mrb[13].mxu0 }
 0x227   : > { %vm3732_vm12 = vcmp.ge.f32.partialorder %v3700_v24, 0.0  ;;  %v3764_v8 = vmul.f32 0.1, %v3700_v24  ;;  %v5524_v51 = vadd.f32 %v3552_v55, %v6892_v40 }
 0x228   : > { %v3797_v9 = vsel %vm3733_vm11, %v3701_v26, %v3765_v20  ;;  %v3703_v13 = vadd.f32 %v5523_v63, %v6898_v47 }
 0x229   : > { %3829 = vst [vmem:[%s6906_s25 + $0x58] sm:$0xff] %v3797_v9  ;;  %v3796_v53 = vsel %vm3732_vm12, %v3700_v24, %v3764_v8  ;;  %v3702_v59 = vadd.f32 %v5524_v51, %v6898_v47  ;;  %v5334_v1 = vpop.f32.mrb[14].mxu0 }
 0x22a   : > { %3828 = vst [vmem:[%s6906_s25 + $0x50] sm:$0xff] %v3796_v53  ;;  %vm3735_vm13 = vcmp.ge.f32.partialorder %v3703_v13, 0.0  ;;  %v3767_v28 = vmul.f32 0.1, %v3703_v13  ;;  %v5525_v14 = vadd.f32 %v5334_v1, %v6894_v37  ;;  %v3562_v45 = vpop.f32.mrb[15].mxu0 }
 0x22b   : > { %vm3734_vm14 = vcmp.ge.f32.partialorder %v3702_v59, 0.0  ;;  %v3766_v46 = vmul.f32 0.1, %v3702_v59  ;;  %v5526_v40 = vadd.f32 %v3562_v45, %v6896_v11 }
 0x22c   : > { %v3799_v54 = vsel %vm3735_vm13, %v3703_v13, %v3767_v28  ;;  %v3705_v62 = vadd.f32 %v5525_v14, %v6898_v47  ;;  %v5081_v2 = vpop.f32.mrb[16].mxu1 }
 0x22d   : > { %3831 = vst [vmem:[%s6906_s25 + $0x68] sm:$0xff] %v3799_v54  ;;  %v3798_v0 = vsel %vm3734_vm14, %v3702_v59, %v3766_v46  ;;  %v3704_v3 = vadd.f32 %v5526_v40, %v6898_v47  ;;  %v5337_v4 = vpop.f32.mrb[16].mxu0  ;;  %v1995_v43 = vpop.f32.mrb[17].mxu1 }
 0x22e   : > { %3830 = vst [vmem:[%s6906_s25 + $0x60] sm:$0xff] %v3798_v0  ;;  %vm3737_vm15 = vcmp.ge.f32.partialorder %v3705_v62, 0.0  ;;  %v3769_v37 = vmul.f32 0.1, %v3705_v62  ;;  %v5527_v5 = vadd.f32 %v5337_v4, %v5081_v2  ;;  %v3572_v34 = vpop.f32.mrb[17].mxu0 }
 0x22f   : > { %vm3736_vm0 = vcmp.ge.f32.partialorder %v3704_v3, 0.0  ;;  %v3768_v41 = vmul.f32 0.1, %v3704_v3  ;;  %v5528_v11 = vadd.f32 %v3572_v34, %v1995_v43 }
 0x230   : > { %v3801_v17 = vsel %vm3737_vm15, %v3705_v62, %v3769_v37  ;;  %v3707_v49 = vadd.f32 %v5527_v5, %v6898_v47  ;;  %v5084_v30 = vpop.f32.mrb[18].mxu1 }
 0x231   : > { %3833 = vst [vmem:[%s6906_s25 + $0x78] sm:$0xff] %v3801_v17  ;;  %v3800_v19 = vsel %vm3736_vm0, %v3704_v3, %v3768_v41  ;;  %v3706_v12 = vadd.f32 %v5528_v11, %v6898_v47  ;;  %v5340_v25 = vpop.f32.mrb[18].mxu0  ;;  %v2005_v7 = vpop.f32.mrb[19].mxu1 }
 0x232   : > { %3832 = vst [vmem:[%s6906_s25 + $0x70] sm:$0xff] %v3800_v19  ;;  %vm3739_vm1 = vcmp.ge.f32.partialorder %v3707_v49, 0.0  ;;  %v3771_v39 = vmul.f32 0.1, %v3707_v49  ;;  %v5529_v6 = vadd.f32 %v5340_v25, %v5084_v30  ;;  %v3582_v15 = vpop.f32.mrb[19].mxu0 }
 0x233   : > { %vm3738_vm2 = vcmp.ge.f32.partialorder %v3706_v12, 0.0  ;;  %v3770_v21 = vmul.f32 0.1, %v3706_v12  ;;  %v5530_v22 = vadd.f32 %v3582_v15, %v2005_v7 }
 0x234   : > { %v3803_v23 = vsel %vm3739_vm1, %v3707_v49, %v3771_v39  ;;  %v3709_v29 = vadd.f32 %v5529_v6, %v6898_v47  ;;  %v5087_v31 = vpop.f32.mrb[20].mxu1 }
 0x235   : > { %3835 = vst [vmem:[%s6906_s25 + $0x88] sm:$0xff] %v3803_v23  ;;  %v3802_v35 = vsel %vm3738_vm2, %v3706_v12, %v3770_v21  ;;  %v3708_v36 = vadd.f32 %v5530_v22, %v6898_v47  ;;  %v5343_v38 = vpop.f32.mrb[20].mxu0  ;;  %v2015_v42 = vpop.f32.mrb[21].mxu1 }
 0x236   : > { %3834 = vst [vmem:[%s6906_s25 + $0x80] sm:$0xff] %v3802_v35  ;;  %vm3741_vm3 = vcmp.ge.f32.partialorder %v3709_v29, 0.0  ;;  %v3773_v44 = vmul.f32 0.1, %v3709_v29  ;;  %v5531_v48 = vadd.f32 %v5343_v38, %v5087_v31  ;;  %v3592_v50 = vpop.f32.mrb[21].mxu0 }
 0x237   : > { %vm3740_vm4 = vcmp.ge.f32.partialorder %v3708_v36, 0.0  ;;  %v3772_v52 = vmul.f32 0.1, %v3708_v36  ;;  %v5532_v56 = vadd.f32 %v3592_v50, %v2015_v42 }
 0x238   : > { %v3805_v57 = vsel %vm3741_vm3, %v3709_v29, %v3773_v44  ;;  %v3711_v58 = vadd.f32 %v5531_v48, %v6898_v47  ;;  %v5090_v61 = vpop.f32.mrb[22].mxu1 }
 0x239   : > { %3837 = vst [vmem:[%s6906_s25 + $0x98] sm:$0xff] %v3805_v57  ;;  %v3804_v16 = vsel %vm3740_vm4, %v3708_v36, %v3772_v52  ;;  %v3710_v18 = vadd.f32 %v5532_v56, %v6898_v47  ;;  %v5346_v32 = vpop.f32.mrb[22].mxu0  ;;  %v2025_v33 = vpop.f32.mrb[23].mxu1 }
 0x23a   : > { %3836 = vst [vmem:[%s6906_s25 + $0x90] sm:$0xff] %v3804_v16  ;;  %vm3743_vm5 = vcmp.ge.f32.partialorder %v3711_v58, 0.0  ;;  %v3775_v60 = vmul.f32 0.1, %v3711_v58  ;;  %v5533_v26 = vadd.f32 %v5346_v32, %v5090_v61  ;;  %v3602_v27 = vpop.f32.mrb[23].mxu0 }
 0x23b   : > { %vm3742_vm6 = vcmp.ge.f32.partialorder %v3710_v18, 0.0  ;;  %v3774_v24 = vmul.f32 0.1, %v3710_v18  ;;  %v5534_v10 = vadd.f32 %v3602_v27, %v2025_v33 }
 0x23c   : > { %v3807_v20 = vsel %vm3743_vm5, %v3711_v58, %v3775_v60  ;;  %v3713_v63 = vadd.f32 %v5533_v26, %v6898_v47  ;;  %v5093_v55 = vpop.f32.mrb[24].mxu1 }
 0x23d   : > { %3839 = vst [vmem:[%s6906_s25 + $0xa8] sm:$0xff] %v3807_v20  ;;  %v3806_v8 = vsel %vm3742_vm6, %v3710_v18, %v3774_v24  ;;  %v3712_v51 = vadd.f32 %v5534_v10, %v6898_v47  ;;  %v5349_v9 = vpop.f32.mrb[24].mxu0  ;;  %v2035_v13 = vpop.f32.mrb[25].mxu1 }
 0x23e   : > { %3838 = vst [vmem:[%s6906_s25 + $0xa0] sm:$0xff] %v3806_v8  ;;  %vm3745_vm7 = vcmp.ge.f32.partialorder %v3713_v63, 0.0  ;;  %v3777_v53 = vmul.f32 0.1, %v3713_v63  ;;  %v5535_v59 = vadd.f32 %v5349_v9, %v5093_v55  ;;  %v3612_v1 = vpop.f32.mrb[25].mxu0 }
 0x23f   : > { %vm3744_vm8 = vcmp.ge.f32.partialorder %v3712_v51, 0.0  ;;  %v3776_v28 = vmul.f32 0.1, %v3712_v51  ;;  %v5536_v14 = vadd.f32 %v3612_v1, %v2035_v13 }
 0x240   : > { %v3809_v45 = vsel %vm3745_vm7, %v3713_v63, %v3777_v53  ;;  %v3715_v46 = vadd.f32 %v5535_v59, %v6898_v47  ;;  %v5096_v40 = vpop.f32.mrb[26].mxu1 }
 0x241   : > { %3841 = vst [vmem:[%s6906_s25 + $0xb8] sm:$0xff] %v3809_v45  ;;  %v3808_v54 = vsel %vm3744_vm8, %v3712_v51, %v3776_v28  ;;  %v3714_v62 = vadd.f32 %v5536_v14, %v6898_v47  ;;  %v5352_v2 = vpop.f32.mrb[26].mxu0  ;;  %v2045_v0 = vpop.f32.mrb[27].mxu1 }
 0x242   : > { %3840 = vst [vmem:[%s6906_s25 + $0xb0] sm:$0xff] %v3808_v54  ;;  %vm3747_vm9 = vcmp.ge.f32.partialorder %v3715_v46, 0.0  ;;  %v3779_v3 = vmul.f32 0.1, %v3715_v46  ;;  %v5537_v4 = vadd.f32 %v5352_v2, %v5096_v40  ;;  %v3622_v43 = vpop.f32.mrb[27].mxu0 }
 0x243   : > { %vm3746_vm10 = vcmp.ge.f32.partialorder %v3714_v62, 0.0  ;;  %v3778_v37 = vmul.f32 0.1, %v3714_v62  ;;  %v5538_v5 = vadd.f32 %v3622_v43, %v2045_v0 }
 0x244   : > { %v3811_v34 = vsel %vm3747_vm9, %v3715_v46, %v3779_v3  ;;  %v3717_v41 = vadd.f32 %v5537_v4, %v6898_v47  ;;  %v5099_v11 = vpop.f32.mrb[28].mxu1 }
 0x245   : > { %3843 = vst [vmem:[%s6906_s25 + $0xc8] sm:$0xff] %v3811_v34  ;;  %v3810_v17 = vsel %vm3746_vm10, %v3714_v62, %v3778_v37  ;;  %v3716_v49 = vadd.f32 %v5538_v5, %v6898_v47  ;;  %v5355_v30 = vpop.f32.mrb[28].mxu0  ;;  %v2055_v19 = vpop.f32.mrb[29].mxu1 }
 0x246   : > { %3842 = vst [vmem:[%s6906_s25 + $0xc0] sm:$0xff] %v3810_v17  ;;  %vm3749_vm11 = vcmp.ge.f32.partialorder %v3717_v41, 0.0  ;;  %v3781_v12 = vmul.f32 0.1, %v3717_v41  ;;  %v5539_v25 = vadd.f32 %v5355_v30, %v5099_v11  ;;  %v3632_v7 = vpop.f32.mrb[29].mxu0 }
 0x247   : > { %vm3748_vm12 = vcmp.ge.f32.partialorder %v3716_v49, 0.0  ;;  %v3780_v39 = vmul.f32 0.1, %v3716_v49  ;;  %v5540_v6 = vadd.f32 %v3632_v7, %v2055_v19 }
 0x248   : > { %v3813_v15 = vsel %vm3749_vm11, %v3717_v41, %v3781_v12  ;;  %v3719_v21 = vadd.f32 %v5539_v25, %v6898_v47  ;;  %v5102_v22 = vpop.f32.mrb[30].mxu1 }
 0x249   : > { %3845 = vst [vmem:[%s6906_s25 + $0xd8] sm:$0xff] %v3813_v15  ;;  %v3812_v23 = vsel %vm3748_vm12, %v3716_v49, %v3780_v39  ;;  %v3718_v29 = vadd.f32 %v5540_v6, %v6898_v47  ;;  %v5358_v31 = vpop.f32.mrb[30].mxu0  ;;  %v2065_v35 = vpop.f32.mrb[31].mxu1 }
 0x24a   : > { %3844 = vst [vmem:[%s6906_s25 + $0xd0] sm:$0xff] %v3812_v23  ;;  %vm3751_vm13 = vcmp.ge.f32.partialorder %v3719_v21, 0.0  ;;  %v3783_v36 = vmul.f32 0.1, %v3719_v21  ;;  %v5541_v38 = vadd.f32 %v5358_v31, %v5102_v22  ;;  %v3642_v42 = vpop.f32.mrb[31].mxu0 }
 0x24b   : > { %vm3750_vm14 = vcmp.ge.f32.partialorder %v3718_v29, 0.0  ;;  %v3782_v44 = vmul.f32 0.1, %v3718_v29  ;;  %v5542_v48 = vadd.f32 %v3642_v42, %v2065_v35 }
 0x24c   : > { %v3815_v50 = vsel %vm3751_vm13, %v3719_v21, %v3783_v36  ;;  %v3721_v52 = vadd.f32 %v5541_v38, %v6898_v47 }
 0x24d   : > { %3847 = vst [vmem:[%s6906_s25 + $0xe8] sm:$0xff] %v3815_v50  ;;  %v3814_v56 = vsel %vm3750_vm14, %v3718_v29, %v3782_v44  ;;  %v3720_v57 = vadd.f32 %v5542_v48, %v6898_v47 }
 0x24e   : > { %3846 = vst [vmem:[%s6906_s25 + $0xe0] sm:$0xff] %v3814_v56  ;;  %vm3753_vm15 = vcmp.ge.f32.partialorder %v3721_v52, 0.0  ;;  %v3785_v58 = vmul.f32 0.1, %v3721_v52 }
 0x24f   : > { %vm3752_vm0 = vcmp.ge.f32.partialorder %v3720_v57, 0.0  ;;  %v3784_v61 = vmul.f32 0.1, %v3720_v57 }
 0x250   : > { %v3817_v16 = vsel %vm3753_vm15, %v3721_v52, %v3785_v58 }
 0x251   : > { %3849 = vst [vmem:[%s6906_s25 + $0xf8] sm:$0xff] %v3817_v16  ;;  %v3816_v18 = vsel %vm3752_vm0, %v3720_v57, %v3784_v61 }
 0x252   : > { %3848 = vst [vmem:[%s6906_s25 + $0xf0] sm:$0xff] %v3816_v18 }
 0x253 PF: > { %s15_s12 = sadd.s32 1, %s5869_s12  }
 0x254   : > { %p12_p5 = scmp.ge.s32.totalorder %s15_s12, 4  }
 0x256   :  { %14 = sbr.rel (!%p12_p5) target bundleno = 2 (0x2), region = 81 }
 0x25d   :  { %3871 = vsyncpa [#allocation3], 1 }
 0x25e   :  { %3873 = vsyncpa [#allocation3 + $0x1], 1 }
 0x25f   :  { %3874 = vsyncpa [#allocation5], 1 }

// kernel: task_classifier_forward.9
= control target key start
LH: loop header
LB: loop body
LE: loop exit
PB: predicated region body
PF: predicated region fallthrough
CT: control target
= control target key end

     0   :  { %10 = vsyncpa [#allocation4], 0  ;;  %s3448_s18 = smov 0   ;;  %s4127_s0 = inlined_call_operand.vmem [shape: f32[2,32768], index: 0, kind: input, shape index: {}]   ;;  %s4128_s1 = inlined_call_operand.vmem [shape: f32[32768,32], index: 1, kind: input, shape index: {}]   ;;  %s4129_s2 = inlined_call_operand.vmem [shape: f32[1,32], index: 2, kind: input, shape index: {}]   ;;  %s4130_s3 = inlined_call_operand.vmem [shape: f32[32,8], index: 3, kind: input, shape index: {}]   ;;  %s4131_s4 = inlined_call_operand.vmem [shape: f32[1,8], index: 4, kind: input, shape index: {}]   ;;  %s4132_s5 = inlined_call_operand.hbm [shape: f32[2,8], index: 5, kind: output, shape index: {}]  }
   0x1 LB: > { %s3454_s19 = sadd.s32 4294967295, %s3410_s18   ;;  %p2234_p0 = scmp.ge.s32.totalorder %s3410_s18, 1  ;;  %s3410_s18 = sphi %s3448_s18, %s16_s18  }
   0x2   : > { %p195_p1 = scmp.lt.s32.totalorder %s3410_s18, 9 }
   0x4   : > { %p196_p2 = pnand %p2234_p0, %p195_p1 }
   0x5   : > { %s2235_s20 = sshll.u32 (!%p196_p2), %s3454_s19, 5  ;;  %s2237_s21 = sshll.u32 (!%p196_p2), %s3454_s19, 9 }
   0x6   : > { %199 = sbr.rel (%p196_p2) target bundleno = 1070 (0x42e), region = 40  ;;  %p224_p3 = scmp.lt.s32.totalorder (!%p196_p2), %s2235_s20, 255 }
   0x7   : > { %p230_p4 = scmp.lt.s32.totalorder (!%p196_p2), %s2237_s21, 4095  ;;  %p2239_p5 = scmp.ne.s32.totalorder (!%p196_p2), %s3454_s19, 0 }
   0xd   : > { %s4134_s20 = smov (!%p224_p3, %s2235_s20), 255  ;;  %s4136_s21 = smov (!%p230_p4, %s2237_s21), 4095 }
   0xe   : > { %s2236_s22 = sshll.u32 %s4134_s20, 1  ;;  %s2238_s26 = sshll.u32 %s4136_s21, 3  ;;  %vm239_vm0 = vcmask (!%p2239_p5), 254976   ;;  %v3412_v0 = vmov (!%p2239_p5), 0.0  }
   0xf   : > { %s3463_s25 = scalar_lea.vmem %s4127_s0, %s2236_s22  ;;  %s3468_s29 = scalar_lea.vmem %s4128_s1, %s2238_s26  ;;  %240 = vst.msk [vmem:[#allocation2] sm:$0x3] (!%p2239_p5), %vm239_vm0, %v3412_v0 }
  0x10   : > { %238 = sbr.rel (%p2239_p5) target bundleno = 23 (0x17), region = 44 }
  0x17 PF: > { %v266_v1 = vld [vmem:[%s3468_s29 + $0x80] sm:$0xff]  ;;  %v267_v2 = vld [vmem:[%s3468_s29 + $0x88] sm:$0xff]  ;;  %v268_v12 = vld [vmem:[%s3468_s29 + $0x90] sm:$0xff]  ;;  %v3413_v48 = vmov 1983009808   ;;  %v774_v50 = vlaneseq  ;;  %vm2059_vm1 = vcmask 254976  }
  0x18   : > { %v298_v3 = vld [vmem:[%s3468_s29 + $0x180] sm:$0xff]  ;;  %v2824_v4 = vpack.c.bf16 %v267_v2, %v266_v1  ;;  %v299_v5 = vld [vmem:[%s3468_s29 + $0x188] sm:$0xff]  ;;  %v269_v14 = vld [vmem:[%s3468_s29 + $0x98] sm:$0xff]  ;;  %v772_v49 = vunpack.c.l.s4 %v3413_v48  ;;  %p2240_p6 = scmp.ne.s32.totalorder %s3454_s19, 7 }
  0x19   : > { %v250_v6 = vld [vmem:[%s3468_s29] sm:$0xff]  ;;  %v251_v7 = vld [vmem:[%s3468_s29 + $0x8] sm:$0xff]  ;;  %v2856_v8 = vpack.c.bf16 %v299_v5, %v298_v3  ;;  %v300_v15 = vld [vmem:[%s3468_s29 + $0x190] sm:$0xff]  ;;  %v2828_v17 = vpack.c.bf16 %v269_v14, %v268_v12  ;;  %v775_v1 = vshrl.u32 %v774_v50, 7  ;;  %vm3415_vm2 = vmmov (!%p2240_p6), 0  }
  0x1a   : > { %v2826_v9 = vpack.c.bf16 %v251_v7, %v250_v6  ;;  %v282_v10 = vld [vmem:[%s3468_s29 + $0x100] sm:$0xff]  ;;  %v283_v11 = vld [vmem:[%s3468_s29 + $0x108] sm:$0xff]  ;;  %2825 = vmatprep.subr.bf16.mxu0 %v2824_v4  ;;  %v301_v16 = vld [vmem:[%s3468_s29 + $0x198] sm:$0xff]  ;;  %v773_v0 = vunpack.c.0.s8 %v772_v49  ;;  %vm2086_vm3 = vcmask (!%p2240_p6), 261120   ;;  %vm2160_vm4 = vcmask (!%p2240_p6), 58368  }
  0x1b   : > { %v2858_v13 = vpack.c.bf16 %v283_v11, %v282_v10  ;;  %2857 = vmatprep.subr.bf16.mxu1 %v2856_v8  ;;  %v2860_v18 = vpack.c.bf16 %v301_v16, %v300_v15  ;;  %v252_v19 = vld [vmem:[%s3468_s29 + $0x10] sm:$0xff]  ;;  %v253_v20 = vld [vmem:[%s3468_s29 + $0x18] sm:$0xff]  ;;  %v270_v24 = vld [vmem:[%s3468_s29 + $0xa0] sm:$0xff] }
  0x1c   : > { %2827 = vmatpush3.bf16.msra.mxu0 %v2826_v9  ;;  %v284_v21 = vld [vmem:[%s3468_s29 + $0x110] sm:$0xff]  ;;  %v2830_v22 = vpack.c.bf16 %v253_v20, %v252_v19  ;;  %v285_v23 = vld [vmem:[%s3468_s29 + $0x118] sm:$0xff]  ;;  %v271_v25 = vld [vmem:[%s3468_s29 + $0xa8] sm:$0xff]  ;;  %v3521_v14 = vsub.s32 %v773_v0, %v775_v1 }
  0x1d   : > { %2859 = vmatpush3.bf16.msra.mxu1 %v2858_v13  ;;  %2829 = vmatprep.subr.bf16.mxu0 %v2828_v17  ;;  %v2862_v26 = vpack.c.bf16 %v285_v23, %v284_v21  ;;  %v2832_v27 = vpack.c.bf16 %v271_v25, %v270_v24  ;;  %v302_v28 = vld [vmem:[%s3468_s29 + $0x1a0] sm:$0xff]  ;;  %v303_v29 = vld [vmem:[%s3468_s29 + $0x1a8] sm:$0xff]  ;;  %v272_v36 = vld [vmem:[%s3468_s29 + $0xb0] sm:$0xff] }
  0x1e   : > { %2861 = vmatprep.subr.bf16.mxu1 %v2860_v18  ;;  %v254_v30 = vld [vmem:[%s3468_s29 + $0x20] sm:$0xff]  ;;  %v2864_v31 = vpack.c.bf16 %v303_v29, %v302_v28  ;;  %v255_v32 = vld [vmem:[%s3468_s29 + $0x28] sm:$0xff]  ;;  %v273_v37 = vld [vmem:[%s3468_s29 + $0xb8] sm:$0xff] }
  0x1f   : > { %v286_v33 = vld [vmem:[%s3468_s29 + $0x120] sm:$0xff]  ;;  %v287_v34 = vld [vmem:[%s3468_s29 + $0x128] sm:$0xff]  ;;  %v2834_v35 = vpack.c.bf16 %v255_v32, %v254_v30  ;;  %v304_v38 = vld [vmem:[%s3468_s29 + $0x1b0] sm:$0xff]  ;;  %v2836_v40 = vpack.c.bf16 %v273_v37, %v272_v36 }
  0x20   : > { %2831 = vmatpush3.bf16.msra.mxu0 %v2830_v22  ;;  %v2866_v39 = vpack.c.bf16 %v287_v34, %v286_v33  ;;  %v305_v41 = vld [vmem:[%s3468_s29 + $0x1b8] sm:$0xff]  ;;  %v256_v42 = vld [vmem:[%s3468_s29 + $0x30] sm:$0xff]  ;;  %v274_v47 = vld [vmem:[%s3468_s29 + $0xc0] sm:$0xff] }
  0x21   : > { %2863 = vmatpush3.bf16.msra.mxu1 %v2862_v26  ;;  %2833 = vmatprep.subr.bf16.mxu0 %v2832_v27  ;;  %v257_v43 = vld [vmem:[%s3468_s29 + $0x38] sm:$0xff]  ;;  %v2868_v44 = vpack.c.bf16 %v305_v41, %v304_v38  ;;  %v288_v45 = vld [vmem:[%s3468_s29 + $0x130] sm:$0xff]  ;;  %v275_v51 = vld [vmem:[%s3468_s29 + $0xc8] sm:$0xff] }
  0x22   : > { %2865 = vmatprep.subr.bf16.mxu1 %v2864_v31  ;;  %v289_v46 = vld [vmem:[%s3468_s29 + $0x138] sm:$0xff]  ;;  %v306_v52 = vld [vmem:[%s3468_s29 + $0x1c0] sm:$0xff]  ;;  %v307_v53 = vld [vmem:[%s3468_s29 + $0x1c8] sm:$0xff]  ;;  %v2838_v54 = vpack.c.bf16 %v257_v43, %v256_v42  ;;  %v2840_v56 = vpack.c.bf16 %v275_v51, %v274_v47 }
  0x23   : > { %v2870_v55 = vpack.c.bf16 %v289_v46, %v288_v45  ;;  %v258_v57 = vld [vmem:[%s3468_s29 + $0x40] sm:$0xff]  ;;  %v259_v58 = vld [vmem:[%s3468_s29 + $0x48] sm:$0xff]  ;;  %v2872_v60 = vpack.c.bf16 %v307_v53, %v306_v52  ;;  %v276_v62 = vld [vmem:[%s3468_s29 + $0xd0] sm:$0xff] }
  0x24   : > { %2835 = vmatpush3.bf16.msra.mxu0 %v2834_v35  ;;  %v290_v59 = vld [vmem:[%s3468_s29 + $0x140] sm:$0xff]  ;;  %v291_v61 = vld [vmem:[%s3468_s29 + $0x148] sm:$0xff]  ;;  %v277_v63 = vld [vmem:[%s3468_s29 + $0xd8] sm:$0xff]  ;;  %v2842_v4 = vpack.c.bf16 %v259_v58, %v258_v57 }
  0x25   : > { %2867 = vmatpush3.bf16.msra.mxu1 %v2866_v39  ;;  %2837 = vmatprep.subr.bf16.mxu0 %v2836_v40  ;;  %v308_v2 = vld [vmem:[%s3468_s29 + $0x1d0] sm:$0xff]  ;;  %v309_v3 = vld [vmem:[%s3468_s29 + $0x1d8] sm:$0xff]  ;;  %v2874_v5 = vpack.c.bf16 %v291_v61, %v290_v59  ;;  %v2844_v6 = vpack.c.bf16 %v277_v63, %v276_v62  ;;  %v278_v12 = vld [vmem:[%s3468_s29 + $0xe0] sm:$0xff] }
  0x26   : > { %2869 = vmatprep.subr.bf16.mxu1 %v2868_v44  ;;  %v260_v7 = vld [vmem:[%s3468_s29 + $0x50] sm:$0xff]  ;;  %v261_v8 = vld [vmem:[%s3468_s29 + $0x58] sm:$0xff]  ;;  %v2876_v10 = vpack.c.bf16 %v309_v3, %v308_v2  ;;  %v279_v13 = vld [vmem:[%s3468_s29 + $0xe8] sm:$0xff] }
  0x27   : > { %v292_v9 = vld [vmem:[%s3468_s29 + $0x150] sm:$0xff]  ;;  %v293_v11 = vld [vmem:[%s3468_s29 + $0x158] sm:$0xff]  ;;  %v310_v15 = vld [vmem:[%s3468_s29 + $0x1e0] sm:$0xff]  ;;  %v2846_v17 = vpack.c.bf16 %v261_v8, %v260_v7  ;;  %v2848_v20 = vpack.c.bf16 %v279_v13, %v278_v12 }
  0x28   : > { %2839 = vmatpush3.bf16.msra.mxu0 %v2838_v54  ;;  %v311_v16 = vld [vmem:[%s3468_s29 + $0x1e8] sm:$0xff]  ;;  %v262_v18 = vld [vmem:[%s3468_s29 + $0x60] sm:$0xff]  ;;  %v2878_v19 = vpack.c.bf16 %v293_v11, %v292_v9  ;;  %v280_v26 = vld [vmem:[%s3468_s29 + $0xf0] sm:$0xff] }
  0x29   : > { %2871 = vmatpush3.bf16.msra.mxu1 %v2870_v55  ;;  %2841 = vmatprep.subr.bf16.mxu0 %v2840_v56  ;;  %v263_v21 = vld [vmem:[%s3468_s29 + $0x68] sm:$0xff]  ;;  %v294_v22 = vld [vmem:[%s3468_s29 + $0x160] sm:$0xff]  ;;  %v2880_v24 = vpack.c.bf16 %v311_v16, %v310_v15  ;;  %v281_v27 = vld [vmem:[%s3468_s29 + $0xf8] sm:$0xff] }
  0x2a   : > { %2873 = vmatprep.subr.bf16.mxu1 %v2872_v60  ;;  %v242_v23 = vld [vmem:[%s3463_s25] sm:$0xff]  ;;  %v295_v25 = vld [vmem:[%s3468_s29 + $0x168] sm:$0xff]  ;;  %v312_v30 = vld [vmem:[%s3468_s29 + $0x1f0] sm:$0xff]  ;;  %v2850_v32 = vpack.c.bf16 %v263_v21, %v262_v18  ;;  %v2852_v36 = vpack.c.bf16 %v281_v27, %v280_v26 }
  0x2b   : > { %v777_v28 = vrot.slane %v242_v23, %v3521_v14  ;;  %v770_v29 = vcombine.high %v242_v23, %v242_v23  ;;  %v313_v31 = vld [vmem:[%s3468_s29 + $0x1f8] sm:$0xff]  ;;  %v2882_v35 = vpack.c.bf16 %v295_v25, %v294_v22  ;;  %v264_v37 = vld [vmem:[%s3468_s29 + $0x70] sm:$0xff]  ;;  %v330_v43 = vld [vmem:[%s3468_s29 + $0x280] sm:$0xff] }
  0x2c   : > { %2843 = vmatpush3.bf16.msra.mxu0 %v2842_v4  ;;  %v265_v38 = vld [vmem:[%s3468_s29 + $0x78] sm:$0xff]  ;;  %v296_v39 = vld [vmem:[%s3468_s29 + $0x170] sm:$0xff]  ;;  %v2884_v40 = vpack.c.bf16 %v313_v31, %v312_v30  ;;  %v331_v44 = vld [vmem:[%s3468_s29 + $0x288] sm:$0xff] }
  0x2d   : > { %2875 = vmatpush3.bf16.msra.mxu1 %v2874_v5  ;;  %2845 = vmatprep.subr.bf16.mxu0 %v2844_v6  ;;  %v785_v33 = vcombine.high %v777_v28, %v777_v28  ;;  %v784_v34 = vrot.slane %v770_v29, %v3521_v14  ;;  %v297_v41 = vld [vmem:[%s3468_s29 + $0x178] sm:$0xff]  ;;  %v362_v45 = vld [vmem:[%s3468_s29 + $0x380] sm:$0xff]  ;;  %v363_v46 = vld [vmem:[%s3468_s29 + $0x388] sm:$0xff]  ;;  %v2854_v47 = vpack.c.bf16 %v265_v38, %v264_v37 }
  0x2e   : > { %2877 = vmatprep.subr.bf16.mxu1 %v2876_v10  ;;  %v2886_v48 = vpack.c.bf16 %v297_v41, %v296_v39  ;;  %v2888_v49 = vpack.c.bf16 %v331_v44, %v330_v43  ;;  %v314_v50 = vld [vmem:[%s3468_s29 + $0x200] sm:$0xff]  ;;  %v315_v51 = vld [vmem:[%s3468_s29 + $0x208] sm:$0xff]  ;;  %v2920_v53 = vpack.c.bf16 %v363_v46, %v362_v45  ;;  %v332_v55 = vld [vmem:[%s3468_s29 + $0x290] sm:$0xff] }
  0x2f   : > { %1002 = vmatprep.mubr.f32.mxu0 %v785_v33  ;;  %v786_v42 = vcombine.high %v784_v34, %v784_v34  ;;  %v346_v52 = vld [vmem:[%s3468_s29 + $0x300] sm:$0xff]  ;;  %v347_v54 = vld [vmem:[%s3468_s29 + $0x308] sm:$0xff]  ;;  %v333_v56 = vld [vmem:[%s3468_s29 + $0x298] sm:$0xff]  ;;  %v2890_v59 = vpack.c.bf16 %v315_v51, %v314_v50 }
  0x30   : > { %2847 = vmatpush3.bf16.msra.mxu0 %v2846_v17  ;;  %v364_v57 = vld [vmem:[%s3468_s29 + $0x390] sm:$0xff]  ;;  %v365_v58 = vld [vmem:[%s3468_s29 + $0x398] sm:$0xff]  ;;  %v2922_v60 = vpack.c.bf16 %v347_v54, %v346_v52  ;;  %v2892_v61 = vpack.c.bf16 %v333_v56, %v332_v55  ;;  %v334_v3 = vld [vmem:[%s3468_s29 + $0x2a0] sm:$0xff] }
  0x31   : > { %2879 = vmatpush3.bf16.msra.mxu1 %v2878_v19  ;;  %2849 = vmatprep.subr.bf16.mxu0 %v2848_v20  ;;  %v316_v62 = vld [vmem:[%s3468_s29 + $0x210] sm:$0xff]  ;;  %v317_v63 = vld [vmem:[%s3468_s29 + $0x218] sm:$0xff]  ;;  %v2924_v1 = vpack.c.bf16 %v365_v58, %v364_v57  ;;  %v335_v4 = vld [vmem:[%s3468_s29 + $0x2a8] sm:$0xff] }
  0x32   : > { %2881 = vmatprep.subr.bf16.mxu1 %v2880_v24  ;;  %1072 = vmatprep.mubr.f32.mxu1 %v786_v42  ;;  %v348_v0 = vld [vmem:[%s3468_s29 + $0x310] sm:$0xff]  ;;  %v349_v2 = vld [vmem:[%s3468_s29 + $0x318] sm:$0xff]  ;;  %v366_v5 = vld [vmem:[%s3468_s29 + $0x3a0] sm:$0xff]  ;;  %v2894_v7 = vpack.c.bf16 %v317_v63, %v316_v62  ;;  %v2896_v9 = vpack.c.bf16 %v335_v4, %v334_v3 }
  0x33   : > { %v367_v6 = vld [vmem:[%s3468_s29 + $0x3a8] sm:$0xff]  ;;  %v2926_v8 = vpack.c.bf16 %v349_v2, %v348_v0  ;;  %v318_v10 = vld [vmem:[%s3468_s29 + $0x220] sm:$0xff]  ;;  %v336_v16 = vld [vmem:[%s3468_s29 + $0x2b0] sm:$0xff] }
  0x34   : > { %2851 = vmatpush3.bf16.msra.mxu0 %v2850_v32  ;;  %v319_v11 = vld [vmem:[%s3468_s29 + $0x228] sm:$0xff]  ;;  %v350_v12 = vld [vmem:[%s3468_s29 + $0x320] sm:$0xff]  ;;  %v2928_v13 = vpack.c.bf16 %v367_v6, %v366_v5  ;;  %v337_v17 = vld [vmem:[%s3468_s29 + $0x2b8] sm:$0xff] }
  0x35   : > { %2883 = vmatpush3.bf16.msra.mxu1 %v2882_v35  ;;  %2853 = vmatprep.subr.bf16.mxu0 %v2852_v36  ;;  %v351_v15 = vld [vmem:[%s3468_s29 + $0x328] sm:$0xff]  ;;  %v368_v18 = vld [vmem:[%s3468_s29 + $0x3b0] sm:$0xff]  ;;  %v369_v19 = vld [vmem:[%s3468_s29 + $0x3b8] sm:$0xff]  ;;  %v2898_v20 = vpack.c.bf16 %v319_v11, %v318_v10  ;;  %v2900_v22 = vpack.c.bf16 %v337_v17, %v336_v16 }
  0x36   : > { %2885 = vmatprep.subr.bf16.mxu1 %v2884_v40  ;;  %v2930_v21 = vpack.c.bf16 %v351_v15, %v350_v12  ;;  %v320_v23 = vld [vmem:[%s3468_s29 + $0x230] sm:$0xff]  ;;  %v321_v24 = vld [vmem:[%s3468_s29 + $0x238] sm:$0xff]  ;;  %v2932_v26 = vpack.c.bf16 %v369_v19, %v368_v18  ;;  %v339_v29 = vld [vmem:[%s3468_s29 + $0x2c8] sm:$0xff] }
  0x37   : > { %v352_v25 = vld [vmem:[%s3468_s29 + $0x330] sm:$0xff]  ;;  %v353_v27 = vld [vmem:[%s3468_s29 + $0x338] sm:$0xff]  ;;  %v370_v30 = vld [vmem:[%s3468_s29 + $0x3c0] sm:$0xff]  ;;  %v2902_v33 = vpack.c.bf16 %v321_v24, %v320_v23 }
  0x38   : > { %2855 = vmatpush3.bf16.msra.mxu0 %v2854_v47  ;;  %v371_v31 = vld [vmem:[%s3468_s29 + $0x3c8] sm:$0xff]  ;;  %v2934_v36 = vpack.c.bf16 %v353_v27, %v352_v25  ;;  %v322_v38 = vld [vmem:[%s3468_s29 + $0x240] sm:$0xff]  ;;  %v340_v43 = vld [vmem:[%s3468_s29 + $0x2d0] sm:$0xff] }
  0x39   : > { %2887 = vmatpush3.bf16.msra.mxu1 %v2886_v48  ;;  %2889 = vmatprep.subr.bf16.mxu0 %v2888_v49  ;;  %v243_v32 = vld [vmem:[%s3463_s25 + $0x8] sm:$0xff]  ;;  %v354_v40 = vld [vmem:[%s3468_s29 + $0x340] sm:$0xff]  ;;  %v2936_v41 = vpack.c.bf16 %v371_v31, %v370_v30  ;;  %v341_v44 = vld [vmem:[%s3468_s29 + $0x2d8] sm:$0xff] }
  0x3a   : > { %2921 = vmatprep.subr.bf16.mxu1 %v2920_v53  ;;  %v787_v35 = vcombine.high %v243_v32, %v243_v32  ;;  %v323_v39 = vld [vmem:[%s3468_s29 + $0x248] sm:$0xff]  ;;  %v372_v47 = vld [vmem:[%s3468_s29 + $0x3d0] sm:$0xff]  ;;  %v373_v48 = vld [vmem:[%s3468_s29 + $0x3d8] sm:$0xff]  ;;  %v2908_v52 = vpack.c.bf16 %v341_v44, %v340_v43 }
  0x3b   : > { %1003 = vmatmul.mubr.f32.vlgmr.msra.gmra.mrb[0].mxu0 %v777_v28  ;;  %v338_v28 = vld [vmem:[%s3468_s29 + $0x2c0] sm:$0xff]  ;;  %v355_v42 = vld [vmem:[%s3468_s29 + $0x348] sm:$0xff]  ;;  %v2906_v49 = vpack.c.bf16 %v323_v39, %v322_v38  ;;  %v324_v53 = vld [vmem:[%s3468_s29 + $0x250] sm:$0xff]  ;;  %v2940_v56 = vpack.c.bf16 %v373_v48, %v372_v47 }
  0x3c   : > { %1073 = vmatmul.mubr.f32.vlgmr.msra.gmra.mrb[0].mxu1 %v784_v34  ;;  %2891 = vmatpush3.bf16.msra.mxu0 %v2890_v59  ;;  %v3578_v34 = vrot.slane %v243_v32, %v3521_v14  ;;  %v2904_v37 = vpack.c.bf16 %v339_v29, %v338_v28  ;;  %v3589_v46 = vrot.slane %v787_v35, %v3521_v14  ;;  %v325_v54 = vld [vmem:[%s3468_s29 + $0x258] sm:$0xff]  ;;  %v356_v55 = vld [vmem:[%s3468_s29 + $0x350] sm:$0xff]  ;;  %v342_v58 = vld [vmem:[%s3468_s29 + $0x2e0] sm:$0xff] }
  0x3d   : > { %2923 = vmatpush3.bf16.msra.mxu1 %v2922_v60  ;;  %2893 = vmatprep.subr.bf16.mxu0 %v2892_v61  ;;  %v2938_v51 = vpack.c.bf16 %v355_v42, %v354_v40  ;;  %v357_v57 = vld [vmem:[%s3468_s29 + $0x358] sm:$0xff]  ;;  %v343_v59 = vld [vmem:[%s3468_s29 + $0x2e8] sm:$0xff]  ;;  %v374_v60 = vld [vmem:[%s3468_s29 + $0x3e0] sm:$0xff]  ;;  %v2910_v62 = vpack.c.bf16 %v325_v54, %v324_v53 }
  0x3e   : > { %2925 = vmatprep.subr.bf16.mxu1 %v2924_v1  ;;  %v802_v45 = vcombine.high %v3578_v34, %v3578_v34  ;;  %v803_v50 = vcombine.high %v3589_v46, %v3589_v46  ;;  %v375_v61 = vld [vmem:[%s3468_s29 + $0x3e8] sm:$0xff]  ;;  %v2942_v63 = vpack.c.bf16 %v357_v57, %v356_v55  ;;  %v2912_v0 = vpack.c.bf16 %v343_v59, %v342_v58  ;;  %v326_v1 = vld [vmem:[%s3468_s29 + $0x260] sm:$0xff]  ;;  %v344_v6 = vld [vmem:[%s3468_s29 + $0x2f0] sm:$0xff] }
  0x3f   : > { %v327_v2 = vld [vmem:[%s3468_s29 + $0x268] sm:$0xff]  ;;  %v358_v3 = vld [vmem:[%s3468_s29 + $0x360] sm:$0xff]  ;;  %v2944_v4 = vpack.c.bf16 %v375_v61, %v374_v60  ;;  %v329_v15 = vld [vmem:[%s3468_s29 + $0x278] sm:$0xff] }
  0x40   : > { %2895 = vmatpush3.bf16.msra.mxu0 %v2894_v7  ;;  %1142 = vmatprep.mubr.f32.mxu0 %v802_v45  ;;  %v359_v5 = vld [vmem:[%s3468_s29 + $0x368] sm:$0xff]  ;;  %v345_v7 = vld [vmem:[%s3468_s29 + $0x2f8] sm:$0xff]  ;;  %v2914_v10 = vpack.c.bf16 %v327_v2, %v326_v1  ;;  %v360_v16 = vld [vmem:[%s3468_s29 + $0x370] sm:$0xff] }
  0x41   : > { %2927 = vmatpush3.bf16.msra.mxu1 %v2926_v8  ;;  %2897 = vmatprep.subr.bf16.mxu0 %v2896_v9  ;;  %v376_v8 = vld [vmem:[%s3468_s29 + $0x3f0] sm:$0xff]  ;;  %v377_v9 = vld [vmem:[%s3468_s29 + $0x3f8] sm:$0xff]  ;;  %v2946_v11 = vpack.c.bf16 %v359_v5, %v358_v3  ;;  %v2916_v12 = vpack.c.bf16 %v345_v7, %v344_v6  ;;  %v394_v19 = vld [vmem:[%s3468_s29 + $0x480] sm:$0xff] }
  0x42   : > { %2929 = vmatprep.subr.bf16.mxu1 %v2928_v13  ;;  %1212 = vmatprep.mubr.f32.mxu1 %v803_v50  ;;  %v328_v13 = vld [vmem:[%s3468_s29 + $0x270] sm:$0xff]  ;;  %v2948_v17 = vpack.c.bf16 %v377_v9, %v376_v8  ;;  %v361_v18 = vld [vmem:[%s3468_s29 + $0x378] sm:$0xff]  ;;  %v378_v24 = vld [vmem:[%s3468_s29 + $0x400] sm:$0xff] }
  0x43   : > { %v2918_v23 = vpack.c.bf16 %v329_v15, %v328_v13  ;;  %v2950_v25 = vpack.c.bf16 %v361_v18, %v360_v16  ;;  %v379_v27 = vld [vmem:[%s3468_s29 + $0x408] sm:$0xff]  ;;  %v410_v28 = vld [vmem:[%s3468_s29 + $0x500] sm:$0xff]  ;;  %v396_v31 = vld [vmem:[%s3468_s29 + $0x490] sm:$0xff] }
  0x44   : > { %2899 = vmatpush3.bf16.msra.mxu0 %v2898_v20  ;;  %v395_v20 = vld [vmem:[%s3468_s29 + $0x488] sm:$0xff]  ;;  %v397_v32 = vld [vmem:[%s3468_s29 + $0x498] sm:$0xff]  ;;  %v244_v38 = vld [vmem:[%s3463_s25 + $0x10] sm:$0xff] }
  0x45   : > { %2931 = vmatpush3.bf16.msra.mxu1 %v2930_v21  ;;  %2901 = vmatprep.subr.bf16.mxu0 %v2900_v22  ;;  %v426_v21 = vld [vmem:[%s3468_s29 + $0x580] sm:$0xff]  ;;  %v427_v22 = vld [vmem:[%s3468_s29 + $0x588] sm:$0xff]  ;;  %v429_v35 = vld [vmem:[%s3468_s29 + $0x598] sm:$0xff]  ;;  %v2956_v39 = vpack.c.bf16 %v397_v32, %v396_v31  ;;  %v3632_v43 = vrot.slane %v244_v38, %v3521_v14  ;;  %v804_v44 = vcombine.high %v244_v38, %v244_v38 }
  0x46   : > { %2933 = vmatprep.subr.bf16.mxu1 %v2932_v26  ;;  %v2952_v26 = vpack.c.bf16 %v395_v20, %v394_v19  ;;  %v411_v29 = vld [vmem:[%s3468_s29 + $0x508] sm:$0xff]  ;;  %v2984_v30 = vpack.c.bf16 %v427_v22, %v426_v21  ;;  %v380_v40 = vld [vmem:[%s3468_s29 + $0x410] sm:$0xff]  ;;  %v413_v47 = vld [vmem:[%s3468_s29 + $0x518] sm:$0xff] }
  0x47   : > { %v412_v42 = vld [vmem:[%s3468_s29 + $0x510] sm:$0xff]  ;;  %v398_v48 = vld [vmem:[%s3468_s29 + $0x4a0] sm:$0xff]  ;;  %v3643_v53 = vrot.slane %v804_v44, %v3521_v14  ;;  %v383_v57 = vld [vmem:[%s3468_s29 + $0x428] sm:$0xff] }
  0x48   : > { %2903 = vmatpush3.bf16.msra.mxu0 %v2902_v33  ;;  %v428_v33 = vld [vmem:[%s3468_s29 + $0x590] sm:$0xff]  ;;  %v430_v50 = vld [vmem:[%s3468_s29 + $0x5a0] sm:$0xff]  ;;  %v415_v61 = vld [vmem:[%s3468_s29 + $0x528] sm:$0xff] }
  0x49   : > { %2935 = vmatpush3.bf16.msra.mxu1 %v2934_v36  ;;  %2905 = vmatprep.subr.bf16.mxu0 %v2904_v37  ;;  %v2954_v36 = vpack.c.bf16 %v379_v27, %v378_v24  ;;  %v2986_v37 = vpack.c.bf16 %v411_v29, %v410_v28  ;;  %v2988_v45 = vpack.c.bf16 %v429_v35, %v428_v33  ;;  %v414_v58 = vld [vmem:[%s3468_s29 + $0x520] sm:$0xff]  ;;  %v385_v5 = vld [vmem:[%s3468_s29 + $0x438] sm:$0xff]  ;;  %v416_v6 = vld [vmem:[%s3468_s29 + $0x530] sm:$0xff] }
  0x4a   : > { %2937 = vmatprep.subr.bf16.mxu1 %v2936_v41  ;;  %v381_v41 = vld [vmem:[%s3468_s29 + $0x418] sm:$0xff]  ;;  %v820_v59 = vcombine.high %v3643_v53, %v3643_v53  ;;  %v2994_v2 = vpack.c.bf16 %v415_v61, %v414_v58  ;;  %v402_v9 = vld [vmem:[%s3468_s29 + $0x4c0] sm:$0xff]  ;;  %v387_v18 = vld [vmem:[%s3468_s29 + $0x448] sm:$0xff] }
  0x4b   : > { %v2958_v54 = vpack.c.bf16 %v381_v41, %v380_v40  ;;  %v417_v8 = vld [vmem:[%s3468_s29 + $0x538] sm:$0xff]  ;;  %v418_v19 = vld [vmem:[%s3468_s29 + $0x540] sm:$0xff]  ;;  %v419_v21 = vld [vmem:[%s3468_s29 + $0x548] sm:$0xff] }
  0x4c   : > { %2907 = vmatpush3.bf16.msra.mxu0 %v2906_v49  ;;  %v399_v49 = vld [vmem:[%s3468_s29 + $0x4a8] sm:$0xff]  ;;  %v2998_v15 = vpack.c.bf16 %v417_v8, %v416_v6  ;;  %v404_v22 = vld [vmem:[%s3468_s29 + $0x4d0] sm:$0xff]  ;;  %v3002_v27 = vpack.c.bf16 %v419_v21, %v418_v19  ;;  %v421_v33 = vld [vmem:[%s3468_s29 + $0x558] sm:$0xff] }
  0x4d   : > { %2939 = vmatpush3.bf16.msra.mxu1 %v2938_v51  ;;  %2909 = vmatprep.subr.bf16.mxu0 %v2908_v52  ;;  %v431_v51 = vld [vmem:[%s3468_s29 + $0x5a8] sm:$0xff]  ;;  %v819_v52 = vcombine.high %v3632_v43, %v3632_v43  ;;  %v2960_v55 = vpack.c.bf16 %v399_v49, %v398_v48  ;;  %v436_v24 = vld [vmem:[%s3468_s29 + $0x5d0] sm:$0xff]  ;;  %v406_v35 = vld [vmem:[%s3468_s29 + $0x4e0] sm:$0xff] }
  0x4e   : > { %2941 = vmatprep.subr.bf16.mxu1 %v2940_v56  ;;  %v382_v56 = vld [vmem:[%s3468_s29 + $0x420] sm:$0xff]  ;;  %v2992_v60 = vpack.c.bf16 %v431_v51, %v430_v50  ;;  %v388_v29 = vld [vmem:[%s3468_s29 + $0x450] sm:$0xff]  ;;  %v439_v38 = vld [vmem:[%s3468_s29 + $0x5e8] sm:$0xff] }
  0x4f   : > { %v2962_v1 = vpack.c.bf16 %v383_v57, %v382_v56  ;;  %v420_v31 = vld [vmem:[%s3468_s29 + $0x550] sm:$0xff]  ;;  %v391_v44 = vld [vmem:[%s3468_s29 + $0x468] sm:$0xff]  ;;  %v409_v50 = vld [vmem:[%s3468_s29 + $0x4f8] sm:$0xff] }
  0x50   : > { %2911 = vmatpush3.bf16.msra.mxu0 %v2910_v62  ;;  %v401_v62 = vld [vmem:[%s3468_s29 + $0x4b8] sm:$0xff]  ;;  %v3006_v40 = vpack.c.bf16 %v421_v33, %v420_v31  ;;  %v423_v48 = vld [vmem:[%s3468_s29 + $0x568] sm:$0xff]  ;;  %v408_v49 = vld [vmem:[%s3468_s29 + $0x4f0] sm:$0xff] }
  0x51   : > { %2943 = vmatpush3.bf16.msra.mxu1 %v2942_v63  ;;  %2913 = vmatprep.subr.bf16.mxu0 %v2912_v0  ;;  %v432_v63 = vld [vmem:[%s3468_s29 + $0x5b0] sm:$0xff]  ;;  %v433_v0 = vld [vmem:[%s3468_s29 + $0x5b8] sm:$0xff]  ;;  %v2980_v56 = vpack.c.bf16 %v409_v50, %v408_v49  ;;  %v443_v6 = vld [vmem:[%s3468_s29 + $0x608] sm:$0xff] }
  0x52   : > { %2945 = vmatprep.subr.bf16.mxu1 %v2944_v4  ;;  %v384_v4 = vld [vmem:[%s3468_s29 + $0x430] sm:$0xff]  ;;  %v2996_v7 = vpack.c.bf16 %v433_v0, %v432_v63  ;;  %v393_v58 = vld [vmem:[%s3468_s29 + $0x478] sm:$0xff]  ;;  %v490_v63 = vld [vmem:[%s3468_s29 + $0x780] sm:$0xff] }
  0x53   : > { %v2966_v13 = vpack.c.bf16 %v385_v5, %v384_v4  ;;  %v440_v51 = vld [vmem:[%s3468_s29 + $0x5f0] sm:$0xff]  ;;  %v425_v61 = vld [vmem:[%s3468_s29 + $0x578] sm:$0xff]  ;;  %v491_v0 = vld [vmem:[%s3468_s29 + $0x788] sm:$0xff] }
  0x54   : > { %2915 = vmatpush3.bf16.msra.mxu0 %v2914_v10  ;;  %v403_v10 = vld [vmem:[%s3468_s29 + $0x4c8] sm:$0xff]  ;;  %v392_v57 = vld [vmem:[%s3468_s29 + $0x470] sm:$0xff]  ;;  %v442_v5 = vld [vmem:[%s3468_s29 + $0x600] sm:$0xff]  ;;  %v3048_v8 = vpack.c.bf16 %v491_v0, %v490_v63 }
  0x55   : > { %2947 = vmatpush3.bf16.msra.mxu1 %v2946_v11  ;;  %2917 = vmatprep.subr.bf16.mxu0 %v2916_v12  ;;  %v434_v11 = vld [vmem:[%s3468_s29 + $0x5c0] sm:$0xff]  ;;  %v435_v12 = vld [vmem:[%s3468_s29 + $0x5c8] sm:$0xff]  ;;  %v2968_v16 = vpack.c.bf16 %v403_v10, %v402_v9  ;;  %v460_v10 = vld [vmem:[%s3468_s29 + $0x690] sm:$0xff] }
  0x56   : > { %2949 = vmatprep.subr.bf16.mxu1 %v2948_v17  ;;  %v386_v17 = vld [vmem:[%s3468_s29 + $0x440] sm:$0xff]  ;;  %v3000_v20 = vpack.c.bf16 %v435_v12, %v434_v11  ;;  %v475_v9 = vld [vmem:[%s3468_s29 + $0x708] sm:$0xff]  ;;  %v461_v11 = vld [vmem:[%s3468_s29 + $0x698] sm:$0xff] }
  0x57   : > { %v3020_v19 = vpack.c.bf16 %v461_v11, %v460_v10  ;;  %v445_v21 = vld [vmem:[%s3468_s29 + $0x618] sm:$0xff]  ;;  %v480_v49 = vld [vmem:[%s3468_s29 + $0x730] sm:$0xff]  ;;  %v470_v11 = vld [vmem:[%s3468_s29 + $0x6e0] sm:$0xff] }
  0x58   : > { %2919 = vmatpush3.bf16.msra.mxu0 %v2918_v23  ;;  %v405_v23 = vld [vmem:[%s3468_s29 + $0x4d8] sm:$0xff]  ;;  %v468_v63 = vld [vmem:[%s3468_s29 + $0x6d0] sm:$0xff] }
  0x59   : > { %2951 = vmatpush3.bf16.msra.mxu1 %v2950_v25  ;;  %2953 = vmatprep.subr.bf16.mxu0 %v2952_v26  ;;  %v437_v25 = vld [vmem:[%s3468_s29 + $0x5d8] sm:$0xff]  ;;  %v2970_v26 = vpack.c.bf16 %v387_v18, %v386_v17  ;;  %v2972_v28 = vpack.c.bf16 %v405_v23, %v404_v22  ;;  %v3018_v17 = vpack.c.bf16 %v443_v6, %v442_v5  ;;  %v476_v22 = vld [vmem:[%s3468_s29 + $0x710] sm:$0xff] }
  0x5a   : > { %2985 = vmatprep.subr.bf16.mxu1 %v2984_v30  ;;  %v389_v30 = vld [vmem:[%s3468_s29 + $0x458] sm:$0xff]  ;;  %v3004_v32 = vpack.c.bf16 %v437_v25, %v436_v24  ;;  %v462_v25 = vld [vmem:[%s3468_s29 + $0x6a0] sm:$0xff]  ;;  %v452_v6 = vld [vmem:[%s3468_s29 + $0x650] sm:$0xff] }
  0x5b   : > { %1143 = vmatmul.mubr.f32.vlgmr.msra.gmra.mrb[2].mxu0 %v3578_v34  ;;  %v2990_v34 = vpack.c.bf16 %v413_v47, %v412_v42  ;;  %v390_v42 = vld [vmem:[%s3468_s29 + $0x460] sm:$0xff]  ;;  %v477_v24 = vld [vmem:[%s3468_s29 + $0x718] sm:$0xff] }
  0x5c   : > { %2955 = vmatpush3.bf16.msra.mxu0 %v2954_v36  ;;  %1213 = vmatmul.mubr.f32.vlgmr.msra.gmra.mrb[2].mxu1 %v3589_v46  ;;  %v400_v46 = vld [vmem:[%s3468_s29 + $0x4b0] sm:$0xff]  ;;  %v407_v36 = vld [vmem:[%s3468_s29 + $0x4e8] sm:$0xff]  ;;  %v469_v0 = vld [vmem:[%s3468_s29 + $0x6d8] sm:$0xff] }
  0x5d   : > { %2987 = vmatpush3.bf16.msra.mxu1 %v2986_v37  ;;  %2957 = vmatprep.subr.bf16.mxu0 %v2956_v39  ;;  %v2964_v3 = vpack.c.bf16 %v401_v62, %v400_v46  ;;  %v438_v37 = vld [vmem:[%s3468_s29 + $0x5e0] sm:$0xff]  ;;  %v2974_v39 = vpack.c.bf16 %v389_v30, %v388_v29  ;;  %v2976_v41 = vpack.c.bf16 %v407_v36, %v406_v35  ;;  %v459_v62 = vld [vmem:[%s3468_s29 + $0x688] sm:$0xff]  ;;  %v485_v10 = vld [vmem:[%s3468_s29 + $0x758] sm:$0xff] }
  0x5e   : > { %2989 = vmatprep.subr.bf16.mxu1 %v2988_v45  ;;  %1282 = vmatprep.mubr.f32.mxu0 %v819_v52  ;;  %v422_v45 = vld [vmem:[%s3468_s29 + $0x560] sm:$0xff]  ;;  %v3008_v47 = vpack.c.bf16 %v439_v38, %v438_v37  ;;  %v441_v52 = vld [vmem:[%s3468_s29 + $0x5f8] sm:$0xff]  ;;  %v495_v29 = vld [vmem:[%s3468_s29 + $0x7a8] sm:$0xff]  ;;  %v3036_v5 = vpack.c.bf16 %v469_v0, %v468_v63 }
  0x5f   : > { %1352 = vmatprep.mubr.f32.mxu1 %v820_v59  ;;  %v424_v59 = vld [vmem:[%s3468_s29 + $0x570] sm:$0xff]  ;;  %v458_v46 = vld [vmem:[%s3468_s29 + $0x680] sm:$0xff]  ;;  %v479_v38 = vld [vmem:[%s3468_s29 + $0x728] sm:$0xff] }
  0x60   : > { %2959 = vmatpush3.bf16.msra.mxu0 %v2958_v54  ;;  %v2978_v54 = vpack.c.bf16 %v391_v44, %v390_v42  ;;  %v3016_v4 = vpack.c.bf16 %v459_v62, %v458_v46  ;;  %v446_v35 = vld [vmem:[%s3468_s29 + $0x620] sm:$0xff]  ;;  %v483_v62 = vld [vmem:[%s3468_s29 + $0x748] sm:$0xff]  ;;  %v540_v63 = vld [vmem:[%s3468_s29 + $0x910] sm:$0xff] }
  0x61   : > { %2991 = vmatpush3.bf16.msra.mxu1 %v2990_v34  ;;  %2961 = vmatprep.subr.bf16.mxu0 %v2960_v55  ;;  %v245_v34 = vld [vmem:[%s3463_s25 + $0x18] sm:$0xff]  ;;  %v3010_v55 = vpack.c.bf16 %v423_v48, %v422_v45  ;;  %v478_v36 = vld [vmem:[%s3468_s29 + $0x720] sm:$0xff] }
  0x62   : > { %2993 = vmatprep.subr.bf16.mxu1 %v2992_v60  ;;  %v3012_v60 = vpack.c.bf16 %v441_v52, %v440_v51  ;;  %v3704_v12 = vrot.slane %v245_v34, %v3521_v14  ;;  %v3058_v44 = vpack.c.bf16 %v479_v38, %v478_v36  ;;  %v449_v48 = vld [vmem:[%s3468_s29 + $0x638] sm:$0xff]  ;;  %v466_v52 = vld [vmem:[%s3468_s29 + $0x6c0] sm:$0xff]  ;;  %v488_v36 = vld [vmem:[%s3468_s29 + $0x770] sm:$0xff] }
  0x63   : > { %v481_v51 = vld [vmem:[%s3468_s29 + $0x738] sm:$0xff] }
  0x64   : > { %2963 = vmatpush3.bf16.msra.mxu0 %v2962_v1  ;;  %v821_v1 = vcombine.high %v245_v34, %v245_v34  ;;  %v498_v34 = vld [vmem:[%s3468_s29 + $0x7c0] sm:$0xff]  ;;  %v489_v38 = vld [vmem:[%s3468_s29 + $0x778] sm:$0xff] }
  0x65   : > { %2995 = vmatpush3.bf16.msra.mxu1 %v2994_v2  ;;  %2965 = vmatprep.subr.bf16.mxu0 %v2964_v3  ;;  %v2982_v2 = vpack.c.bf16 %v393_v58, %v392_v57  ;;  %v3014_v3 = vpack.c.bf16 %v425_v61, %v424_v59  ;;  %v3062_v57 = vpack.c.bf16 %v481_v51, %v480_v49  ;;  %v450_v59 = vld [vmem:[%s3468_s29 + $0x640] sm:$0xff]  ;;  %v507_v49 = vld [vmem:[%s3468_s29 + $0x808] sm:$0xff] }
  0x66   : > { %2997 = vmatprep.subr.bf16.mxu1 %v2996_v7  ;;  %v474_v7 = vld [vmem:[%s3468_s29 + $0x700] sm:$0xff] }
  0x67   : > { %v3050_v18 = vpack.c.bf16 %v475_v9, %v474_v7  ;;  %v482_v61 = vld [vmem:[%s3468_s29 + $0x740] sm:$0xff]  ;;  %v453_v7 = vld [vmem:[%s3468_s29 + $0x658] sm:$0xff] }
  0x68   : > { %2967 = vmatpush3.bf16.msra.mxu0 %v2966_v13  ;;  %v492_v13 = vld [vmem:[%s3468_s29 + $0x790] sm:$0xff] }
  0x69   : > { %2999 = vmatpush3.bf16.msra.mxu1 %v2998_v15  ;;  %2969 = vmatprep.subr.bf16.mxu0 %v2968_v16  ;;  %v493_v15 = vld [vmem:[%s3468_s29 + $0x798] sm:$0xff]  ;;  %v3709_v16 = vrot.slane %v821_v1, %v3521_v14  ;;  %v500_v1 = vld [vmem:[%s3468_s29 + $0x7d0] sm:$0xff] }
  0x6a   : > { %3001 = vmatprep.subr.bf16.mxu1 %v3000_v20  ;;  %v444_v20 = vld [vmem:[%s3468_s29 + $0x610] sm:$0xff]  ;;  %v3052_v23 = vpack.c.bf16 %v493_v15, %v492_v13  ;;  %v471_v13 = vld [vmem:[%s3468_s29 + $0x6e8] sm:$0xff]  ;;  %v502_v15 = vld [vmem:[%s3468_s29 + $0x7e0] sm:$0xff] }
  0x6b   : > { %v837_v30 = vcombine.high %v3709_v16, %v3709_v16  ;;  %v3022_v31 = vpack.c.bf16 %v445_v21, %v444_v20  ;;  %v3040_v20 = vpack.c.bf16 %v471_v13, %v470_v11  ;;  %v454_v21 = vld [vmem:[%s3468_s29 + $0x660] sm:$0xff] }
  0x6c   : > { %2971 = vmatpush3.bf16.msra.mxu0 %v2970_v26  ;;  %v463_v26 = vld [vmem:[%s3468_s29 + $0x6a8] sm:$0xff]  ;;  %v510_v11 = vld [vmem:[%s3468_s29 + $0x820] sm:$0xff] }
  0x6d   : > { %3003 = vmatpush3.bf16.msra.mxu1 %v3002_v27  ;;  %2973 = vmatprep.subr.bf16.mxu0 %v2972_v28  ;;  %v836_v27 = vcombine.high %v3704_v12, %v3704_v12  ;;  %v494_v28 = vld [vmem:[%s3468_s29 + $0x7a0] sm:$0xff]  ;;  %v3024_v33 = vpack.c.bf16 %v463_v26, %v462_v25  ;;  %v487_v25 = vld [vmem:[%s3468_s29 + $0x768] sm:$0xff]  ;;  %v472_v26 = vld [vmem:[%s3468_s29 + $0x6f0] sm:$0xff] }
  0x6e   : > { %3005 = vmatprep.subr.bf16.mxu1 %v3004_v32  ;;  %v3054_v32 = vpack.c.bf16 %v477_v24, %v476_v22  ;;  %v3056_v37 = vpack.c.bf16 %v495_v29, %v494_v28  ;;  %v455_v22 = vld [vmem:[%s3468_s29 + $0x668] sm:$0xff]  ;;  %v504_v28 = vld [vmem:[%s3468_s29 + $0x7f0] sm:$0xff]  ;;  %v505_v29 = vld [vmem:[%s3468_s29 + $0x7f8] sm:$0xff] }
  0x6f   : > { %v542_v13 = vld [vmem:[%s3468_s29 + $0x920] sm:$0xff] }
  0x70   : > { %2975 = vmatpush3.bf16.msra.mxu0 %v2974_v39  ;;  %v464_v39 = vld [vmem:[%s3468_s29 + $0x6b0] sm:$0xff] }
  0x71   : > { %3007 = vmatpush3.bf16.msra.mxu1 %v3006_v40  ;;  %2977 = vmatprep.subr.bf16.mxu0 %v2976_v41  ;;  %v465_v40 = vld [vmem:[%s3468_s29 + $0x6b8] sm:$0xff] }
  0x72   : > { %3009 = vmatprep.subr.bf16.mxu1 %v3008_v47  ;;  %v497_v41 = vld [vmem:[%s3468_s29 + $0x7b8] sm:$0xff]  ;;  %v3028_v45 = vpack.c.bf16 %v465_v40, %v464_v39  ;;  %v448_v47 = vld [vmem:[%s3468_s29 + $0x630] sm:$0xff]  ;;  %v522_v39 = vld [vmem:[%s3468_s29 + $0x880] sm:$0xff] }
  0x73   : > { %v523_v40 = vld [vmem:[%s3468_s29 + $0x888] sm:$0xff] }
  0x74   : > { %2979 = vmatpush3.bf16.msra.mxu0 %v2978_v54  ;;  %v467_v54 = vld [vmem:[%s3468_s29 + $0x6c8] sm:$0xff] }
  0x75   : > { %3011 = vmatpush3.bf16.msra.mxu1 %v3010_v55  ;;  %2981 = vmatprep.subr.bf16.mxu0 %v2980_v56  ;;  %v499_v55 = vld [vmem:[%s3468_s29 + $0x7c8] sm:$0xff]  ;;  %v3030_v56 = vpack.c.bf16 %v449_v48, %v448_v47  ;;  %v3032_v58 = vpack.c.bf16 %v467_v54, %v466_v52  ;;  %v3080_v47 = vpack.c.bf16 %v523_v40, %v522_v39  ;;  %v506_v48 = vld [vmem:[%s3468_s29 + $0x800] sm:$0xff]  ;;  %v524_v54 = vld [vmem:[%s3468_s29 + $0x890] sm:$0xff] }
  0x76   : > { %3013 = vmatprep.subr.bf16.mxu1 %v3012_v60  ;;  %v451_v60 = vld [vmem:[%s3468_s29 + $0x648] sm:$0xff]  ;;  %v3064_v46 = vpack.c.bf16 %v499_v55, %v498_v34  ;;  %v525_v34 = vld [vmem:[%s3468_s29 + $0x898] sm:$0xff] }
  0x77   : > { %v539_v52 = vld [vmem:[%s3468_s29 + $0x908] sm:$0xff] }
  0x78   : > { %2983 = vmatpush3.bf16.msra.mxu0 %v2982_v2  ;;  %v501_v2 = vld [vmem:[%s3468_s29 + $0x7d8] sm:$0xff]  ;;  %v547_v40 = vld [vmem:[%s3468_s29 + $0x948] sm:$0xff] }
  0x79   : > { %3015 = vmatpush3.bf16.msra.mxu1 %v3014_v3  ;;  %3017 = vmatprep.subr.bf16.mxu0 %v3016_v4  ;;  %v3034_v3 = vpack.c.bf16 %v451_v60, %v450_v59  ;;  %v3066_v4 = vpack.c.bf16 %v483_v62, %v482_v61  ;;  %v3068_v9 = vpack.c.bf16 %v501_v2, %v500_v1  ;;  %v509_v62 = vld [vmem:[%s3468_s29 + $0x818] sm:$0xff]  ;;  %v526_v2 = vld [vmem:[%s3468_s29 + $0x8a0] sm:$0xff] }
  0x7a   : > { %3049 = vmatprep.subr.bf16.mxu1 %v3048_v8  ;;  %v484_v8 = vld [vmem:[%s3468_s29 + $0x750] sm:$0xff]  ;;  %v3082_v59 = vpack.c.bf16 %v507_v49, %v506_v48  ;;  %v3084_v61 = vpack.c.bf16 %v525_v34, %v524_v54  ;;  %v541_v1 = vld [vmem:[%s3468_s29 + $0x918] sm:$0xff]  ;;  %v534_v34 = vld [vmem:[%s3468_s29 + $0x8e0] sm:$0xff] }
  0x7b   : > { %1283 = vmatmul.mubr.f32.vlgmr.msra.gmra.mrb[4].mxu0 %v3632_v43  ;;  %v447_v43 = vld [vmem:[%s3468_s29 + $0x628] sm:$0xff]  ;;  %v516_v49 = vld [vmem:[%s3468_s29 + $0x850] sm:$0xff]  ;;  %v549_v54 = vld [vmem:[%s3468_s29 + $0x958] sm:$0xff] }
  0x7c   : > { %3019 = vmatpush3.bf16.msra.mxu0 %v3018_v17  ;;  %1353 = vmatmul.mubr.f32.vlgmr.msra.gmra.mrb[4].mxu1 %v3643_v53  ;;  %v496_v53 = vld [vmem:[%s3468_s29 + $0x7b0] sm:$0xff]  ;;  %v3026_v42 = vpack.c.bf16 %v447_v43, %v446_v35  ;;  %v503_v17 = vld [vmem:[%s3468_s29 + $0x7e8] sm:$0xff]  ;;  %v457_v43 = vld [vmem:[%s3468_s29 + $0x678] sm:$0xff] }
  0x7d   : > { %3051 = vmatpush3.bf16.msra.mxu1 %v3050_v18  ;;  %3021 = vmatprep.subr.bf16.mxu0 %v3020_v19  ;;  %v3060_v50 = vpack.c.bf16 %v497_v41, %v496_v53  ;;  %v3038_v18 = vpack.c.bf16 %v453_v7, %v452_v6  ;;  %v3070_v19 = vpack.c.bf16 %v485_v10, %v484_v8  ;;  %v456_v35 = vld [vmem:[%s3468_s29 + $0x670] sm:$0xff]  ;;  %v554_v53 = vld [vmem:[%s3468_s29 + $0x980] sm:$0xff]  ;;  %v555_v41 = vld [vmem:[%s3468_s29 + $0x988] sm:$0xff] }
  0x7e   : > { %3053 = vmatprep.subr.bf16.mxu1 %v3052_v23  ;;  %1422 = vmatprep.mubr.f32.mxu0 %v836_v27  ;;  %v486_v23 = vld [vmem:[%s3468_s29 + $0x760] sm:$0xff]  ;;  %v3072_v24 = vpack.c.bf16 %v503_v17, %v502_v15  ;;  %v473_v27 = vld [vmem:[%s3468_s29 + $0x6f8] sm:$0xff]  ;;  %v3112_v51 = vpack.c.bf16 %v555_v41, %v554_v53  ;;  %v559_v6 = vld [vmem:[%s3468_s29 + $0x9a8] sm:$0xff] }
  0x7f   : > { %1492 = vmatprep.mubr.f32.mxu1 %v837_v30  ;;  %v3042_v30 = vpack.c.bf16 %v455_v22, %v454_v21  ;;  %v543_v17 = vld [vmem:[%s3468_s29 + $0x928] sm:$0xff]  ;;  %v532_v53 = vld [vmem:[%s3468_s29 + $0x8d0] sm:$0xff]  ;;  %v533_v41 = vld [vmem:[%s3468_s29 + $0x8d8] sm:$0xff] }
  0x80   : > { %3023 = vmatpush3.bf16.msra.mxu0 %v3022_v31  ;;  %v246_v31 = vld [vmem:[%s3463_s25 + $0x20] sm:$0xff]  ;;  %v3122_v22 = vpack.c.bf16 %v543_v17, %v542_v13  ;;  %v3100_v48 = vpack.c.bf16 %v533_v41, %v532_v53  ;;  %v552_v13 = vld [vmem:[%s3468_s29 + $0x970] sm:$0xff]  ;;  %v553_v17 = vld [vmem:[%s3468_s29 + $0x978] sm:$0xff] }
  0x81   : > { %3055 = vmatpush3.bf16.msra.mxu1 %v3054_v32  ;;  %3025 = vmatprep.subr.bf16.mxu0 %v3024_v33  ;;  %v3074_v32 = vpack.c.bf16 %v487_v25, %v486_v23  ;;  %v3044_v33 = vpack.c.bf16 %v473_v27, %v472_v26  ;;  %v3781_v55 = vrot.slane %v246_v31, %v3521_v14  ;;  %v513_v25 = vld [vmem:[%s3468_s29 + $0x838] sm:$0xff]  ;;  %v544_v26 = vld [vmem:[%s3468_s29 + $0x930] sm:$0xff] }
  0x82   : > { %3057 = vmatprep.subr.bf16.mxu1 %v3056_v37  ;;  %v3076_v37 = vpack.c.bf16 %v505_v29, %v504_v28  ;;  %v545_v28 = vld [vmem:[%s3468_s29 + $0x938] sm:$0xff]  ;;  %v530_v29 = vld [vmem:[%s3468_s29 + $0x8c0] sm:$0xff]  ;;  %v604_v53 = vld [vmem:[%s3468_s29 + $0xb10] sm:$0xff] }
  0x84   : > { %3027 = vmatpush3.bf16.msra.mxu0 %v3026_v42  ;;  %v838_v42 = vcombine.high %v246_v31, %v246_v31  ;;  %v562_v31 = vld [vmem:[%s3468_s29 + $0x9c0] sm:$0xff] }
  0x85   : > { %3059 = vmatpush3.bf16.msra.mxu1 %v3058_v44  ;;  %3029 = vmatprep.subr.bf16.mxu0 %v3028_v45  ;;  %v3046_v44 = vpack.c.bf16 %v457_v43, %v456_v35  ;;  %v3078_v45 = vpack.c.bf16 %v489_v38, %v488_v36  ;;  %v3126_v35 = vpack.c.bf16 %v545_v28, %v544_v26  ;;  %v514_v36 = vld [vmem:[%s3468_s29 + $0x840] sm:$0xff]  ;;  %v571_v26 = vld [vmem:[%s3468_s29 + $0xa08] sm:$0xff] }
  0x86   : > { %3061 = vmatprep.subr.bf16.mxu1 %v3060_v50  ;;  %v538_v50 = vld [vmem:[%s3468_s29 + $0x900] sm:$0xff] }
  0x87   : > { %v3114_v60 = vpack.c.bf16 %v539_v52, %v538_v50  ;;  %v546_v38 = vld [vmem:[%s3468_s29 + $0x940] sm:$0xff]  ;;  %v517_v50 = vld [vmem:[%s3468_s29 + $0x858] sm:$0xff] }
  0x88   : > { %3031 = vmatpush3.bf16.msra.mxu0 %v3030_v56  ;;  %v556_v56 = vld [vmem:[%s3468_s29 + $0x990] sm:$0xff] }
  0x89   : > { %3063 = vmatpush3.bf16.msra.mxu1 %v3062_v57  ;;  %3033 = vmatprep.subr.bf16.mxu0 %v3032_v58  ;;  %v557_v57 = vld [vmem:[%s3468_s29 + $0x998] sm:$0xff]  ;;  %v3786_v58 = vrot.slane %v838_v42, %v3521_v14  ;;  %v564_v42 = vld [vmem:[%s3468_s29 + $0x9d0] sm:$0xff] }
  0x8a   : > { %3065 = vmatprep.subr.bf16.mxu1 %v3064_v46  ;;  %v508_v46 = vld [vmem:[%s3468_s29 + $0x810] sm:$0xff]  ;;  %v3116_v0 = vpack.c.bf16 %v557_v57, %v556_v56  ;;  %v535_v56 = vld [vmem:[%s3468_s29 + $0x8e8] sm:$0xff]  ;;  %v566_v57 = vld [vmem:[%s3468_s29 + $0x9e0] sm:$0xff] }
  0x8b   : > { %v854_v7 = vcombine.high %v3786_v58, %v3786_v58  ;;  %v3086_v8 = vpack.c.bf16 %v509_v62, %v508_v46  ;;  %v3104_v46 = vpack.c.bf16 %v535_v56, %v534_v34  ;;  %v518_v62 = vld [vmem:[%s3468_s29 + $0x860] sm:$0xff] }
  0x8c   : > { %3035 = vmatpush3.bf16.msra.mxu0 %v3034_v3  ;;  %v527_v3 = vld [vmem:[%s3468_s29 + $0x8a8] sm:$0xff]  ;;  %v574_v34 = vld [vmem:[%s3468_s29 + $0xa20] sm:$0xff] }
  0x8d   : > { %3067 = vmatpush3.bf16.msra.mxu1 %v3066_v4  ;;  %3037 = vmatprep.subr.bf16.mxu0 %v3036_v5  ;;  %v853_v4 = vcombine.high %v3781_v55, %v3781_v55  ;;  %v558_v5 = vld [vmem:[%s3468_s29 + $0x9a0] sm:$0xff]  ;;  %v3088_v10 = vpack.c.bf16 %v527_v3, %v526_v2  ;;  %v551_v2 = vld [vmem:[%s3468_s29 + $0x968] sm:$0xff]  ;;  %v536_v3 = vld [vmem:[%s3468_s29 + $0x8f0] sm:$0xff] }
  0x8e   : > { %3069 = vmatprep.subr.bf16.mxu1 %v3068_v9  ;;  %v3118_v9 = vpack.c.bf16 %v541_v1, %v540_v63  ;;  %v3120_v15 = vpack.c.bf16 %v559_v6, %v558_v5  ;;  %v519_v63 = vld [vmem:[%s3468_s29 + $0x868] sm:$0xff]  ;;  %v568_v5 = vld [vmem:[%s3468_s29 + $0x9f0] sm:$0xff]  ;;  %v569_v6 = vld [vmem:[%s3468_s29 + $0x9f8] sm:$0xff] }
  0x8f   : > { %v606_v56 = vld [vmem:[%s3468_s29 + $0xb20] sm:$0xff] }
  0x90   : > { %3039 = vmatpush3.bf16.msra.mxu0 %v3038_v18  ;;  %v528_v18 = vld [vmem:[%s3468_s29 + $0x8b0] sm:$0xff] }
  0x91   : > { %3071 = vmatpush3.bf16.msra.mxu1 %v3070_v19  ;;  %3041 = vmatprep.subr.bf16.mxu0 %v3040_v20  ;;  %v529_v19 = vld [vmem:[%s3468_s29 + $0x8b8] sm:$0xff] }
  0x92   : > { %3073 = vmatprep.subr.bf16.mxu1 %v3072_v24  ;;  %v561_v20 = vld [vmem:[%s3468_s29 + $0x9b8] sm:$0xff]  ;;  %v3092_v23 = vpack.c.bf16 %v529_v19, %v528_v18  ;;  %v512_v24 = vld [vmem:[%s3468_s29 + $0x830] sm:$0xff]  ;;  %v586_v18 = vld [vmem:[%s3468_s29 + $0xa80] sm:$0xff] }
  0x93   : > { %v587_v19 = vld [vmem:[%s3468_s29 + $0xa88] sm:$0xff] }
  0x94   : > { %3043 = vmatpush3.bf16.msra.mxu0 %v3042_v30  ;;  %v531_v30 = vld [vmem:[%s3468_s29 + $0x8c8] sm:$0xff] }
  0x95   : > { %3075 = vmatpush3.bf16.msra.mxu1 %v3074_v32  ;;  %3045 = vmatprep.subr.bf16.mxu0 %v3044_v33  ;;  %v563_v32 = vld [vmem:[%s3468_s29 + $0x9c8] sm:$0xff]  ;;  %v3094_v33 = vpack.c.bf16 %v513_v25, %v512_v24  ;;  %v3096_v43 = vpack.c.bf16 %v531_v30, %v530_v29  ;;  %v3144_v24 = vpack.c.bf16 %v587_v19, %v586_v18  ;;  %v570_v25 = vld [vmem:[%s3468_s29 + $0xa00] sm:$0xff]  ;;  %v588_v30 = vld [vmem:[%s3468_s29 + $0xa90] sm:$0xff] }
  0x96   : > { %3077 = vmatprep.subr.bf16.mxu1 %v3076_v37  ;;  %v515_v37 = vld [vmem:[%s3468_s29 + $0x848] sm:$0xff]  ;;  %v3128_v39 = vpack.c.bf16 %v563_v32, %v562_v31  ;;  %v589_v31 = vld [vmem:[%s3468_s29 + $0xa98] sm:$0xff] }
  0x97   : > { %v603_v29 = vld [vmem:[%s3468_s29 + $0xb08] sm:$0xff] }
  0x98   : > { %3047 = vmatpush3.bf16.msra.mxu0 %v3046_v44  ;;  %v565_v44 = vld [vmem:[%s3468_s29 + $0x9d8] sm:$0xff]  ;;  %v611_v19 = vld [vmem:[%s3468_s29 + $0xb48] sm:$0xff] }
  0x99   : > { %3079 = vmatpush3.bf16.msra.mxu1 %v3078_v45  ;;  %3081 = vmatprep.subr.bf16.mxu0 %v3080_v47  ;;  %v3098_v45 = vpack.c.bf16 %v515_v37, %v514_v36  ;;  %v3130_v47 = vpack.c.bf16 %v547_v40, %v546_v38  ;;  %v3132_v52 = vpack.c.bf16 %v565_v44, %v564_v42  ;;  %v573_v40 = vld [vmem:[%s3468_s29 + $0xa18] sm:$0xff]  ;;  %v590_v44 = vld [vmem:[%s3468_s29 + $0xaa0] sm:$0xff] }
  0x9a   : > { %3113 = vmatprep.subr.bf16.mxu1 %v3112_v51  ;;  %v548_v51 = vld [vmem:[%s3468_s29 + $0x950] sm:$0xff]  ;;  %v3146_v36 = vpack.c.bf16 %v571_v26, %v570_v25  ;;  %v3148_v38 = vpack.c.bf16 %v589_v31, %v588_v30  ;;  %v605_v42 = vld [vmem:[%s3468_s29 + $0xb18] sm:$0xff]  ;;  %v598_v31 = vld [vmem:[%s3468_s29 + $0xae0] sm:$0xff] }
  0x9b   : > { %1423 = vmatmul.mubr.f32.vlgmr.msra.gmra.mrb[6].mxu0 %v3704_v12  ;;  %v511_v12 = vld [vmem:[%s3468_s29 + $0x828] sm:$0xff]  ;;  %v580_v26 = vld [vmem:[%s3468_s29 + $0xa50] sm:$0xff]  ;;  %v613_v30 = vld [vmem:[%s3468_s29 + $0xb58] sm:$0xff] }
  0x9c   : > { %3083 = vmatpush3.bf16.msra.mxu0 %v3082_v59  ;;  %1493 = vmatmul.mubr.f32.vlgmr.msra.gmra.mrb[6].mxu1 %v3709_v16  ;;  %v560_v16 = vld [vmem:[%s3468_s29 + $0x9b0] sm:$0xff]  ;;  %v3090_v21 = vpack.c.bf16 %v511_v12, %v510_v11  ;;  %v567_v59 = vld [vmem:[%s3468_s29 + $0x9e8] sm:$0xff]  ;;  %v521_v12 = vld [vmem:[%s3468_s29 + $0x878] sm:$0xff] }
  0x9d   : > { %3115 = vmatpush3.bf16.msra.mxu1 %v3114_v60  ;;  %3085 = vmatprep.subr.bf16.mxu0 %v3084_v61  ;;  %v3124_v27 = vpack.c.bf16 %v561_v20, %v560_v16  ;;  %v3102_v60 = vpack.c.bf16 %v517_v50, %v516_v49  ;;  %v3134_v61 = vpack.c.bf16 %v549_v54, %v548_v51  ;;  %v520_v11 = vld [vmem:[%s3468_s29 + $0x870] sm:$0xff]  ;;  %v618_v16 = vld [vmem:[%s3468_s29 + $0xb80] sm:$0xff]  ;;  %v619_v20 = vld [vmem:[%s3468_s29 + $0xb88] sm:$0xff] }
  0x9e   : > { %3117 = vmatprep.subr.bf16.mxu1 %v3116_v0  ;;  %1562 = vmatprep.mubr.f32.mxu0 %v853_v4  ;;  %v550_v0 = vld [vmem:[%s3468_s29 + $0x960] sm:$0xff]  ;;  %v3136_v1 = vpack.c.bf16 %v567_v59, %v566_v57  ;;  %v537_v4 = vld [vmem:[%s3468_s29 + $0x8f8] sm:$0xff]  ;;  %v3176_v28 = vpack.c.bf16 %v619_v20, %v618_v16  ;;  %v623_v49 = vld [vmem:[%s3468_s29 + $0xba8] sm:$0xff] }
  0x9f   : > { %1632 = vmatprep.mubr.f32.mxu1 %v854_v7  ;;  %v3106_v7 = vpack.c.bf16 %v519_v63, %v518_v62  ;;  %v607_v59 = vld [vmem:[%s3468_s29 + $0xb28] sm:$0xff]  ;;  %v596_v16 = vld [vmem:[%s3468_s29 + $0xad0] sm:$0xff]  ;;  %v597_v20 = vld [vmem:[%s3468_s29 + $0xad8] sm:$0xff] }
  0xa0   : > { %3087 = vmatpush3.bf16.msra.mxu0 %v3086_v8  ;;  %v247_v8 = vld [vmem:[%s3463_s25 + $0x28] sm:$0xff]  ;;  %v3186_v63 = vpack.c.bf16 %v607_v59, %v606_v56  ;;  %v3164_v25 = vpack.c.bf16 %v597_v20, %v596_v16  ;;  %v616_v56 = vld [vmem:[%s3468_s29 + $0xb70] sm:$0xff]  ;;  %v617_v59 = vld [vmem:[%s3468_s29 + $0xb78] sm:$0xff] }
  0xa1   : > { %3119 = vmatpush3.bf16.msra.mxu1 %v3118_v9  ;;  %3089 = vmatprep.subr.bf16.mxu0 %v3088_v10  ;;  %v3138_v9 = vpack.c.bf16 %v551_v2, %v550_v0  ;;  %v3108_v10 = vpack.c.bf16 %v537_v4, %v536_v3  ;;  %v3858_v32 = vrot.slane %v247_v8, %v3521_v14  ;;  %v577_v2 = vld [vmem:[%s3468_s29 + $0xa38] sm:$0xff]  ;;  %v608_v3 = vld [vmem:[%s3468_s29 + $0xb30] sm:$0xff] }
  0xa2   : > { %3121 = vmatprep.subr.bf16.mxu1 %v3120_v15  ;;  %v3140_v15 = vpack.c.bf16 %v569_v6, %v568_v5  ;;  %v609_v5 = vld [vmem:[%s3468_s29 + $0xb38] sm:$0xff]  ;;  %v594_v6 = vld [vmem:[%s3468_s29 + $0xac0] sm:$0xff]  ;;  %v668_v16 = vld [vmem:[%s3468_s29 + $0xd10] sm:$0xff] }
  0xa4   : > { %3091 = vmatpush3.bf16.msra.mxu0 %v3090_v21  ;;  %v855_v21 = vcombine.high %v247_v8, %v247_v8  ;;  %v626_v8 = vld [vmem:[%s3468_s29 + $0xbc0] sm:$0xff] }
  0xa5   : > { %3123 = vmatpush3.bf16.msra.mxu1 %v3122_v22  ;;  %3093 = vmatprep.subr.bf16.mxu0 %v3092_v23  ;;  %v3110_v22 = vpack.c.bf16 %v521_v12, %v520_v11  ;;  %v3142_v23 = vpack.c.bf16 %v553_v17, %v552_v13  ;;  %v3190_v11 = vpack.c.bf16 %v609_v5, %v608_v3  ;;  %v578_v13 = vld [vmem:[%s3468_s29 + $0xa40] sm:$0xff]  ;;  %v635_v3 = vld [vmem:[%s3468_s29 + $0xc08] sm:$0xff] }
  0xa6   : > { %3125 = vmatprep.subr.bf16.mxu1 %v3124_v27  ;;  %v602_v27 = vld [vmem:[%s3468_s29 + $0xb00] sm:$0xff] }
  0xa7   : > { %v3178_v37 = vpack.c.bf16 %v603_v29, %v602_v27  ;;  %v610_v17 = vld [vmem:[%s3468_s29 + $0xb40] sm:$0xff]  ;;  %v581_v27 = vld [vmem:[%s3468_s29 + $0xa58] sm:$0xff] }
  0xa8   : > { %3095 = vmatpush3.bf16.msra.mxu0 %v3094_v33  ;;  %v620_v33 = vld [vmem:[%s3468_s29 + $0xb90] sm:$0xff] }
  0xa9   : > { %3127 = vmatpush3.bf16.msra.mxu1 %v3126_v35  ;;  %3097 = vmatprep.subr.bf16.mxu0 %v3096_v43  ;;  %v621_v35 = vld [vmem:[%s3468_s29 + $0xb98] sm:$0xff]  ;;  %v3863_v43 = vrot.slane %v855_v21, %v3521_v14  ;;  %v628_v21 = vld [vmem:[%s3468_s29 + $0xbd0] sm:$0xff] }
  0xaa   : > { %3129 = vmatprep.subr.bf16.mxu1 %v3128_v39  ;;  %v572_v39 = vld [vmem:[%s3468_s29 + $0xa10] sm:$0xff]  ;;  %v3180_v41 = vpack.c.bf16 %v621_v35, %v620_v33  ;;  %v599_v33 = vld [vmem:[%s3468_s29 + $0xae8] sm:$0xff]  ;;  %v630_v35 = vld [vmem:[%s3468_s29 + $0xbe0] sm:$0xff] }
  0xab   : > { %v871_v50 = vcombine.high %v3863_v43, %v3863_v43  ;;  %v3150_v51 = vpack.c.bf16 %v573_v40, %v572_v39  ;;  %v3168_v39 = vpack.c.bf16 %v599_v33, %v598_v31  ;;  %v582_v40 = vld [vmem:[%s3468_s29 + $0xa60] sm:$0xff] }
  0xac   : > { %3099 = vmatpush3.bf16.msra.mxu0 %v3098_v45  ;;  %v591_v45 = vld [vmem:[%s3468_s29 + $0xaa8] sm:$0xff]  ;;  %v638_v31 = vld [vmem:[%s3468_s29 + $0xc20] sm:$0xff] }
  0xad   : > { %3131 = vmatpush3.bf16.msra.mxu1 %v3130_v47  ;;  %3101 = vmatprep.subr.bf16.mxu0 %v3100_v48  ;;  %v870_v47 = vcombine.high %v3858_v32, %v3858_v32  ;;  %v622_v48 = vld [vmem:[%s3468_s29 + $0xba0] sm:$0xff]  ;;  %v3152_v54 = vpack.c.bf16 %v591_v45, %v590_v44  ;;  %v615_v44 = vld [vmem:[%s3468_s29 + $0xb68] sm:$0xff]  ;;  %v600_v45 = vld [vmem:[%s3468_s29 + $0xaf0] sm:$0xff] }
  0xae   : > { %3133 = vmatprep.subr.bf16.mxu1 %v3132_v52  ;;  %v3182_v52 = vpack.c.bf16 %v605_v42, %v604_v53  ;;  %v3184_v57 = vpack.c.bf16 %v623_v49, %v622_v48  ;;  %v583_v53 = vld [vmem:[%s3468_s29 + $0xa68] sm:$0xff]  ;;  %v632_v48 = vld [vmem:[%s3468_s29 + $0xbf0] sm:$0xff]  ;;  %v633_v49 = vld [vmem:[%s3468_s29 + $0xbf8] sm:$0xff] }
  0xaf   : > { %v670_v33 = vld [vmem:[%s3468_s29 + $0xd20] sm:$0xff] }
  0xb0   : > { %3103 = vmatpush3.bf16.msra.mxu0 %v3102_v60  ;;  %v592_v60 = vld [vmem:[%s3468_s29 + $0xab0] sm:$0xff] }
  0xb1   : > { %3135 = vmatpush3.bf16.msra.mxu1 %v3134_v61  ;;  %3105 = vmatprep.subr.bf16.mxu0 %v3104_v46  ;;  %v593_v61 = vld [vmem:[%s3468_s29 + $0xab8] sm:$0xff] }
  0xb2   : > { %3137 = vmatprep.subr.bf16.mxu1 %v3136_v1  ;;  %v625_v46 = vld [vmem:[%s3468_s29 + $0xbb8] sm:$0xff]  ;;  %v3156_v0 = vpack.c.bf16 %v593_v61, %v592_v60  ;;  %v576_v1 = vld [vmem:[%s3468_s29 + $0xa30] sm:$0xff]  ;;  %v650_v60 = vld [vmem:[%s3468_s29 + $0xc80] sm:$0xff] }
  0xb3   : > { %v651_v61 = vld [vmem:[%s3468_s29 + $0xc88] sm:$0xff] }
  0xb4   : > { %3107 = vmatpush3.bf16.msra.mxu0 %v3106_v7  ;;  %v595_v7 = vld [vmem:[%s3468_s29 + $0xac8] sm:$0xff] }
  0xb5   : > { %3139 = vmatpush3.bf16.msra.mxu1 %v3138_v9  ;;  %3109 = vmatprep.subr.bf16.mxu0 %v3108_v10  ;;  %v627_v9 = vld [vmem:[%s3468_s29 + $0xbc8] sm:$0xff]  ;;  %v3158_v10 = vpack.c.bf16 %v577_v2, %v576_v1  ;;  %v3160_v12 = vpack.c.bf16 %v595_v7, %v594_v6  ;;  %v3208_v1 = vpack.c.bf16 %v651_v61, %v650_v60  ;;  %v634_v2 = vld [vmem:[%s3468_s29 + $0xc00] sm:$0xff]  ;;  %v652_v7 = vld [vmem:[%s3468_s29 + $0xc90] sm:$0xff] }
  0xb6   : > { %3141 = vmatprep.subr.bf16.mxu1 %v3140_v15  ;;  %v579_v15 = vld [vmem:[%s3468_s29 + $0xa48] sm:$0xff]  ;;  %v3192_v18 = vpack.c.bf16 %v627_v9, %v626_v8  ;;  %v653_v8 = vld [vmem:[%s3468_s29 + $0xc98] sm:$0xff] }
  0xb7   : > { %v667_v6 = vld [vmem:[%s3468_s29 + $0xd08] sm:$0xff] }
  0xb8   : > { %3111 = vmatpush3.bf16.msra.mxu0 %v3110_v22  ;;  %v629_v22 = vld [vmem:[%s3468_s29 + $0xbd8] sm:$0xff]  ;;  %v675_v61 = vld [vmem:[%s3468_s29 + $0xd48] sm:$0xff] }
  0xb9   : > { %3143 = vmatpush3.bf16.msra.mxu1 %v3142_v23  ;;  %3145 = vmatprep.subr.bf16.mxu0 %v3144_v24  ;;  %v3162_v23 = vpack.c.bf16 %v579_v15, %v578_v13  ;;  %v3194_v24 = vpack.c.bf16 %v611_v19, %v610_v17  ;;  %v3196_v29 = vpack.c.bf16 %v629_v22, %v628_v21  ;;  %v637_v19 = vld [vmem:[%s3468_s29 + $0xc18] sm:$0xff]  ;;  %v654_v22 = vld [vmem:[%s3468_s29 + $0xca0] sm:$0xff] }
  0xba   : > { %3177 = vmatprep.subr.bf16.mxu1 %v3176_v28  ;;  %v612_v28 = vld [vmem:[%s3468_s29 + $0xb50] sm:$0xff]  ;;  %v3210_v13 = vpack.c.bf16 %v635_v3, %v634_v2  ;;  %v3212_v17 = vpack.c.bf16 %v653_v8, %v652_v7  ;;  %v669_v21 = vld [vmem:[%s3468_s29 + $0xd18] sm:$0xff]  ;;  %v662_v8 = vld [vmem:[%s3468_s29 + $0xce0] sm:$0xff] }
  0xbb   : > { %1563 = vmatmul.mubr.f32.vlgmr.msra.gmra.mrb[8].mxu0 %v3781_v55  ;;  %v575_v55 = vld [vmem:[%s3468_s29 + $0xa28] sm:$0xff]  ;;  %v644_v3 = vld [vmem:[%s3468_s29 + $0xc50] sm:$0xff]  ;;  %v677_v7 = vld [vmem:[%s3468_s29 + $0xd58] sm:$0xff] }
  0xbc   : > { %3147 = vmatpush3.bf16.msra.mxu0 %v3146_v36  ;;  %1633 = vmatmul.mubr.f32.vlgmr.msra.gmra.mrb[8].mxu1 %v3786_v58  ;;  %v624_v58 = vld [vmem:[%s3468_s29 + $0xbb0] sm:$0xff]  ;;  %v3154_v62 = vpack.c.bf16 %v575_v55, %v574_v34  ;;  %v631_v36 = vld [vmem:[%s3468_s29 + $0xbe8] sm:$0xff]  ;;  %v585_v55 = vld [vmem:[%s3468_s29 + $0xa78] sm:$0xff] }
  0xbd   : > { %3179 = vmatpush3.bf16.msra.mxu1 %v3178_v37  ;;  %3149 = vmatprep.subr.bf16.mxu0 %v3148_v38  ;;  %v3188_v4 = vpack.c.bf16 %v625_v46, %v624_v58  ;;  %v3166_v37 = vpack.c.bf16 %v581_v27, %v580_v26  ;;  %v3198_v38 = vpack.c.bf16 %v613_v30, %v612_v28  ;;  %v584_v34 = vld [vmem:[%s3468_s29 + $0xa70] sm:$0xff]  ;;  %v682_v58 = vld [vmem:[%s3468_s29 + $0xd80] sm:$0xff]  ;;  %v683_v46 = vld [vmem:[%s3468_s29 + $0xd88] sm:$0xff] }
  0xbe   : > { %3181 = vmatprep.subr.bf16.mxu1 %v3180_v41  ;;  %1702 = vmatprep.mubr.f32.mxu0 %v870_v47  ;;  %v614_v41 = vld [vmem:[%s3468_s29 + $0xb60] sm:$0xff]  ;;  %v3200_v42 = vpack.c.bf16 %v631_v36, %v630_v35  ;;  %v601_v47 = vld [vmem:[%s3468_s29 + $0xaf8] sm:$0xff]  ;;  %v3240_v5 = vpack.c.bf16 %v683_v46, %v682_v58  ;;  %v687_v26 = vld [vmem:[%s3468_s29 + $0xda8] sm:$0xff] }
  0xbf   : > { %1772 = vmatprep.mubr.f32.mxu1 %v871_v50  ;;  %v3170_v50 = vpack.c.bf16 %v583_v53, %v582_v40  ;;  %v671_v36 = vld [vmem:[%s3468_s29 + $0xd28] sm:$0xff]  ;;  %v660_v58 = vld [vmem:[%s3468_s29 + $0xcd0] sm:$0xff]  ;;  %v661_v46 = vld [vmem:[%s3468_s29 + $0xcd8] sm:$0xff] }
  0xc0   : > { %3151 = vmatpush3.bf16.msra.mxu0 %v3150_v51  ;;  %v248_v51 = vld [vmem:[%s3463_s25 + $0x30] sm:$0xff]  ;;  %v3250_v53 = vpack.c.bf16 %v671_v36, %v670_v33  ;;  %v3228_v2 = vpack.c.bf16 %v661_v46, %v660_v58  ;;  %v681_v36 = vld [vmem:[%s3468_s29 + $0xd78] sm:$0xff] }
  0xc1   : > { %3183 = vmatpush3.bf16.msra.mxu1 %v3182_v52  ;;  %3153 = vmatprep.subr.bf16.mxu0 %v3152_v54  ;;  %v3202_v52 = vpack.c.bf16 %v615_v44, %v614_v41  ;;  %v3172_v54 = vpack.c.bf16 %v601_v47, %v600_v45  ;;  %v3935_v9 = vrot.slane %v248_v51, %v3521_v14  ;;  %v641_v44 = vld [vmem:[%s3468_s29 + $0xc38] sm:$0xff]  ;;  %v672_v45 = vld [vmem:[%s3468_s29 + $0xd30] sm:$0xff] }
  0xc2   : > { %3185 = vmatprep.subr.bf16.mxu1 %v3184_v57  ;;  %v3204_v57 = vpack.c.bf16 %v633_v49, %v632_v48  ;;  %v673_v48 = vld [vmem:[%s3468_s29 + $0xd38] sm:$0xff]  ;;  %v658_v49 = vld [vmem:[%s3468_s29 + $0xcc0] sm:$0xff]  ;;  %v680_v33 = vld [vmem:[%s3468_s29 + $0xd70] sm:$0xff] }
  0xc3   : > { %v732_v58 = vld [vmem:[%s3468_s29 + $0xf10] sm:$0xff] }
  0xc4   : > { %3155 = vmatpush3.bf16.msra.mxu0 %v3154_v62  ;;  %v872_v62 = vcombine.high %v248_v51, %v248_v51  ;;  %v690_v51 = vld [vmem:[%s3468_s29 + $0xdc0] sm:$0xff] }
  0xc5   : > { %3187 = vmatpush3.bf16.msra.mxu1 %v3186_v63  ;;  %3157 = vmatprep.subr.bf16.mxu0 %v3156_v0  ;;  %v3174_v63 = vpack.c.bf16 %v585_v55, %v584_v34  ;;  %v3206_v0 = vpack.c.bf16 %v617_v59, %v616_v56  ;;  %v3254_v34 = vpack.c.bf16 %v673_v48, %v672_v45  ;;  %v642_v56 = vld [vmem:[%s3468_s29 + $0xc40] sm:$0xff]  ;;  %v699_v45 = vld [vmem:[%s3468_s29 + $0xe08] sm:$0xff] }
  0xc6   : > { %3189 = vmatprep.subr.bf16.mxu1 %v3188_v4  ;;  %v666_v4 = vld [vmem:[%s3468_s29 + $0xd00] sm:$0xff] }
  0xc7   : > { %v3242_v15 = vpack.c.bf16 %v667_v6, %v666_v4  ;;  %v674_v59 = vld [vmem:[%s3468_s29 + $0xd40] sm:$0xff]  ;;  %v645_v4 = vld [vmem:[%s3468_s29 + $0xc58] sm:$0xff] }
  0xc8   : > { %3159 = vmatpush3.bf16.msra.mxu0 %v3158_v10  ;;  %v684_v10 = vld [vmem:[%s3468_s29 + $0xd90] sm:$0xff] }
  0xc9   : > { %3191 = vmatpush3.bf16.msra.mxu1 %v3190_v11  ;;  %3161 = vmatprep.subr.bf16.mxu0 %v3160_v12  ;;  %v685_v11 = vld [vmem:[%s3468_s29 + $0xd98] sm:$0xff]  ;;  %v3940_v12 = vrot.slane %v872_v62, %v3521_v14  ;;  %v692_v62 = vld [vmem:[%s3468_s29 + $0xdd0] sm:$0xff] }
  0xca   : > { %3193 = vmatprep.subr.bf16.mxu1 %v3192_v18  ;;  %v636_v18 = vld [vmem:[%s3468_s29 + $0xc10] sm:$0xff]  ;;  %v3244_v20 = vpack.c.bf16 %v685_v11, %v684_v10  ;;  %v663_v10 = vld [vmem:[%s3468_s29 + $0xce8] sm:$0xff]  ;;  %v694_v11 = vld [vmem:[%s3468_s29 + $0xde0] sm:$0xff] }
  0xcb   : > { %v888_v27 = vcombine.high %v3940_v12, %v3940_v12  ;;  %v3214_v28 = vpack.c.bf16 %v637_v19, %v636_v18  ;;  %v3232_v18 = vpack.c.bf16 %v663_v10, %v662_v8  ;;  %v646_v19 = vld [vmem:[%s3468_s29 + $0xc60] sm:$0xff] }
  0xcc   : > { %3163 = vmatpush3.bf16.msra.mxu0 %v3162_v23  ;;  %v655_v23 = vld [vmem:[%s3468_s29 + $0xca8] sm:$0xff]  ;;  %v734_v8 = vld [vmem:[%s3468_s29 + $0xf20] sm:$0xff] }
  0xcd   : > { %3195 = vmatpush3.bf16.msra.mxu1 %v3194_v24  ;;  %3165 = vmatprep.subr.bf16.mxu0 %v3164_v25  ;;  %v887_v24 = vcombine.high %v3935_v9, %v3935_v9  ;;  %v686_v25 = vld [vmem:[%s3468_s29 + $0xda0] sm:$0xff]  ;;  %v3216_v30 = vpack.c.bf16 %v655_v23, %v654_v22  ;;  %v679_v22 = vld [vmem:[%s3468_s29 + $0xd68] sm:$0xff]  ;;  %v664_v23 = vld [vmem:[%s3468_s29 + $0xcf0] sm:$0xff] }
  0xce   : > { %3197 = vmatprep.subr.bf16.mxu1 %v3196_v29  ;;  %v3246_v29 = vpack.c.bf16 %v669_v21, %v668_v16  ;;  %v3248_v35 = vpack.c.bf16 %v687_v26, %v686_v25  ;;  %v647_v16 = vld [vmem:[%s3468_s29 + $0xc68] sm:$0xff]  ;;  %v696_v25 = vld [vmem:[%s3468_s29 + $0xdf0] sm:$0xff]  ;;  %v697_v26 = vld [vmem:[%s3468_s29 + $0xdf8] sm:$0xff] }
  0xd0   : > { %3167 = vmatpush3.bf16.msra.mxu0 %v3166_v37  ;;  %v656_v37 = vld [vmem:[%s3468_s29 + $0xcb0] sm:$0xff] }
  0xd1   : > { %3199 = vmatpush3.bf16.msra.mxu1 %v3198_v38  ;;  %3169 = vmatprep.subr.bf16.mxu0 %v3168_v39  ;;  %v657_v38 = vld [vmem:[%s3468_s29 + $0xcb8] sm:$0xff] }
  0xd2   : > { %3201 = vmatprep.subr.bf16.mxu1 %v3200_v42  ;;  %v689_v39 = vld [vmem:[%s3468_s29 + $0xdb8] sm:$0xff]  ;;  %v3220_v41 = vpack.c.bf16 %v657_v38, %v656_v37  ;;  %v640_v42 = vld [vmem:[%s3468_s29 + $0xc30] sm:$0xff]  ;;  %v714_v37 = vld [vmem:[%s3468_s29 + $0xe80] sm:$0xff] }
  0xd3   : > { %v715_v38 = vld [vmem:[%s3468_s29 + $0xe88] sm:$0xff] }
  0xd4   : > { %3171 = vmatpush3.bf16.msra.mxu0 %v3170_v50  ;;  %v659_v50 = vld [vmem:[%s3468_s29 + $0xcc8] sm:$0xff] }
  0xd5   : > { %3203 = vmatpush3.bf16.msra.mxu1 %v3202_v52  ;;  %3173 = vmatprep.subr.bf16.mxu0 %v3172_v54  ;;  %v691_v52 = vld [vmem:[%s3468_s29 + $0xdc8] sm:$0xff]  ;;  %v3222_v54 = vpack.c.bf16 %v641_v44, %v640_v42  ;;  %v3224_v55 = vpack.c.bf16 %v659_v50, %v658_v49  ;;  %v3272_v42 = vpack.c.bf16 %v715_v38, %v714_v37  ;;  %v698_v44 = vld [vmem:[%s3468_s29 + $0xe00] sm:$0xff]  ;;  %v716_v50 = vld [vmem:[%s3468_s29 + $0xe90] sm:$0xff] }
  0xd6   : > { %3205 = vmatprep.subr.bf16.mxu1 %v3204_v57  ;;  %v643_v57 = vld [vmem:[%s3468_s29 + $0xc48] sm:$0xff]  ;;  %v3256_v60 = vpack.c.bf16 %v691_v52, %v690_v51  ;;  %v717_v51 = vld [vmem:[%s3468_s29 + $0xe98] sm:$0xff]  ;;  %v724_v38 = vld [vmem:[%s3468_s29 + $0xed0] sm:$0xff] }
  0xd7   : > { %v731_v49 = vld [vmem:[%s3468_s29 + $0xf08] sm:$0xff] }
  0xd8   : > { %3175 = vmatpush3.bf16.msra.mxu0 %v3174_v63  ;;  %v693_v63 = vld [vmem:[%s3468_s29 + $0xdd8] sm:$0xff]  ;;  %v739_v37 = vld [vmem:[%s3468_s29 + $0xf48] sm:$0xff] }
  0xd9   : > { %3207 = vmatpush3.bf16.msra.mxu1 %v3206_v0  ;;  %3209 = vmatprep.subr.bf16.mxu0 %v3208_v1  ;;  %v3226_v0 = vpack.c.bf16 %v643_v57, %v642_v56  ;;  %v3258_v1 = vpack.c.bf16 %v675_v61, %v674_v59  ;;  %v3260_v6 = vpack.c.bf16 %v693_v63, %v692_v62  ;;  %v701_v61 = vld [vmem:[%s3468_s29 + $0xe18] sm:$0xff]  ;;  %v718_v63 = vld [vmem:[%s3468_s29 + $0xea0] sm:$0xff] }
  0xda   : > { %3241 = vmatprep.subr.bf16.mxu1 %v3240_v5  ;;  %v676_v5 = vld [vmem:[%s3468_s29 + $0xd50] sm:$0xff]  ;;  %v3274_v56 = vpack.c.bf16 %v699_v45, %v698_v44  ;;  %v3276_v59 = vpack.c.bf16 %v717_v51, %v716_v50  ;;  %v733_v62 = vld [vmem:[%s3468_s29 + $0xf18] sm:$0xff]  ;;  %v726_v50 = vld [vmem:[%s3468_s29 + $0xee0] sm:$0xff] }
  0xdb   : > { %1703 = vmatmul.mubr.f32.vlgmr.msra.gmra.mrb[10].mxu0 %v3858_v32  ;;  %v639_v32 = vld [vmem:[%s3468_s29 + $0xc28] sm:$0xff]  ;;  %v708_v44 = vld [vmem:[%s3468_s29 + $0xe50] sm:$0xff]  ;;  %v709_v45 = vld [vmem:[%s3468_s29 + $0xe58] sm:$0xff] }
  0xdc   : > { %3211 = vmatpush3.bf16.msra.mxu0 %v3210_v13  ;;  %1773 = vmatmul.mubr.f32.vlgmr.msra.gmra.mrb[10].mxu1 %v3863_v43  ;;  %v688_v43 = vld [vmem:[%s3468_s29 + $0xdb0] sm:$0xff]  ;;  %v3218_v40 = vpack.c.bf16 %v639_v32, %v638_v31  ;;  %v695_v13 = vld [vmem:[%s3468_s29 + $0xde8] sm:$0xff]  ;;  %v649_v32 = vld [vmem:[%s3468_s29 + $0xc78] sm:$0xff] }
  0xdd   : > { %3243 = vmatpush3.bf16.msra.mxu1 %v3242_v15  ;;  %3213 = vmatprep.subr.bf16.mxu0 %v3212_v17  ;;  %v3252_v47 = vpack.c.bf16 %v689_v39, %v688_v43  ;;  %v3230_v15 = vpack.c.bf16 %v645_v4, %v644_v3  ;;  %v3262_v17 = vpack.c.bf16 %v677_v7, %v676_v5  ;;  %v648_v31 = vld [vmem:[%s3468_s29 + $0xc70] sm:$0xff]  ;;  %v746_v43 = vld [vmem:[%s3468_s29 + $0xf80] sm:$0xff]  ;;  %v747_v39 = vld [vmem:[%s3468_s29 + $0xf88] sm:$0xff] }
  0xde   : > { %3245 = vmatprep.subr.bf16.mxu1 %v3244_v20  ;;  %1842 = vmatprep.mubr.f32.mxu0 %v887_v24  ;;  %v678_v20 = vld [vmem:[%s3468_s29 + $0xd60] sm:$0xff]  ;;  %v3264_v21 = vpack.c.bf16 %v695_v13, %v694_v11  ;;  %v665_v24 = vld [vmem:[%s3468_s29 + $0xcf8] sm:$0xff]  ;;  %v3304_v48 = vpack.c.bf16 %v747_v39, %v746_v43  ;;  %v3310_v5 = vpack.c.bf16 %v733_v62, %v732_v58  ;;  %v735_v11 = vld [vmem:[%s3468_s29 + $0xf28] sm:$0xff] }
  0xdf   : > { %1912 = vmatprep.mubr.f32.mxu1 %v888_v27  ;;  %v3234_v27 = vpack.c.bf16 %v647_v16, %v646_v19  ;;  %v702_v7 = vld [vmem:[%s3468_s29 + $0xe20] sm:$0xff]  ;;  %v720_v13 = vld [vmem:[%s3468_s29 + $0xeb0] sm:$0xff]  ;;  %v3314_v19 = vpack.c.bf16 %v735_v11, %v734_v8  ;;  %v725_v43 = vld [vmem:[%s3468_s29 + $0xed8] sm:$0xff] }
  0xe0   : > { %3215 = vmatpush3.bf16.msra.mxu0 %v3214_v28  ;;  %v249_v28 = vld [vmem:[%s3463_s25 + $0x38] sm:$0xff]  ;;  %v756_v39 = vld [vmem:[%s3468_s29 + $0xfd0] sm:$0xff]  ;;  %v727_v51 = vld [vmem:[%s3468_s29 + $0xee8] sm:$0xff] }
  0xe1   : > { %3247 = vmatpush3.bf16.msra.mxu1 %v3246_v29  ;;  %3217 = vmatprep.subr.bf16.mxu0 %v3216_v30  ;;  %v3266_v29 = vpack.c.bf16 %v679_v22, %v678_v20  ;;  %v3236_v30 = vpack.c.bf16 %v665_v24, %v664_v23  ;;  %v4012_v52 = vrot.slane %v249_v28, %v3521_v14  ;;  %v704_v20 = vld [vmem:[%s3468_s29 + $0xe30] sm:$0xff]  ;;  %v737_v24 = vld [vmem:[%s3468_s29 + $0xf38] sm:$0xff]  ;;  %v742_v58 = vld [vmem:[%s3468_s29 + $0xf60] sm:$0xff] }
  0xe2   : > { %3249 = vmatprep.subr.bf16.mxu1 %v3248_v35  ;;  %v3268_v35 = vpack.c.bf16 %v697_v26, %v696_v25  ;;  %v736_v22 = vld [vmem:[%s3468_s29 + $0xf30] sm:$0xff]  ;;  %v722_v25 = vld [vmem:[%s3468_s29 + $0xec0] sm:$0xff]  ;;  %v723_v26 = vld [vmem:[%s3468_s29 + $0xec8] sm:$0xff] }
  0xe3   : > { %v712_v11 = vld [vmem:[%s3468_s29 + $0xe70] sm:$0xff] }
  0xe4   : > { %3219 = vmatpush3.bf16.msra.mxu0 %v3218_v40  ;;  %v889_v40 = vcombine.high %v249_v28, %v249_v28  ;;  %v755_v28 = vld [vmem:[%s3468_s29 + $0xfc8] sm:$0xff] }
  0xe5   : > { %3251 = vmatpush3.bf16.msra.mxu1 %v3250_v53  ;;  %3221 = vmatprep.subr.bf16.mxu0 %v3220_v41  ;;  %v3238_v53 = vpack.c.bf16 %v649_v32, %v648_v31  ;;  %v3270_v41 = vpack.c.bf16 %v681_v36, %v680_v33  ;;  %v3288_v31 = vpack.c.bf16 %v723_v26, %v722_v25  ;;  %v706_v32 = vld [vmem:[%s3468_s29 + $0xe40] sm:$0xff]  ;;  %v707_v33 = vld [vmem:[%s3468_s29 + $0xe48] sm:$0xff] }
  0xe6   : > { %3253 = vmatprep.subr.bf16.mxu1 %v3252_v47  ;;  %v730_v47 = vld [vmem:[%s3468_s29 + $0xf00] sm:$0xff] }
  0xe7   : > { %v3306_v57 = vpack.c.bf16 %v731_v49, %v730_v47  ;;  %v740_v47 = vld [vmem:[%s3468_s29 + $0xf50] sm:$0xff]  ;;  %v741_v49 = vld [vmem:[%s3468_s29 + $0xf58] sm:$0xff] }
  0xe8   : > { %3223 = vmatpush3.bf16.msra.mxu0 %v3222_v54  ;;  %v748_v54 = vld [vmem:[%s3468_s29 + $0xf90] sm:$0xff] }
  0xe9   : > { %3255 = vmatpush3.bf16.msra.mxu1 %v3254_v34  ;;  %3225 = vmatprep.subr.bf16.mxu0 %v3224_v55  ;;  %v749_v34 = vld [vmem:[%s3468_s29 + $0xf98] sm:$0xff]  ;;  %v4017_v55 = vrot.slane %v889_v40, %v3521_v14  ;;  %v719_v14 = vld [vmem:[%s3468_s29 + $0xea8] sm:$0xff] }
  0xea   : > { %3257 = vmatprep.subr.bf16.mxu1 %v3256_v60  ;;  %v700_v60 = vld [vmem:[%s3468_s29 + $0xe10] sm:$0xff]  ;;  %v3308_v46 = vpack.c.bf16 %v749_v34, %v748_v54  ;;  %v757_v40 = vld [vmem:[%s3468_s29 + $0xfd8] sm:$0xff]  ;;  %v758_v54 = vld [vmem:[%s3468_s29 + $0xfe0] sm:$0xff] }
  0xeb   : > { %v905_v3 = vcombine.high %v4017_v55, %v4017_v55  ;;  %v3278_v4 = vpack.c.bf16 %v701_v61, %v700_v60  ;;  %v759_v34 = vld [vmem:[%s3468_s29 + $0xfe8] sm:$0xff]  ;;  %v710_v60 = vld [vmem:[%s3468_s29 + $0xe60] sm:$0xff] }
  0xec   : > { %3227 = vmatpush3.bf16.msra.mxu0 %v3226_v0  ;;  %v904_v0 = vcombine.high %v4012_v52, %v4012_v52  ;;  %v711_v61 = vld [vmem:[%s3468_s29 + $0xe68] sm:$0xff]  ;;  %v3328_v62 = vpack.c.bf16 %v759_v34, %v758_v54 }
  0xed   : > { %3259 = vmatpush3.bf16.msra.mxu1 %v3258_v1  ;;  %3229 = vmatprep.subr.bf16.mxu0 %v3228_v2  ;;  %v750_v1 = vld [vmem:[%s3468_s29 + $0xfa0] sm:$0xff]  ;;  %v751_v2 = vld [vmem:[%s3468_s29 + $0xfa8] sm:$0xff] }
  0xee   : > { %3261 = vmatprep.subr.bf16.mxu1 %v3260_v6  ;;  %v3280_v6 = vpack.c.bf16 %v719_v14, %v718_v63  ;;  %v3312_v10 = vpack.c.bf16 %v751_v2, %v750_v1  ;;  %v743_v63 = vld [vmem:[%s3468_s29 + $0xf68] sm:$0xff]  ;;  %v728_v14 = vld [vmem:[%s3468_s29 + $0xef0] sm:$0xff] }
  0xef   : > { %v3330_v8 = vpack.c.bf16 %v743_v63, %v742_v58 }
  0xf0   : > { %3231 = vmatpush3.bf16.msra.mxu0 %v3230_v15  ;;  %v721_v15 = vld [vmem:[%s3468_s29 + $0xeb8] sm:$0xff] }
  0xf1   : > { %3263 = vmatpush3.bf16.msra.mxu1 %v3262_v17  ;;  %3233 = vmatprep.subr.bf16.mxu0 %v3232_v18  ;;  %v753_v17 = vld [vmem:[%s3468_s29 + $0xfb8] sm:$0xff]  ;;  %v3284_v16 = vpack.c.bf16 %v721_v15, %v720_v13 }
  0xf2   : > { %3265 = vmatprep.subr.bf16.mxu1 %v3264_v21  ;;  %v705_v21 = vld [vmem:[%s3468_s29 + $0xe38] sm:$0xff] }
  0xf3   : > { %v713_v13 = vld [vmem:[%s3468_s29 + $0xe78] sm:$0xff] }
  0xf4   : > { %3235 = vmatpush3.bf16.msra.mxu0 %v3234_v27  ;;  %v754_v27 = vld [vmem:[%s3468_s29 + $0xfc0] sm:$0xff] }
  0xf5   : > { %3267 = vmatpush3.bf16.msra.mxu1 %v3266_v29  ;;  %3237 = vmatprep.subr.bf16.mxu0 %v3236_v30  ;;  %v3286_v29 = vpack.c.bf16 %v705_v21, %v704_v20  ;;  %v3318_v30 = vpack.c.bf16 %v737_v24, %v736_v22  ;;  %v3320_v36 = vpack.c.bf16 %v755_v28, %v754_v27 }
  0xf6   : > { %3269 = vmatprep.subr.bf16.mxu1 %v3268_v35  ;;  %v738_v35 = vld [vmem:[%s3468_s29 + $0xf40] sm:$0xff] }
  0xf8   : > { %3239 = vmatpush3.bf16.msra.mxu0 %v3238_v53  ;;  %v3290_v53 = vpack.c.bf16 %v707_v33, %v706_v32 }
  0xf9   : > { %3271 = vmatpush3.bf16.msra.mxu1 %v3270_v41  ;;  %3273 = vmatprep.subr.bf16.mxu0 %v3272_v42  ;;  %v3322_v41 = vpack.c.bf16 %v739_v37, %v738_v35  ;;  %v3292_v42 = vpack.c.bf16 %v725_v43, %v724_v38 }
  0xfa   : > { %3305 = vmatprep.subr.bf16.mxu1 %v3304_v48  ;;  %v3324_v48 = vpack.c.bf16 %v757_v40, %v756_v39 }
  0xfb   : > { %1843 = vmatmul.mubr.f32.vlgmr.msra.gmra.mrb[12].mxu0 %v3935_v9  ;;  %v703_v9 = vld [vmem:[%s3468_s29 + $0xe28] sm:$0xff] }
  0xfc   : > { %3275 = vmatpush3.bf16.msra.mxu0 %v3274_v56  ;;  %1913 = vmatmul.mubr.f32.vlgmr.msra.gmra.mrb[12].mxu1 %v3940_v12  ;;  %v752_v12 = vld [vmem:[%s3468_s29 + $0xfb0] sm:$0xff]  ;;  %v3282_v18 = vpack.c.bf16 %v703_v9, %v702_v7  ;;  %v3294_v56 = vpack.c.bf16 %v709_v45, %v708_v44  ;;  %v3298_v7 = vpack.c.bf16 %v711_v61, %v710_v60 }
  0xfd   : > { %3307 = vmatpush3.bf16.msra.mxu1 %v3306_v57  ;;  %3277 = vmatprep.subr.bf16.mxu0 %v3276_v59  ;;  %v3316_v23 = vpack.c.bf16 %v753_v17, %v752_v12  ;;  %v3326_v57 = vpack.c.bf16 %v741_v49, %v740_v47  ;;  %v3296_v59 = vpack.c.bf16 %v727_v51, %v726_v50  ;;  %v744_v12 = vld [vmem:[%s3468_s29 + $0xf70] sm:$0xff]  ;;  %v745_v17 = vld [vmem:[%s3468_s29 + $0xf78] sm:$0xff] }
  0xfe   : > { %3309 = vmatprep.subr.bf16.mxu1 %v3308_v46  ;;  %1982 = vmatprep.mubr.f32.mxu0 %v904_v0  ;;  %v729_v0 = vld [vmem:[%s3468_s29 + $0xef8] sm:$0xff] }
  0xff   : > { %2052 = vmatprep.mubr.f32.mxu1 %v905_v3  ;;  %v760_v3 = vld [vmem:[%s3468_s29 + $0xff0] sm:$0xff] }
 0x100   : > { %3279 = vmatpush3.bf16.msra.mxu0 %v3278_v4  ;;  %v761_v4 = vld [vmem:[%s3468_s29 + $0xff8] sm:$0xff] }
 0x101   : > { %3311 = vmatpush3.bf16.msra.mxu1 %v3310_v5  ;;  %3281 = vmatprep.subr.bf16.mxu0 %v3280_v6  ;;  %v3332_v15 = vpack.c.bf16 %v761_v4, %v760_v3 }
 0x102   : > { %3313 = vmatprep.subr.bf16.mxu1 %v3312_v10  ;;  %v3300_v10 = vpack.c.bf16 %v729_v0, %v728_v14 }
 0x104   : > { %3283 = vmatpush3.bf16.msra.mxu0 %v3282_v18 }
 0x105   : > { %3315 = vmatpush3.bf16.msra.mxu1 %v3314_v19  ;;  %3285 = vmatprep.subr.bf16.mxu0 %v3284_v16  ;;  %v3302_v19 = vpack.c.bf16 %v713_v13, %v712_v11  ;;  %v3334_v16 = vpack.c.bf16 %v745_v17, %v744_v12  ;;  %v2076_v12 = vld [vmem:[%s4130_s3 + $0x8] sm:$0xff] (!%p2240_p6)  ;;  %v2077_v17 = vld [vmem:[%s4130_s3 + $0x10] sm:$0xff] (!%p2240_p6) }
 0x106   : > { %3317 = vmatprep.subr.bf16.mxu1 %v3316_v23 }
 0x108   : > { %3287 = vmatpush3.bf16.msra.mxu0 %v3286_v29 }
 0x109   : > { %3319 = vmatpush3.bf16.msra.mxu1 %v3318_v30  ;;  %3289 = vmatprep.subr.bf16.mxu0 %v3288_v31 }
 0x10a   : > { %3321 = vmatprep.subr.bf16.mxu1 %v3320_v36 }
 0x10c   : > { %3291 = vmatpush3.bf16.msra.mxu0 %v3290_v53 }
 0x10d   : > { %3323 = vmatpush3.bf16.msra.mxu1 %v3322_v41  ;;  %3293 = vmatprep.subr.bf16.mxu0 %v3292_v42 }
 0x10e   : > { %v2280_v46 = vpop.f32.mrb[0].mxu0  ;;  %3325 = vmatprep.subr.bf16.mxu1 %v3324_v48 }
 0x10f   : > { %v2315_v1 = vpop.f32.mrb[0].mxu1  ;;  %v2281_v2 = vpop.f32.mrb[1].mxu0 }
 0x110   : > { %v2282_v5 = vadd.f32 %v2281_v2, %v2280_v46  ;;  %v2316_v6 = vpop.f32.mrb[1].mxu1  ;;  %3295 = vmatpush3.bf16.msra.mxu0 %v3294_v56 }
 0x111   : > { %v2317_v9 = vadd.f32 %v2316_v6, %v2315_v1  ;;  %3327 = vmatpush3.bf16.msra.mxu1 %v3326_v57  ;;  %3297 = vmatprep.subr.bf16.mxu0 %v3296_v59 }
 0x112   : > { %3329 = vmatprep.subr.bf16.mxu1 %v3328_v62 }
 0x113   : > { %v1075_v18 = vadd.f32 %v2317_v9, %v2282_v5 }
 0x114   : > { %3299 = vmatpush3.bf16.msra.mxu0 %v3298_v7 }
 0x115   : > { %3331 = vmatpush3.bf16.msra.mxu1 %v3330_v8  ;;  %3301 = vmatprep.subr.bf16.mxu0 %v3300_v10  ;;  %v241_v10 = vld [vmem:[#allocation2] sm:$0x3] }
 0x116   : > { %3333 = vmatprep.subr.bf16.mxu1 %v3332_v15  ;;  %v2075_v15 = vld [vmem:[%s4130_s3] sm:$0xff] (!%p2240_p6) }
 0x118   : > { %3303 = vmatpush3.bf16.msra.mxu0 %v3302_v19  ;;  %v3337_v19 = vpack.c.bf16 (!%p2240_p6), %v2076_v12, %v2075_v15 }
 0x119   : > { %3335 = vmatpush3.bf16.msra.mxu1 %v3334_v16  ;;  %v2078_v16 = vld [vmem:[%s4130_s3 + $0x18] sm:$0xff] (!%p2240_p6) }
 0x11b   : > { %1983 = vmatmul.mubr.f32.vlgmr.msra.gmra.mrb[14].mxu0 %v4012_v52 }
 0x11c   : > { %2053 = vmatmul.mubr.f32.vlgmr.msra.gmra.mrb[14].mxu1 %v4017_v55 }
 0x12e   : > { %v2350_v20 = vpop.f32.mrb[2].mxu0 }
 0x12f   : > { %v2351_v21 = vpop.f32.mrb[3].mxu0  ;;  %v2385_v22 = vpop.f32.mrb[2].mxu1 }
 0x130   : > { %v2352_v23 = vadd.f32 %v2351_v21, %v2350_v20  ;;  %v2386_v24 = vpop.f32.mrb[3].mxu1  ;;  %v3416_v20 = vmov (!%p2240_p6), 0.0  }
 0x131   : > { %v2387_v25 = vadd.f32 %v2386_v24, %v2385_v22  ;;  %2821 = vmatprep.mubr.msk.f32.mxu0 (!%p2240_p6), %vm3415_vm2, %v3416_v20  ;;  %v2241_v22 = vld [vmem:[%s4129_s2] ss:$0 sm:$0xff] (!%p2240_p6)  ;;  %v3340_v24 = vpack.c.bf16 (!%p2240_p6), %v2078_v16, %v2077_v17 }
 0x132   : > { %v1145_v26 = vadd.f32 %v2352_v23, %v1075_v18  ;;  %v3414_v18 = vmov (!%p2240_p6), 0.0|0.0  }
 0x133   : > { %3336 = vmatprep.subr.bf16.mxu0 (!%p2240_p6), %v3414_v18 }
 0x134   : > { %v1215_v27 = vadd.f32 %v2387_v25, %v1145_v26  ;;  %3338 = vmatpush3.bf16.msra.mxu0 (!%p2240_p6), %v3337_v19  ;;  %v2242_v26 = vld [vmem:[%s4131_s4] ss:$0 sm:$0xff] (!%p2240_p6) }
 0x135   : > { %3339 = vmatprep.subr.bf16.mxu0 (!%p2240_p6), %v3414_v18 }
 0x138   : > { %3341 = vmatpush3.bf16.msra.mxu0 (!%p2240_p6), %v3340_v24 }
 0x14e   : > { %v2420_v28 = vpop.f32.mrb[4].mxu0 }
 0x14f   : > { %v2421_v29 = vpop.f32.mrb[5].mxu0  ;;  %v2455_v30 = vpop.f32.mrb[4].mxu1 }
 0x150   : > { %v2422_v31 = vadd.f32 %v2421_v29, %v2420_v28  ;;  %v2456_v32 = vpop.f32.mrb[5].mxu1 }
 0x151   : > { %v2457_v33 = vadd.f32 %v2456_v32, %v2455_v30 }
 0x152   : > { %v1285_v35 = vadd.f32 %v2422_v31, %v1215_v27 }
 0x154   : > { %v1355_v36 = vadd.f32 %v2457_v33, %v1285_v35 }
 0x16e   : > { %v2490_v37 = vpop.f32.mrb[6].mxu0 }
 0x16f   : > { %v2491_v52 = vpop.f32.mrb[7].mxu0  ;;  %v2525_v38 = vpop.f32.mrb[6].mxu1 }
 0x170   : > { %v2492_v55 = vadd.f32 %v2491_v52, %v2490_v37  ;;  %v2526_v43 = vpop.f32.mrb[7].mxu1 }
 0x171   : > { %v2527_v39 = vadd.f32 %v2526_v43, %v2525_v38 }
 0x172   : > { %v1425_v40 = vadd.f32 %v2492_v55, %v1355_v36 }
 0x174   : > { %v1495_v53 = vadd.f32 %v2527_v39, %v1425_v40 }
 0x18e   : > { %v2560_v41 = vpop.f32.mrb[8].mxu0 }
 0x18f   : > { %v2561_v42 = vpop.f32.mrb[9].mxu0  ;;  %v2595_v44 = vpop.f32.mrb[8].mxu1 }
 0x190   : > { %v2562_v45 = vadd.f32 %v2561_v42, %v2560_v41  ;;  %v2596_v47 = vpop.f32.mrb[9].mxu1 }
 0x191   : > { %v2597_v48 = vadd.f32 %v2596_v47, %v2595_v44 }
 0x192   : > { %v1565_v49 = vadd.f32 %v2562_v45, %v1495_v53 }
 0x194   : > { %v1635_v50 = vadd.f32 %v2597_v48, %v1565_v49 }
 0x1ae   : > { %v2630_v51 = vpop.f32.mrb[10].mxu0 }
 0x1af   : > { %v2631_v54 = vpop.f32.mrb[11].mxu0  ;;  %v2665_v34 = vpop.f32.mrb[10].mxu1 }
 0x1b0   : > { %v2632_v56 = vadd.f32 %v2631_v54, %v2630_v51  ;;  %v2666_v57 = vpop.f32.mrb[11].mxu1 }
 0x1b1   : > { %v2667_v59 = vadd.f32 %v2666_v57, %v2665_v34 }
 0x1b2   : > { %v1705_v60 = vadd.f32 %v2632_v56, %v1635_v50 }
 0x1b4   : > { %v1775_v61 = vadd.f32 %v2667_v59, %v1705_v60 }
 0x1ce   : > { %v2700_v58 = vpop.f32.mrb[12].mxu0 }
 0x1cf   : > { %v2701_v46 = vpop.f32.mrb[13].mxu0  ;;  %v2735_v62 = vpop.f32.mrb[12].mxu1 }
 0x1d0   : > { %v2702_v63 = vadd.f32 %v2701_v46, %v2700_v58  ;;  %v2736_v14 = vpop.f32.mrb[13].mxu1 }
 0x1d1   : > { %v2737_v0 = vadd.f32 %v2736_v14, %v2735_v62 }
 0x1d2   : > { %v1845_v1 = vadd.f32 %v2702_v63, %v1775_v61 }
 0x1d4   : > { %v1915_v2 = vadd.f32 %v2737_v0, %v1845_v1 }
 0x1ee   : > { %v2770_v3 = vpop.f32.mrb[14].mxu0 }
 0x1ef   : > { %v2771_v4 = vpop.f32.mrb[15].mxu0  ;;  %v2805_v5 = vpop.f32.mrb[14].mxu1 }
 0x1f0   : > { %v2772_v6 = vadd.f32 %v2771_v4, %v2770_v3  ;;  %v2806_v7 = vpop.f32.mrb[15].mxu1 }
 0x1f1   : > { %v2807_v9 = vadd.f32 %v2806_v7, %v2805_v5 }
 0x1f2   : > { %v1985_v8 = vadd.f32 %v2772_v6, %v1915_v2  ;;  %2064 = sbr.rel (%p2240_p6) target bundleno = 1045 (0x415), region = 48 }
 0x1f4   : > { %v2055_v11 = vadd.f32 %v2807_v9, %v1985_v8 }
 0x1f6   : > { %v2058_v13 = vadd.f32 %v2055_v11, %v241_v10 }
 0x1f8   : > { %2060 = vst.msk [vmem:[#allocation2] sm:$0x3] %vm2059_vm1, %v2058_v13 }
 0x1ff   : > { %v2065_v21 = vld [vmem:[#allocation2] sm:$0x3] }
 0x200   : > { %v2073_v23 = vadd.f32 %v2241_v22, %v2065_v21 }
 0x202   : > { %v2074_v25 = vmax.f32 %v2073_v23, 0.0 }
 0x204   : > { %2822 = vmatmul.mubr.msk.f32.vlgmr.msra.gmra.mrb[0].mxu0 %vm2086_vm3, %v2074_v25 }
 0x2d7   : > { %v2156_v27 = vpop.f32.mrb[0].mxu0 }
 0x2d8   : > { %v2157_v28 = vadd.f32 %v2242_v26, %v2156_v27  ;;  %v2823_v29 = vpop.f32.mrb[1].mxu0 }
 0x2da   : > { %v2161_v30 = vsel %vm2160_vm4, %v2157_v28, -inf }
 0x2db   : > { %2162 = vmax.xlane.f32.xlu0 %v2161_v30 }
 0x368   : > { %v2163_v31 = vpop.xlane.xlu0 %2162 }
 0x369   : > { %v2164_v32 = vsub.f32 %v2157_v28, %v2163_v31 }
 0x36b   : > { %v2165_v33 = vmul.f32 1.442695, %v2164_v32 }
 0x36d   : > { %3370 = vpow2.f32 %v2165_v33 }
 0x377   : > { %v3371_v35 = vpop.eup %3370 }
 0x378   : > { %v2167_v36 = vsel %vm2160_vm4, %v3371_v35, 0.0 }
 0x379   : > { %2168 = vadd.xlane.f32.xlu0 %v2167_v36 }
 0x406   : > { %v2169_v37 = vpop.xlane.xlu0 %2168 }
 0x407   : > { %3372 = vrcp.f32 %v2169_v37 }
 0x411   : > { %v3373_v52 = vpop.eup %3372 }
 0x412   : > { %v2171_v38 = vmul.f32 %v3373_v52, %v3371_v35 }
 0x414   : > { %2172 = vst.msk [vmem:[#allocation3] sm:$0x3] %vm2160_vm4, %v2171_v38 }
 0x415 PF: > { %p3346_p7 = scmp.eq.s32.totalorder %s3454_s19, 7  ;;  %s3417_s17 = smov [#allocation3]  }
 0x416   : > { %s2180_s20 = sshll.u32 %s3417_s17, 4  ;;  %s2181_s20 = int_to_ptr.vmem [resolvable:$true] %s2180_s20 }
 0x417   : > { %s3374_s21 = scalar_lea.vmem %s2181_s20, 32  ;;  %p3381_p11 = scmp.lt.s32.totalorder %s2181_s20, %s2181_s20 }
 0x418   : > { %p3375_p8 = scmp.ne.s32.totalorder %s2181_s20, %s3374_s21  ;;  %p3382_p12 = scmp.lt.s32.totalorder %s3374_s21, %s3374_s21 }
 0x41a   : > { %p3376_p9 = pnand %p3375_p8, %p3346_p7  ;;  %p3383_p13 = por %p3382_p12, %p3381_p11 }
 0x41c   : > { %p3377_p10 = pneg %p3376_p9 }
 0x41e   : > { %p3384_p0 = pnand %p3383_p13, %p3377_p10 }
 0x420   : > { %3387 = shalt.err (!%p3384_p0)
}
 0x421   : > { %s3388_s24 = scalar_lea.hbm %s4132_s5, 32 }
 0x422   : > { %p3389_p1 = scmp.ne.s32.totalorder %s4132_s5, %s3388_s24  ;;  %p3394_p4 = scmp.lt.u32.totalorder %s3388_s24, %s4132_s5 }
 0x424   : > { %p3390_p2 = pnand %p3389_p1, %p3346_p7 }
 0x426   : > { %p3391_p3 = pneg %p3390_p2 }
 0x428   : > { %p3396_p5 = pnand %p3394_p4, %p3391_p3 }
 0x42a   : > { %3399 = shalt.err (!%p3396_p5)
}
 0x42b   : > { %3343 = dma.vmem_to_hbm [thread:$0]  (%p3346_p7), %s2181_s20, 32, %s4132_s5, [#allocation4]  }
 0x42c   : > { %3405 = dma.done.wait (%p3346_p7), [#allocation4], 32  }
 0x42d   : > { %3407 = vsyncadd (%p3346_p7), [#allocation4], 4294967264 }
 0x42e PF: > { %s16_s18 = sadd.s32 1, %s3410_s18  }
 0x42f   : > { %p13_p6 = scmp.ge.s32.totalorder %s16_s18, 10  }
 0x431   :  { %15 = sbr.rel (!%p13_p6) target bundleno = 1 (0x1), region = 78 }
 0x438   :  { %2193 = vsyncpa [#allocation4], 1 }
 0x439   :  { %2195 = vsyncpa [#allocation4 + $0x1], 1 }

</bundles_post_ra>
